<compile_context>
chip_gen: v7x
topology: tpu7x:2x2x1
jax: 0.10.0
libtpu: 0.0.40
codegen_flags: <defaults>
</compile_context>

<pallas_src>
import math

import jax
import jax.numpy as jnp
from jax.experimental import pallas as pl
from jax.experimental.pallas import tpu as pltpu

# ---------------- config ----------------
B = 2
C = 3
IMG = 16
PATCH = 4
NUM_PATCHES = (IMG // PATCH) ** 2      # 16
SEQ = NUM_PATCHES + 1                  # 17 (CLS + patches)
SEQP = 24                              # SEQ padded to a multiple of 8 (sublane tile)
CP = C * PATCH * PATCH                 # 48
HIDDEN = 32
HEADS = 4
DH = HIDDEN // HEADS                   # 8
INTER = 64
LAYERS = 2
NUM_LABELS = 10
LN_EPS = 1e-12                         # HF ViT default layer_norm_eps
NEG_INF = -1e9                         # additive mask for padded key positions

# Packed per-layer small-vector operand `lvec` (LAYERS, 8, 3*HIDDEN):
#   row 0: ln1_gamma[:H]   row 1: ln1_beta[:H]   row 2: qkv_bias[:3H]
#   row 3: attn_out_b[:H]  row 4: ln2_gamma[:H]  row 5: ln2_beta[:H]
#   row 6: mlp_in_b[:INTER] row 7: mlp_out_b[:H]
# Packed final small-vector operand `fvec` (3, HIDDEN):
#   row 0: final_ln_gamma  row 1: final_ln_beta  row 2: classifier_bias[:NUM_LABELS]


# ---------------- fully fused forward kernel ----------------
def _vit_fused_kernel(patches_ref, wp_ref, prefix_ref, wqkv_ref, wo_ref,
                      wi_ref, wo2_ref, lvec_ref, fvec_ref, cw_ref, logits_ref):
    f32 = jnp.float32

    def layer_norm(x, g, b):
        mean = jnp.mean(x, axis=-1, keepdims=True)
        xc = x - mean
        var = jnp.mean(xc * xc, axis=-1, keepdims=True)
        return xc * jax.lax.rsqrt(var + LN_EPS) * g + b

    def gelu(x):
        # exact (erf-based) GELU, matching HF ViT hidden_act="gelu"
        return 0.5 * x * (1.0 + jax.lax.erf(x * (1.0 / math.sqrt(2.0))))

    def split_heads(x2d):            # (B*SEQP, HIDDEN) -> (B*HEADS, SEQP, DH)
        x = x2d.reshape(B, SEQP, HEADS, DH)
        x = jnp.transpose(x, (0, 2, 1, 3))
        return x.reshape(B * HEADS, SEQP, DH)

    def merge_heads(x3d):            # (B*HEADS, SEQP, DH) -> (B*SEQP, HIDDEN)
        x = x3d.reshape(B, HEADS, SEQP, DH)
        x = jnp.transpose(x, (0, 2, 1, 3))
        return x.reshape(B * SEQP, HIDDEN)

    # --- patch embedding (conv-as-matmul) + fused CLS/pos additive prefix ---
    pe = jnp.dot(patches_ref[...], wp_ref[...], preferred_element_type=f32)   # (B*SEQP, H)
    h = (pe.reshape(B, SEQP, HIDDEN) + prefix_ref[...]).reshape(B * SEQP, HIDDEN)
    # TODO(synk): all nn.Dropout(0.1) layers are identity in inference mode.

    # additive score bias masking the padded key positions (rows SEQ..SEQP-1)
    key_ids = jax.lax.broadcasted_iota(jnp.int32, (1, SEQP), 1)
    key_bias = jnp.where(key_ids < SEQ, 0.0, NEG_INF).astype(f32)             # (1, SEQP)

    scale = 1.0 / math.sqrt(DH)

    # --- encoder layers (fully unrolled; weights stay resident in VMEM) ---
    for l in range(LAYERS):
        lvec = lvec_ref[l]                                                    # (8, 3H)
        ln1_g, ln1_b = lvec[0:1, :HIDDEN], lvec[1:2, :HIDDEN]
        bqkv = lvec[2:3, :]
        bo = lvec[3:4, :HIDDEN]
        ln2_g, ln2_b = lvec[4:5, :HIDDEN], lvec[5:6, :HIDDEN]
        bi = lvec[6:7, :INTER]
        bo2 = lvec[7:8, :HIDDEN]

        # pre-LN multi-head self-attention (fused QKV, batched over B*HEADS)
        ln1 = layer_norm(h, ln1_g, ln1_b)
        qkv = jnp.dot(ln1, wqkv_ref[l], preferred_element_type=f32) + bqkv    # (B*SEQP, 3H)
        q = split_heads(qkv[:, 0 * HIDDEN:1 * HIDDEN])
        k = split_heads(qkv[:, 1 * HIDDEN:2 * HIDDEN])
        v = split_heads(qkv[:, 2 * HIDDEN:3 * HIDDEN])

        s = jnp.einsum("bqd,bkd->bqk", q, k, preferred_element_type=f32) * scale
        s = s + key_bias                                                      # mask pad keys
        s = s - jnp.max(s, axis=-1, keepdims=True)
        p = jnp.exp(s)
        p = p / jnp.sum(p, axis=-1, keepdims=True)                            # exact softmax
        ctx = jnp.einsum("bqk,bkd->bqd", p, v, preferred_element_type=f32)    # (B*H, SEQP, DH)

        attn = jnp.dot(merge_heads(ctx), wo_ref[l], preferred_element_type=f32) + bo
        h = h + attn                                                          # residual 1

        # pre-LN MLP
        ln2 = layer_norm(h, ln2_g, ln2_b)
        mid = gelu(jnp.dot(ln2, wi_ref[l], preferred_element_type=f32) + bi)  # (B*SEQP, I)
        h = h + jnp.dot(mid, wo2_ref[l], preferred_element_type=f32) + bo2    # residual 2

    # --- final LN (CLS rows only) -> classifier; dropout is identity in eval ---
    fvec = fvec_ref[...]
    cls_tok = h.reshape(B, SEQP, HIDDEN)[:, 0, :]                             # (B, H)
    cls_ln = layer_norm(cls_tok, fvec[0:1, :], fvec[1:2, :])
    logits = (jnp.dot(cls_ln, cw_ref[...], preferred_element_type=f32)
              + fvec[2:3, :NUM_LABELS])                                       # (B, NUM_LABELS)
    logits_ref[...] = logits.astype(logits_ref.dtype)


# ---------------- parameters (deterministic, synthetic) ----------------
def init_params(key):
    def nrm(k, shape, scale=0.02):
        return scale * jax.random.normal(k, shape, dtype=jnp.float32)

    keys = iter(jax.random.split(key, 64))

    # conv weight generated in PyTorch layout (out_ch, in_ch, kh, kw), then
    # converted once to matmul layout (C*P*P, HIDDEN) with (c, kh, kw) ordering.
    pw = nrm(next(keys), (HIDDEN, C, PATCH, PATCH))
    patch_w = pw.reshape(HIDDEN, CP).T                                        # (CP, H)
    patch_b = jnp.zeros((HIDDEN,), jnp.float32)
    cls_tok = nrm(next(keys), (1, HIDDEN))
    pos = nrm(next(keys), (SEQ, HIDDEN))

    # Additive prefix: row0 = cls + pos[0]; rows 1..SEQ-1 = pos + patch_bias;
    # padded rows stay zero (the padded patch rows are also zero).
    prefix = jnp.zeros((SEQP, HIDDEN), jnp.float32)
    prefix = prefix.at[0].set(cls_tok[0] + pos[0])
    prefix = prefix.at[1:SEQ].set(pos[1:] + patch_b)

    wqkv, wo, wi, wo2, lvec = [], [], [], [], []
    for _ in range(LAYERS):
        wq = nrm(next(keys), (HIDDEN, HIDDEN))
        wk = nrm(next(keys), (HIDDEN, HIDDEN))
        wv = nrm(next(keys), (HIDDEN, HIDDEN))
        wqkv.append(jnp.concatenate([wq, wk, wv], axis=1))                    # (H, 3H)
        wo.append(nrm(next(keys), (HIDDEN, HIDDEN)))
        wi.append(nrm(next(keys), (HIDDEN, INTER)))
        wo2.append(nrm(next(keys), (INTER, HIDDEN)))

        v = jnp.zeros((8, 3 * HIDDEN), jnp.float32)
        v = v.at[0, :HIDDEN].set(1.0)      # ln1_gamma = 1
        # row1 ln1_beta, row2 qkv_bias, row3 attn_out_bias stay 0
        v = v.at[4, :HIDDEN].set(1.0)      # ln2_gamma = 1
        # row5 ln2_beta, row6 mlp_in_bias, row7 mlp_out_bias stay 0
        lvec.append(v)

    fvec = jnp.zeros((3, HIDDEN), jnp.float32)
    fvec = fvec.at[0].set(1.0)             # final LN gamma = 1; beta / cls_b = 0
    cls_w = nrm(next(keys), (HIDDEN, NUM_LABELS))

    return {
        "patch_w": patch_w, "prefix": prefix,
        "wqkv": jnp.stack(wqkv), "wo": jnp.stack(wo),
        "wi": jnp.stack(wi), "wo2": jnp.stack(wo2),
        "lvec": jnp.stack(lvec), "fvec": fvec, "cls_w": cls_w,
    }


# ---------------- forward pass (single pallas_call) ----------------
def vit_for_image_classification(params, pixel_values):
    """Equivalent of ViTForImageClassification.forward(pixel_values) -> logits."""
    B_, C_, H_, W_ = pixel_values.shape
    assert (B_, C_, H_, W_) == (B, C, IMG, IMG), (B_, C_, H_, W_)
    gh, gw = H_ // PATCH, W_ // PATCH

    # Conv2d(stride=patch) == patch-flatten + matmul; flattening is cheap input
    # glue, the matmul itself runs inside the fused kernel.  A zero CLS row is
    # prepended and the sequence is zero-padded to SEQP (multiple of 8) so every
    # per-image block in the kernel is sublane-tile aligned.
    x = pixel_values.reshape(B_, C_, gh, PATCH, gw, PATCH)
    x = jnp.transpose(x, (0, 2, 4, 1, 3, 5))                 # (B, gh, gw, C, p, p)
    patches = x.reshape(B_, gh * gw, CP)                     # (B, NP, C*P*P)
    patches = jnp.pad(patches, ((0, 0), (1, SEQP - SEQ), (0, 0)))
    patches = patches.reshape(B_ * SEQP, CP)                 # (B*SEQP, C*P*P)

    args = (patches, params["patch_w"], params["prefix"], params["wqkv"],
            params["wo"], params["wi"], params["wo2"], params["lvec"],
            params["fvec"], params["cls_w"])

    # No grid: every operand (whole model < 1 MB) is pinned to VMEM for the
    # single invocation; all intermediates stay on-chip.
    return pl.pallas_call(
        _vit_fused_kernel,
        out_shape=jax.ShapeDtypeStruct((B_, NUM_LABELS), jnp.float32),
        in_specs=[pl.BlockSpec(memory_space=pltpu.MemorySpace.VMEM)
                  for _ in args],
        out_specs=pl.BlockSpec(memory_space=pltpu.MemorySpace.VMEM),
        compiler_params=pltpu.CompilerParams(
            vmem_limit_bytes=32 * 1024 * 1024),
    )(*args)


if __name__ == "__main__":
    key = jax.random.PRNGKey(0)
    k_param, k_input = jax.random.split(key)
    params = init_params(k_param)
    pixel_values = jax.random.normal(k_input, (B, C, IMG, IMG), dtype=jnp.float32)

    logits = jax.jit(vit_for_image_classification)(params, pixel_values)
    logits = jax.block_until_ready(logits)

    assert logits.shape == (B, NUM_LABELS), logits.shape
    assert bool(jnp.all(jnp.isfinite(logits)))
    print("KERNEL_OK")
</pallas_src>

<mosaic_0001>
module attributes {stable_mosaic.version = 11 : i64} {
  func.func @_vit_fused_kernel(%arg0: memref<48x48xf32, #tpu.memory_space<vmem>>, %arg1: memref<48x32xf32, #tpu.memory_space<vmem>>, %arg2: memref<24x32xf32, #tpu.memory_space<vmem>>, %arg3: memref<2x32x96xf32, #tpu.memory_space<vmem>>, %arg4: memref<2x32x32xf32, #tpu.memory_space<vmem>>, %arg5: memref<2x32x64xf32, #tpu.memory_space<vmem>>, %arg6: memref<2x64x32xf32, #tpu.memory_space<vmem>>, %arg7: memref<2x8x96xf32, #tpu.memory_space<vmem>>, %arg8: memref<3x32xf32, #tpu.memory_space<vmem>>, %arg9: memref<32x10xf32, #tpu.memory_space<vmem>>, %arg10: memref<2x10xf32, #tpu.memory_space<vmem>>) attributes {dimension_semantics = [], scalar_prefetch = 0 : i64, scratch_operands = 0 : i64, tpu.core_type = #tpu.core_type<tc>} {
    %c0 = arith.constant 0 : index
    %c0_0 = arith.constant 0 : index
    %0 = vector.load %arg0[%c0, %c0_0] : memref<48x48xf32, #tpu.memory_space<vmem>>, vector<48x48xf32>
    %c0_1 = arith.constant 0 : index
    %c0_2 = arith.constant 0 : index
    %1 = vector.load %arg1[%c0_1, %c0_2] : memref<48x32xf32, #tpu.memory_space<vmem>>, vector<48x32xf32>
    %cst = arith.constant dense<0.000000e+00> : vector<48x32xf32>
    %2 = tpu.matmul %0, %1, %cst {dimension_numbers = #tpu.dot_dimension_numbers<[1], [0], [0], [1], [0, 0, 1, 1], [], []>} : vector<48x48xf32>, vector<48x32xf32>, vector<48x32xf32> -> vector<48x32xf32>
    %3 = vector.shape_cast %2 : vector<48x32xf32> to vector<2x24x32xf32>
    %c0_3 = arith.constant 0 : index
    %c0_4 = arith.constant 0 : index
    %4 = vector.load %arg2[%c0_3, %c0_4] : memref<24x32xf32, #tpu.memory_space<vmem>>, vector<24x32xf32>
    %5 = vector.shape_cast %4 : vector<24x32xf32> to vector<1x24x32xf32>
    %6 = vector.broadcast %5 : vector<1x24x32xf32> to vector<2x24x32xf32>
    %7 = arith.addf %3, %6 : vector<2x24x32xf32>
    %8 = vector.shape_cast %7 : vector<2x24x32xf32> to vector<48x32xf32>
    %9 = tpu.iota {dimensions = array<i32: 1>} : vector<1x24xi32>
    %c17_i32 = arith.constant 17 : i32
    %10 = vector.broadcast %c17_i32 : i32 to vector<1x24xi32>
    %11 = arith.cmpi slt, %9, %10 : vector<1x24xi32>
    %cst_5 = arith.constant 0.000000e+00 : f32
    %cst_6 = arith.constant -1.000000e+09 : f32
    %12 = vector.broadcast %cst_5 : f32 to vector<1x24xf32>
    %13 = vector.broadcast %cst_6 : f32 to vector<1x24xf32>
    %14 = arith.select %11, %12, %13 : vector<1x24xi1>, vector<1x24xf32>
    %c0_7 = arith.constant 0 : index
    %c0_8 = arith.constant 0 : index
    %c0_9 = arith.constant 0 : index
    %15 = vector.load %arg7[%c0_7, %c0_8, %c0_9] : memref<2x8x96xf32, #tpu.memory_space<vmem>>, vector<1x8x96xf32>
    %16 = vector.shape_cast %15 : vector<1x8x96xf32> to vector<8x96xf32>
    %17 = vector.extract_strided_slice %16 {offsets = [0, 0], sizes = [1, 32], strides = [1, 1]} : vector<8x96xf32> to vector<1x32xf32>
    %18 = vector.extract_strided_slice %16 {offsets = [1, 0], sizes = [1, 32], strides = [1, 1]} : vector<8x96xf32> to vector<1x32xf32>
    %19 = vector.extract_strided_slice %16 {offsets = [2, 0], sizes = [1, 96], strides = [1, 1]} : vector<8x96xf32> to vector<1x96xf32>
    %20 = vector.extract_strided_slice %16 {offsets = [3, 0], sizes = [1, 32], strides = [1, 1]} : vector<8x96xf32> to vector<1x32xf32>
    %21 = vector.extract_strided_slice %16 {offsets = [4, 0], sizes = [1, 32], strides = [1, 1]} : vector<8x96xf32> to vector<1x32xf32>
    %22 = vector.extract_strided_slice %16 {offsets = [5, 0], sizes = [1, 32], strides = [1, 1]} : vector<8x96xf32> to vector<1x32xf32>
    %23 = vector.extract_strided_slice %16 {offsets = [6, 0], sizes = [1, 64], strides = [1, 1]} : vector<8x96xf32> to vector<1x64xf32>
    %24 = vector.extract_strided_slice %16 {offsets = [7, 0], sizes = [1, 32], strides = [1, 1]} : vector<8x96xf32> to vector<1x32xf32>
    %cst_10 = arith.constant dense<0.000000e+00> : vector<48xf32>
    %25 = vector.multi_reduction <add>, %8, %cst_10 [1] : vector<48x32xf32> to vector<48xf32>
    %26 = vector.shape_cast %25 : vector<48xf32> to vector<48x1xf32>
    %cst_11 = arith.constant 3.200000e+01 : f32
    %27 = vector.broadcast %cst_11 : f32 to vector<48x1xf32>
    %28 = arith.divf %26, %27 : vector<48x1xf32>
    %29 = vector.broadcast %28 : vector<48x1xf32> to vector<48x32xf32>
    %30 = arith.subf %8, %29 : vector<48x32xf32>
    %31 = arith.mulf %30, %30 : vector<48x32xf32>
    %cst_12 = arith.constant dense<0.000000e+00> : vector<48xf32>
    %32 = vector.multi_reduction <add>, %31, %cst_12 [1] : vector<48x32xf32> to vector<48xf32>
    %33 = vector.shape_cast %32 : vector<48xf32> to vector<48x1xf32>
    %cst_13 = arith.constant 3.200000e+01 : f32
    %34 = vector.broadcast %cst_13 : f32 to vector<48x1xf32>
    %35 = arith.divf %33, %34 : vector<48x1xf32>
    %cst_14 = arith.constant 9.99999996E-13 : f32
    %36 = vector.broadcast %cst_14 : f32 to vector<48x1xf32>
    %37 = arith.addf %35, %36 : vector<48x1xf32>
    %38 = math.rsqrt %37 : vector<48x1xf32>
    %39 = vector.broadcast %38 : vector<48x1xf32> to vector<48x32xf32>
    %40 = arith.mulf %30, %39 : vector<48x32xf32>
    %41 = vector.broadcast %17 : vector<1x32xf32> to vector<48x32xf32>
    %42 = arith.mulf %40, %41 : vector<48x32xf32>
    %43 = vector.broadcast %18 : vector<1x32xf32> to vector<48x32xf32>
    %44 = arith.addf %42, %43 : vector<48x32xf32>
    %c0_15 = arith.constant 0 : index
    %c0_16 = arith.constant 0 : index
    %c0_17 = arith.constant 0 : index
    %45 = vector.load %arg3[%c0_15, %c0_16, %c0_17] : memref<2x32x96xf32, #tpu.memory_space<vmem>>, vector<1x32x96xf32>
    %46 = vector.shape_cast %45 : vector<1x32x96xf32> to vector<32x96xf32>
    %cst_18 = arith.constant dense<0.000000e+00> : vector<48x96xf32>
    %47 = tpu.matmul %44, %46, %cst_18 {dimension_numbers = #tpu.dot_dimension_numbers<[1], [0], [0], [1], [0, 0, 1, 1], [], []>} : vector<48x32xf32>, vector<32x96xf32>, vector<48x96xf32> -> vector<48x96xf32>
    %48 = vector.broadcast %19 : vector<1x96xf32> to vector<48x96xf32>
    %49 = arith.addf %47, %48 : vector<48x96xf32>
    %50 = vector.extract_strided_slice %49 {offsets = [0, 0], sizes = [48, 32], strides = [1, 1]} : vector<48x96xf32> to vector<48x32xf32>
    %51 = vector.shape_cast %50 : vector<48x32xf32> to vector<2x24x4x8xf32>
    %52 = tpu.transpose %51, [0, 2, 1, 3] : vector<2x24x4x8xf32> -> vector<2x4x24x8xf32>
    %53 = vector.shape_cast %52 : vector<2x4x24x8xf32> to vector<8x24x8xf32>
    %54 = vector.extract_strided_slice %49 {offsets = [0, 32], sizes = [48, 32], strides = [1, 1]} : vector<48x96xf32> to vector<48x32xf32>
    %55 = vector.shape_cast %54 : vector<48x32xf32> to vector<2x24x4x8xf32>
    %56 = tpu.transpose %55, [0, 2, 1, 3] : vector<2x24x4x8xf32> -> vector<2x4x24x8xf32>
    %57 = vector.shape_cast %56 : vector<2x4x24x8xf32> to vector<8x24x8xf32>
    %58 = vector.extract_strided_slice %49 {offsets = [0, 64], sizes = [48, 32], strides = [1, 1]} : vector<48x96xf32> to vector<48x32xf32>
    %59 = vector.shape_cast %58 : vector<48x32xf32> to vector<2x24x4x8xf32>
    %60 = tpu.transpose %59, [0, 2, 1, 3] : vector<2x24x4x8xf32> -> vector<2x4x24x8xf32>
    %61 = vector.shape_cast %60 : vector<2x4x24x8xf32> to vector<8x24x8xf32>
    "tpu.trace_start"() <{level = 10 : i32, message = "bqd,bkd->bqk"}> : () -> ()
    %cst_19 = arith.constant dense<0.000000e+00> : vector<8x24x24xf32>
    %62 = tpu.matmul %53, %57, %cst_19 {dimension_numbers = #tpu.dot_dimension_numbers<[2], [2], [1], [1], [0, 0, 0, 1, 1, 1], [0], [0]>} : vector<8x24x8xf32>, vector<8x24x8xf32>, vector<8x24x24xf32> -> vector<8x24x24xf32>
    "tpu.trace_stop"() : () -> ()
    %cst_20 = arith.constant 0.353553385 : f32
    %63 = vector.broadcast %cst_20 : f32 to vector<8x24x24xf32>
    %64 = arith.mulf %62, %63 : vector<8x24x24xf32>
    %65 = vector.shape_cast %14 : vector<1x24xf32> to vector<1x1x24xf32>
    %66 = vector.broadcast %65 : vector<1x1x24xf32> to vector<8x24x24xf32>
    %67 = arith.addf %64, %66 : vector<8x24x24xf32>
    %cst_21 = arith.constant dense<0xFF800000> : vector<8x24xf32>
    %68 = vector.multi_reduction <maximumf>, %67, %cst_21 [2] : vector<8x24x24xf32> to vector<8x24xf32>
    %69 = vector.shape_cast %68 : vector<8x24xf32> to vector<8x24x1xf32>
    %70 = vector.broadcast %69 : vector<8x24x1xf32> to vector<8x24x24xf32>
    %71 = arith.subf %67, %70 : vector<8x24x24xf32>
    %72 = math.exp %71 : vector<8x24x24xf32>
    %cst_22 = arith.constant dense<0.000000e+00> : vector<8x24xf32>
    %73 = vector.multi_reduction <add>, %72, %cst_22 [2] : vector<8x24x24xf32> to vector<8x24xf32>
    %74 = vector.shape_cast %73 : vector<8x24xf32> to vector<8x24x1xf32>
    %75 = vector.broadcast %74 : vector<8x24x1xf32> to vector<8x24x24xf32>
    %76 = arith.divf %72, %75 : vector<8x24x24xf32>
    "tpu.trace_start"() <{level = 10 : i32, message = "bqk,bkd->bqd"}> : () -> ()
    %cst_23 = arith.constant dense<0.000000e+00> : vector<8x24x8xf32>
    %77 = tpu.matmul %76, %61, %cst_23 {dimension_numbers = #tpu.dot_dimension_numbers<[2], [1], [1], [2], [0, 0, 0, 1, 1, 2], [0], [0]>} : vector<8x24x24xf32>, vector<8x24x8xf32>, vector<8x24x8xf32> -> vector<8x24x8xf32>
    "tpu.trace_stop"() : () -> ()
    %78 = vector.shape_cast %77 : vector<8x24x8xf32> to vector<2x4x24x8xf32>
    %79 = tpu.transpose %78, [0, 2, 1, 3] : vector<2x4x24x8xf32> -> vector<2x24x4x8xf32>
    %80 = vector.shape_cast %79 : vector<2x24x4x8xf32> to vector<48x32xf32>
    %c0_24 = arith.constant 0 : index
    %c0_25 = arith.constant 0 : index
    %c0_26 = arith.constant 0 : index
    %81 = vector.load %arg4[%c0_24, %c0_25, %c0_26] : memref<2x32x32xf32, #tpu.memory_space<vmem>>, vector<1x32x32xf32>
    %82 = vector.shape_cast %81 : vector<1x32x32xf32> to vector<32x32xf32>
    %cst_27 = arith.constant dense<0.000000e+00> : vector<48x32xf32>
    %83 = tpu.matmul %80, %82, %cst_27 {dimension_numbers = #tpu.dot_dimension_numbers<[1], [0], [0], [1], [0, 0, 1, 1], [], []>} : vector<48x32xf32>, vector<32x32xf32>, vector<48x32xf32> -> vector<48x32xf32>
    %84 = vector.broadcast %20 : vector<1x32xf32> to vector<48x32xf32>
    %85 = arith.addf %83, %84 : vector<48x32xf32>
    %86 = arith.addf %8, %85 : vector<48x32xf32>
    %cst_28 = arith.constant dense<0.000000e+00> : vector<48xf32>
    %87 = vector.multi_reduction <add>, %86, %cst_28 [1] : vector<48x32xf32> to vector<48xf32>
    %88 = vector.shape_cast %87 : vector<48xf32> to vector<48x1xf32>
    %cst_29 = arith.constant 3.200000e+01 : f32
    %89 = vector.broadcast %cst_29 : f32 to vector<48x1xf32>
    %90 = arith.divf %88, %89 : vector<48x1xf32>
    %91 = vector.broadcast %90 : vector<48x1xf32> to vector<48x32xf32>
    %92 = arith.subf %86, %91 : vector<48x32xf32>
    %93 = arith.mulf %92, %92 : vector<48x32xf32>
    %cst_30 = arith.constant dense<0.000000e+00> : vector<48xf32>
    %94 = vector.multi_reduction <add>, %93, %cst_30 [1] : vector<48x32xf32> to vector<48xf32>
    %95 = vector.shape_cast %94 : vector<48xf32> to vector<48x1xf32>
    %cst_31 = arith.constant 3.200000e+01 : f32
    %96 = vector.broadcast %cst_31 : f32 to vector<48x1xf32>
    %97 = arith.divf %95, %96 : vector<48x1xf32>
    %cst_32 = arith.constant 9.99999996E-13 : f32
    %98 = vector.broadcast %cst_32 : f32 to vector<48x1xf32>
    %99 = arith.addf %97, %98 : vector<48x1xf32>
    %100 = math.rsqrt %99 : vector<48x1xf32>
    %101 = vector.broadcast %100 : vector<48x1xf32> to vector<48x32xf32>
    %102 = arith.mulf %92, %101 : vector<48x32xf32>
    %103 = vector.broadcast %21 : vector<1x32xf32> to vector<48x32xf32>
    %104 = arith.mulf %102, %103 : vector<48x32xf32>
    %105 = vector.broadcast %22 : vector<1x32xf32> to vector<48x32xf32>
    %106 = arith.addf %104, %105 : vector<48x32xf32>
    %c0_33 = arith.constant 0 : index
    %c0_34 = arith.constant 0 : index
    %c0_35 = arith.constant 0 : index
    %107 = vector.load %arg5[%c0_33, %c0_34, %c0_35] : memref<2x32x64xf32, #tpu.memory_space<vmem>>, vector<1x32x64xf32>
    %108 = vector.shape_cast %107 : vector<1x32x64xf32> to vector<32x64xf32>
    %cst_36 = arith.constant dense<0.000000e+00> : vector<48x64xf32>
    %109 = tpu.matmul %106, %108, %cst_36 {dimension_numbers = #tpu.dot_dimension_numbers<[1], [0], [0], [1], [0, 0, 1, 1], [], []>} : vector<48x32xf32>, vector<32x64xf32>, vector<48x64xf32> -> vector<48x64xf32>
    %110 = vector.broadcast %23 : vector<1x64xf32> to vector<48x64xf32>
    %111 = arith.addf %109, %110 : vector<48x64xf32>
    %cst_37 = arith.constant 5.000000e-01 : f32
    %112 = vector.broadcast %cst_37 : f32 to vector<48x64xf32>
    %113 = arith.mulf %112, %111 : vector<48x64xf32>
    %cst_38 = arith.constant 0.707106769 : f32
    %114 = vector.broadcast %cst_38 : f32 to vector<48x64xf32>
    %115 = arith.mulf %111, %114 : vector<48x64xf32>
    %116 = math.erf %115 : vector<48x64xf32>
    %cst_39 = arith.constant 1.000000e+00 : f32
    %117 = vector.broadcast %cst_39 : f32 to vector<48x64xf32>
    %118 = arith.addf %117, %116 : vector<48x64xf32>
    %119 = arith.mulf %113, %118 : vector<48x64xf32>
    %c0_40 = arith.constant 0 : index
    %c0_41 = arith.constant 0 : index
    %c0_42 = arith.constant 0 : index
    %120 = vector.load %arg6[%c0_40, %c0_41, %c0_42] : memref<2x64x32xf32, #tpu.memory_space<vmem>>, vector<1x64x32xf32>
    %121 = vector.shape_cast %120 : vector<1x64x32xf32> to vector<64x32xf32>
    %cst_43 = arith.constant dense<0.000000e+00> : vector<48x32xf32>
    %122 = tpu.matmul %119, %121, %cst_43 {dimension_numbers = #tpu.dot_dimension_numbers<[1], [0], [0], [1], [0, 0, 1, 1], [], []>} : vector<48x64xf32>, vector<64x32xf32>, vector<48x32xf32> -> vector<48x32xf32>
    %123 = arith.addf %86, %122 : vector<48x32xf32>
    %124 = vector.broadcast %24 : vector<1x32xf32> to vector<48x32xf32>
    %125 = arith.addf %123, %124 : vector<48x32xf32>
    %c1 = arith.constant 1 : index
    %c0_44 = arith.constant 0 : index
    %c0_45 = arith.constant 0 : index
    %126 = vector.load %arg7[%c1, %c0_44, %c0_45] : memref<2x8x96xf32, #tpu.memory_space<vmem>>, vector<1x8x96xf32>
    %127 = vector.shape_cast %126 : vector<1x8x96xf32> to vector<8x96xf32>
    %128 = vector.extract_strided_slice %127 {offsets = [0, 0], sizes = [1, 32], strides = [1, 1]} : vector<8x96xf32> to vector<1x32xf32>
    %129 = vector.extract_strided_slice %127 {offsets = [1, 0], sizes = [1, 32], strides = [1, 1]} : vector<8x96xf32> to vector<1x32xf32>
    %130 = vector.extract_strided_slice %127 {offsets = [2, 0], sizes = [1, 96], strides = [1, 1]} : vector<8x96xf32> to vector<1x96xf32>
    %131 = vector.extract_strided_slice %127 {offsets = [3, 0], sizes = [1, 32], strides = [1, 1]} : vector<8x96xf32> to vector<1x32xf32>
    %132 = vector.extract_strided_slice %127 {offsets = [4, 0], sizes = [1, 32], strides = [1, 1]} : vector<8x96xf32> to vector<1x32xf32>
    %133 = vector.extract_strided_slice %127 {offsets = [5, 0], sizes = [1, 32], strides = [1, 1]} : vector<8x96xf32> to vector<1x32xf32>
    %134 = vector.extract_strided_slice %127 {offsets = [6, 0], sizes = [1, 64], strides = [1, 1]} : vector<8x96xf32> to vector<1x64xf32>
    %135 = vector.extract_strided_slice %127 {offsets = [7, 0], sizes = [1, 32], strides = [1, 1]} : vector<8x96xf32> to vector<1x32xf32>
    %cst_46 = arith.constant dense<0.000000e+00> : vector<48xf32>
    %136 = vector.multi_reduction <add>, %125, %cst_46 [1] : vector<48x32xf32> to vector<48xf32>
    %137 = vector.shape_cast %136 : vector<48xf32> to vector<48x1xf32>
    %cst_47 = arith.constant 3.200000e+01 : f32
    %138 = vector.broadcast %cst_47 : f32 to vector<48x1xf32>
    %139 = arith.divf %137, %138 : vector<48x1xf32>
    %140 = vector.broadcast %139 : vector<48x1xf32> to vector<48x32xf32>
    %141 = arith.subf %125, %140 : vector<48x32xf32>
    %142 = arith.mulf %141, %141 : vector<48x32xf32>
    %cst_48 = arith.constant dense<0.000000e+00> : vector<48xf32>
    %143 = vector.multi_reduction <add>, %142, %cst_48 [1] : vector<48x32xf32> to vector<48xf32>
    %144 = vector.shape_cast %143 : vector<48xf32> to vector<48x1xf32>
    %cst_49 = arith.constant 3.200000e+01 : f32
    %145 = vector.broadcast %cst_49 : f32 to vector<48x1xf32>
    %146 = arith.divf %144, %145 : vector<48x1xf32>
    %cst_50 = arith.constant 9.99999996E-13 : f32
    %147 = vector.broadcast %cst_50 : f32 to vector<48x1xf32>
    %148 = arith.addf %146, %147 : vector<48x1xf32>
    %149 = math.rsqrt %148 : vector<48x1xf32>
    %150 = vector.broadcast %149 : vector<48x1xf32> to vector<48x32xf32>
    %151 = arith.mulf %141, %150 : vector<48x32xf32>
    %152 = vector.broadcast %128 : vector<1x32xf32> to vector<48x32xf32>
    %153 = arith.mulf %151, %152 : vector<48x32xf32>
    %154 = vector.broadcast %129 : vector<1x32xf32> to vector<48x32xf32>
    %155 = arith.addf %153, %154 : vector<48x32xf32>
    %c1_51 = arith.constant 1 : index
    %c0_52 = arith.constant 0 : index
    %c0_53 = arith.constant 0 : index
    %156 = vector.load %arg3[%c1_51, %c0_52, %c0_53] : memref<2x32x96xf32, #tpu.memory_space<vmem>>, vector<1x32x96xf32>
    %157 = vector.shape_cast %156 : vector<1x32x96xf32> to vector<32x96xf32>
    %cst_54 = arith.constant dense<0.000000e+00> : vector<48x96xf32>
    %158 = tpu.matmul %155, %157, %cst_54 {dimension_numbers = #tpu.dot_dimension_numbers<[1], [0], [0], [1], [0, 0, 1, 1], [], []>} : vector<48x32xf32>, vector<32x96xf32>, vector<48x96xf32> -> vector<48x96xf32>
    %159 = vector.broadcast %130 : vector<1x96xf32> to vector<48x96xf32>
    %160 = arith.addf %158, %159 : vector<48x96xf32>
    %161 = vector.extract_strided_slice %160 {offsets = [0, 0], sizes = [48, 32], strides = [1, 1]} : vector<48x96xf32> to vector<48x32xf32>
    %162 = vector.shape_cast %161 : vector<48x32xf32> to vector<2x24x4x8xf32>
    %163 = tpu.transpose %162, [0, 2, 1, 3] : vector<2x24x4x8xf32> -> vector<2x4x24x8xf32>
    %164 = vector.shape_cast %163 : vector<2x4x24x8xf32> to vector<8x24x8xf32>
    %165 = vector.extract_strided_slice %160 {offsets = [0, 32], sizes = [48, 32], strides = [1, 1]} : vector<48x96xf32> to vector<48x32xf32>
    %166 = vector.shape_cast %165 : vector<48x32xf32> to vector<2x24x4x8xf32>
    %167 = tpu.transpose %166, [0, 2, 1, 3] : vector<2x24x4x8xf32> -> vector<2x4x24x8xf32>
    %168 = vector.shape_cast %167 : vector<2x4x24x8xf32> to vector<8x24x8xf32>
    %169 = vector.extract_strided_slice %160 {offsets = [0, 64], sizes = [48, 32], strides = [1, 1]} : vector<48x96xf32> to vector<48x32xf32>
    %170 = vector.shape_cast %169 : vector<48x32xf32> to vector<2x24x4x8xf32>
    %171 = tpu.transpose %170, [0, 2, 1, 3] : vector<2x24x4x8xf32> -> vector<2x4x24x8xf32>
    %172 = vector.shape_cast %171 : vector<2x4x24x8xf32> to vector<8x24x8xf32>
    "tpu.trace_start"() <{level = 10 : i32, message = "bqd,bkd->bqk"}> : () -> ()
    %cst_55 = arith.constant dense<0.000000e+00> : vector<8x24x24xf32>
    %173 = tpu.matmul %164, %168, %cst_55 {dimension_numbers = #tpu.dot_dimension_numbers<[2], [2], [1], [1], [0, 0, 0, 1, 1, 1], [0], [0]>} : vector<8x24x8xf32>, vector<8x24x8xf32>, vector<8x24x24xf32> -> vector<8x24x24xf32>
    "tpu.trace_stop"() : () -> ()
    %cst_56 = arith.constant 0.353553385 : f32
    %174 = vector.broadcast %cst_56 : f32 to vector<8x24x24xf32>
    %175 = arith.mulf %173, %174 : vector<8x24x24xf32>
    %176 = vector.shape_cast %14 : vector<1x24xf32> to vector<1x1x24xf32>
    %177 = vector.broadcast %176 : vector<1x1x24xf32> to vector<8x24x24xf32>
    %178 = arith.addf %175, %177 : vector<8x24x24xf32>
    %cst_57 = arith.constant dense<0xFF800000> : vector<8x24xf32>
    %179 = vector.multi_reduction <maximumf>, %178, %cst_57 [2] : vector<8x24x24xf32> to vector<8x24xf32>
    %180 = vector.shape_cast %179 : vector<8x24xf32> to vector<8x24x1xf32>
    %181 = vector.broadcast %180 : vector<8x24x1xf32> to vector<8x24x24xf32>
    %182 = arith.subf %178, %181 : vector<8x24x24xf32>
    %183 = math.exp %182 : vector<8x24x24xf32>
    %cst_58 = arith.constant dense<0.000000e+00> : vector<8x24xf32>
    %184 = vector.multi_reduction <add>, %183, %cst_58 [2] : vector<8x24x24xf32> to vector<8x24xf32>
    %185 = vector.shape_cast %184 : vector<8x24xf32> to vector<8x24x1xf32>
    %186 = vector.broadcast %185 : vector<8x24x1xf32> to vector<8x24x24xf32>
    %187 = arith.divf %183, %186 : vector<8x24x24xf32>
    "tpu.trace_start"() <{level = 10 : i32, message = "bqk,bkd->bqd"}> : () -> ()
    %cst_59 = arith.constant dense<0.000000e+00> : vector<8x24x8xf32>
    %188 = tpu.matmul %187, %172, %cst_59 {dimension_numbers = #tpu.dot_dimension_numbers<[2], [1], [1], [2], [0, 0, 0, 1, 1, 2], [0], [0]>} : vector<8x24x24xf32>, vector<8x24x8xf32>, vector<8x24x8xf32> -> vector<8x24x8xf32>
    "tpu.trace_stop"() : () -> ()
    %189 = vector.shape_cast %188 : vector<8x24x8xf32> to vector<2x4x24x8xf32>
    %190 = tpu.transpose %189, [0, 2, 1, 3] : vector<2x4x24x8xf32> -> vector<2x24x4x8xf32>
    %191 = vector.shape_cast %190 : vector<2x24x4x8xf32> to vector<48x32xf32>
    %c1_60 = arith.constant 1 : index
    %c0_61 = arith.constant 0 : index
    %c0_62 = arith.constant 0 : index
    %192 = vector.load %arg4[%c1_60, %c0_61, %c0_62] : memref<2x32x32xf32, #tpu.memory_space<vmem>>, vector<1x32x32xf32>
    %193 = vector.shape_cast %192 : vector<1x32x32xf32> to vector<32x32xf32>
    %cst_63 = arith.constant dense<0.000000e+00> : vector<48x32xf32>
    %194 = tpu.matmul %191, %193, %cst_63 {dimension_numbers = #tpu.dot_dimension_numbers<[1], [0], [0], [1], [0, 0, 1, 1], [], []>} : vector<48x32xf32>, vector<32x32xf32>, vector<48x32xf32> -> vector<48x32xf32>
    %195 = vector.broadcast %131 : vector<1x32xf32> to vector<48x32xf32>
    %196 = arith.addf %194, %195 : vector<48x32xf32>
    %197 = arith.addf %125, %196 : vector<48x32xf32>
    %cst_64 = arith.constant dense<0.000000e+00> : vector<48xf32>
    %198 = vector.multi_reduction <add>, %197, %cst_64 [1] : vector<48x32xf32> to vector<48xf32>
    %199 = vector.shape_cast %198 : vector<48xf32> to vector<48x1xf32>
    %cst_65 = arith.constant 3.200000e+01 : f32
    %200 = vector.broadcast %cst_65 : f32 to vector<48x1xf32>
    %201 = arith.divf %199, %200 : vector<48x1xf32>
    %202 = vector.broadcast %201 : vector<48x1xf32> to vector<48x32xf32>
    %203 = arith.subf %197, %202 : vector<48x32xf32>
    %204 = arith.mulf %203, %203 : vector<48x32xf32>
    %cst_66 = arith.constant dense<0.000000e+00> : vector<48xf32>
    %205 = vector.multi_reduction <add>, %204, %cst_66 [1] : vector<48x32xf32> to vector<48xf32>
    %206 = vector.shape_cast %205 : vector<48xf32> to vector<48x1xf32>
    %cst_67 = arith.constant 3.200000e+01 : f32
    %207 = vector.broadcast %cst_67 : f32 to vector<48x1xf32>
    %208 = arith.divf %206, %207 : vector<48x1xf32>
    %cst_68 = arith.constant 9.99999996E-13 : f32
    %209 = vector.broadcast %cst_68 : f32 to vector<48x1xf32>
    %210 = arith.addf %208, %209 : vector<48x1xf32>
    %211 = math.rsqrt %210 : vector<48x1xf32>
    %212 = vector.broadcast %211 : vector<48x1xf32> to vector<48x32xf32>
    %213 = arith.mulf %203, %212 : vector<48x32xf32>
    %214 = vector.broadcast %132 : vector<1x32xf32> to vector<48x32xf32>
    %215 = arith.mulf %213, %214 : vector<48x32xf32>
    %216 = vector.broadcast %133 : vector<1x32xf32> to vector<48x32xf32>
    %217 = arith.addf %215, %216 : vector<48x32xf32>
    %c1_69 = arith.constant 1 : index
    %c0_70 = arith.constant 0 : index
    %c0_71 = arith.constant 0 : index
    %218 = vector.load %arg5[%c1_69, %c0_70, %c0_71] : memref<2x32x64xf32, #tpu.memory_space<vmem>>, vector<1x32x64xf32>
    %219 = vector.shape_cast %218 : vector<1x32x64xf32> to vector<32x64xf32>
    %cst_72 = arith.constant dense<0.000000e+00> : vector<48x64xf32>
    %220 = tpu.matmul %217, %219, %cst_72 {dimension_numbers = #tpu.dot_dimension_numbers<[1], [0], [0], [1], [0, 0, 1, 1], [], []>} : vector<48x32xf32>, vector<32x64xf32>, vector<48x64xf32> -> vector<48x64xf32>
    %221 = vector.broadcast %134 : vector<1x64xf32> to vector<48x64xf32>
    %222 = arith.addf %220, %221 : vector<48x64xf32>
    %cst_73 = arith.constant 5.000000e-01 : f32
    %223 = vector.broadcast %cst_73 : f32 to vector<48x64xf32>
    %224 = arith.mulf %223, %222 : vector<48x64xf32>
    %cst_74 = arith.constant 0.707106769 : f32
    %225 = vector.broadcast %cst_74 : f32 to vector<48x64xf32>
    %226 = arith.mulf %222, %225 : vector<48x64xf32>
    %227 = math.erf %226 : vector<48x64xf32>
    %cst_75 = arith.constant 1.000000e+00 : f32
    %228 = vector.broadcast %cst_75 : f32 to vector<48x64xf32>
    %229 = arith.addf %228, %227 : vector<48x64xf32>
    %230 = arith.mulf %224, %229 : vector<48x64xf32>
    %c1_76 = arith.constant 1 : index
    %c0_77 = arith.constant 0 : index
    %c0_78 = arith.constant 0 : index
    %231 = vector.load %arg6[%c1_76, %c0_77, %c0_78] : memref<2x64x32xf32, #tpu.memory_space<vmem>>, vector<1x64x32xf32>
    %232 = vector.shape_cast %231 : vector<1x64x32xf32> to vector<64x32xf32>
    %cst_79 = arith.constant dense<0.000000e+00> : vector<48x32xf32>
    %233 = tpu.matmul %230, %232, %cst_79 {dimension_numbers = #tpu.dot_dimension_numbers<[1], [0], [0], [1], [0, 0, 1, 1], [], []>} : vector<48x64xf32>, vector<64x32xf32>, vector<48x32xf32> -> vector<48x32xf32>
    %234 = arith.addf %197, %233 : vector<48x32xf32>
    %235 = vector.broadcast %135 : vector<1x32xf32> to vector<48x32xf32>
    %236 = arith.addf %234, %235 : vector<48x32xf32>
    %c0_80 = arith.constant 0 : index
    %c0_81 = arith.constant 0 : index
    %237 = vector.load %arg8[%c0_80, %c0_81] : memref<3x32xf32, #tpu.memory_space<vmem>>, vector<3x32xf32>
    %238 = vector.shape_cast %236 : vector<48x32xf32> to vector<2x24x32xf32>
    %239 = vector.extract_strided_slice %238 {offsets = [0, 0, 0], sizes = [2, 1, 32], strides = [1, 1, 1]} : vector<2x24x32xf32> to vector<2x1x32xf32>
    %240 = vector.shape_cast %239 : vector<2x1x32xf32> to vector<2x32xf32>
    %241 = vector.extract_strided_slice %237 {offsets = [0, 0], sizes = [1, 32], strides = [1, 1]} : vector<3x32xf32> to vector<1x32xf32>
    %242 = vector.extract_strided_slice %237 {offsets = [1, 0], sizes = [1, 32], strides = [1, 1]} : vector<3x32xf32> to vector<1x32xf32>
    %cst_82 = arith.constant dense<0.000000e+00> : vector<2xf32>
    %243 = vector.multi_reduction <add>, %240, %cst_82 [1] : vector<2x32xf32> to vector<2xf32>
    %244 = vector.shape_cast %243 : vector<2xf32> to vector<2x1xf32>
    %cst_83 = arith.constant 3.200000e+01 : f32
    %245 = vector.broadcast %cst_83 : f32 to vector<2x1xf32>
    %246 = arith.divf %244, %245 : vector<2x1xf32>
    %247 = vector.broadcast %246 : vector<2x1xf32> to vector<2x32xf32>
    %248 = arith.subf %240, %247 : vector<2x32xf32>
    %249 = arith.mulf %248, %248 : vector<2x32xf32>
    %cst_84 = arith.constant dense<0.000000e+00> : vector<2xf32>
    %250 = vector.multi_reduction <add>, %249, %cst_84 [1] : vector<2x32xf32> to vector<2xf32>
    %251 = vector.shape_cast %250 : vector<2xf32> to vector<2x1xf32>
    %cst_85 = arith.constant 3.200000e+01 : f32
    %252 = vector.broadcast %cst_85 : f32 to vector<2x1xf32>
    %253 = arith.divf %251, %252 : vector<2x1xf32>
    %cst_86 = arith.constant 9.99999996E-13 : f32
    %254 = vector.broadcast %cst_86 : f32 to vector<2x1xf32>
    %255 = arith.addf %253, %254 : vector<2x1xf32>
    %256 = math.rsqrt %255 : vector<2x1xf32>
    %257 = vector.broadcast %256 : vector<2x1xf32> to vector<2x32xf32>
    %258 = arith.mulf %248, %257 : vector<2x32xf32>
    %259 = vector.broadcast %241 : vector<1x32xf32> to vector<2x32xf32>
    %260 = arith.mulf %258, %259 : vector<2x32xf32>
    %261 = vector.broadcast %242 : vector<1x32xf32> to vector<2x32xf32>
    %262 = arith.addf %260, %261 : vector<2x32xf32>
    %c0_87 = arith.constant 0 : index
    %c0_88 = arith.constant 0 : index
    %263 = vector.load %arg9[%c0_87, %c0_88] : memref<32x10xf32, #tpu.memory_space<vmem>>, vector<32x10xf32>
    %cst_89 = arith.constant dense<0.000000e+00> : vector<2x10xf32>
    %264 = tpu.matmul %262, %263, %cst_89 {dimension_numbers = #tpu.dot_dimension_numbers<[1], [0], [0], [1], [0, 0, 1, 1], [], []>} : vector<2x32xf32>, vector<32x10xf32>, vector<2x10xf32> -> vector<2x10xf32>
    %265 = vector.extract_strided_slice %237 {offsets = [2, 0], sizes = [1, 10], strides = [1, 1]} : vector<3x32xf32> to vector<1x10xf32>
    %266 = vector.broadcast %265 : vector<1x10xf32> to vector<2x10xf32>
    %267 = arith.addf %264, %266 : vector<2x10xf32>
    %c0_90 = arith.constant 0 : index
    %c0_91 = arith.constant 0 : index
    %268 = vector.load %arg10[%c0_90, %c0_91] : memref<2x10xf32, #tpu.memory_space<vmem>>, vector<2x10xf32>
    tpu.vector_store %arg10[%c0_90, %c0_91], %267 {strides = array<i32>} : memref<2x10xf32, #tpu.memory_space<vmem>>, vector<2x10xf32>,
    return
  }
}

</mosaic_0001>

<bundles_post_ra>
// kernel: vit_for_image_classification.1
= control target key start
LH: loop header
LB: loop body
LE: loop exit
PB: predicated region body
PF: predicated region fallthrough
CT: control target
= control target key end

     0   :  { %vm48_vm0 = vcmask 392192   ;;  %s18475_s0 = inlined_call_operand.vmem [shape: f32[48,48], index: 0, kind: input, shape index: {}]   ;;  %s18476_s1 = inlined_call_operand.vmem [shape: f32[48,32], index: 1, kind: input, shape index: {}]   ;;  %s18477_s2 = inlined_call_operand.vmem [shape: f32[24,32], index: 2, kind: input, shape index: {}]   ;;  %s18478_s3 = inlined_call_operand.vmem [shape: f32[2,32,96], index: 3, kind: input, shape index: {}]   ;;  %s18479_s4 = inlined_call_operand.vmem [shape: f32[2,32,32], index: 4, kind: input, shape index: {}]   ;;  %s18480_s5 = inlined_call_operand.vmem [shape: f32[2,32,64], index: 5, kind: input, shape index: {}]   ;;  %s18481_s6 = inlined_call_operand.vmem [shape: f32[2,64,32], index: 6, kind: input, shape index: {}]   ;;  %s18482_s7 = inlined_call_operand.vmem [shape: f32[2,8,96], index: 7, kind: input, shape index: {}]   ;;  %s18483_s8 = inlined_call_operand.vmem [shape: f32[3,32], index: 8, kind: input, shape index: {}]   ;;  %s18484_s9 = inlined_call_operand.vmem [shape: f32[32,10], index: 9, kind: input, shape index: {}]   ;;  %s18485_s10 = inlined_call_operand.hbm [shape: f32[2,10], index: 10, kind: output, shape index: {}]  }
   0x1   :  { %v42_v0 = vld [vmem:[%s18476_s1] sm:$0xff]  ;;  %v43_v1 = vld [vmem:[%s18476_s1 + $0x8] sm:$0xff]  ;;  %v44_v2 = vld [vmem:[%s18476_s1 + $0x10] sm:$0xff] }
   0x2   :  { %v13798_v3 = vpack.c.bf16 %v43_v1, %v42_v0  ;;  %v45_v4 = vld [vmem:[%s18476_s1 + $0x18] sm:$0xff]  ;;  %v46_v6 = vld [vmem:[%s18476_s1 + $0x20] sm:$0xff]  ;;  %v47_v7 = vld [vmem:[%s18476_s1 + $0x28] sm:$0xff] }
   0x3   :  { %v13802_v5 = vpack.c.bf16 %v45_v4, %v44_v2  ;;  %v36_v8 = vld [vmem:[%s18475_s0] sm:$0xff] }
   0x4   :  { %13799 = vmatprep.subr.bf16.mxu0 %v13798_v3  ;;  %13146 = vmatprep.mubr.msk.f32.mxu0 %vm48_vm0, %v36_v8 }
   0x5   :  { %13801 = vmatpush3.bf16.msra.mxu0 %v13798_v3 }
   0x6   :  { %15 = vsyncpa [#allocation3], 0  ;;  %13803 = vmatprep.subr.bf16.mxu0 %v13802_v5  ;;  %v13806_v9 = vpack.c.bf16 %v47_v7, %v46_v6  ;;  %v37_v10 = vld [vmem:[%s18475_s0 + $0x8] sm:$0xff]  ;;  %v38_v11 = vld [vmem:[%s18475_s0 + $0x10] sm:$0xff]  ;;  %vm176_vm1 = vcmask 261120   ;;  %s14319_s1 = smov 120  }
   0x7   :  { %v39_v12 = vld [vmem:[%s18475_s0 + $0x18] sm:$0xff]  ;;  %v40_v13 = vld [vmem:[%s18475_s0 + $0x20] sm:$0xff]  ;;  %v41_v14 = vld [vmem:[%s18475_s0 + $0x28] sm:$0xff]  ;;  %s14320_s30 = smov 112   ;;  %s14321_s11 = smov 104   ;;  %vm14324_vm2 = vmmov 0  }
   0x8   :  { %v162_v15 = vld [vmem:[%s18477_s2] sm:$0xff]  ;;  %v163_v17 = vld [vmem:[%s18477_s2 + $0x8] sm:$0xff]  ;;  %v164_v20 = vld [vmem:[%s18477_s2 + $0x10] sm:$0xff]  ;;  %s14322_s12 = smov 96   ;;  %s14326_s13 = smov 64   ;;  %vm3049_vm3 = vcmask 64512  }
   0x9   :  { %13805 = vmatpush3.bf16.msra.mxu0 %v13802_v5  ;;  %v276_v2 = vld [vmem:[%s18478_s3] sm:$0xff]  ;;  %v277_v3 = vld [vmem:[%s18478_s3 + $0x8] sm:$0xff]  ;;  %v278_v5 = vld [vmem:[%s18478_s3 + $0x10] sm:$0xff]  ;;  %vm3882_vm6 = vcmask 195584   ;;  %s14330_s14 = smov 16   ;;  %s14331_s15 = smov 8  }
   0xa   :  { %13807 = vmatprep.subr.bf16.mxu0 %v13806_v9  ;;  %v13810_v4 = vpack.c.bf16 %v277_v3, %v276_v2  ;;  %v279_v6 = vld [vmem:[%s18478_s3 + $0x18] sm:$0xff]  ;;  %vm15074_vm4 = vmpackc.low %vm3049_vm3, %vm3049_vm3  ;;  %s14332_s16 = smov 24   ;;  %vm5753_vm7 = vcmask 130048   ;;  %vm6150_vm8 = vcmask 523264   ;;  %vm12376_vm9 = vcmask 1041409  }
   0xb   :  { %v13814_v7 = vpack.c.bf16 %v279_v6, %v278_v5  ;;  %vm12379_vm10 = vcmask 254976   ;;  %vm12505_vm11 = vcmask 74752  }
   0xc   :  { %13811 = vmatprep.subr.bf16.mxu1 %v13810_v4 }
   0xd   :  { %13809 = vmatpush3.bf16.msra.mxu0 %v13806_v9  ;;  %13813 = vmatpush3.bf16.msra.mxu1 %v13810_v4 }
   0xe   :  { %13815 = vmatprep.subr.bf16.mxu1 %v13814_v7 }
  0x10   :  { %13147 = vmatmul.mubr.msk.f32.vlgmr.msra.gmra.mrb[0].mxu0 %vm48_vm0, %v37_v10  ;;  %v18486_v10 = vlaneseq }
  0x11   :  { %13149 = vmatprep.mubr.msk.f32.mxu0 %vm48_vm0, %v38_v11  ;;  %13817 = vmatpush3.bf16.msra.mxu1 %v13814_v7 }
  0x14   :  { %13150 = vmatmul.mubr.msk.f32.gmra.mrb[2].mxu0 %vm48_vm0, %v39_v12 }
  0x15   :  { %13152 = vmatprep.mubr.msk.f32.mxu0 %vm48_vm0, %v40_v13 }
  0x18   :  { %13153 = vmatmul.mubr.msk.f32.gmra.mrb[4].mxu0 %vm48_vm0, %v41_v14 }
  0xe3   :  { %v13148_v16 = vpop.f32.mrb[0].mxu0 }
  0xe4   :  { %v133_v18 = vpop.f32.mrb[1].mxu0  ;;  %v14442_v21 = vadd.f32 %v13148_v16, %v163_v17  ;;  %v14513_v16 = vshrl.u32 %v18486_v10, 7 }
  0xe5   :  { %v14437_v19 = vadd.f32 %v162_v15, %v133_v18 }
  0xe6   :  { %18526 = vst [vmem:[#allocation6_spill] sm:$0xff] %v14442_v21  ;;  %v180_v28 = vsel %vm176_vm1, %v14442_v21, 0.0  ;;  %18531 = vst [vmem:[#allocation11_spill] sm:$0xff] %v14513_v16 }
  0xe7   :  { %18525 = vst [vmem:[#allocation5_spill] sm:$0xff] %v14437_v19  ;;  %v13151_v22 = vpop.f32.mrb[2].mxu0  ;;  %v177_v23 = vsel %vm176_vm1, %v14437_v19, 0.0 }
  0xe8   :  { %178 = vadd.xlane.f32.xlu0 %v177_v23  ;;  %v143_v24 = vpop.f32.mrb[3].mxu0  ;;  %v14446_v25 = vadd.f32 %v13151_v22, %v162_v15 }
  0xe9   :  { %v14448_v26 = vadd.f32 %v164_v20, %v143_v24 }
  0xea   :  { %18527 = vst [vmem:[#allocation7_spill] sm:$0xff] %v14446_v25  ;;  %v186_v33 = vsel %vm176_vm1, %v14446_v25, 0.0 }
  0xeb   :  { %18528 = vst [vmem:[#allocation8_spill] sm:$0xff] %v14448_v26  ;;  %v13154_v27 = vpop.f32.mrb[4].mxu0  ;;  %v183_v29 = vsel %vm176_vm1, %v14448_v26, 0.0 }
  0xec   :  { %181 = vadd.xlane.f32.xlu0 %v180_v28  ;;  %184 = vadd.xlane.f32.xlu1 %v183_v29  ;;  %v153_v30 = vpop.f32.mrb[5].mxu0  ;;  %v14454_v31 = vadd.f32 %v13154_v27, %v164_v20  ;;  %v14516_v27 = vsub.s32 0, %v14513_v16 }
  0xed   :  { %v14456_v32 = vadd.f32 %v163_v17, %v153_v30  ;;  %v175_v30 = vld [vmem:[%s18482_s7] sm:$0xff] }
  0xee   :  { %18529 = vst [vmem:[#allocation9_spill] sm:$0xff] %v14454_v31  ;;  %v192_v35 = vsel %vm176_vm1, %v14454_v31, 0.0  ;;  %18532 = vst [vmem:[#allocation12_spill] sm:$0xff] %v14516_v27 }
  0xef   :  { %18530 = vst [vmem:[#allocation10_spill] sm:$0xff] %v14456_v32  ;;  %v189_v34 = vsel %vm176_vm1, %v14456_v32, 0.0 }
  0xf0   :  { %187 = vadd.xlane.f32.xlu1 %v186_v33  ;;  %190 = vadd.xlane.f32.xlu0 %v189_v34  ;;  %v14522_v34 = vsub.s32 1, %v14513_v16 }
  0xf2   :  { %18533 = vst [vmem:[#allocation13_spill] sm:$0xff] %v14522_v34 }
  0xf4   :  { %193 = vadd.xlane.f32.xlu1 %v192_v35 }
 0x175   :  { %v179_v36 = vpop.xlane.xlu0 %178 }
 0x176   :  { %v196_v37 = vmul.f32 0.03125, %v179_v36  ;;  %v259_v36 = vrot.slane %v175_v30, %v14516_v27 }
 0x178   :  { %v14465_v38 = vsub.f32 %v14437_v19, %v196_v37 }
 0x179   :  { %v182_v39 = vpop.xlane.xlu0 %181  ;;  %v185_v40 = vpop.xlane.xlu1 %184 }
 0x17a   :  { %v197_v41 = vmul.f32 0.03125, %v182_v39  ;;  %v198_v42 = vmul.f32 0.03125, %v185_v40  ;;  %v208_v43 = vmul.f32 %v14465_v38, %v14465_v38 }
 0x17c   :  { %v14470_v44 = vsub.f32 %v14442_v21, %v197_v41  ;;  %v14473_v45 = vsub.f32 %v14448_v26, %v198_v42  ;;  %v214_v46 = vsel %vm176_vm1, %v208_v43, 0.0  ;;  %v269_v41 = vrot.slane %v175_v30, %v14522_v34 }
 0x17d   :  { %v188_v47 = vpop.xlane.xlu1 %187  ;;  %215 = vadd.xlane.f32.xlu0 %v214_v46  ;;  %v191_v48 = vpop.xlane.xlu0 %190 }
 0x17e   :  { %v199_v49 = vmul.f32 0.03125, %v188_v47  ;;  %v200_v50 = vmul.f32 0.03125, %v191_v48  ;;  %v209_v51 = vmul.f32 %v14470_v44, %v14470_v44  ;;  %v210_v52 = vmul.f32 %v14473_v45, %v14473_v45 }
 0x180   :  { %v14481_v53 = vsub.f32 %v14446_v25, %v199_v49  ;;  %v14484_v54 = vsub.f32 %v14456_v32, %v200_v50  ;;  %v217_v55 = vsel %vm176_vm1, %v209_v51, 0.0  ;;  %v220_v56 = vsel %vm176_vm1, %v210_v52, 0.0 }
 0x181   :  { %218 = vadd.xlane.f32.xlu1 %v217_v55  ;;  %v194_v57 = vpop.xlane.xlu1 %193  ;;  %221 = vadd.xlane.f32.xlu0 %v220_v56 }
 0x182   :  { %v201_v58 = vmul.f32 0.03125, %v194_v57  ;;  %v211_v59 = vmul.f32 %v14481_v53, %v14481_v53  ;;  %v212_v60 = vmul.f32 %v14484_v54, %v14484_v54 }
 0x184   :  { %v14493_v61 = vsub.f32 %v14454_v31, %v201_v58  ;;  %v223_v62 = vsel %vm176_vm1, %v211_v59, 0.0  ;;  %v226_v63 = vsel %vm176_vm1, %v212_v60, 0.0 }
 0x185   :  { %224 = vadd.xlane.f32.xlu1 %v223_v62  ;;  %227 = vadd.xlane.f32.xlu0 %v226_v63 }
 0x186   :  { %v213_v0 = vmul.f32 %v14493_v61, %v14493_v61 }
 0x188   :  { %v229_v1 = vsel %vm176_vm1, %v213_v0, 0.0 }
 0x189   :  { %230 = vadd.xlane.f32.xlu1 %v229_v1 }
 0x20a   :  { %v216_v8 = vpop.xlane.xlu0 %215 }
 0x20b   :  { %v232_v9 = vmul.f32 0.03125, %v216_v8 }
 0x20d   :  { %v238_v11 = vadd.f32 1e-12, %v232_v9 }
 0x20e   :  { %v219_v12 = vpop.xlane.xlu1 %218  ;;  %v222_v13 = vpop.xlane.xlu0 %221 }
 0x20f   :  { %14027 = vrsqrt.f32 %v238_v11  ;;  %v233_v14 = vmul.f32 0.03125, %v219_v12  ;;  %v234_v15 = vmul.f32 0.03125, %v222_v13 }
 0x211   :  { %v239_v17 = vadd.f32 1e-12, %v233_v14  ;;  %v240_v18 = vadd.f32 1e-12, %v234_v15 }
 0x212   :  { %v225_v20 = vpop.xlane.xlu1 %224  ;;  %v228_v22 = vpop.xlane.xlu0 %227 }
 0x213   :  { %14029 = vrsqrt.f32 %v239_v17  ;;  %v235_v23 = vmul.f32 0.03125, %v225_v20  ;;  %v236_v24 = vmul.f32 0.03125, %v228_v22 }
 0x214   :  { %14031 = vrsqrt.f32 %v240_v18 }
 0x215   :  { %v241_v28 = vadd.f32 1e-12, %v235_v23  ;;  %v242_v29 = vadd.f32 1e-12, %v236_v24 }
 0x216   :  { %v231_v33 = vpop.xlane.xlu1 %230 }
 0x217   :  { %14033 = vrsqrt.f32 %v241_v28  ;;  %v237_v35 = vmul.f32 0.03125, %v231_v33 }
 0x218   :  { %14035 = vrsqrt.f32 %v242_v29 }
 0x219   :  { %v14028_v37 = vpop.eup %14027  ;;  %v243_v39 = vadd.f32 1e-12, %v237_v35  ;;  %v18487_v35 = vmov 0.0|0.0  }
 0x21a   :  { %v250_v40 = vmul.f32 %v14028_v37, %v14465_v38  ;;  %13818 = vmatprep.subr.bf16.mxu1 %v18487_v35  ;;  %13822 = vmatprep.subr.bf16.mxu0 %v18487_v35 }
 0x21b   :  { %14037 = vrsqrt.f32 %v243_v39 }
 0x21c   :  { %v260_v42 = vmul.f32 %v259_v36, %v250_v40 }
 0x21d   :  { %v14030_v43 = vpop.eup %14029 }
 0x21e   :  { %v14032_v46 = vpop.eup %14031  ;;  %v270_v47 = vadd.f32 %v269_v41, %v260_v42  ;;  %v251_v48 = vmul.f32 %v14030_v43, %v14470_v44  ;;  %v18489_v43 = vmov 0.0  }
 0x21f   :  { %v252_v49 = vmul.f32 %v14032_v46, %v14473_v45  ;;  %13193 = vmatprep.mubr.msk.f32.mxu0 %vm14324_vm2, %v18489_v43  ;;  %v14327_v46 = vmov 1983009808  }
 0x220   :  { %13163 = vmatprep.mubr.msk.f32.mxu1 %vm176_vm1, %v270_v47  ;;  %v261_v50 = vmul.f32 %v259_v36, %v251_v48  ;;  %v460_v47 = vunpack.c.l.s4 %v14327_v46 }
 0x221   :  { %v14034_v51 = vpop.eup %14033  ;;  %v262_v52 = vmul.f32 %v259_v36, %v252_v49  ;;  %v14328_v49 = vmov 1934713408  }
 0x222   :  { %v14036_v55 = vpop.eup %14035  ;;  %v271_v56 = vadd.f32 %v269_v41, %v261_v50  ;;  %v253_v38 = vmul.f32 %v14034_v51, %v14481_v53  ;;  %v461_v48 = vunpack.c.0.s8 %v460_v47  ;;  %v492_v50 = vunpack.c.l.s4 %v14328_v49 }
 0x223   :  { %v272_v57 = vadd.f32 %v269_v41, %v262_v52  ;;  %v254_v58 = vmul.f32 %v14036_v55, %v14484_v54  ;;  %v14539_v54 = vsub.s32 2, %v14513_v16 }
 0x224   :  { %13164 = vmatmul.mubr.msk.f32.vlgmr.msra.gmra.mrb[0].mxu1 %vm176_vm1, %v271_v56  ;;  %v263_v59 = vmul.f32 %v259_v36, %v253_v38  ;;  %v14709_v55 = vsub.s32 %v461_v48, %v14513_v16 }
 0x225   :  { %v14038_v60 = vpop.eup %14037  ;;  %13166 = vmatprep.mubr.msk.f32.mxu1 %vm176_vm1, %v272_v57  ;;  %v264_v44 = vmul.f32 %v259_v36, %v254_v58  ;;  %18534 = vst [vmem:[#allocation14_spill] sm:$0xff] %v14539_v54  ;;  %v283_v1 = vrot.slane %v175_v30, %v14539_v54  ;;  %v493_v57 = vunpack.c.0.s8 %v492_v50 }
 0x226   :  { %v273_v45 = vadd.f32 %v269_v41, %v263_v59  ;;  %v255_v62 = vmul.f32 %v14038_v60, %v14493_v61 }
 0x227   :  { %v274_v63 = vadd.f32 %v269_v41, %v264_v44 }
 0x228   :  { %13167 = vmatmul.mubr.msk.f32.gmra.mrb[2].mxu1 %vm176_vm1, %v273_v45  ;;  %v265_v0 = vmul.f32 %v259_v36, %v255_v62  ;;  %v14724_v45 = vsub.s32 %v493_v57, %v14513_v16 }
 0x229   :  { %13169 = vmatprep.mubr.msk.f32.mxu1 %vm176_vm1, %v274_v63 }
 0x22a   :  { %v275_v53 = vadd.f32 %v269_v41, %v265_v0 }
 0x22c   :  { %13170 = vmatmul.mubr.msk.f32.gmra.mrb[4].mxu1 %vm176_vm1, %v275_v53 }
 0x22d   :  { %13178 = vmatprep.mubr.msk.f32.mxu1 %vm14324_vm2, %v18489_v43 }
 0x2f7   :  { %v13165_v2 = vpop.f32.mrb[0].mxu1 }
 0x2f8   :  { %v14542_v3 = vadd.f32 %v13165_v2, %v283_v1  ;;  %v368_v4 = vpop.f32.mrb[1].mxu1 }
 0x2f9   :  { %v14544_v5 = vadd.f32 %v368_v4, %v283_v1 }
 0x2fa   :  { %405 = vrot.lane.b32.xlu1 %v14542_v3, %s14319_s1 }
 0x2fb   :  { %403 = vrot.lane.b32.xlu0 %v14544_v5, %s14319_s1  ;;  %v13168_v61 = vpop.f32.mrb[2].mxu1 }
 0x2fc   :  { %v378_v6 = vpop.f32.mrb[3].mxu1  ;;  %v14570_v12 = vadd.f32 %v13168_v61, %v283_v1 }
 0x2fd   :  { %v14554_v9 = vadd.f32 %v378_v6, %v283_v1 }
 0x2fe   :  { %423 = vrot.lane.b32.xlu1 %v14542_v3, %s14320_s30 }
 0x2ff   :  { %439 = vrot.lane.b32.xlu0 %v14544_v5, %s14321_s11  ;;  %v13171_v7 = vpop.f32.mrb[4].mxu1 }
 0x300   :  { %v388_v8 = vpop.f32.mrb[5].mxu1  ;;  %v14580_v13 = vadd.f32 %v13171_v7, %v283_v1 }
 0x301   :  { %v14564_v11 = vadd.f32 %v388_v8, %v283_v1 }
 0x302   :  { %421 = vrot.lane.b32.xlu1 %v14544_v5, %s14320_s30 }
 0x303   :  { %407 = vrot.lane.b32.xlu0 %v14554_v9, %s14319_s1 }
 0x306   :  { %441 = vrot.lane.b32.xlu1 %v14542_v3, %s14321_s11 }
 0x307   :  { %443 = vrot.lane.b32.xlu0 %v14554_v9, %s14321_s11 }
 0x30a   :  { %425 = vrot.lane.b32.xlu1 %v14554_v9, %s14320_s30 }
 0x30b   :  { %411 = vrot.lane.b32.xlu0 %v14564_v11, %s14319_s1 }
 0x30e   :  { %409 = vrot.lane.b32.xlu1 %v14570_v12, %s14319_s1 }
 0x30f   :  { %429 = vrot.lane.b32.xlu0 %v14564_v11, %s14320_s30 }
 0x312   :  { %427 = vrot.lane.b32.xlu1 %v14570_v12, %s14320_s30 }
 0x313   :  { %447 = vrot.lane.b32.xlu0 %v14564_v11, %s14321_s11 }
 0x316   :  { %445 = vrot.lane.b32.xlu1 %v14570_v12, %s14321_s11 }
 0x317   :  { %431 = vrot.lane.b32.xlu0 %v14580_v13, %s14320_s30 }
 0x31a   :  { %413 = vrot.lane.b32.xlu1 %v14580_v13, %s14319_s1 }
 0x31b   :  { %1273 = vrot.lane.b32.xlu0 %v14544_v5, %s14322_s12 }
 0x31e   :  { %449 = vrot.lane.b32.xlu1 %v14580_v13, %s14321_s11 }
 0x322   :  { %1275 = vrot.lane.b32.xlu1 %v14542_v3, %s14322_s12 }
 0x36c   :  { %v14594_v14 = vpop.permute.xlu1 %405 }
 0x36d   :  { %1287 = vrot.lane.b32.xlu1 %v14594_v14, %s14322_s12  ;;  %v14598_v15 = vpop.permute.xlu0 %403 }
 0x36e   :  { %1285 = vrot.lane.b32.xlu0 %v14598_v15, %s14322_s12 }
 0x370   :  { %v14602_v17 = vpop.permute.xlu1 %423 }
 0x371   :  { %1299 = vrot.lane.b32.xlu1 %v14602_v17, %s14322_s12  ;;  %v14606_v18 = vpop.permute.xlu0 %439  ;;  %v525_v4 = vcombine.low %v14542_v3, %v14602_v17  ;;  %v526_v6 = vcombine.high %v14542_v3, %v14602_v17 }
 0x372   :  { %v473_v56 = vcombine.low %v14598_v15, %v14606_v18  ;;  %v474_v38 = vcombine.high %v14598_v15, %v14606_v18 }
 0x374   :  { %v14608_v20 = vpop.permute.xlu1 %421  ;;  %v481_v60 = vrot.slane %v473_v56, %v14709_v55  ;;  %v488_v44 = vrot.slane %v474_v38, %v14709_v55 }
 0x375   :  { %1297 = vrot.lane.b32.xlu0 %v14608_v20, %s14322_s12  ;;  %v14612_v22 = vpop.permute.xlu0 %407  ;;  %v457_v51 = vcombine.low %v14544_v5, %v14608_v20  ;;  %v458_v52 = vcombine.high %v14544_v5, %v14608_v20 }
 0x377   :  { %v465_v58 = vrot.slane %v457_v51, %v14709_v55  ;;  %v472_v59 = vrot.slane %v458_v52, %v14709_v55 }
 0x378   :  { %v14614_v23 = vpop.permute.xlu1 %441 }
 0x379   :  { %1311 = vrot.lane.b32.xlu1 %v14614_v23, %s14322_s12  ;;  %1309 = vrot.lane.b32.xlu0 %v14606_v18, %s14322_s12  ;;  %v14624_v28 = vpop.permute.xlu0 %443  ;;  %v489_v62 = vcombine.low %v465_v58, %v481_v60  ;;  %v490_v63 = vcombine.high %v465_v58, %v481_v60  ;;  %v505_v0 = vcombine.low %v472_v59, %v488_v44 }
 0x37a   :  { %v506_v53 = vcombine.high %v472_v59, %v488_v44  ;;  %v541_v1 = vcombine.low %v14594_v14, %v14614_v23  ;;  %v542_v2 = vcombine.high %v14594_v14, %v14614_v23  ;;  %v609_v47 = vcombine.low %v14612_v22, %v14624_v28 }
 0x37b   :  { %v504_v61 = vrot.slane %v490_v63, %v14724_v45  ;;  %v513_v7 = vrot.slane %v505_v0, %v14724_v45  ;;  %v610_v49 = vcombine.high %v14612_v22, %v14624_v28 }
 0x37c   :  { %v14620_v24 = vpop.permute.xlu1 %425  ;;  %v520_v8 = vrot.slane %v506_v53, %v14724_v45 }
 0x37d   :  { %1289 = vrot.lane.b32.xlu1 %v14612_v22, %s14322_s12  ;;  %1277 = vrot.lane.b32.xlu0 %v14554_v9, %s14322_s12  ;;  %v14634_v30 = vpop.permute.xlu0 %411  ;;  %v593_v50 = vcombine.low %v14554_v9, %v14620_v24  ;;  %v594_v56 = vcombine.high %v14554_v9, %v14620_v24  ;;  %v624_v44 = vrot.slane %v610_v49, %v14709_v55 }
 0x37e   :  { %v12534_v46 = vcombine.high %v513_v7, %v520_v8 }
 0x380   :  { %v14628_v29 = vpop.permute.xlu1 %409 }
 0x381   :  { %1313 = vrot.lane.b32.xlu1 %v14624_v28, %s14322_s12  ;;  %1301 = vrot.lane.b32.xlu0 %v14620_v24, %s14322_s12  ;;  %v14646_v36 = vpop.permute.xlu0 %429 }
 0x384   :  { %v14638_v33 = vpop.permute.xlu1 %427 }
 0x385   :  { %1281 = vrot.lane.b32.xlu1 %v14564_v11, %s14322_s12  ;;  %1279 = vrot.lane.b32.xlu0 %v14570_v12, %s14322_s12  ;;  %v14656_v39 = vpop.permute.xlu0 %447  ;;  %v661_v63 = vcombine.low %v14570_v12, %v14638_v33 }
 0x388   :  { %v14650_v37 = vpop.permute.xlu1 %445 }
 0x389   :  { %1293 = vrot.lane.b32.xlu1 %v14634_v30, %s14322_s12  ;;  %1291 = vrot.lane.b32.xlu0 %v14628_v29, %s14322_s12  ;;  %v14670_v42 = vpop.permute.xlu0 %431  ;;  %v677_v59 = vcombine.low %v14628_v29, %v14650_v37 }
 0x38a   :  { %18536 = vst [vmem:[#allocation16_spill] sm:$0xff] %v14670_v42 }
 0x38c   :  { %v14660_v40 = vpop.permute.xlu1 %413 }
 0x38d   :  { %1305 = vrot.lane.b32.xlu1 %v14646_v36, %s14322_s12  ;;  %1303 = vrot.lane.b32.xlu0 %v14638_v33, %s14322_s12 }
 0x390   :  { %v14668_v41 = vpop.permute.xlu1 %449 }
 0x391   :  { %1317 = vrot.lane.b32.xlu1 %v14656_v39, %s14322_s12  ;;  %1315 = vrot.lane.b32.xlu0 %v14650_v37, %s14322_s12  ;;  %18535 = vst [vmem:[#allocation15_spill] sm:$0xff] %v14668_v41 }
 0x395   :  { %1295 = vrot.lane.b32.xlu1 %v14660_v40, %s14322_s12  ;;  %1283 = vrot.lane.b32.xlu0 %v14580_v13, %s14322_s12 }
 0x399   :  { %1319 = vrot.lane.b32.xlu1 %v14668_v41, %s14322_s12  ;;  %1307 = vrot.lane.b32.xlu0 %v14670_v42, %s14322_s12 }
 0x39d   :  { %2163 = vrot.lane.b32.xlu1 %v14542_v3, %s14326_s13  ;;  %2161 = vrot.lane.b32.xlu0 %v14544_v5, %s14326_s13  ;;  %v497_v5 = vrot.slane %v489_v62, %v14724_v45  ;;  %v540_v3 = vrot.slane %v526_v6, %v14709_v55  ;;  %v601_v62 = vrot.slane %v593_v50, %v14709_v55 }
 0x3a1   :  { %2173 = vrot.lane.b32.xlu1 %v14598_v15, %s14326_s13  ;;  %2185 = vrot.lane.b32.xlu0 %v14608_v20, %s14326_s13  ;;  %v556_v15 = vrot.slane %v542_v2, %v14709_v55  ;;  %v865_v20 = vcombine.low %v497_v5, %v504_v61  ;;  %v662_v2 = vcombine.high %v14570_v12, %v14638_v33 }
 0x3a3   :  { %v573_v52 = vcombine.low %v540_v3, %v556_v15  ;;  %v14761_v38 = vrot.slane %v865_v20, %v14709_v55  ;;  %v574_v58 = vcombine.high %v540_v3, %v556_v15  ;;  %v745_v15 = vcombine.low %v14634_v30, %v14656_v39 }
 0x3a4   :  { %v746_v3 = vcombine.high %v14634_v30, %v14656_v39 }
 0x3a5   :  { %2175 = vrot.lane.b32.xlu1 %v14594_v14, %s14326_s13  ;;  %2197 = vrot.lane.b32.xlu0 %v14606_v18, %s14326_s13  ;;  %v549_v14 = vrot.slane %v541_v1, %v14709_v55  ;;  %v533_v18 = vrot.slane %v525_v4, %v14709_v55  ;;  %v581_v53 = vrot.slane %v573_v52, %v14724_v45 }
 0x3a6   :  { %v608_v1 = vrot.slane %v594_v56, %v14709_v55  ;;  %v588_v4 = vrot.slane %v574_v58, %v14724_v45 }
 0x3a7   :  { %v557_v48 = vcombine.low %v533_v18, %v549_v14  ;;  %v558_v51 = vcombine.high %v533_v18, %v549_v14  ;;  %v669_v14 = vrot.slane %v661_v63, %v14709_v55  ;;  %v797_v63 = vcombine.low %v14580_v13, %v14670_v42 }
 0x3a8   :  { %v641_v20 = vcombine.low %v608_v1, %v624_v44 }
 0x3a9   :  { %2187 = vrot.lane.b32.xlu1 %v14602_v17, %s14326_s13  ;;  %2165 = vrot.lane.b32.xlu0 %v14554_v9, %s14326_s13  ;;  %v881_v17 = vcombine.low %v513_v7, %v520_v8  ;;  %v617_v9 = vrot.slane %v609_v47, %v14709_v55  ;;  %v565_v60 = vrot.slane %v557_v48, %v14724_v45 }
 0x3aa   :  { %v572_v0 = vrot.slane %v558_v51, %v14724_v45  ;;  %v730_v8 = vcombine.high %v14564_v11, %v14646_v36 }
 0x3ab   :  { %v625_v7 = vcombine.low %v601_v62, %v617_v9  ;;  %v626_v18 = vcombine.high %v601_v62, %v617_v9  ;;  %v760_v9 = vrot.slane %v746_v3, %v14709_v55 }
 0x3ac   :  { %v933_v50 = vcombine.low %v565_v60, %v572_v0  ;;  %v744_v52 = vrot.slane %v730_v8, %v14709_v55  ;;  %v12535_v56 = vcombine.high %v565_v60, %v572_v0  ;;  %v949_v0 = vcombine.low %v581_v53, %v588_v4 }
 0x3ad   :  { %2199 = vrot.lane.b32.xlu1 %v14614_v23, %s14326_s13  ;;  %2189 = vrot.lane.b32.xlu0 %v14620_v24, %s14326_s13  ;;  %v12533_v23 = vcombine.high %v497_v5, %v504_v61  ;;  %v678_v24 = vcombine.high %v14628_v29, %v14650_v37  ;;  %v685_v5 = vrot.slane %v677_v59, %v14709_v55 }
 0x3ae   :  { %v633_v58 = vrot.slane %v625_v7, %v14724_v45  ;;  %v649_v59 = vrot.slane %v641_v20, %v14724_v45  ;;  %v777_v7 = vcombine.low %v744_v52, %v760_v9  ;;  %v813_v8 = vcombine.low %v14660_v40, %v14668_v41 }
 0x3af   :  { %v14764_v57 = vrot.slane %v12533_v23, %v14709_v55  ;;  %v676_v23 = vrot.slane %v662_v2, %v14709_v55  ;;  %v694_v47 = vcombine.high %v669_v14, %v685_v5  ;;  %v12536_v2 = vcombine.high %v581_v53, %v588_v4 }
 0x3b0   :  { %v814_v53 = vcombine.high %v14660_v40, %v14668_v41 }
 0x3b1   :  { %2177 = vrot.lane.b32.xlu1 %v14612_v22, %s14326_s13  ;;  %2167 = vrot.lane.b32.xlu0 %v14570_v12, %s14326_s13  ;;  %v14771_v22 = vrot.slane %v881_v17, %v14709_v55  ;;  %v729_v12 = vcombine.low %v14564_v11, %v14646_v36  ;;  %v642_v17 = vcombine.high %v608_v1, %v624_v44 }
 0x3b2   :  { %v708_v62 = vrot.slane %v694_v47, %v14724_v45  ;;  %v964_v3 = vrot.slane %v12536_v2, %v14709_v55 }
 0x3b3   :  { %v737_v51 = vrot.slane %v729_v12, %v14709_v55 }
 0x3b5   :  { %2201 = vrot.lane.b32.xlu1 %v14624_v28, %s14326_s13  ;;  %2191 = vrot.lane.b32.xlu0 %v14638_v33, %s14326_s13  ;;  %v14774_v28 = vrot.slane %v12534_v46, %v14709_v55  ;;  %v692_v33 = vrot.slane %v678_v24, %v14709_v55  ;;  %v693_v46 = vcombine.low %v669_v14, %v685_v5 }
 0x3b6   :  { %v656_v24 = vrot.slane %v642_v17, %v14724_v45  ;;  %v798_v5 = vcombine.high %v14580_v13, %v14670_v42  ;;  %v940_v14 = vrot.slane %v933_v50, %v14709_v55  ;;  %v805_v50 = vrot.slane %v797_v63, %v14709_v55 }
 0x3b7   :  { %v913_v61 = vcombine.low %v14771_v22, %v14774_v28  ;;  %v914_v6 = vcombine.high %v14771_v22, %v14774_v28  ;;  %v710_v48 = vcombine.high %v676_v23, %v692_v33  ;;  %v701_v44 = vrot.slane %v693_v46, %v14724_v45 }
 0x3b8   :  { %v1017_v47 = vcombine.low %v649_v59, %v656_v24 }
 0x3b9   :  { %2169 = vrot.lane.b32.xlu1 %v14564_v11, %s14326_s13  ;;  %2203 = vrot.lane.b32.xlu0 %v14650_v37, %s14326_s13  ;;  %v898_v37 = vcombine.high %v14761_v38, %v14764_v57  ;;  %v14818_v49 = vrot.slane %v913_v61, %v14724_v45  ;;  %v724_v60 = vrot.slane %v710_v48, %v14724_v45 }
 0x3ba   :  { %v778_v48 = vcombine.high %v744_v52, %v760_v9  ;;  %v1024_v63 = vrot.slane %v1017_v47, %v14709_v55  ;;  %v14888_v47 = vpop.permute.xlu0 %1273 }
 0x3bc   :  { %v792_v2 = vrot.slane %v778_v48, %v14724_v45 }
 0x3bd   :  { %2179 = vrot.lane.b32.xlu1 %v14628_v29, %s14326_s13  ;;  %2171 = vrot.lane.b32.xlu0 %v14580_v13, %s14326_s13  ;;  %v897_v29 = vcombine.low %v14761_v38, %v14764_v57  ;;  %v948_v13 = vrot.slane %v12535_v56, %v14709_v55 }
 0x3bf   :  { %v14815_v11 = vrot.slane %v897_v29, %v14724_v45 }
 0x3c1   :  { %2183 = vrot.lane.b32.xlu1 %v14660_v40, %s14326_s13 }
 0x3c5   :  { %2181 = vrot.lane.b32.xlu1 %v14634_v30, %s14326_s13  ;;  %v753_v30 = vrot.slane %v745_v15, %v14709_v55  ;;  %v1069_v15 = vcombine.low %v701_v44, %v708_v62 }
 0x3c7   :  { %v761_v29 = vcombine.low %v737_v51, %v753_v30  ;;  %v14855_v56 = vrot.slane %v1069_v15, %v14709_v55 }
 0x3c9   :  { %2193 = vrot.lane.b32.xlu1 %v14646_v36, %s14326_s13  ;;  %v709_v36 = vcombine.low %v676_v23, %v692_v33  ;;  %v762_v33 = vcombine.high %v737_v51, %v753_v30  ;;  %v956_v23 = vrot.slane %v949_v0, %v14709_v55  ;;  %v812_v51 = vrot.slane %v798_v5, %v14709_v55 }
 0x3ca   :  { %v821_v30 = vrot.slane %v813_v8, %v14709_v55  ;;  %v14852_v40 = vrot.slane %v761_v29, %v14724_v45  ;;  %v785_v0 = vrot.slane %v777_v7, %v14724_v45 }
 0x3cb   :  { %v717_v1 = vrot.slane %v709_v36, %v14724_v45  ;;  %v12538_v36 = vcombine.high %v649_v59, %v656_v24  ;;  %v965_v59 = vcombine.low %v940_v14, %v948_v13  ;;  %v981_v9 = vcombine.low %v956_v23, %v964_v3 }
 0x3cc   :  { %v829_v29 = vcombine.low %v805_v50, %v821_v30  ;;  %v830_v8 = vcombine.high %v805_v50, %v821_v30 }
 0x3cd   :  { %2205 = vrot.lane.b32.xlu1 %v14656_v39, %s14326_s13  ;;  %v640_v39 = vrot.slane %v626_v18, %v14724_v45  ;;  %v12539_v18 = vcombine.high %v701_v44, %v708_v62  ;;  %v1085_v4 = vcombine.low %v717_v1, %v724_v60  ;;  %v12540_v20 = vcombine.high %v717_v1, %v724_v60 }
 0x3ce   :  { %v1032_v1 = vrot.slane %v12538_v36, %v14709_v55  ;;  %v776_v60 = vrot.slane %v762_v33, %v14724_v45  ;;  %v966_v33 = vcombine.high %v940_v14, %v948_v13  ;;  %v14897_v14 = vrot.slane %v898_v37, %v14724_v45 }
 0x3cf   :  { %v1001_v17 = vcombine.low %v633_v58, %v640_v39  ;;  %v12537_v46 = vcombine.high %v633_v58, %v640_v39  ;;  %v14858_v44 = vrot.slane %v12539_v18, %v14709_v55  ;;  %v828_v58 = vrot.slane %v814_v53, %v14709_v55  ;;  %v14876_v53 = vpop.permute.xlu1 %1275 }
 0x3d0   :  { %v14862_v39 = vrot.slane %v1085_v4, %v14709_v55  ;;  %v14865_v52 = vrot.slane %v12540_v20, %v14709_v55  ;;  %v14879_v4 = vrot.slane %v965_v59, %v14724_v45  ;;  %v14882_v20 = vrot.slane %v981_v9, %v14724_v45 }
 0x3d1   :  { %v1008_v24 = vrot.slane %v1001_v17, %v14709_v55  ;;  %v1016_v62 = vrot.slane %v12537_v46, %v14709_v55  ;;  %v1101_v5 = vcombine.low %v14855_v56, %v14858_v44  ;;  %v845_v15 = vcombine.low %v812_v51, %v828_v58 }
 0x3d2   :  { %v846_v18 = vcombine.high %v812_v51, %v828_v58  ;;  %v982_v17 = vcombine.high %v956_v23, %v964_v3  ;;  %v1102_v7 = vcombine.high %v14855_v56, %v14858_v44  ;;  %v1117_v46 = vcombine.low %v14862_v39, %v14865_v52 }
 0x3d3   :  { %v1033_v36 = vcombine.low %v1008_v24, %v1016_v62  ;;  %v1049_v48 = vcombine.low %v1024_v63, %v1032_v1  ;;  %v837_v51 = vrot.slane %v829_v29, %v14724_v45  ;;  %v14903_v13 = vrot.slane %v914_v6, %v14724_v45 }
 0x3d4   :  { %v844_v23 = vrot.slane %v830_v8, %v14724_v45  ;;  %v853_v3 = vrot.slane %v845_v15, %v14724_v45  ;;  %v1034_v58 = vcombine.high %v1008_v24, %v1016_v62  ;;  %v1050_v59 = vcombine.high %v1024_v63, %v1032_v1 }
 0x3d5   :  { %v860_v9 = vrot.slane %v846_v18, %v14724_v45  ;;  %v14911_v57 = vrot.slane %v966_v33, %v14724_v45  ;;  %v14914_v37 = vrot.slane %v982_v17, %v14724_v45  ;;  %v14917_v28 = vrot.slane %v1033_v36, %v14724_v45 }
 0x3d6   :  { %v14920_v6 = vrot.slane %v1049_v48, %v14724_v45  ;;  %v1137_v24 = vcombine.low %v14852_v40, %v776_v60  ;;  %v12541_v62 = vcombine.high %v14852_v40, %v776_v60  ;;  %v14929_v29 = vrot.slane %v1101_v5, %v14724_v45 }
 0x3d7   :  { %v14932_v8 = vrot.slane %v1117_v46, %v14724_v45  ;;  %v14935_v15 = vrot.slane %v1034_v58, %v14724_v45  ;;  %v14938_v18 = vrot.slane %v1050_v59, %v14724_v45  ;;  %v1153_v33 = vcombine.low %v785_v0, %v792_v2 }
 0x3d8   :  { %v12542_v40 = vcombine.high %v785_v0, %v792_v2  ;;  %v1205_v36 = vcombine.low %v837_v51, %v844_v23  ;;  %v14949_v59 = vrot.slane %v1137_v24, %v14709_v55  ;;  %v14952_v0 = vrot.slane %v12541_v62, %v14709_v55 }
 0x3d9   :  { %v12543_v2 = vcombine.high %v837_v51, %v844_v23  ;;  %v1221_v5 = vcombine.low %v853_v3, %v860_v9  ;;  %v12544_v60 = vcombine.high %v853_v3, %v860_v9  ;;  %v14963_v24 = vrot.slane %v1153_v33, %v14709_v55 }
 0x3da   :  { %v14966_v62 = vrot.slane %v12542_v40, %v14709_v55  ;;  %v14973_v3 = vrot.slane %v1205_v36, %v14709_v55 }
 0x3db   :  { %18537 = vst [vmem:[#allocation17_spill] sm:$0xff] %v14963_v24  ;;  %v14980_v40 = vrot.slane %v12543_v2, %v14709_v55  ;;  %v14986_v36 = vrot.slane %v12544_v60, %v14709_v55 }
 0x3dc   :  { %18538 = vst [vmem:[#allocation18_spill] sm:$0xff] %v14966_v62 }
 0x3dd   :  { %18540 = vst [vmem:[#allocation20_spill] sm:$0xff] %v14986_v36 }
 0x3df   :  { %v1288_v30 = vpop.permute.xlu1 %1287 }
 0x3e0   :  { %v1286_v22 = vpop.permute.xlu0 %1285 }
 0x3e3   :  { %v1300_v46 = vpop.permute.xlu1 %1299 }
 0x3e4   :  { %v1413_v51 = vcombine.low %v14876_v53, %v1300_v46  ;;  %v1414_v23 = vcombine.high %v14876_v53, %v1300_v46  ;;  %v14983_v46 = vrot.slane %v1221_v5, %v14709_v55 }
 0x3e6   :  { %18539 = vst [vmem:[#allocation19_spill] sm:$0xff] %v14983_v46 }
 0x3e7   :  { %v1298_v48 = vpop.permute.xlu0 %1297 }
 0x3e8   :  { %v1345_v9 = vcombine.low %v14888_v47, %v1298_v48  ;;  %v1346_v58 = vcombine.high %v14888_v47, %v1298_v48  ;;  %v14994_v48 = vrot.slane %v1102_v7, %v14724_v45 }
 0x3ea   :  { %18541 = vst [vmem:[#allocation21_spill] sm:$0xff] %v14994_v48  ;;  %v1353_v2 = vrot.slane %v1345_v9, %v14709_v55 }
 0x3eb   :  { %v1312_v1 = vpop.permute.xlu1 %1311  ;;  %v1310_v53 = vpop.permute.xlu0 %1309 }
 0x3ec   :  { %v1429_v10 = vcombine.low %v1288_v30, %v1312_v1  ;;  %v1430_v63 = vcombine.high %v1288_v30, %v1312_v1  ;;  %v1361_v17 = vcombine.low %v1286_v22, %v1310_v53  ;;  %v1362_v38 = vcombine.high %v1286_v22, %v1310_v53 }
 0x3ed   :  { %v1421_v30 = vrot.slane %v1413_v51, %v14709_v55  ;;  %v1428_v1 = vrot.slane %v1414_v23, %v14709_v55  ;;  %v1360_v22 = vrot.slane %v1346_v58, %v14709_v55 }
 0x3ee   :  { %v1437_v5 = vrot.slane %v1429_v10, %v14709_v55  ;;  %v1444_v60 = vrot.slane %v1430_v63, %v14709_v55  ;;  %v1369_v53 = vrot.slane %v1361_v17, %v14709_v55  ;;  %v1376_v12 = vrot.slane %v1362_v38, %v14709_v55 }
 0x3ef   :  { %v1290_v61 = vpop.permute.xlu1 %1289  ;;  %v1278_v51 = vpop.permute.xlu0 %1277 }
 0x3f0   :  { %v1445_v56 = vcombine.low %v1421_v30, %v1437_v5  ;;  %v1446_v44 = vcombine.high %v1421_v30, %v1437_v5  ;;  %v1461_v7 = vcombine.low %v1428_v1, %v1444_v60  ;;  %v1462_v35 = vcombine.high %v1428_v1, %v1444_v60 }
 0x3f1   :  { %v1377_v43 = vcombine.low %v1353_v2, %v1369_v53  ;;  %v1378_v23 = vcombine.high %v1353_v2, %v1369_v53  ;;  %v1393_v47 = vcombine.low %v1360_v22, %v1376_v12  ;;  %v1394_v10 = vcombine.high %v1360_v22, %v1376_v12 }
 0x3f2   :  { %v1453_v63 = vrot.slane %v1445_v56, %v14724_v45  ;;  %v1460_v9 = vrot.slane %v1446_v44, %v14724_v45  ;;  %v1469_v58 = vrot.slane %v1461_v7, %v14724_v45  ;;  %v1476_v17 = vrot.slane %v1462_v35, %v14724_v45 }
 0x3f3   :  { %v1385_v38 = vrot.slane %v1377_v43, %v14724_v45  ;;  %v1392_v33 = vrot.slane %v1378_v23, %v14724_v45  ;;  %v1401_v30 = vrot.slane %v1393_v47, %v14724_v45  ;;  %v1408_v1 = vrot.slane %v1394_v10, %v14724_v45  ;;  %v1314_v5 = vpop.permute.xlu1 %1313  ;;  %v1302_v53 = vpop.permute.xlu0 %1301 }
 0x3f4   :  { %v1821_v60 = vcombine.low %v1453_v63, %v1460_v9  ;;  %v12547_v12 = vcombine.high %v1453_v63, %v1460_v9  ;;  %v1837_v2 = vcombine.low %v1469_v58, %v1476_v17  ;;  %v12548_v22 = vcombine.high %v1469_v58, %v1476_v17 }
 0x3f5   :  { %v1753_v56 = vcombine.low %v1385_v38, %v1392_v33  ;;  %v12545_v44 = vcombine.high %v1385_v38, %v1392_v33  ;;  %v1769_v7 = vcombine.low %v1401_v30, %v1408_v1  ;;  %v12546_v50 = vcombine.high %v1401_v30, %v1408_v1 }
 0x3f6   :  { %v15013_v35 = vrot.slane %v1821_v60, %v14709_v55  ;;  %v15016_v43 = vrot.slane %v12547_v12, %v14709_v55  ;;  %v15019_v47 = vrot.slane %v1837_v2, %v14709_v55  ;;  %v15022_v23 = vrot.slane %v12548_v22, %v14709_v55 }
 0x3f7   :  { %v15025_v10 = vrot.slane %v1753_v56, %v14709_v55  ;;  %v15028_v63 = vrot.slane %v12545_v44, %v14709_v55  ;;  %v15031_v33 = vrot.slane %v1769_v7, %v14709_v55  ;;  %v15034_v9 = vrot.slane %v12546_v50, %v14709_v55  ;;  %v15036_v58 = vpop.permute.xlu1 %1281  ;;  %v15042_v30 = vpop.permute.xlu0 %1279 }
 0x3f8   :  { %v1853_v17 = vcombine.low %v15013_v35, %v15016_v43  ;;  %v1869_v38 = vcombine.low %v15019_v47, %v15022_v23  ;;  %v1237_v1 = vcombine.low %v14973_v3, %v14980_v40  ;;  %v18542_v60 = vcombine.high %v14862_v39, %v14865_v52 }
 0x3f9   :  { %v1785_v50 = vcombine.low %v15025_v10, %v15028_v63  ;;  %v1801_v2 = vcombine.low %v15031_v33, %v15034_v9  ;;  %v18544_v22 = vcombine.low %v14949_v59, %v14952_v0  ;;  %v1497_v7 = vcombine.low %v1290_v61, %v1314_v5 }
 0x3fa   :  { %v15050_v12 = vrot.slane %v18542_v60, %v14724_v45  ;;  %v1498_v54 = vcombine.high %v1290_v61, %v1314_v5  ;;  %v1481_v39 = vcombine.low %v1278_v51, %v1302_v53  ;;  %v1482_v52 = vcombine.high %v1278_v51, %v1302_v53 }
 0x3fb   :  { %v15060_v56 = vrot.slane %v18544_v22, %v14724_v45  ;;  %v1294_v60 = vpop.permute.xlu1 %1293  ;;  %v1793_v34 = vrot.slane %v1785_v50, %v14724_v45  ;;  %v1809_v27 = vrot.slane %v1801_v2, %v14724_v45  ;;  %v1861_v32 = vrot.slane %v1853_v17, %v14724_v45  ;;  %v1292_v61 = vpop.permute.xlu0 %1291 }
 0x3fc   :  { %18543 = vst [vmem:[#allocation22_spill] sm:$0xff] %v15050_v12  ;;  %v1877_v31 = vrot.slane %v1869_v38, %v14724_v45  ;;  %v1505_v25 = vrot.slane %v1497_v7, %v14709_v55  ;;  %v1512_v22 = vrot.slane %v1498_v54, %v14709_v55  ;;  %v1489_v26 = vrot.slane %v1481_v39, %v14709_v55 }
 0x3fd   :  { %v1496_v44 = vrot.slane %v1482_v52, %v14709_v55  ;;  %v1817_v5 = vcombine.low %v1793_v34, %v1809_v27  ;;  %v1818_v53 = vcombine.high %v1793_v34, %v1809_v27  ;;  %v18547_v39 = vcombine.low %v14963_v24, %v14966_v62 }
 0x3fe   :  { %v1885_v51 = vcombine.low %v1861_v32, %v1877_v31  ;;  %v1886_v19 = vcombine.high %v1861_v32, %v1877_v31  ;;  %v1513_v50 = vcombine.low %v1489_v26, %v1505_v25  ;;  %v1514_v21 = vcombine.high %v1489_v26, %v1505_v25 }
 0x3ff   :  { %v1529_v2 = vcombine.low %v1496_v44, %v1512_v22  ;;  %v1530_v16 = vcombine.high %v1496_v44, %v1512_v22  ;;  %v1306_v54 = vpop.permute.xlu1 %1305  ;;  %v15082_v52 = vrot.slane %v18547_v39, %v14724_v45  ;;  %v1253_v25 = vcombine.low %v14983_v46, %v14986_v36  ;;  %v1304_v34 = vpop.permute.xlu0 %1303 }
 0x400   :  { %v13819_v38 = vpack.c.bf16 %v1885_v51, %v1817_v5  ;;  %v13823_v7 = vpack.c.bf16 %v1886_v19, %v1818_v53  ;;  %v1521_v26 = vrot.slane %v1513_v50, %v14724_v45  ;;  %v1528_v31 = vrot.slane %v1514_v21, %v14724_v45 }
 0x401   :  { %v1537_v32 = vrot.slane %v1529_v2, %v14724_v45  ;;  %v1544_v27 = vrot.slane %v1530_v16, %v14724_v45  ;;  %v1617_v19 = vcombine.low %v15036_v58, %v1306_v54  ;;  %v1618_v44 = vcombine.high %v15036_v58, %v1306_v54 }
 0x402   :  { %13821 = vmatpush3.bf16.xpose.msk.msra.mxu1 %vm15074_vm4, %v13819_v38  ;;  %v15095_v22 = vrot.slane %v1237_v1, %v14724_v45  ;;  %v1889_v51 = vcombine.low %v1521_v26, %v1528_v31  ;;  %v12549_v21 = vcombine.high %v1521_v26, %v1528_v31  ;;  %13825 = vmatpush3.bf16.xpose.msk.msra.mxu0 %vm15074_vm4, %v13823_v7  ;;  %v18548_v54 = vmov 0.0  }
 0x403   :  { %v1905_v53 = vcombine.low %v1537_v32, %v1544_v27  ;;  %v12550_v50 = vcombine.high %v1537_v32, %v1544_v27  ;;  %v1549_v16 = vcombine.low %v15042_v30, %v1304_v34  ;;  %v1550_v58 = vcombine.high %v15042_v30, %v1304_v34  ;;  %v1318_v2 = vpop.permute.xlu1 %1317  ;;  %13176 = vmatprep.subr.mxu1 %v18548_v54  ;;  %v1316_v31 = vpop.permute.xlu0 %1315 }
 0x404   :  { %v15107_v38 = vrot.slane %v1253_v25, %v14724_v45  ;;  %v15110_v39 = vrot.slane %v1889_v51, %v14709_v55  ;;  %v15113_v26 = vrot.slane %v12549_v21, %v14709_v55  ;;  %13191 = vmatprep.subr.mxu0 %v18548_v54  ;;  %v1633_v32 = vcombine.low %v1294_v60, %v1318_v2 }
 0x405   :  { %v15116_v7 = vrot.slane %v1905_v53, %v14709_v55  ;;  %v15119_v30 = vrot.slane %v12550_v50, %v14709_v55  ;;  %v1634_v27 = vcombine.high %v1294_v60, %v1318_v2  ;;  %v1565_v34 = vcombine.low %v1292_v61, %v1316_v31 }
 0x406   :  { %v1566_v25 = vcombine.high %v1292_v61, %v1316_v31  ;;  %v1786_v51 = vcombine.high %v15025_v10, %v15028_v63  ;;  %v1802_v21 = vcombine.high %v15031_v33, %v15034_v9  ;;  %v1625_v5 = vrot.slane %v1617_v19, %v14709_v55 }
 0x407   :  { %v1632_v53 = vrot.slane %v1618_v44, %v14709_v55  ;;  %v1641_v50 = vrot.slane %v1633_v32, %v14709_v55  ;;  %v1648_v1 = vrot.slane %v1634_v27, %v14709_v55  ;;  %v1573_v41 = vrot.slane %v1565_v34, %v14709_v55  ;;  %v15132_v2 = vpop.permute.xlu1 %1295  ;;  %v15140_v61 = vpop.permute.xlu0 %1283 }
 0x408   :  { %v1580_v60 = vrot.slane %v1566_v25, %v14709_v55  ;;  %v1921_v10 = vcombine.low %v15110_v39, %v15113_v26  ;;  %v1937_v63 = vcombine.low %v15116_v7, %v15119_v30  ;;  %v1557_v33 = vrot.slane %v1549_v16, %v14709_v55 }
 0x409   :  { %v1564_v9 = vrot.slane %v1550_v58, %v14709_v55  ;;  %v1649_v19 = vcombine.low %v1625_v5, %v1641_v50  ;;  %v1650_v44 = vcombine.high %v1625_v5, %v1641_v50  ;;  %v1665_v31 = vcombine.low %v1632_v53, %v1648_v1 }
 0x40a   :  { %v1666_v32 = vcombine.high %v1632_v53, %v1648_v1  ;;  %v1581_v27 = vcombine.low %v1557_v33, %v1573_v41  ;;  %v1582_v34 = vcombine.high %v1557_v33, %v1573_v41  ;;  %v1800_v41 = vrot.slane %v1786_v51, %v14724_v45 }
 0x40b   :  { %v1597_v25 = vcombine.low %v1564_v9, %v1580_v60  ;;  %v1598_v42 = vcombine.high %v1564_v9, %v1580_v60  ;;  %v1657_v48 = vrot.slane %v1649_v19, %v14724_v45  ;;  %v1664_v12 = vrot.slane %v1650_v44, %v14724_v45  ;;  %v1320_v58 = vpop.permute.xlu1 %1319  ;;  %v1308_v1 = vpop.permute.xlu0 %1307 }
 0x40c   :  { %v15145_v46 = vrot.slane %v1665_v31, %v14724_v45  ;;  %v15148_v16 = vrot.slane %v1666_v32, %v14724_v45  ;;  %v1589_v36 = vrot.slane %v1581_v27, %v14724_v45  ;;  %v1596_v5 = vrot.slane %v1582_v34, %v14724_v45 }
 0x40d   :  { %v1816_v53 = vrot.slane %v1802_v21, %v14724_v45  ;;  %v1854_v50 = vcombine.high %v15013_v35, %v15016_v43  ;;  %v1605_v60 = vrot.slane %v1597_v25, %v14724_v45  ;;  %v1612_v33 = vrot.slane %v1598_v42, %v14724_v45 }
 0x40e   :  { %v2025_v19 = vcombine.low %v1657_v48, %v1664_v12  ;;  %v12553_v44 = vcombine.high %v1657_v48, %v1664_v12  ;;  %v2041_v31 = vcombine.low %v15145_v46, %v15148_v16  ;;  %v1870_v21 = vcombine.high %v15019_v47, %v15022_v23 }
 0x40f   :  { %v1929_v35 = vrot.slane %v1921_v10, %v14724_v45  ;;  %v1945_v43 = vrot.slane %v1937_v63, %v14724_v45  ;;  %v15168_v32 = vpop.permute.xlu1 %2163  ;;  %v1957_v27 = vcombine.low %v1589_v36, %v1596_v5  ;;  %v1819_v34 = vcombine.low %v1800_v41, %v1816_v53  ;;  %v15176_v25 = vpop.permute.xlu0 %2161 }
 0x410   :  { %v12554_v47 = vcombine.high %v15145_v46, %v15148_v16  ;;  %v12551_v23 = vcombine.high %v1589_v36, %v1596_v5  ;;  %v1973_v10 = vcombine.low %v1605_v60, %v1612_v33  ;;  %v1868_v63 = vrot.slane %v1854_v50, %v14724_v45 }
 0x411   :  { %v15182_v51 = vrot.slane %v2025_v19, %v14709_v55  ;;  %v15185_v42 = vrot.slane %v12553_v44, %v14709_v55  ;;  %v15188_v9 = vrot.slane %v2041_v31, %v14709_v55  ;;  %v12552_v12 = vcombine.high %v1605_v60, %v1612_v33 }
 0x412   :  { %v1953_v48 = vcombine.low %v1929_v35, %v1945_v43  ;;  %v1954_v62 = vcombine.high %v1929_v35, %v1945_v43  ;;  %v1701_v24 = vcombine.low %v15132_v2, %v1320_v58  ;;  %v1702_v46 = vcombine.high %v15132_v2, %v1320_v58 }
 0x413   :  { %v15193_v36 = vrot.slane %v1957_v27, %v14709_v55  ;;  %v1685_v16 = vcombine.low %v15140_v61, %v1308_v1  ;;  %v1686_v5 = vcombine.high %v15140_v61, %v1308_v1  ;;  %v1884_v50 = vrot.slane %v1870_v21, %v14724_v45  ;;  %v2174_v19 = vpop.permute.xlu1 %2173  ;;  %v2186_v44 = vpop.permute.xlu0 %2185 }
 0x414   :  { %13177 = vmatpush3.xpose.msk.msra.mxu1 %vm3049_vm3, %v1953_v48  ;;  %13192 = vmatpush3.xpose.msk.msra.mxu0 %vm3049_vm3, %v1954_v62  ;;  %v1709_v60 = vrot.slane %v1701_v24, %v14709_v55  ;;  %v1716_v33 = vrot.slane %v1702_v46, %v14709_v55  ;;  %v1820_v2 = vcombine.high %v1800_v41, %v1816_v53  ;;  %v18549_v58 = vmov 0.0|0.0  }
 0x415   :  { %13826 = vmatprep.subr.bf16.mxu1 %v18549_v58  ;;  %13830 = vmatprep.subr.bf16.mxu0 %v18549_v58  ;;  %v1693_v31 = vrot.slane %v1685_v16, %v14709_v55  ;;  %v1700_v61 = vrot.slane %v1686_v5, %v14709_v55  ;;  %v1887_v1 = vcombine.low %v1868_v63, %v1884_v50 }
 0x416   :  { %v15207_v21 = vrot.slane %v12551_v23, %v14709_v55  ;;  %v15210_v35 = vrot.slane %v1973_v10, %v14709_v55  ;;  %v15213_v24 = vrot.slane %v12552_v12, %v14709_v55  ;;  %v1888_v62 = vcombine.high %v1868_v63, %v1884_v50 }
 0x417   :  { %v18550_v41 = vcombine.low %v14815_v11, %v14818_v49  ;;  %v18551_v53 = vcombine.high %v14815_v11, %v14818_v49  ;;  %v1717_v43 = vcombine.low %v1693_v31, %v1709_v60  ;;  %v1718_v48 = vcombine.high %v1693_v31, %v1709_v60  ;;  %v2198_v12 = vpop.permute.xlu0 %2197  ;;  %v15233_v5 = vpop.permute.xlu1 %2175 }
 0x418   :  { %v1733_v27 = vcombine.low %v1700_v61, %v1716_v33  ;;  %v1734_v23 = vcombine.high %v1700_v61, %v1716_v33  ;;  %v13827_v10 = vpack.c.bf16 %v1887_v1, %v1819_v34  ;;  %v13831_v46 = vpack.c.bf16 %v1888_v62, %v1820_v2 }
 0x419   :  { %13179 = vmatmul.mubr.msk.f32.vlgmr.msra.gmra.mrb[6].mxu1 %vm3049_vm3, %v18550_v41  ;;  %13194 = vmatmul.mubr.msk.f32.vlgmr.msra.gmra.mrb[6].mxu0 %vm3049_vm3, %v18551_v53  ;;  %v15228_v63 = vrot.slane %v12554_v47, %v14709_v55  ;;  %v1725_v11 = vrot.slane %v1717_v43, %v14724_v45  ;;  %v1732_v49 = vrot.slane %v1718_v48, %v14724_v45 }
 0x41a   :  { %13181 = vmatprep.mubr.msk.f32.mxu1 %vm14324_vm2, %v18548_v54  ;;  %13196 = vmatprep.mubr.msk.f32.mxu0 %vm14324_vm2, %v18548_v54  ;;  %v1741_v16 = vrot.slane %v1733_v27, %v14724_v45  ;;  %v1989_v34 = vcombine.low %v15193_v36, %v15207_v21  ;;  %v1748_v50 = vrot.slane %v1734_v23, %v14724_v45 }
 0x41b   :  { %13829 = vmatpush3.bf16.xpose.msk.msra.mxu1 %vm15074_vm4, %v13827_v10  ;;  %13833 = vmatpush3.bf16.xpose.msk.msra.mxu0 %vm15074_vm4, %v13831_v46  ;;  %v2233_v47 = vcombine.low %v15176_v25, %v2186_v44  ;;  %v18552_v60 = vcombine.low %v14879_v4, %v14882_v20  ;;  %v18553_v33 = vcombine.high %v14879_v4, %v14882_v20  ;;  %v15284_v10 = vpop.permute.xlu1 %2187 }
 0x41c   :  { %v2234_v2 = vcombine.high %v15176_v25, %v2186_v44  ;;  %v2249_v31 = vcombine.low %v2174_v19, %v2198_v12  ;;  %v2250_v61 = vcombine.high %v2174_v19, %v2198_v12  ;;  %v2005_v1 = vcombine.low %v15210_v35, %v15213_v24  ;;  %13206 = vmatprep.subr.mxu1 %v18548_v54 }
 0x41d   :  { %13182 = vmatmul.mubr.msk.f32.gmra.mrb[8].mxu1 %vm3049_vm3, %v18552_v60  ;;  %13197 = vmatmul.mubr.msk.f32.gmra.mrb[8].mxu0 %vm3049_vm3, %v18553_v33  ;;  %v18554_v62 = vcombine.high %v15110_v39, %v15113_v26  ;;  %v18555_v20 = vcombine.high %v15116_v7, %v15119_v30  ;;  %v2093_v19 = vcombine.low %v1725_v11, %v1732_v49 }
 0x41e   :  { %13184 = vmatprep.mubr.msk.f32.mxu1 %vm14324_vm2, %v18548_v54  ;;  %13199 = vmatprep.mubr.msk.f32.mxu0 %vm14324_vm2, %v18548_v54  ;;  %v12555_v44 = vcombine.high %v1725_v11, %v1732_v49  ;;  %v2109_v41 = vcombine.low %v1741_v16, %v1748_v50  ;;  %v2057_v53 = vcombine.low %v15182_v51, %v15185_v42 }
 0x41f   :  { %v1936_v4 = vrot.slane %v18554_v62, %v14724_v45  ;;  %v1952_v25 = vrot.slane %v18555_v20, %v14724_v45  ;;  %13221 = vmatprep.subr.mxu0 %v18548_v54  ;;  %v2073_v43 = vcombine.low %v15188_v9, %v15228_v63  ;;  %v12556_v39 = vcombine.high %v1741_v16, %v1748_v50 }
 0x420   :  { %v2241_v26 = vrot.slane %v2233_v47, %v14709_v55  ;;  %v18556_v7 = vcombine.low %v14917_v28, %v14920_v6  ;;  %v18557_v30 = vcombine.high %v14917_v28, %v14920_v6  ;;  %v2248_v48 = vrot.slane %v2234_v2, %v14709_v55 }
 0x421   :  { %v2257_v27 = vrot.slane %v2249_v31, %v14709_v55  ;;  %v2264_v23 = vrot.slane %v2250_v61, %v14709_v55  ;;  %v1955_v46 = vcombine.low %v1936_v4, %v1952_v25  ;;  %v1956_v12 = vcombine.high %v1936_v4, %v1952_v25 }
 0x422   :  { %13185 = vmatmul.mubr.msk.f32.gmra.mrb[10].mxu1 %vm3049_vm3, %v18556_v7  ;;  %13200 = vmatmul.mubr.msk.f32.gmra.mrb[10].mxu0 %vm3049_vm3, %v18557_v30  ;;  %v1997_v28 = vrot.slane %v1989_v34, %v14724_v45  ;;  %v15292_v6 = vrot.slane %v2093_v19, %v14709_v55  ;;  %v15295_v11 = vrot.slane %v12555_v44, %v14709_v55 }
 0x423   :  { %13208 = vmatprep.mubr.msk.f32.mxu1 %vm14324_vm2, %v18548_v54  ;;  %13223 = vmatprep.mubr.msk.f32.mxu0 %vm14324_vm2, %v18548_v54  ;;  %v15298_v49 = vrot.slane %v2109_v41, %v14709_v55  ;;  %v2013_v16 = vrot.slane %v2005_v1, %v14724_v45  ;;  %v15302_v50 = vrot.slane %v12556_v39, %v14709_v55  ;;  %v2200_v41 = vpop.permute.xlu1 %2199 }
 0x424   :  { %13207 = vmatpush3.xpose.msk.msra.mxu1 %vm3049_vm3, %v1955_v46  ;;  %13222 = vmatpush3.xpose.msk.msra.mxu0 %vm3049_vm3, %v1956_v12  ;;  %v2065_v34 = vrot.slane %v2057_v53, %v14724_v45  ;;  %v2081_v47 = vrot.slane %v2073_v43, %v14724_v45  ;;  %v2265_v60 = vcombine.low %v2241_v26, %v2257_v27 }
 0x425   :  { %13834 = vmatprep.subr.bf16.mxu1 %v18549_v58  ;;  %13838 = vmatprep.subr.bf16.mxu0 %v18549_v58  ;;  %v2266_v33 = vcombine.high %v2241_v26, %v2257_v27  ;;  %v2281_v2 = vcombine.low %v2248_v48, %v2264_v23  ;;  %v2021_v31 = vcombine.low %v1997_v28, %v2013_v16 }
 0x426   :  { %v2089_v61 = vcombine.low %v2065_v34, %v2081_v47  ;;  %v2022_v1 = vcombine.high %v1997_v28, %v2013_v16  ;;  %v2090_v62 = vcombine.high %v2065_v34, %v2081_v47  ;;  %v2058_v4 = vcombine.high %v15182_v51, %v15185_v42 }
 0x427   :  { %v2074_v20 = vcombine.high %v15188_v9, %v15228_v63  ;;  %v18558_v25 = vcombine.low %v14897_v14, %v14903_v13  ;;  %v18559_v19 = vcombine.high %v14897_v14, %v14903_v13  ;;  %v2282_v44 = vcombine.high %v2248_v48, %v2264_v23  ;;  %v15347_v63 = vpop.permute.xlu0 %2165 }
 0x428   :  { %v1990_v53 = vcombine.high %v15193_v36, %v15207_v21  ;;  %v13835_v43 = vpack.c.bf16 %v2089_v61, %v2021_v31  ;;  %v13839_v51 = vpack.c.bf16 %v2090_v62, %v2022_v1  ;;  %v2125_v9 = vcombine.low %v15292_v6, %v15295_v11 }
 0x429   :  { %13209 = vmatmul.mubr.msk.f32.vlgmr.msra.gmra.mrb[12].mxu1 %vm3049_vm3, %v18558_v25  ;;  %13224 = vmatmul.mubr.msk.f32.vlgmr.msra.gmra.mrb[12].mxu0 %vm3049_vm3, %v18559_v19  ;;  %v2141_v14 = vcombine.low %v15298_v49, %v15302_v50  ;;  %v15333_v13 = vrot.slane %v2265_v60, %v14724_v45  ;;  %v15336_v42 = vrot.slane %v2266_v33, %v14724_v45 }
 0x42a   :  { %13211 = vmatprep.mubr.msk.f32.mxu1 %vm14324_vm2, %v18548_v54  ;;  %13226 = vmatprep.mubr.msk.f32.mxu0 %vm14324_vm2, %v18548_v54  ;;  %v15339_v36 = vrot.slane %v2281_v2, %v14724_v45  ;;  %v2301_v21 = vcombine.low %v15168_v32, %v15284_v10  ;;  %v2317_v39 = vcombine.low %v15233_v5, %v2200_v41 }
 0x42b   :  { %13837 = vmatpush3.bf16.xpose.msk.msra.mxu1 %vm15074_vm4, %v13835_v43  ;;  %13841 = vmatpush3.bf16.xpose.msk.msra.mxu0 %vm15074_vm4, %v13839_v51  ;;  %v15351_v26 = vrot.slane %v2282_v44, %v14724_v45  ;;  %v2302_v7 = vcombine.high %v15168_v32, %v15284_v10  ;;  %v18560_v30 = vcombine.low %v14911_v57, %v14914_v37  ;;  %v2190_v61 = vpop.permute.xlu0 %2189 }
 0x42c   :  { %v18561_v48 = vcombine.high %v14911_v57, %v14914_v37  ;;  %v2318_v27 = vcombine.high %v15233_v5, %v2200_v41  ;;  %v2006_v23 = vcombine.high %v15210_v35, %v15213_v24  ;;  %v2126_v46 = vcombine.high %v15292_v6, %v15295_v11  ;;  %13236 = vmatprep.subr.mxu1 %v18548_v54  ;;  %v2178_v24 = vpop.permute.xlu1 %2177 }
 0x42d   :  { %13212 = vmatmul.mubr.msk.f32.gmra.mrb[14].mxu1 %vm3049_vm3, %v18560_v30  ;;  %v2325_v32 = vrot.slane %v2317_v39, %v14709_v55  ;;  %v2142_v57 = vcombine.high %v15298_v49, %v15302_v50  ;;  %13251 = vmatprep.subr.mxu0 %v18548_v54  ;;  %v2133_v35 = vrot.slane %v2125_v9, %v14724_v45 }
 0x42e   :  { %13227 = vmatmul.mubr.msk.f32.gmra.mrb[14].mxu0 %vm3049_vm3, %v18561_v48  ;;  %13214 = vmatprep.mubr.msk.f32.mxu1 %vm14324_vm2, %v18548_v54  ;;  %v2332_v37 = vrot.slane %v2318_v27, %v14709_v55  ;;  %v2641_v5 = vcombine.low %v15333_v13, %v15336_v42  ;;  %v12557_v10 = vcombine.high %v15333_v13, %v15336_v42 }
 0x42f   :  { %13229 = vmatprep.mubr.msk.f32.mxu0 %vm14324_vm2, %v18548_v54  ;;  %v2309_v12 = vrot.slane %v2301_v21, %v14709_v55  ;;  %v2149_v28 = vrot.slane %v2141_v14, %v14724_v45  ;;  %v2657_v16 = vcombine.low %v15339_v36, %v15351_v26  ;;  %v2316_v34 = vrot.slane %v2302_v7, %v14709_v55 }
 0x430   :  { %v18562_v47 = vcombine.low %v14935_v15, %v14938_v18  ;;  %v18563_v60 = vcombine.high %v14935_v15, %v14938_v18  ;;  %v2004_v33 = vrot.slane %v1990_v53, %v14724_v45  ;;  %v2020_v44 = vrot.slane %v2006_v23, %v14724_v45  ;;  %v2202_v9 = vpop.permute.xlu1 %2201 }
 0x431   :  { %v2333_v2 = vcombine.low %v2309_v12, %v2325_v32  ;;  %v2334_v31 = vcombine.high %v2309_v12, %v2325_v32  ;;  %v2157_v1 = vcombine.low %v2133_v35, %v2149_v28  ;;  %v2158_v62 = vcombine.high %v2133_v35, %v2149_v28 }
 0x432   :  { %13215 = vmatmul.mubr.msk.f32.gmra.mrb[16].mxu1 %vm3049_vm3, %v18562_v47  ;;  %13230 = vmatmul.mubr.msk.f32.gmra.mrb[16].mxu0 %vm3049_vm3, %v18563_v60  ;;  %v2349_v25 = vcombine.low %v2316_v34, %v2332_v37  ;;  %v2350_v19 = vcombine.high %v2316_v34, %v2332_v37  ;;  %v2072_v15 = vrot.slane %v2058_v4, %v14724_v45 }
 0x433   :  { %13238 = vmatprep.mubr.msk.f32.mxu1 %vm14324_vm2, %v18548_v54  ;;  %13253 = vmatprep.mubr.msk.f32.mxu0 %vm14324_vm2, %v18548_v54  ;;  %v15404_v18 = vrot.slane %v2641_v5, %v14709_v55  ;;  %v12558_v41 = vcombine.high %v15339_v36, %v15351_v26  ;;  %v2088_v53 = vrot.slane %v2074_v20, %v14724_v45 }
 0x434   :  { %13237 = vmatpush3.xpose.msk.msra.mxu1 %vm3049_vm3, %v2157_v1  ;;  %13252 = vmatpush3.xpose.msk.msra.mxu0 %vm3049_vm3, %v2158_v62  ;;  %v2369_v43 = vcombine.low %v15347_v63, %v2190_v61  ;;  %v2370_v51 = vcombine.high %v15347_v63, %v2190_v61  ;;  %v2023_v4 = vcombine.low %v2004_v33, %v2020_v44 }
 0x435   :  { %13842 = vmatprep.subr.bf16.mxu1 %v18549_v58  ;;  %13846 = vmatprep.subr.bf16.mxu0 %v18549_v58  ;;  %v2341_v14 = vrot.slane %v2333_v2, %v14724_v45  ;;  %v2348_v13 = vrot.slane %v2334_v31, %v14724_v45  ;;  %v2091_v42 = vcombine.low %v2072_v15, %v2088_v53 }
 0x436   :  { %v2024_v36 = vcombine.high %v2004_v33, %v2020_v44  ;;  %v2357_v21 = vrot.slane %v2349_v25, %v14724_v45  ;;  %v2364_v20 = vrot.slane %v2350_v19, %v14724_v45  ;;  %v18564_v39 = vcombine.low %v14929_v29, %v14932_v8 }
 0x437   :  { %v18565_v63 = vcombine.high %v14929_v29, %v14932_v8  ;;  %v2092_v26 = vcombine.high %v2072_v15, %v2088_v53  ;;  %v13843_v7 = vpack.c.bf16 %v2091_v42, %v2023_v4  ;;  %v2385_v30 = vcombine.low %v2178_v24, %v2202_v9  ;;  %v18571_v15 = vld [vmem:[#allocation17_spill] sm:$0xff]  ;;  %v18575_v4 = vld [vmem:[#allocation19_spill] sm:$0xff]  ;;  %v18576_v42 = vld [vmem:[#allocation22_spill] sm:$0xff] }
 0x438   :  { %13239 = vmatmul.mubr.msk.f32.vlgmr.msra.gmra.mrb[18].mxu1 %vm3049_vm3, %v18564_v39  ;;  %v2386_v48 = vcombine.high %v2178_v24, %v2202_v9  ;;  %v15432_v27 = vrot.slane %v12557_v10, %v14709_v55  ;;  %v2377_v23 = vrot.slane %v2369_v43, %v14709_v55  ;;  %v2384_v32 = vrot.slane %v2370_v51, %v14709_v55 }
 0x439   :  { %13254 = vmatmul.mubr.msk.f32.vlgmr.msra.gmra.mrb[18].mxu0 %vm3049_vm3, %v18565_v63  ;;  %13241 = vmatprep.mubr.msk.f32.mxu1 %vm14324_vm2, %v18548_v54  ;;  %v13847_v29 = vpack.c.bf16 %v2092_v26, %v2024_v36  ;;  %v2709_v8 = vcombine.low %v2341_v14, %v2348_v13  ;;  %v12559_v37 = vcombine.high %v2341_v14, %v2348_v13  ;;  %v18577_v36 = vld [vmem:[#allocation21_spill] sm:$0xff] }
 0x43a   :  { %13256 = vmatprep.mubr.msk.f32.mxu0 %vm14324_vm2, %v18548_v54  ;;  %13845 = vmatpush3.bf16.xpose.msk.msra.mxu1 %vm15074_vm4, %v13843_v7  ;;  %v2393_v35 = vrot.slane %v2385_v30, %v14709_v55  ;;  %v2400_v5 = vrot.slane %v2386_v48, %v14709_v55  ;;  %v2725_v12 = vcombine.low %v2357_v21, %v2364_v20 }
 0x43b   :  { %13849 = vmatpush3.bf16.xpose.msk.msra.mxu0 %vm15074_vm4, %v13847_v29  ;;  %v18566_v24 = vcombine.low %v15060_v56, %v15082_v52  ;;  %v2140_v10 = vrot.slane %v2126_v46, %v14724_v45  ;;  %v2156_v28 = vrot.slane %v2142_v57, %v14724_v45  ;;  %v18567_v2 = vcombine.high %v15060_v56, %v15082_v52 }
 0x43c   :  { %v2401_v34 = vcombine.low %v2377_v23, %v2393_v35  ;;  %v2402_v47 = vcombine.high %v2377_v23, %v2393_v35  ;;  %v2417_v60 = vcombine.low %v2384_v32, %v2400_v5  ;;  %v2418_v33 = vcombine.high %v2384_v32, %v2400_v5  ;;  %13266 = vmatprep.subr.mxu1 %v18548_v54 }
 0x43d   :  { %13242 = vmatmul.mubr.msk.f32.gmra.mrb[20].mxu1 %vm3049_vm3, %v18566_v24  ;;  %13257 = vmatmul.mubr.msk.f32.gmra.mrb[20].mxu0 %vm3049_vm3, %v18567_v2  ;;  %v15459_v31 = vrot.slane %v2657_v16, %v14709_v55  ;;  %v15462_v6 = vrot.slane %v12558_v41, %v14709_v55  ;;  %v12560_v11 = vcombine.high %v2357_v21, %v2364_v20  ;;  %v18572_v41 = vld [vmem:[#allocation18_spill] sm:$0xff] }
 0x43e   :  { %13244 = vmatprep.mubr.msk.f32.mxu1 %vm14324_vm2, %v18548_v54  ;;  %13259 = vmatprep.mubr.msk.f32.mxu0 %vm14324_vm2, %v18548_v54  ;;  %v15469_v49 = vrot.slane %v2709_v8, %v14709_v55  ;;  %v15472_v56 = vrot.slane %v12559_v37, %v14709_v55  ;;  %v2409_v52 = vrot.slane %v2401_v34, %v14724_v45 }
 0x43f   :  { %v2416_v50 = vrot.slane %v2402_v47, %v14724_v45  ;;  %v2425_v46 = vrot.slane %v2417_v60, %v14724_v45  ;;  %v2432_v57 = vrot.slane %v2418_v33, %v14724_v45  ;;  %v18568_v16 = vcombine.low %v15095_v22, %v15107_v38  ;;  %13281 = vmatprep.subr.mxu0 %v18548_v54 }
 0x440   :  { %v1238_v61 = vcombine.high %v14973_v3, %v14980_v40  ;;  %v15487_v1 = vrot.slane %v2725_v12, %v14709_v55  ;;  %v18569_v62 = vcombine.high %v15095_v22, %v15107_v38  ;;  %v2159_v25 = vcombine.low %v2140_v10, %v2156_v28  ;;  %v18574_v38 = vld [vmem:[#allocation20_spill] sm:$0xff] }
 0x441   :  { %13245 = vmatmul.mubr.msk.f32.gmra.mrb[22].mxu1 %vm3049_vm3, %v18568_v16  ;;  %v18570_v19 = vcombine.high %v14949_v59, %v14952_v0  ;;  %v18573_v53 = vcombine.high %v18571_v15, %v18572_v41  ;;  %v15502_v3 = vrot.slane %v12560_v11, %v14709_v55  ;;  %v2777_v40 = vcombine.low %v2409_v52, %v2416_v50 }
 0x442   :  { %13260 = vmatmul.mubr.msk.f32.gmra.mrb[22].mxu0 %vm3049_vm3, %v18569_v62  ;;  %v2160_v51 = vcombine.high %v2140_v10, %v2156_v28  ;;  %13268 = vmatprep.mubr.msk.f32.mxu1 %vm14324_vm2, %v18548_v54  ;;  %v2673_v59 = vcombine.low %v15404_v18, %v15432_v27  ;;  %v2689_v0 = vcombine.low %v15459_v31, %v15462_v6 }
 0x443   :  { %v1184_v44 = vrot.slane %v18570_v19, %v14724_v45  ;;  %v1200_v43 = vrot.slane %v18573_v53, %v14724_v45  ;;  %13283 = vmatprep.mubr.msk.f32.mxu0 %vm14324_vm2, %v18548_v54  ;;  %13267 = vmatpush3.xpose.msk.msra.mxu1 %vm3049_vm3, %v2159_v25  ;;  %v2741_v22 = vcombine.low %v15469_v49, %v15472_v56 }
 0x444   :  { %v1254_v9 = vcombine.high %v18575_v4, %v18574_v38  ;;  %v12561_v14 = vcombine.high %v2409_v52, %v2416_v50  ;;  %v2793_v13 = vcombine.low %v2425_v46, %v2432_v57  ;;  %13282 = vmatpush3.xpose.msk.msra.mxu0 %vm3049_vm3, %v2160_v51  ;;  %v1135_v21 = vcombine.low %v18577_v36, %v18576_v42 }
 0x445   :  { %14008 = vmatprep.subr.bf16.mxu1 %v18549_v58  ;;  %v12562_v20 = vcombine.high %v2425_v46, %v2432_v57  ;;  %v1136_v39 = vcombine.high %v18577_v36, %v18576_v42  ;;  %13853 = vmatprep.subr.bf16.mxu0 %v18549_v58  ;;  %v2681_v63 = vrot.slane %v2673_v59, %v14724_v45  ;;  %v14329_v38 = vmov -1e+09  }
 0x446   :  { %13269 = vmatmul.mubr.msk.f32.vlgmr.msra.gmra.mrb[24].mxu1 %vm3049_vm3, %v1135_v21  ;;  %v2697_v26 = vrot.slane %v2689_v0, %v14724_v45  ;;  %v2749_v7 = vrot.slane %v2741_v22, %v14724_v45  ;;  %v2757_v30 = vcombine.low %v15487_v1, %v15502_v3  ;;  %v2784_v48 = vrot.slane %v2777_v40, %v14709_v55 }
 0x447   :  { %13284 = vmatmul.mubr.msk.f32.vlgmr.msra.gmra.mrb[24].mxu0 %vm3049_vm3, %v1136_v39  ;;  %14010 = vmatpush3.bf16.xpose.msk.msra.mxu1 %vm15074_vm4, %v13847_v29  ;;  %v1203_v23 = vcombine.low %v1184_v44, %v1200_v43  ;;  %v1252_v32 = vrot.slane %v1238_v61, %v14724_v45  ;;  %v1268_v8 = vrot.slane %v1254_v9, %v14724_v45  ;;  %v18578_v0 = vlaneseq }
 0x448   :  { %13271 = vmatprep.mubr.msk.f32.mxu1 %vm14324_vm2, %v18548_v54  ;;  %13286 = vmatprep.mubr.msk.f32.mxu0 %vm14324_vm2, %v18548_v54  ;;  %v2765_v37 = vrot.slane %v2757_v30, %v14724_v45  ;;  %v2792_v35 = vrot.slane %v12561_v14, %v14709_v55  ;;  %v2800_v5 = vrot.slane %v2793_v13, %v14709_v55 }
 0x449   :  { %v1204_v12 = vcombine.high %v1184_v44, %v1200_v43  ;;  %14009 = vmatprep.subr.mxu1 %v18548_v54  ;;  %v2808_v29 = vrot.slane %v12562_v20, %v14709_v55  ;;  %v2706_v24 = vcombine.high %v2681_v63, %v2697_v26  ;;  %v1271_v60 = vcombine.low %v1252_v32, %v1268_v8 }
 0x44a   :  { %13272 = vmatmul.mubr.msk.f32.gmra.mrb[26].mxu1 %vm3049_vm3, %v1203_v23  ;;  %v2774_v10 = vcombine.high %v2749_v7, %v2765_v37  ;;  %v2809_v28 = vcombine.low %v2784_v48, %v2792_v35  ;;  %v2773_v11 = vcombine.low %v2749_v7, %v2765_v37  ;;  %v2674_v52 = vcombine.high %v15404_v18, %v15432_v27 }
 0x44b   :  { %13287 = vmatmul.mubr.msk.f32.gmra.mrb[26].mxu0 %vm3049_vm3, %v1204_v12  ;;  %13274 = vmatprep.mubr.msk.f32.mxu1 %vm14324_vm2, %v18548_v54  ;;  %v2825_v34 = vcombine.low %v2800_v5, %v2808_v29  ;;  %v2690_v50 = vcombine.high %v15459_v31, %v15462_v6  ;;  %v2742_v46 = vcombine.high %v15469_v49, %v15472_v56  ;;  %v172_v22 = vand.u32 127, %v18578_v0 }
 0x44c   :  { %v13854_v47 = vpack.c.bf16 %v2774_v10, %v2706_v24  ;;  %v2817_v33 = vrot.slane %v2809_v28, %v14724_v45  ;;  %13313 = vmatprep.mubr.msk.f32.mxu0 %vm14324_vm2, %v18548_v54  ;;  %v2705_v16 = vcombine.low %v2681_v63, %v2697_v26  ;;  %v1272_v61 = vcombine.high %v1252_v32, %v1268_v8 }
 0x44d   :  { %v2833_v2 = vrot.slane %v2825_v34, %v14724_v45  ;;  %v2688_v18 = vrot.slane %v2674_v52, %v14724_v45  ;;  %v2704_v31 = vrot.slane %v2690_v50, %v14724_v45  ;;  %v2756_v6 = vrot.slane %v2742_v46, %v14724_v45 }
 0x44e   :  { %13855 = vmatpush3.bf16.msra.mxu0 %v13854_v47  ;;  %13275 = vmatmul.mubr.msk.f32.gmra.mrb[28].mxu1 %vm3049_vm3, %v1271_v60  ;;  %v13851_v27 = vpack.c.bf16 %v2773_v11, %v2705_v16  ;;  %v2758_v49 = vcombine.high %v15487_v1, %v15502_v3  ;;  %v2810_v44 = vcombine.high %v2784_v48, %v2792_v35  ;;  %vm173_vm5 = vcmp.lt.s32.totalorder %v172_v22, 17 }
 0x44f   :  { %14011 = vmatpush3.xpose.msk.msra.mxu1 %vm3049_vm3, %v2160_v51  ;;  %13311 = vmatprep.subr.mxu0 %v18548_v54  ;;  %v2842_v57 = vcombine.high %v2817_v33, %v2833_v2  ;;  %v2707_v56 = vcombine.low %v2688_v18, %v2704_v31  ;;  %v2841_v25 = vcombine.low %v2817_v33, %v2833_v2  ;;  %v15592_v4 = vsel %vm173_vm5, 0.0, %v14329_v38 }
 0x450   :  { %13289 = vmatprep.mubr.msk.f32.mxu1 %vm14324_vm2, %v18548_v54  ;;  %13850 = vmatprep.subr.bf16.mxu1 %v18549_v58  ;;  %v2772_v62 = vrot.slane %v2758_v49, %v14724_v45  ;;  %v2708_v19 = vcombine.high %v2688_v18, %v2704_v31  ;;  %v15577_v53 = vrot.slane %v2810_v44, %v14724_v45 }
 0x451   :  { %v2826_v1 = vcombine.high %v2800_v5, %v2808_v29 }
 0x452   :  { %13312 = vmatpush3.msra.mxu0 %v2842_v57  ;;  %13290 = vmatmul.mubr.msk.f32.vlgmr.msra.gmra.mrb[30].mxu1 %vm3049_vm3, %v1272_v61  ;;  %v2775_v15 = vcombine.low %v2756_v6, %v2772_v62  ;;  %v2776_v41 = vcombine.high %v2756_v6, %v2772_v62 }
 0x453   :  { %13852 = vmatpush3.bf16.msra.mxu1 %v13851_v27  ;;  %13298 = vmatprep.mubr.msk.f32.mxu1 %vm14324_vm2, %v18548_v54  ;;  %v15585_v40 = vrot.slane %v2826_v1, %v14724_v45 }
 0x454   :  { %13296 = vmatprep.subr.mxu1 %v18548_v54  ;;  %13859 = vmatprep.subr.bf16.mxu0 %v18549_v58  ;;  %v15580_v43 = vpack.c.bf16 %v2775_v15, %v2707_v56  ;;  %v15582_v3 = vpack.c.bf16 %v2776_v41, %v2708_v19 }
 0x455   :  { %v2843_v51 = vcombine.low %v15577_v53, %v15585_v40  ;;  %v2844_v59 = vcombine.high %v15577_v53, %v15585_v40 }
 0x457   :  { %13297 = vmatpush3.msra.mxu1 %v2841_v25 }
 0x458   :  { %13856 = vmatprep.subr.bf16.mxu1 %v18549_v58 }
 0x4ec   :  { %v3134_v9 = vpop.f32.mrb[6].mxu1  ;;  %v3232_v14 = vpop.f32.mrb[6].mxu0 }
 0x4ed   :  { %v3834_v13 = vmul.f32 0.35355338, %v3134_v9  ;;  %v3837_v42 = vmul.f32 0.35355338, %v3232_v14  ;;  %v13180_v36 = vpop.f32.mrb[7].mxu1  ;;  %v13195_v21 = vpop.f32.mrb[7].mxu0 }
 0x4ef   :  { %v15595_v20 = vadd.f32 %v3837_v42, %v15592_v4  ;;  %v15598_v39 = vadd.f32 %v3834_v13, %v15592_v4 }
 0x4f0   :  { %v3139_v63 = vpop.f32.mrb[8].mxu1  ;;  %v3237_v26 = vpop.f32.mrb[8].mxu0 }
 0x4f1   :  { %v3835_v7 = vmul.f32 0.35355338, %v3139_v63  ;;  %v13183_v30 = vpop.f32.mrb[9].mxu1  ;;  %v13198_v48 = vpop.f32.mrb[9].mxu0  ;;  %v3838_v23 = vmul.f32 0.35355338, %v3237_v26 }
 0x4f2   :  { %v3892_v32 = vsel %vm3882_vm6, %v15595_v20, -inf  ;;  %v3883_v8 = vsel %vm3882_vm6, %v15598_v39, -inf }
 0x4f3   :  { %3893 = vmax.xlane.f32.xlu1 %v3892_v32  ;;  %3884 = vmax.xlane.f32.xlu0 %v3883_v8  ;;  %v15605_v37 = vadd.f32 %v3835_v7, %v15592_v4  ;;  %v15610_v34 = vadd.f32 %v3838_v23, %v15592_v4 }
 0x4f5   :  { %v3144_v35 = vpop.f32.mrb[10].mxu1  ;;  %v3242_v5 = vpop.f32.mrb[10].mxu0  ;;  %v3886_v28 = vsel %vm3882_vm6, %v15605_v37, -inf  ;;  %v3895_v11 = vsel %vm3882_vm6, %v15610_v34, -inf }
 0x4f6   :  { %v3839_v12 = vmul.f32 0.35355338, %v3242_v5  ;;  %v13186_v29 = vpop.f32.mrb[11].mxu1  ;;  %v13201_v24 = vpop.f32.mrb[11].mxu0  ;;  %v3836_v10 = vmul.f32 0.35355338, %v3144_v35 }
 0x4f7   :  { %3887 = vmax.xlane.f32.xlu0 %v3886_v28 }
 0x4f8   :  { %v15613_v47 = vadd.f32 %v3839_v12, %v15592_v4  ;;  %v15620_v52 = vadd.f32 %v3836_v10, %v15592_v4 }
 0x4fa   :  { %v3898_v60 = vsel %vm3882_vm6, %v15613_v47, -inf  ;;  %v3889_v31 = vsel %vm3882_vm6, %v15620_v52, -inf }
 0x4fb   :  { %3899 = vmax.xlane.f32.xlu1 %v3898_v60  ;;  %3896 = vmax.xlane.f32.xlu0 %v3895_v11 }
 0x4fc   :  { %v3330_v33 = vpop.f32.mrb[12].mxu1  ;;  %v3428_v2 = vpop.f32.mrb[12].mxu0 }
 0x4fd   :  { %v3840_v50 = vmul.f32 0.35355338, %v3330_v33  ;;  %v3843_v46 = vmul.f32 0.35355338, %v3428_v2  ;;  %v13210_v57 = vpop.f32.mrb[13].mxu1  ;;  %v13225_v16 = vpop.f32.mrb[13].mxu0 }
 0x4ff   :  { %v15623_v61 = vadd.f32 %v3843_v46, %v15592_v4  ;;  %v15628_v6 = vadd.f32 %v3840_v50, %v15592_v4  ;;  %3890 = vmax.xlane.f32.xlu0 %v3889_v31 }
 0x500   :  { %v3335_v18 = vpop.f32.mrb[14].mxu1 }
 0x501   :  { %v3433_v27 = vpop.f32.mrb[14].mxu0  ;;  %v3841_v49 = vmul.f32 0.35355338, %v3335_v18  ;;  %v13213_v62 = vpop.f32.mrb[15].mxu1  ;;  %v3910_v19 = vsel %vm3882_vm6, %v15623_v61, -inf  ;;  %v3901_v1 = vsel %vm3882_vm6, %v15628_v6, -inf }
 0x502   :  { %v3844_v56 = vmul.f32 0.35355338, %v3433_v27  ;;  %v13228_v25 = vpop.f32.mrb[15].mxu0  ;;  %3911 = vmax.xlane.f32.xlu1 %v3910_v19 }
 0x503   :  { %v15638_v0 = vadd.f32 %v3841_v49, %v15592_v4  ;;  %3902 = vmax.xlane.f32.xlu0 %v3901_v1 }
 0x504   :  { %v15633_v44 = vadd.f32 %v3844_v56, %v15592_v4 }
 0x505   :  { %v3340_v15 = vpop.f32.mrb[16].mxu1  ;;  %v3438_v41 = vpop.f32.mrb[16].mxu0  ;;  %v3904_v36 = vsel %vm3882_vm6, %v15638_v0, -inf }
 0x506   :  { %v3842_v22 = vmul.f32 0.35355338, %v3340_v15  ;;  %v3845_v38 = vmul.f32 0.35355338, %v3438_v41  ;;  %v13216_v9 = vpop.f32.mrb[17].mxu1  ;;  %v13231_v14 = vpop.f32.mrb[17].mxu0 }
 0x507   :  { %v3913_v13 = vsel %vm3882_vm6, %v15633_v44, -inf  ;;  %3905 = vmax.xlane.f32.xlu0 %v3904_v36 }
 0x508   :  { %3914 = vmax.xlane.f32.xlu1 %v3913_v13  ;;  %v15643_v42 = vadd.f32 %v3845_v38, %v15592_v4  ;;  %v15648_v21 = vadd.f32 %v3842_v22, %v15592_v4 }
 0x50a   :  { %v3916_v63 = vsel %vm3882_vm6, %v15643_v42, -inf  ;;  %v3907_v8 = vsel %vm3882_vm6, %v15648_v21, -inf }
 0x50b   :  { %v3526_v26 = vpop.f32.mrb[18].mxu1  ;;  %3908 = vmax.xlane.f32.xlu0 %v3907_v8 }
 0x50c   :  { %v3624_v7 = vpop.f32.mrb[18].mxu0  ;;  %v3846_v30 = vmul.f32 0.35355338, %v3526_v26  ;;  %v13240_v23 = vpop.f32.mrb[19].mxu1  ;;  %3917 = vmax.xlane.f32.xlu1 %v3916_v63 }
 0x50d   :  { %v3849_v48 = vmul.f32 0.35355338, %v3624_v7  ;;  %v13255_v32 = vpop.f32.mrb[19].mxu0 }
 0x50e   :  { %v15658_v5 = vadd.f32 %v3846_v30, %v15592_v4 }
 0x50f   :  { %v15655_v35 = vadd.f32 %v3849_v48, %v15592_v4 }
 0x510   :  { %v3531_v12 = vpop.f32.mrb[20].mxu1  ;;  %v3629_v24 = vpop.f32.mrb[20].mxu0  ;;  %v3919_v2 = vsel %vm3882_vm6, %v15658_v5, -inf }
 0x511   :  { %v3847_v29 = vmul.f32 0.35355338, %v3531_v12  ;;  %v13243_v10 = vpop.f32.mrb[21].mxu1  ;;  %v3928_v28 = vsel %vm3882_vm6, %v15655_v35, -inf  ;;  %v3850_v60 = vmul.f32 0.35355338, %v3629_v24  ;;  %3920 = vmax.xlane.f32.xlu0 %v3919_v2 }
 0x512   :  { %v13258_v33 = vpop.f32.mrb[21].mxu0  ;;  %3929 = vmax.xlane.f32.xlu1 %v3928_v28 }
 0x513   :  { %v15665_v11 = vadd.f32 %v3847_v29, %v15592_v4  ;;  %v15668_v46 = vadd.f32 %v3850_v60, %v15592_v4 }
 0x514   :  { %v3536_v50 = vpop.f32.mrb[22].mxu1 }
 0x515   :  { %v3848_v57 = vmul.f32 0.35355338, %v3536_v50  ;;  %v3634_v16 = vpop.f32.mrb[22].mxu0  ;;  %v13246_v18 = vpop.f32.mrb[23].mxu1  ;;  %v3931_v49 = vsel %vm3882_vm6, %v15668_v46, -inf  ;;  %v3922_v56 = vsel %vm3882_vm6, %v15665_v11, -inf }
 0x516   :  { %v3851_v27 = vmul.f32 0.35355338, %v3634_v16  ;;  %v13261_v31 = vpop.f32.mrb[23].mxu0  ;;  %3932 = vmax.xlane.f32.xlu1 %v3931_v49  ;;  %3923 = vmax.xlane.f32.xlu0 %v3922_v56  ;;  %v18579_v49 = vld [vmem:[#allocation16_spill] sm:$0xff]  ;;  %v15716_v56 = vpop.permute.xlu1 %2169 }
 0x517   :  { %v15675_v62 = vadd.f32 %v3848_v57, %v15592_v4 }
 0x518   :  { %v15678_v25 = vadd.f32 %v3851_v27, %v15592_v4 }
 0x519   :  { %v3722_v19 = vpop.f32.mrb[24].mxu1  ;;  %v3925_v41 = vsel %vm3882_vm6, %v15675_v62, -inf }
 0x51a   :  { %v3934_v15 = vsel %vm3882_vm6, %v15678_v25, -inf  ;;  %v3852_v1 = vmul.f32 0.35355338, %v3722_v19  ;;  %v3820_v22 = vpop.f32.mrb[24].mxu0  ;;  %v13270_v38 = vpop.f32.mrb[25].mxu1  ;;  %3926 = vmax.xlane.f32.xlu0 %v3925_v41 }
 0x51b   :  { %3935 = vmax.xlane.f32.xlu1 %v3934_v15  ;;  %v3855_v9 = vmul.f32 0.35355338, %v3820_v22  ;;  %v13285_v14 = vpop.f32.mrb[25].mxu0  ;;  %v15718_v19 = vpop.permute.xlu1 %2179 }
 0x51c   :  { %v15685_v13 = vadd.f32 %v3852_v1, %v15592_v4  ;;  %v15720_v15 = vpop.permute.xlu0 %2167 }
 0x51d   :  { %v15688_v36 = vadd.f32 %v3855_v9, %v15592_v4  ;;  %v3727_v63 = vpop.f32.mrb[26].mxu1 }
 0x51e   :  { %v3853_v26 = vmul.f32 0.35355338, %v3727_v63  ;;  %v3825_v7 = vpop.f32.mrb[26].mxu0  ;;  %v13273_v30 = vpop.f32.mrb[27].mxu1  ;;  %v3937_v48 = vsel %vm3882_vm6, %v15685_v13, -inf }
 0x51f   :  { %v3856_v23 = vmul.f32 0.35355338, %v3825_v7  ;;  %v13288_v32 = vpop.f32.mrb[27].mxu0  ;;  %v3946_v8 = vsel %vm3882_vm6, %v15688_v36, -inf  ;;  %3938 = vmax.xlane.f32.xlu0 %v3937_v48  ;;  %v15722_v41 = vpop.permute.xlu1 %2183 }
 0x520   :  { %3947 = vmax.xlane.f32.xlu1 %v3946_v8  ;;  %v15695_v12 = vadd.f32 %v3853_v26, %v15592_v4  ;;  %v15724_v1 = vpop.permute.xlu0 %2191 }
 0x521   :  { %v15698_v29 = vadd.f32 %v3856_v23, %v15592_v4  ;;  %v3732_v24 = vpop.f32.mrb[28].mxu1 }
 0x522   :  { %v3854_v10 = vmul.f32 0.35355338, %v3732_v24  ;;  %v13276_v28 = vpop.f32.mrb[29].mxu1  ;;  %v3940_v60 = vsel %vm3882_vm6, %v15695_v12, -inf }
 0x523   :  { %v3949_v33 = vsel %vm3882_vm6, %v15698_v29, -inf  ;;  %3941 = vmax.xlane.f32.xlu0 %v3940_v60  ;;  %v15726_v22 = vpop.permute.xlu1 %2181 }
 0x524   :  { %3950 = vmax.xlane.f32.xlu1 %v3949_v33  ;;  %v15705_v2 = vadd.f32 %v3854_v10, %v15592_v4  ;;  %v15728_v38 = vpop.permute.xlu0 %2203 }
 0x525   :  { %v3830_v50 = vpop.f32.mrb[30].mxu1 }
 0x526   :  { %v3857_v57 = vmul.f32 0.35355338, %v3830_v50  ;;  %v13291_v16 = vpop.f32.mrb[31].mxu1  ;;  %v3943_v18 = vsel %vm3882_vm6, %v15705_v2, -inf }
 0x527   :  { %3944 = vmax.xlane.f32.xlu0 %v3943_v18  ;;  %v15730_v9 = vpop.permute.xlu1 %2193 }
 0x528   :  { %v15710_v27 = vadd.f32 %v3857_v57, %v15592_v4  ;;  %v15732_v14 = vpop.permute.xlu0 %2171 }
 0x52a   :  { %v3952_v31 = vsel %vm3882_vm6, %v15710_v27, -inf }
 0x52b   :  { %3953 = vmax.xlane.f32.xlu1 %v3952_v31  ;;  %v15734_v63 = vpop.permute.xlu1 %2205 }
 0x53d   :  { %2195 = vrot.lane.b32.xlu0 %v18579_v49, %s14326_s13 }
 0x580   :  { %v3894_v26 = vpop.xlane.xlu1 %3893  ;;  %v3885_v7 = vpop.xlane.xlu0 %3884 }
 0x581   :  { %v3958_v30 = vsub.f32 %v15595_v20, %v3894_v26  ;;  %v3955_v48 = vsub.f32 %v15598_v39, %v3885_v7 }
 0x583   :  { %v3985_v23 = vmul.f32 1.442695, %v3958_v30  ;;  %v3979_v32 = vmul.f32 1.442695, %v3955_v48 }
 0x584   :  { %v3888_v8 = vpop.xlane.xlu0 %3887 }
 0x585   :  { %14039 = vpow2.f32 %v3985_v23  ;;  %v3956_v24 = vsub.f32 %v15605_v37, %v3888_v8 }
 0x586   :  { %14041 = vpow2.f32 %v3979_v32 }
 0x587   :  { %v3981_v10 = vmul.f32 1.442695, %v3956_v24 }
 0x588   :  { %v3900_v28 = vpop.xlane.xlu1 %3899  ;;  %v3897_v33 = vpop.xlane.xlu0 %3896 }
 0x589   :  { %v3960_v60 = vsub.f32 %v15613_v47, %v3900_v28  ;;  %14043 = vpow2.f32 %v3981_v10  ;;  %v3959_v50 = vsub.f32 %v15610_v34, %v3897_v33 }
 0x58b   :  { %v3989_v57 = vmul.f32 1.442695, %v3960_v60  ;;  %v3987_v16 = vmul.f32 1.442695, %v3959_v50 }
 0x58c   :  { %v3891_v20 = vpop.xlane.xlu0 %3890 }
 0x58d   :  { %14045 = vpow2.f32 %v3987_v16  ;;  %v3957_v39 = vsub.f32 %v15620_v52, %v3891_v20 }
 0x58e   :  { %14047 = vpow2.f32 %v3989_v57 }
 0x58f   :  { %v3912_v18 = vpop.xlane.xlu1 %3911  ;;  %v15742_v31 = vpop.eup %14039  ;;  %v3983_v49 = vmul.f32 1.442695, %v3957_v39 }
 0x590   :  { %v3964_v37 = vsub.f32 %v15623_v61, %v3912_v18  ;;  %v15745_v26 = vpop.eup %14041  ;;  %v3903_v47 = vpop.xlane.xlu0 %3902  ;;  %v4036_v7 = vsel %vm3882_vm6, %v15742_v31, 0.0 }
 0x591   :  { %14049 = vpow2.f32 %v3983_v49  ;;  %v3961_v34 = vsub.f32 %v15628_v6, %v3903_v47  ;;  %4037 = vadd.xlane.f32.xlu1 %v4036_v7  ;;  %v4027_v52 = vsel %vm3882_vm6, %v15745_v26, 0.0 }
 0x592   :  { %4028 = vadd.xlane.f32.xlu0 %v4027_v52  ;;  %v3997_v61 = vmul.f32 1.442695, %v3964_v37 }
 0x593   :  { %v15754_v48 = vpop.eup %14043  ;;  %v3991_v23 = vmul.f32 1.442695, %v3961_v34 }
 0x594   :  { %v3906_v32 = vpop.xlane.xlu0 %3905  ;;  %v4030_v8 = vsel %vm3882_vm6, %v15754_v48, 0.0 }
 0x595   :  { %v15752_v30 = vpop.xlane.xlu1 %3914  ;;  %14051 = vpow2.f32 %v3991_v23  ;;  %v3962_v24 = vsub.f32 %v15638_v0, %v3906_v32 }
 0x596   :  { %4031 = vadd.xlane.f32.xlu0 %v4030_v8  ;;  %14053 = vpow2.f32 %v3997_v61 }
 0x597   :  { %v15761_v6 = vpop.eup %14045  ;;  %v3993_v28 = vmul.f32 1.442695, %v3962_v24 }
 0x598   :  { %v3909_v60 = vpop.xlane.xlu0 %3908  ;;  %v4039_v33 = vsel %vm3882_vm6, %v15761_v6, 0.0  ;;  %v15765_v50 = vpop.eup %14047 }
 0x599   :  { %v15759_v10 = vpop.xlane.xlu1 %3917  ;;  %v3963_v57 = vsub.f32 %v15648_v21, %v3909_v60  ;;  %4040 = vadd.xlane.f32.xlu1 %v4039_v33  ;;  %14055 = vpow2.f32 %v3993_v28  ;;  %v4042_v18 = vsel %vm3882_vm6, %v15765_v50, 0.0 }
 0x59b   :  { %v15768_v16 = vpop.eup %14049  ;;  %v3995_v20 = vmul.f32 1.442695, %v3963_v57 }
 0x59c   :  { %v4033_v37 = vsel %vm3882_vm6, %v15768_v16, 0.0 }
 0x59d   :  { %4043 = vadd.xlane.f32.xlu1 %v4042_v18  ;;  %4034 = vadd.xlane.f32.xlu0 %v4033_v37  ;;  %14057 = vpow2.f32 %v3995_v20 }
 0x59e   :  { %v3921_v39 = vpop.xlane.xlu0 %3920 }
 0x59f   :  { %v15770_v0 = vpop.xlane.xlu1 %3929  ;;  %v3967_v49 = vsub.f32 %v15658_v5, %v3921_v39  ;;  %v15777_v47 = vpop.eup %14051 }
 0x5a0   :  { %v4045_v52 = vsel %vm3882_vm6, %v15777_v47, 0.0  ;;  %v15783_v61 = vpop.eup %14053 }
 0x5a1   :  { %v4003_v21 = vmul.f32 1.442695, %v3967_v49  ;;  %4046 = vadd.xlane.f32.xlu0 %v4045_v52  ;;  %v4054_v24 = vsel %vm3882_vm6, %v15783_v61, 0.0  ;;  %v18580_v52 = vld [vmem:[#allocation15_spill] sm:$0xff] }
 0x5a3   :  { %v15779_v7 = vpop.xlane.xlu1 %3932  ;;  %v3924_v34 = vpop.xlane.xlu0 %3923  ;;  %14059 = vpow2.f32 %v4003_v21 }
 0x5a4   :  { %v3968_v23 = vsub.f32 %v15665_v11, %v3924_v34  ;;  %v15790_v28 = vpop.eup %14055 }
 0x5a5   :  { %4055 = vadd.xlane.f32.xlu0 %v4054_v24  ;;  %v4048_v57 = vsel %vm3882_vm6, %v15790_v28, 0.0 }
 0x5a6   :  { %v4005_v32 = vmul.f32 1.442695, %v3968_v23 }
 0x5a7   :  { %v3927_v8 = vpop.xlane.xlu0 %3926  ;;  %v15795_v11 = vpop.eup %14057 }
 0x5a8   :  { %v15786_v5 = vpop.xlane.xlu1 %3935  ;;  %v3969_v60 = vsub.f32 %v15675_v62, %v3927_v8  ;;  %14061 = vpow2.f32 %v4005_v32  ;;  %v4051_v62 = vsel %vm3882_vm6, %v15795_v11, 0.0 }
 0x5a9   :  { %4049 = vadd.xlane.f32.xlu0 %v4048_v57 }
 0x5aa   :  { %v4007_v33 = vmul.f32 1.442695, %v3969_v60 }
 0x5ac   :  { %v3939_v20 = vpop.xlane.xlu0 %3938  ;;  %14063 = vpow2.f32 %v4007_v33 }
 0x5ad   :  { %v3948_v39 = vpop.xlane.xlu1 %3947  ;;  %v3973_v18 = vsub.f32 %v15685_v13, %v3939_v20  ;;  %v15801_v21 = vpop.eup %14059  ;;  %4052 = vadd.xlane.f32.xlu0 %v4051_v62  ;;  %v3966_v62 = vsub.f32 %v15643_v42, %v15759_v10  ;;  %v3971_v42 = vsub.f32 %v15668_v46, %v15779_v7 }
 0x5ae   :  { %v3976_v37 = vsub.f32 %v15688_v36, %v3948_v39  ;;  %2207 = vrot.lane.b32.xlu1 %v18580_v52, %s14326_s13  ;;  %v4063_v13 = vsel %vm3882_vm6, %v15801_v21, 0.0 }
 0x5af   :  { %v4015_v49 = vmul.f32 1.442695, %v3973_v18  ;;  %v3965_v18 = vsub.f32 %v15633_v44, %v15752_v30  ;;  %v3970_v44 = vsub.f32 %v15655_v35, %v15770_v0  ;;  %v3972_v35 = vsub.f32 %v15678_v25, %v15786_v5 }
 0x5b0   :  { %v3942_v34 = vpop.xlane.xlu0 %3941  ;;  %v4021_v23 = vmul.f32 1.442695, %v3976_v37 }
 0x5b1   :  { %14065 = vpow2.f32 %v4015_v49  ;;  %v3974_v32 = vsub.f32 %v15695_v12, %v3942_v34  ;;  %4064 = vadd.xlane.f32.xlu0 %v4063_v13  ;;  %v3999_v49 = vmul.f32 1.442695, %v3965_v18  ;;  %v4009_v13 = vmul.f32 1.442695, %v3970_v44  ;;  %v3951_v0 = vpop.xlane.xlu1 %3950 }
 0x5b2   :  { %v15808_v36 = vpop.eup %14061  ;;  %14067 = vpow2.f32 %v4021_v23  ;;  %v4001_v23 = vmul.f32 1.442695, %v3966_v62 }
 0x5b3   :  { %v4017_v24 = vmul.f32 1.442695, %v3974_v32  ;;  %v4066_v33 = vsel %vm3882_vm6, %v15808_v36, 0.0 }
 0x5b4   :  { %v3945_v8 = vpop.xlane.xlu0 %3944 }
 0x5b5   :  { %v3975_v60 = vsub.f32 %v15705_v2, %v3945_v8  ;;  %4067 = vadd.xlane.f32.xlu0 %v4066_v33  ;;  %14069 = vpow2.f32 %v4017_v24  ;;  %v4011_v8 = vmul.f32 1.442695, %v3971_v42  ;;  %v3977_v33 = vsub.f32 %v15698_v29, %v3951_v0 }
 0x5b6   :  { %v15813_v57 = vpop.eup %14063  ;;  %v2521_v42 = vcombine.low %v15726_v22, %v15734_v63  ;;  %v2454_v0 = vcombine.high %v15718_v19, %v15728_v38 }
 0x5b7   :  { %v4019_v20 = vmul.f32 1.442695, %v3975_v60  ;;  %v4069_v12 = vsel %vm3882_vm6, %v15813_v57, 0.0  ;;  %v4013_v60 = vmul.f32 1.442695, %v3972_v35  ;;  %v2505_v35 = vcombine.low %v15716_v56, %v15730_v9 }
 0x5b9   :  { %4070 = vadd.xlane.f32.xlu0 %v4069_v12  ;;  %14071 = vpow2.f32 %v4019_v20  ;;  %v3954_v20 = vpop.xlane.xlu1 %3953  ;;  %v4023_v12 = vmul.f32 1.442695, %v3977_v33  ;;  %v2437_v33 = vcombine.low %v15720_v15, %v15724_v1 }
 0x5ba   :  { %14073 = vpow2.f32 %v3999_v49  ;;  %v3978_v18 = vsub.f32 %v15710_v27, %v3954_v20  ;;  %v2529_v20 = vrot.slane %v2521_v42, %v14709_v55 }
 0x5bb   :  { %v15817_v39 = vpop.eup %14065  ;;  %14075 = vpow2.f32 %v4001_v23 }
 0x5bc   :  { %v4081_v2 = vsel %vm3882_vm6, %v15817_v39, 0.0  ;;  %v15823_v37 = vpop.eup %14067  ;;  %14077 = vpow2.f32 %v4009_v13 }
 0x5bd   :  { %4082 = vadd.xlane.f32.xlu0 %v4081_v2  ;;  %v4090_v34 = vsel %vm3882_vm6, %v15823_v37, 0.0  ;;  %14079 = vpow2.f32 %v4011_v8  ;;  %v4025_v2 = vmul.f32 1.442695, %v3978_v18  ;;  %v2453_v8 = vcombine.low %v15718_v19, %v15728_v38 }
 0x5be   :  { %14081 = vpow2.f32 %v4013_v60  ;;  %v2506_v60 = vcombine.high %v15716_v56, %v15730_v9  ;;  %v2513_v18 = vrot.slane %v2505_v35, %v14709_v55  ;;  %v2468_v19 = vrot.slane %v2454_v0, %v14709_v55 }
 0x5bf   :  { %v15829_v52 = vpop.eup %14069  ;;  %14083 = vpow2.f32 %v4023_v12  ;;  %v2461_v12 = vrot.slane %v2453_v8, %v14709_v55  ;;  %v2445_v9 = vrot.slane %v2437_v33, %v14709_v55 }
 0x5c0   :  { %v4084_v30 = vsel %vm3882_vm6, %v15829_v52, 0.0  ;;  %14085 = vpow2.f32 %v4025_v2  ;;  %v2520_v56 = vrot.slane %v2506_v60, %v14709_v55  ;;  %v2538_v2 = vcombine.high %v2513_v18, %v2529_v20 }
 0x5c1   :  { %4091 = vadd.xlane.f32.xlu0 %v4090_v34 }
 0x5c2   :  { %v2552_v8 = vrot.slane %v2538_v2, %v14724_v45 }
 0x5c3   :  { %v15835_v32 = vpop.eup %14071 }
 0x5c4   :  { %v4087_v10 = vsel %vm3882_vm6, %v15835_v32, 0.0  ;;  %v15843_v24 = vpop.eup %14073 }
 0x5c5   :  { %4085 = vadd.xlane.f32.xlu0 %v4084_v30  ;;  %v4057_v46 = vsel %vm3882_vm6, %v15843_v24, 0.0  ;;  %v15848_v7 = vpop.eup %14075 }
 0x5c6   :  { %v4060_v25 = vsel %vm3882_vm6, %v15848_v7, 0.0  ;;  %v15853_v5 = vpop.eup %14077 }
 0x5c7   :  { %v4072_v29 = vsel %vm3882_vm6, %v15853_v5, 0.0  ;;  %v15857_v49 = vpop.eup %14079 }
 0x5c8   :  { %v4075_v62 = vsel %vm3882_vm6, %v15857_v49, 0.0  ;;  %v15861_v34 = vpop.eup %14081 }
 0x5c9   :  { %4088 = vadd.xlane.f32.xlu0 %v4087_v10  ;;  %v4078_v27 = vsel %vm3882_vm6, %v15861_v34, 0.0  ;;  %v15865_v23 = vpop.eup %14083  ;;  %v2522_v10 = vcombine.high %v15726_v22, %v15734_v63  ;;  %v2438_v22 = vcombine.high %v15720_v15, %v15724_v1 }
 0x5ca   :  { %v4093_v44 = vsel %vm3882_vm6, %v15865_v23, 0.0  ;;  %v15869_v30 = vpop.eup %14085 }
 0x5cb   :  { %v4096_v13 = vsel %vm3882_vm6, %v15869_v30, 0.0  ;;  %v2536_v63 = vrot.slane %v2522_v10, %v14709_v55 }
 0x5cd   :  { %v2553_v15 = vcombine.low %v2520_v56, %v2536_v63  ;;  %v2554_v1 = vcombine.high %v2520_v56, %v2536_v63 }
 0x5cf   :  { %v2561_v0 = vrot.slane %v2553_v15, %v14724_v45  ;;  %v2568_v60 = vrot.slane %v2554_v1, %v14724_v45 }
 0x5d1   :  { %v2929_v56 = vcombine.low %v2561_v0, %v2568_v60 }
 0x5d2   :  { %4058 = vadd.xlane.f32.xlu1 %v4057_v46  ;;  %v15888_v46 = vpop.permute.xlu0 %2195 }
 0x5d6   :  { %4061 = vadd.xlane.f32.xlu1 %v4060_v25  ;;  %v2537_v25 = vcombine.low %v2513_v18, %v2529_v20 }
 0x5d8   :  { %v2545_v10 = vrot.slane %v2537_v25, %v14724_v45 }
 0x5da   :  { %4073 = vadd.xlane.f32.xlu1 %v4072_v29  ;;  %v2913_v18 = vcombine.low %v2545_v10, %v2552_v8 }
 0x5de   :  { %4076 = vadd.xlane.f32.xlu1 %v4075_v62  ;;  %v2452_v62 = vrot.slane %v2438_v22, %v14709_v55 }
 0x5e0   :  { %v2486_v42 = vcombine.high %v2452_v62, %v2468_v19 }
 0x5e2   :  { %4079 = vadd.xlane.f32.xlu1 %v4078_v27  ;;  %v2469_v27 = vcombine.low %v2445_v9, %v2461_v12  ;;  %v2500_v63 = vrot.slane %v2486_v42, %v14724_v45 }
 0x5e4   :  { %v2477_v33 = vrot.slane %v2469_v27, %v14724_v45 }
 0x5e6   :  { %4094 = vadd.xlane.f32.xlu1 %v4093_v44  ;;  %v2470_v44 = vcombine.high %v2445_v9, %v2461_v12 }
 0x5e8   :  { %v2484_v20 = vrot.slane %v2470_v44, %v14724_v45 }
 0x5ea   :  { %4097 = vadd.xlane.f32.xlu1 %v4096_v13  ;;  %v2485_v13 = vcombine.low %v2452_v62, %v2468_v19  ;;  %v12565_v19 = vcombine.high %v2545_v10, %v2552_v8  ;;  %v2845_v25 = vcombine.low %v2477_v33, %v2484_v20  ;;  %v15916_v8 = vrot.slane %v2929_v56, %v14709_v55 }
 0x5ec   :  { %v2493_v22 = vrot.slane %v2485_v13, %v14724_v45  ;;  %v15909_v13 = vrot.slane %v2913_v18, %v14709_v55  ;;  %v15912_v42 = vrot.slane %v12565_v19, %v14709_v55 }
 0x5ee   :  { %v2861_v62 = vcombine.low %v2493_v22, %v2500_v63  ;;  %v12564_v15 = vcombine.high %v2493_v22, %v2500_v63 }
 0x5f0   :  { %v15938_v22 = vrot.slane %v12564_v15, %v14709_v55 }
 0x61e   :  { %v4038_v38 = vpop.xlane.xlu1 %4037 }
 0x61f   :  { %14087 = vrcp.f32 %v4038_v38  ;;  %v4029_v29 = vpop.xlane.xlu0 %4028  ;;  %v12566_v38 = vcombine.high %v2561_v0, %v2568_v60  ;;  %v15925_v0 = vrot.slane %v2845_v25, %v14709_v55  ;;  %v2574_v60 = vcombine.high %v15732_v14, %v15888_v46 }
 0x620   :  { %14089 = vrcp.f32 %v4029_v29  ;;  %v12563_v29 = vcombine.high %v2477_v33, %v2484_v20  ;;  %v15935_v20 = vrot.slane %v2861_v62, %v14709_v55 }
 0x622   :  { %v15932_v33 = vrot.slane %v12563_v29, %v14709_v55  ;;  %v2893_v29 = vcombine.low %v15935_v20, %v15938_v22 }
 0x623   :  { %v4032_v35 = vpop.xlane.xlu0 %4031 }
 0x624   :  { %14091 = vrcp.f32 %v4032_v35  ;;  %v15919_v35 = vrot.slane %v12566_v38, %v14709_v55 }
 0x626   :  { %v4041_v12 = vpop.xlane.xlu1 %4040  ;;  %v2961_v19 = vcombine.low %v15916_v8, %v15919_v35 }
 0x627   :  { %14093 = vrcp.f32 %v4041_v12 }
 0x628   :  { %v2969_v40 = vrot.slane %v2961_v19, %v14724_v45 }
 0x629   :  { %v14088_v9 = vpop.eup %14087 }
 0x62a   :  { %v14090_v2 = vpop.eup %14089  ;;  %v4106_v1 = vmul.f32 %v14088_v9, %v15742_v31  ;;  %v4044_v27 = vpop.xlane.xlu1 %4043  ;;  %v2573_v31 = vcombine.low %v15732_v14, %v15888_v46 }
 0x62b   :  { %v4035_v44 = vpop.xlane.xlu0 %4034  ;;  %14095 = vrcp.f32 %v4044_v27  ;;  %v4100_v10 = vmul.f32 %v14090_v2, %v15745_v26  ;;  %v2877_v2 = vcombine.low %v15925_v0, %v15932_v33 }
 0x62c   :  { %14097 = vrcp.f32 %v4035_v44  ;;  %13314 = vmatmul.mubr.msk.f32.vlgmr.msra.gmra.mrb[28].mxu0 %vm3882_vm6, %v4106_v1  ;;  %v2581_v18 = vrot.slane %v2573_v31, %v14709_v55 }
 0x62d   :  { %13299 = vmatmul.mubr.msk.f32.vlgmr.msra.gmra.mrb[32].mxu1 %vm3882_vm6, %v4100_v10  ;;  %13861 = vmatpush3.bf16.msra.mxu0 %v15582_v3 }
 0x62e   :  { %v14092_v26 = vpop.eup %14091  ;;  %13858 = vmatpush3.bf16.msra.mxu1 %v15580_v43  ;;  %v2208_v63 = vpop.permute.xlu1 %2207  ;;  %13301 = vmatprep.mubr.msk.f32.mxu1 %vm14324_vm2, %v18548_v54  ;;  %v2945_v43 = vcombine.low %v15909_v13, %v15912_v42 }
 0x62f   :  { %v4047_v12 = vpop.xlane.xlu0 %4046  ;;  %v2589_v14 = vcombine.low %v15722_v41, %v2208_v63  ;;  %v2590_v3 = vcombine.high %v15722_v41, %v2208_v63  ;;  %13326 = vmatprep.subr.mxu1 %v18548_v54  ;;  %13341 = vmatprep.subr.mxu0 %v18548_v54  ;;  %v4102_v46 = vmul.f32 %v14092_v26, %v15754_v48 }
 0x630   :  { %14099 = vrcp.f32 %v4047_v12  ;;  %13316 = vmatprep.mubr.msk.f32.mxu0 %vm14324_vm2, %v18548_v54  ;;  %v2588_v41 = vrot.slane %v2574_v60, %v14709_v55  ;;  %v2953_v53 = vrot.slane %v2945_v43, %v14724_v45  ;;  %v2885_v63 = vrot.slane %v2877_v2, %v14724_v45 }
 0x631   :  { %v14094_v56 = vpop.eup %14093  ;;  %v2597_v38 = vrot.slane %v2589_v14, %v14709_v55  ;;  %v2604_v9 = vrot.slane %v2590_v3, %v14709_v55  ;;  %13302 = vmatmul.mubr.msk.f32.gmra.mrb[34].mxu1 %vm3882_vm6, %v4102_v46  ;;  %13342 = vmatpush3.msra.mxu0 %v2844_v59  ;;  %v2901_v12 = vrot.slane %v2893_v29, %v14724_v45 }
 0x632   :  { %13327 = vmatpush3.msra.mxu1 %v2843_v51  ;;  %v4108_v25 = vmul.f32 %v14094_v56, %v15761_v6  ;;  %13304 = vmatprep.mubr.msk.f32.mxu1 %vm14324_vm2, %v18548_v54  ;;  %v2977_v19 = vcombine.low %v2953_v53, %v2969_v40 }
 0x633   :  { %v4056_v48 = vpop.xlane.xlu0 %4055  ;;  %v2605_v62 = vcombine.low %v2581_v18, %v2597_v38  ;;  %v2606_v15 = vcombine.high %v2581_v18, %v2597_v38  ;;  %v2621_v1 = vcombine.low %v2588_v41, %v2604_v9  ;;  %v2622_v59 = vcombine.high %v2588_v41, %v2604_v9  ;;  %13862 = vmatprep.subr.bf16.mxu1 %v18549_v58 }
 0x634   :  { %14101 = vrcp.f32 %v4056_v48  ;;  %13317 = vmatmul.mubr.msk.f32.gmra.mrb[30].mxu0 %vm3882_vm6, %v4108_v25  ;;  %13865 = vmatprep.subr.bf16.mxu0 %v18549_v58  ;;  %v2909_v25 = vcombine.low %v2885_v63, %v2901_v12 }
 0x635   :  { %v14096_v51 = vpop.eup %14095  ;;  %v2613_v6 = vrot.slane %v2605_v62, %v14724_v45  ;;  %v2620_v27 = vrot.slane %v2606_v15, %v14724_v45  ;;  %v2629_v44 = vrot.slane %v2621_v1, %v14724_v45  ;;  %v2636_v10 = vrot.slane %v2622_v59, %v14724_v45  ;;  %13319 = vmatprep.mubr.msk.f32.mxu0 %vm14324_vm2, %v18548_v54 }
 0x636   :  { %v14098_v31 = vpop.eup %14097  ;;  %v4110_v26 = vmul.f32 %v14096_v51, %v15765_v50  ;;  %v2978_v62 = vcombine.high %v2953_v53, %v2969_v40  ;;  %v13863_v15 = vpack.c.bf16 %v2977_v19, %v2909_v25  ;;  %v2946_v40 = vcombine.high %v15909_v13, %v15912_v42 }
 0x637   :  { %v4050_v60 = vpop.xlane.xlu0 %4049  ;;  %v2981_v14 = vcombine.low %v2613_v6, %v2620_v27  ;;  %v12567_v3 = vcombine.high %v2613_v6, %v2620_v27  ;;  %v2997_v46 = vcombine.low %v2629_v44, %v2636_v10  ;;  %v12568_v18 = vcombine.high %v2629_v44, %v2636_v10 }
 0x638   :  { %14103 = vrcp.f32 %v4050_v60  ;;  %v4104_v43 = vmul.f32 %v14098_v31, %v15768_v16  ;;  %13320 = vmatmul.mubr.msk.f32.gmra.mrb[32].mxu0 %vm3882_vm6, %v4110_v26  ;;  %v2910_v6 = vcombine.high %v2885_v63, %v2901_v12  ;;  %v2962_v10 = vcombine.high %v15916_v8, %v15919_v35 }
 0x639   :  { %13343 = vmatprep.mubr.msk.f32.mxu0 %vm14324_vm2, %v18548_v54  ;;  %v15991_v50 = vrot.slane %v2981_v14, %v14709_v55  ;;  %v15994_v41 = vrot.slane %v12567_v3, %v14709_v55  ;;  %v15997_v38 = vrot.slane %v2997_v46, %v14709_v55  ;;  %v16000_v9 = vrot.slane %v12568_v18, %v14709_v55 }
 0x63a   :  { %v14100_v56 = vpop.eup %14099  ;;  %13305 = vmatmul.mubr.msk.f32.gmra.mrb[36].mxu1 %vm3882_vm6, %v4104_v43  ;;  %v13866_v53 = vpack.c.bf16 %v2978_v62, %v2910_v6  ;;  %v2878_v60 = vcombine.high %v15925_v0, %v15932_v33  ;;  %v2894_v26 = vcombine.high %v15935_v20, %v15938_v22  ;;  %v16032_v8 = vrot.slane %v2946_v40, %v14724_v45 }
 0x63b   :  { %v4112_v16 = vmul.f32 %v14100_v56, %v15777_v47  ;;  %v4053_v48 = vpop.xlane.xlu0 %4052  ;;  %13328 = vmatprep.mubr.msk.f32.mxu1 %vm14324_vm2, %v18548_v54  ;;  %v3013_v2 = vcombine.low %v15991_v50, %v15994_v41  ;;  %v3029_v29 = vcombine.low %v15997_v38, %v16000_v9  ;;  %v16035_v35 = vrot.slane %v2962_v10, %v14724_v45 }
 0x63c   :  { %14105 = vrcp.f32 %v4053_v48  ;;  %v16045_v22 = vrot.slane %v2894_v26, %v14724_v45  ;;  %v3014_v12 = vcombine.high %v15991_v50, %v15994_v41  ;;  %v3030_v14 = vcombine.high %v15997_v38, %v16000_v9 }
 0x63d   :  { %v3021_v1 = vrot.slane %v3013_v2, %v14724_v45  ;;  %v3037_v47 = vrot.slane %v3029_v29, %v14724_v45  ;;  %v2979_v63 = vcombine.low %v16032_v8, %v16035_v35 }
 0x63e   :  { %v14102_v59 = vpop.eup %14101  ;;  %13329 = vmatmul.mubr.msk.f32.vlgmr.msra.gmra.mrb[38].mxu1 %vm3882_vm6, %v4112_v16  ;;  %v16061_v19 = vrot.slane %v3014_v12, %v14724_v45  ;;  %v16064_v56 = vrot.slane %v3030_v14, %v14724_v45 }
 0x63f   :  { %v4065_v51 = vpop.xlane.xlu0 %4064  ;;  %v4118_v27 = vmul.f32 %v14102_v59, %v15783_v61  ;;  %13864 = vmatpush3.bf16.msra.mxu1 %v13863_v15  ;;  %v3045_v44 = vcombine.low %v3021_v1, %v3037_v47  ;;  %13331 = vmatprep.mubr.msk.f32.mxu1 %vm14324_vm2, %v18548_v54  ;;  %v3046_v42 = vcombine.high %v3021_v1, %v3037_v47 }
 0x640   :  { %14107 = vrcp.f32 %v4065_v51  ;;  %13356 = vmatprep.subr.mxu1 %v18548_v54  ;;  %v3047_v38 = vcombine.low %v16061_v19, %v16064_v56  ;;  %v3048_v26 = vcombine.high %v16061_v19, %v16064_v56 }
 0x641   :  { %13344 = vmatmul.mubr.msk.f32.vlgmr.msra.gmra.mrb[34].mxu0 %vm3882_vm6, %v4118_v27 }
 0x642   :  { %v14104_v31 = vpop.eup %14103  ;;  %13867 = vmatpush3.bf16.msra.mxu0 %v13866_v53  ;;  %13346 = vmatprep.mubr.msk.f32.mxu0 %vm14324_vm2, %v18548_v54 }
 0x643   :  { %v4068_v61 = vpop.xlane.xlu0 %4067  ;;  %13357 = vmatpush3.msra.mxu1 %v3045_v44  ;;  %13371 = vmatprep.subr.mxu0 %v18548_v54  ;;  %v4114_v13 = vmul.f32 %v14104_v31, %v15790_v28  ;;  %v16042_v28 = vrot.slane %v2878_v60, %v14724_v45  ;;  %v2980_v44 = vcombine.high %v16032_v8, %v16035_v35 }
 0x644   :  { %14109 = vrcp.f32 %v4068_v61  ;;  %13868 = vmatprep.subr.bf16.mxu1 %v18549_v58 }
 0x645   :  { %13332 = vmatmul.mubr.msk.f32.gmra.mrb[40].mxu1 %vm3882_vm6, %v4114_v13  ;;  %v2911_v18 = vcombine.low %v16042_v28, %v16045_v22 }
 0x646   :  { %v14106_v0 = vpop.eup %14105  ;;  %13372 = vmatpush3.msra.mxu0 %v3046_v42  ;;  %13334 = vmatprep.mubr.msk.f32.mxu1 %vm14324_vm2, %v18548_v54 }
 0x647   :  { %v4071_v33 = vpop.xlane.xlu0 %4070  ;;  %v4116_v20 = vmul.f32 %v14106_v0, %v15795_v11  ;;  %13871 = vmatprep.subr.bf16.mxu0 %v18549_v58  ;;  %v13869_v43 = vpack.c.bf16 %v2979_v63, %v2911_v18 }
 0x648   :  { %14111 = vrcp.f32 %v4071_v33 }
 0x649   :  { %13335 = vmatmul.mubr.msk.f32.gmra.mrb[42].mxu1 %vm3882_vm6, %v4116_v20 }
 0x64a   :  { %v14108_v3 = vpop.eup %14107  ;;  %13358 = vmatprep.mubr.msk.f32.mxu1 %vm14324_vm2, %v18548_v54 }
 0x64b   :  { %v4124_v11 = vmul.f32 %v14108_v3, %v15801_v21  ;;  %v4083_v46 = vpop.xlane.xlu0 %4082 }
 0x64c   :  { %14113 = vrcp.f32 %v4083_v46 }
 0x64d   :  { %13359 = vmatmul.mubr.msk.f32.vlgmr.msra.gmra.mrb[44].mxu1 %vm3882_vm6, %v4124_v11 }
 0x64e   :  { %v14110_v50 = vpop.eup %14109  ;;  %13870 = vmatpush3.bf16.msra.mxu1 %v13869_v43  ;;  %13361 = vmatprep.mubr.msk.f32.mxu1 %vm14324_vm2, %v18548_v54 }
 0x64f   :  { %v4092_v21 = vpop.xlane.xlu0 %4091  ;;  %v4126_v41 = vmul.f32 %v14110_v50, %v15808_v36  ;;  %13386 = vmatprep.subr.mxu1 %v18548_v54 }
 0x651   :  { %13362 = vmatmul.mubr.msk.f32.gmra.mrb[46].mxu1 %vm3882_vm6, %v4126_v41 }
 0x652   :  { %v14112_v9 = vpop.eup %14111  ;;  %13387 = vmatpush3.msra.mxu1 %v3047_v38  ;;  %13364 = vmatprep.mubr.msk.f32.mxu1 %vm14324_vm2, %v18548_v54 }
 0x653   :  { %v4086_v16 = vpop.xlane.xlu0 %4085  ;;  %v4128_v48 = vmul.f32 %v14112_v9, %v15813_v57 }
 0x654   :  { %14115 = vrcp.f32 %v4086_v16 }
 0x655   :  { %13365 = vmatmul.mubr.msk.f32.gmra.mrb[48].mxu1 %vm3882_vm6, %v4128_v48 }
 0x656   :  { %v14114_v25 = vpop.eup %14113  ;;  %13388 = vmatprep.mubr.msk.f32.mxu1 %vm14324_vm2, %v18548_v54 }
 0x657   :  { %v4136_v36 = vmul.f32 %v14114_v25, %v15817_v39  ;;  %v4089_v2 = vpop.xlane.xlu0 %4088 }
 0x658   :  { %14117 = vrcp.f32 %v4089_v2 }
 0x659   :  { %13389 = vmatmul.mubr.msk.f32.vlgmr.msra.gmra.mrb[50].mxu1 %vm3882_vm6, %v4136_v36 }
 0x65a   :  { %13391 = vmatprep.mubr.msk.f32.mxu1 %vm14324_vm2, %v18548_v54 }
 0x65e   :  { %v14116_v29 = vpop.eup %14115 }
 0x65f   :  { %v4138_v62 = vmul.f32 %v14116_v29, %v15829_v52  ;;  %v4059_v57 = vpop.xlane.xlu1 %4058 }
 0x660   :  { %14119 = vrcp.f32 %v4059_v57 }
 0x661   :  { %13392 = vmatmul.mubr.msk.f32.gmra.mrb[52].mxu1 %vm3882_vm6, %v4138_v62 }
 0x662   :  { %v14118_v15 = vpop.eup %14117  ;;  %13394 = vmatprep.mubr.msk.f32.mxu1 %vm14324_vm2, %v18548_v54 }
 0x663   :  { %v4140_v39 = vmul.f32 %v14118_v15, %v15835_v32  ;;  %v4062_v1 = vpop.xlane.xlu1 %4061 }
 0x664   :  { %14121 = vrcp.f32 %v4062_v1 }
 0x665   :  { %13395 = vmatmul.mubr.msk.f32.gmra.mrb[54].mxu1 %vm3882_vm6, %v4140_v39 }
 0x667   :  { %v4074_v47 = vpop.xlane.xlu1 %4073 }
 0x668   :  { %14123 = vrcp.f32 %v4074_v47 }
 0x66a   :  { %v14120_v59 = vpop.eup %14119 }
 0x66b   :  { %v4077_v51 = vpop.xlane.xlu1 %4076  ;;  %v4120_v52 = vmul.f32 %v14120_v59, %v15843_v24  ;;  %v2912_v24 = vcombine.high %v16042_v28, %v16045_v22 }
 0x66c   :  { %14125 = vrcp.f32 %v4077_v51 }
 0x66d   :  { %13347 = vmatmul.mubr.msk.f32.gmra.mrb[36].mxu0 %vm3882_vm6, %v4120_v52  ;;  %v13872_v31 = vpack.c.bf16 %v2980_v44, %v2912_v24 }
 0x66e   :  { %v14122_v6 = vpop.eup %14121  ;;  %13349 = vmatprep.mubr.msk.f32.mxu0 %vm14324_vm2, %v18548_v54 }
 0x66f   :  { %v4080_v27 = vpop.xlane.xlu1 %4079  ;;  %v4122_v32 = vmul.f32 %v14122_v6, %v15848_v7 }
 0x670   :  { %14127 = vrcp.f32 %v4080_v27 }
 0x671   :  { %13350 = vmatmul.mubr.msk.f32.gmra.mrb[38].mxu0 %vm3882_vm6, %v4122_v32  ;;  %14129 = vrcp.f32 %v4092_v21 }
 0x672   :  { %v14124_v53 = vpop.eup %14123  ;;  %13373 = vmatprep.mubr.msk.f32.mxu0 %vm14324_vm2, %v18548_v54 }
 0x673   :  { %v4130_v40 = vmul.f32 %v14124_v53, %v15853_v5  ;;  %v4095_v10 = vpop.xlane.xlu1 %4094 }
 0x674   :  { %14131 = vrcp.f32 %v4095_v10 }
 0x675   :  { %13374 = vmatmul.mubr.msk.f32.vlgmr.msra.gmra.mrb[40].mxu0 %vm3882_vm6, %v4130_v40 }
 0x676   :  { %v14126_v7 = vpop.eup %14125  ;;  %13873 = vmatpush3.bf16.msra.mxu0 %v13872_v31  ;;  %13376 = vmatprep.mubr.msk.f32.mxu0 %vm14324_vm2, %v18548_v54 }
 0x677   :  { %v4098_v61 = vpop.xlane.xlu1 %4097  ;;  %13401 = vmatprep.subr.mxu0 %v18548_v54  ;;  %v4132_v60 = vmul.f32 %v14126_v7, %v15857_v49 }
 0x678   :  { %14133 = vrcp.f32 %v4098_v61 }
 0x679   :  { %13377 = vmatmul.mubr.msk.f32.gmra.mrb[42].mxu0 %vm3882_vm6, %v4132_v60 }
 0x67a   :  { %v14128_v5 = vpop.eup %14127  ;;  %13402 = vmatpush3.msra.mxu0 %v3048_v26  ;;  %13379 = vmatprep.mubr.msk.f32.mxu0 %vm14324_vm2, %v18548_v54 }
 0x67b   :  { %v4134_v13 = vmul.f32 %v14128_v5, %v15861_v34  ;;  %v14130_v42 = vpop.eup %14129 }
 0x67c   :  { %v4142_v49 = vmul.f32 %v14130_v42, %v15823_v37 }
 0x67d   :  { %13380 = vmatmul.mubr.msk.f32.gmra.mrb[44].mxu0 %vm3882_vm6, %v4134_v13 }
 0x67e   :  { %13403 = vmatprep.mubr.msk.f32.mxu0 %vm14324_vm2, %v18548_v54  ;;  %v14132_v8 = vpop.eup %14131 }
 0x67f   :  { %v4144_v35 = vmul.f32 %v14132_v8, %v15865_v23 }
 0x681   :  { %13404 = vmatmul.mubr.msk.f32.vlgmr.msra.gmra.mrb[46].mxu0 %vm3882_vm6, %v4142_v49 }
 0x682   :  { %13406 = vmatprep.mubr.msk.f32.mxu0 %vm14324_vm2, %v18548_v54  ;;  %v14134_v0 = vpop.eup %14133 }
 0x683   :  { %v4146_v34 = vmul.f32 %v14134_v0, %v15869_v30 }
 0x685   :  { %13407 = vmatmul.mubr.msk.f32.gmra.mrb[48].mxu0 %vm3882_vm6, %v4144_v35 }
 0x686   :  { %13409 = vmatprep.mubr.msk.f32.mxu0 %vm14324_vm2, %v18548_v54 }
 0x689   :  { %13410 = vmatmul.mubr.msk.f32.gmra.mrb[50].mxu0 %vm3882_vm6, %v4146_v34 }
 0x6ff   :  { %v4311_v33 = vpop.f32.mrb[28].mxu0 }
 0x700   :  { %v4222_v37 = vpop.f32.mrb[32].mxu1  ;;  %v13315_v20 = vpop.f32.mrb[29].mxu0 }
 0x701   :  { %v13300_v28 = vpop.f32.mrb[33].mxu1 }
 0x704   :  { %v16127_v22 = vpop.f32.mrb[34].mxu1 }
 0x705   :  { %v13303_v63 = vpop.f32.mrb[35].mxu1 }
 0x707   :  { %v16129_v12 = vpop.f32.mrb[30].mxu0 }
 0x708   :  { %v13318_v23 = vpop.f32.mrb[31].mxu0 }
 0x70b   :  { %v16131_v14 = vpop.f32.mrb[32].mxu0 }
 0x70c   :  { %v13321_v3 = vpop.f32.mrb[33].mxu0 }
 0x70d   :  { %v16133_v11 = vpop.f32.mrb[36].mxu1 }
 0x70e   :  { %v13306_v46 = vpop.f32.mrb[37].mxu1 }
 0x711   :  { %v4400_v18 = vpop.f32.mrb[38].mxu1 }
 0x712   :  { %v4859_v30 = vcombine.low %v4222_v37, %v4400_v18  ;;  %v4860_v43 = vcombine.high %v4222_v37, %v4400_v18  ;;  %v13330_v19 = vpop.f32.mrb[39].mxu1 }
 0x714   :  { %v4489_v56 = vpop.f32.mrb[34].mxu0  ;;  %v4867_v38 = vrot.slane %v4859_v30, %v14709_v55  ;;  %v4874_v9 = vrot.slane %v4860_v43, %v14709_v55 }
 0x715   :  { %v4875_v50 = vcombine.low %v4311_v33, %v4489_v56  ;;  %v4876_v21 = vcombine.high %v4311_v33, %v4489_v56  ;;  %v13345_v41 = vpop.f32.mrb[35].mxu0 }
 0x717   :  { %v4883_v16 = vrot.slane %v4875_v50, %v14709_v55  ;;  %v4890_v48 = vrot.slane %v4876_v21, %v14709_v55 }
 0x718   :  { %v16139_v25 = vpop.f32.mrb[40].mxu1 }
 0x719   :  { %v4891_v36 = vcombine.low %v4867_v38, %v4883_v16  ;;  %v4892_v2 = vcombine.high %v4867_v38, %v4883_v16  ;;  %v4907_v29 = vcombine.low %v4874_v9, %v4890_v48  ;;  %v4908_v62 = vcombine.high %v4874_v9, %v4890_v48  ;;  %v13333_v57 = vpop.f32.mrb[41].mxu1 }
 0x71a   :  { %v4927_v15 = vcombine.low %v16127_v22, %v16139_v25  ;;  %v4928_v39 = vcombine.high %v16127_v22, %v16139_v25 }
 0x71b   :  { %v4899_v1 = vrot.slane %v4891_v36, %v14724_v45  ;;  %v4906_v47 = vrot.slane %v4892_v2, %v14724_v45  ;;  %v4915_v59 = vrot.slane %v4907_v29, %v14724_v45  ;;  %v4922_v51 = vrot.slane %v4908_v62, %v14724_v45 }
 0x71c   :  { %v16149_v52 = vpop.f32.mrb[42].mxu1  ;;  %v4935_v29 = vrot.slane %v4927_v15, %v14709_v55  ;;  %v4942_v62 = vrot.slane %v4928_v39, %v14709_v55  ;;  %v5766_v15 = vld [vmem:[%s18479_s4] sm:$0xff]  ;;  %v5767_v39 = vld [vmem:[%s18479_s4 + $0x8] sm:$0xff] }
 0x71d   :  { %v5267_v6 = vcombine.low %v4899_v1, %v4906_v47  ;;  %v12641_v27 = vcombine.high %v4899_v1, %v4906_v47  ;;  %v5283_v32 = vcombine.low %v4915_v59, %v4922_v51  ;;  %v12642_v44 = vcombine.high %v4915_v59, %v4922_v51  ;;  %v13336_v53 = vpop.f32.mrb[43].mxu1 }
 0x71e   :  { %v4995_v24 = vcombine.low %v16133_v11, %v16149_v52  ;;  %v4996_v40 = vcombine.high %v16133_v11, %v16149_v52 }
 0x71f   :  { %v5274_v10 = vrot.slane %v5267_v6, %v14709_v55  ;;  %v5282_v31 = vrot.slane %v12641_v27, %v14709_v55  ;;  %v5290_v7 = vrot.slane %v5283_v32, %v14709_v55  ;;  %v5298_v61 = vrot.slane %v12642_v44, %v14709_v55 }
 0x720   :  { %v16159_v60 = vpop.f32.mrb[44].mxu1  ;;  %v5003_v44 = vrot.slane %v4995_v24, %v14709_v55 }
 0x721   :  { %v13360_v26 = vpop.f32.mrb[45].mxu1  ;;  %v5300_v5 = vcombine.high %v5274_v10, %v5282_v31  ;;  %v5316_v13 = vcombine.high %v5290_v7, %v5298_v61  ;;  %v5299_v42 = vcombine.low %v5274_v10, %v5282_v31  ;;  %v5315_v49 = vcombine.low %v5290_v7, %v5298_v61 }
 0x723   :  { %v5314_v8 = vrot.slane %v5300_v5, %v14724_v45  ;;  %v5330_v35 = vrot.slane %v5316_v13, %v14724_v45  ;;  %v16164_v0 = vrot.slane %v5299_v42, %v14724_v45  ;;  %v16167_v34 = vrot.slane %v5315_v49, %v14724_v45 }
 0x724   :  { %v16169_v33 = vpop.f32.mrb[46].mxu1  ;;  %v13874_v13 = vpack.c.bf16 %v5767_v39, %v5766_v15 }
 0x725   :  { %v13363_v37 = vpop.f32.mrb[47].mxu1  ;;  %v5333_v20 = vcombine.low %v5314_v8, %v5330_v35  ;;  %v5332_v28 = vcombine.high %v16164_v0, %v16167_v34  ;;  %v5334_v22 = vcombine.high %v5314_v8, %v5330_v35  ;;  %v5331_v63 = vcombine.low %v16164_v0, %v16167_v34 }
 0x726   :  { %13875 = vmatprep.subr.bf16.mxu1 %v13874_v13 }
 0x727   :  { %5705 = vrot.lane.b32.xlu1 %v5333_v20, %s14330_s14  ;;  %5681 = vrot.lane.b32.xlu0 %v5332_v28, %s14331_s15 }
 0x728   :  { %v16177_v23 = vpop.f32.mrb[48].mxu1  ;;  %13877 = vmatpush3.bf16.msra.mxu1 %v13874_v13 }
 0x729   :  { %v13366_v3 = vpop.f32.mrb[49].mxu1 }
 0x72b   :  { %5729 = vrot.lane.b32.xlu0 %v5334_v22, %s14332_s16 }
 0x72c   :  { %v16180_v46 = vpop.f32.mrb[50].mxu1 }
 0x72d   :  { %v5063_v18 = vcombine.low %v16159_v60, %v16180_v46  ;;  %v5064_v30 = vcombine.high %v16159_v60, %v16180_v46  ;;  %v13390_v43 = vpop.f32.mrb[51].mxu1 }
 0x734   :  { %v16186_v19 = vpop.f32.mrb[52].mxu1 }
 0x735   :  { %v5131_v56 = vcombine.low %v16169_v33, %v16186_v19  ;;  %v5132_v50 = vcombine.high %v16169_v33, %v16186_v19  ;;  %v13393_v21 = vpop.f32.mrb[53].mxu1 }
 0x737   :  { %v5139_v60 = vrot.slane %v5131_v56, %v14709_v55  ;;  %v5146_v46 = vrot.slane %v5132_v50, %v14709_v55 }
 0x738   :  { %v16192_v41 = vpop.f32.mrb[54].mxu1 }
 0x739   :  { %v5199_v38 = vcombine.low %v16177_v23, %v16192_v41  ;;  %v5200_v9 = vcombine.high %v16177_v23, %v16192_v41  ;;  %v13396_v16 = vpop.f32.mrb[55].mxu1 }
 0x73b   :  { %v5207_v33 = vrot.slane %v5199_v38, %v14709_v55  ;;  %v5214_v19 = vrot.slane %v5200_v9, %v14709_v55 }
 0x740   :  { %v4494_v48 = vpop.f32.mrb[36].mxu0 }
 0x741   :  { %v4943_v25 = vcombine.low %v16129_v12, %v4494_v48  ;;  %v4944_v36 = vcombine.high %v16129_v12, %v4494_v48  ;;  %v13348_v2 = vpop.f32.mrb[37].mxu0 }
 0x743   :  { %v4951_v57 = vrot.slane %v4943_v25, %v14709_v55  ;;  %v4958_v1 = vrot.slane %v4944_v36, %v14709_v55 }
 0x744   :  { %v4499_v47 = vpop.f32.mrb[38].mxu0 }
 0x745   :  { %v4959_v59 = vcombine.low %v4935_v29, %v4951_v57  ;;  %v4960_v51 = vcombine.high %v4935_v29, %v4951_v57  ;;  %v4975_v6 = vcombine.low %v4942_v62, %v4958_v1  ;;  %v4976_v27 = vcombine.high %v4942_v62, %v4958_v1  ;;  %v13351_v32 = vpop.f32.mrb[39].mxu0 }
 0x746   :  { %v5011_v53 = vcombine.low %v16131_v14, %v4499_v47  ;;  %v5012_v12 = vcombine.high %v16131_v14, %v4499_v47  ;;  %v5010_v14 = vrot.slane %v4996_v40, %v14709_v55 }
 0x747   :  { %v4967_v10 = vrot.slane %v4959_v59, %v14724_v45  ;;  %v4974_v31 = vrot.slane %v4960_v51, %v14724_v45  ;;  %v4983_v7 = vrot.slane %v4975_v6, %v14724_v45  ;;  %v4990_v24 = vrot.slane %v4976_v27, %v14724_v45 }
 0x748   :  { %v5019_v61 = vrot.slane %v5011_v53, %v14709_v55  ;;  %v5026_v26 = vrot.slane %v5012_v12, %v14709_v55  ;;  %v16223_v5 = vpop.f32.mrb[40].mxu0 }
 0x749   :  { %v5335_v42 = vcombine.low %v4967_v10, %v4974_v31  ;;  %v12643_v49 = vcombine.high %v4967_v10, %v4974_v31  ;;  %v5351_v8 = vcombine.low %v4983_v7, %v4990_v24  ;;  %v12644_v35 = vcombine.high %v4983_v7, %v4990_v24  ;;  %v13375_v37 = vpop.f32.mrb[41].mxu0  ;;  %v5768_v7 = vld [vmem:[%s18479_s4 + $0x10] sm:$0xff]  ;;  %v5769_v24 = vld [vmem:[%s18479_s4 + $0x18] sm:$0xff] }
 0x74a   :  { %v5027_v20 = vcombine.low %v5003_v44, %v5019_v61  ;;  %v5028_v28 = vcombine.high %v5003_v44, %v5019_v61  ;;  %v5043_v22 = vcombine.low %v5010_v14, %v5026_v26  ;;  %v5044_v3 = vcombine.high %v5010_v14, %v5026_v26 }
 0x74b   :  { %v5342_v11 = vrot.slane %v5335_v42, %v14709_v55  ;;  %v5350_v52 = vrot.slane %v12643_v49, %v14709_v55  ;;  %v5358_v40 = vrot.slane %v5351_v8, %v14709_v55  ;;  %v5366_v43 = vrot.slane %v12644_v35, %v14709_v55 }
 0x74c   :  { %v5035_v21 = vrot.slane %v5027_v20, %v14724_v45  ;;  %v5042_v16 = vrot.slane %v5028_v28, %v14724_v45  ;;  %v5051_v48 = vrot.slane %v5043_v22, %v14724_v45  ;;  %v5058_v25 = vrot.slane %v5044_v3, %v14724_v45  ;;  %v16233_v36 = vpop.f32.mrb[42].mxu0 }
 0x74d   :  { %v13378_v2 = vpop.f32.mrb[43].mxu0  ;;  %v5367_v29 = vcombine.low %v5342_v11, %v5350_v52  ;;  %v5383_v62 = vcombine.low %v5358_v40, %v5366_v43  ;;  %v5368_v57 = vcombine.high %v5342_v11, %v5350_v52  ;;  %v5384_v1 = vcombine.high %v5358_v40, %v5366_v43 }
 0x74e   :  { %v5403_v47 = vcombine.low %v5035_v21, %v5042_v16  ;;  %v12645_v59 = vcombine.high %v5035_v21, %v5042_v16  ;;  %v5419_v51 = vcombine.low %v5051_v48, %v5058_v25  ;;  %v12646_v6 = vcombine.high %v5051_v48, %v5058_v25 }
 0x74f   :  { %v16236_v27 = vrot.slane %v5367_v29, %v14724_v45  ;;  %v16239_v32 = vrot.slane %v5383_v62, %v14724_v45  ;;  %v5382_v44 = vrot.slane %v5368_v57, %v14724_v45  ;;  %v5398_v53 = vrot.slane %v5384_v1, %v14724_v45 }
 0x750   :  { %v5410_v12 = vrot.slane %v5403_v47, %v14709_v55  ;;  %v5418_v15 = vrot.slane %v12645_v59, %v14709_v55  ;;  %v5426_v39 = vrot.slane %v5419_v51, %v14709_v55  ;;  %v5434_v10 = vrot.slane %v12646_v6, %v14709_v55  ;;  %v16247_v31 = vpop.f32.mrb[44].mxu0 }
 0x751   :  { %v13381_v14 = vpop.f32.mrb[45].mxu0  ;;  %v5400_v61 = vcombine.high %v16236_v27, %v16239_v32  ;;  %v5401_v26 = vcombine.low %v5382_v44, %v5398_v53  ;;  %v5402_v13 = vcombine.high %v5382_v44, %v5398_v53  ;;  %v5399_v42 = vcombine.low %v16236_v27, %v16239_v32 }
 0x752   :  { %v5435_v49 = vcombine.low %v5410_v12, %v5418_v15  ;;  %v5451_v8 = vcombine.low %v5426_v39, %v5434_v10  ;;  %v5436_v35 = vcombine.high %v5410_v12, %v5418_v15  ;;  %v5452_v37 = vcombine.high %v5426_v39, %v5434_v10 }
 0x753   :  { %5683 = vrot.lane.b32.xlu1 %v5400_v61, %s14331_s15  ;;  %v13878_v20 = vpack.c.bf16 %v5769_v24, %v5768_v7  ;;  %v5071_v29 = vrot.slane %v5063_v18, %v14709_v55 }
 0x754   :  { %v4845_v28 = vpop.f32.mrb[46].mxu0  ;;  %v16261_v22 = vrot.slane %v5435_v49, %v14724_v45  ;;  %v16264_v3 = vrot.slane %v5451_v8, %v14724_v45  ;;  %v5450_v11 = vrot.slane %v5436_v35, %v14724_v45  ;;  %v5466_v52 = vrot.slane %v5452_v37, %v14724_v45 }
 0x755   :  { %v5079_v40 = vcombine.low %v16223_v5, %v4845_v28  ;;  %v5080_v43 = vcombine.high %v16223_v5, %v4845_v28  ;;  %v13405_v21 = vpop.f32.mrb[47].mxu0  ;;  %13879 = vmatprep.subr.bf16.mxu1 %v13878_v20  ;;  %v5078_v5 = vrot.slane %v5064_v30, %v14709_v55 }
 0x756   :  { %v5468_v16 = vcombine.high %v16261_v22, %v16264_v3  ;;  %v5469_v48 = vcombine.low %v5450_v11, %v5466_v52  ;;  %v5470_v25 = vcombine.high %v5450_v11, %v5466_v52  ;;  %v5467_v2 = vcombine.low %v16261_v22, %v16264_v3  ;;  %13881 = vmatpush3.bf16.msra.mxu1 %v13878_v20 }
 0x757   :  { %v5087_v62 = vrot.slane %v5079_v40, %v14709_v55  ;;  %v5094_v57 = vrot.slane %v5080_v43, %v14709_v55  ;;  %5707 = vrot.lane.b32.xlu1 %v5401_v26, %s14330_s14 }
 0x758   :  { %5685 = vrot.lane.b32.xlu0 %v5468_v16, %s14331_s15  ;;  %v4850_v1 = vpop.f32.mrb[48].mxu0 }
 0x759   :  { %v5095_v47 = vcombine.low %v5071_v29, %v5087_v62  ;;  %v5096_v59 = vcombine.high %v5071_v29, %v5087_v62  ;;  %v5111_v51 = vcombine.low %v5078_v5, %v5094_v57  ;;  %v5112_v6 = vcombine.high %v5078_v5, %v5094_v57  ;;  %v13408_v44 = vpop.f32.mrb[49].mxu0 }
 0x75a   :  { %v5147_v18 = vcombine.low %v16233_v36, %v4850_v1  ;;  %v5148_v30 = vcombine.high %v16233_v36, %v4850_v1 }
 0x75b   :  { %v5103_v53 = vrot.slane %v5095_v47, %v14724_v45  ;;  %v5110_v12 = vrot.slane %v5096_v59, %v14724_v45  ;;  %v5119_v15 = vrot.slane %v5111_v51, %v14724_v45  ;;  %v5126_v39 = vrot.slane %v5112_v6, %v14724_v45  ;;  %5731 = vrot.lane.b32.xlu1 %v5402_v13, %s14332_s16 }
 0x75c   :  { %v5155_v56 = vrot.slane %v5147_v18, %v14709_v55  ;;  %v5162_v50 = vrot.slane %v5148_v30, %v14709_v55  ;;  %5709 = vrot.lane.b32.xlu0 %v5469_v48, %s14330_s14  ;;  %v4855_v36 = vpop.f32.mrb[50].mxu0 }
 0x75d   :  { %v5471_v10 = vcombine.low %v5103_v53, %v5110_v12  ;;  %v12647_v7 = vcombine.high %v5103_v53, %v5110_v12  ;;  %v5487_v24 = vcombine.low %v5119_v15, %v5126_v39  ;;  %v12648_v14 = vcombine.high %v5119_v15, %v5126_v39  ;;  %v13411_v61 = vpop.f32.mrb[51].mxu0 }
 0x75e   :  { %v5163_v26 = vcombine.low %v5139_v60, %v5155_v56  ;;  %v5164_v13 = vcombine.high %v5139_v60, %v5155_v56  ;;  %v5179_v38 = vcombine.low %v5146_v46, %v5162_v50  ;;  %v5180_v49 = vcombine.high %v5146_v46, %v5162_v50 }
 0x75f   :  { %v5478_v8 = vrot.slane %v5471_v10, %v14709_v55  ;;  %v5486_v23 = vrot.slane %v12647_v7, %v14709_v55  ;;  %v5494_v41 = vrot.slane %v5487_v24, %v14709_v55  ;;  %v5502_v9 = vrot.slane %v12648_v14, %v14709_v55 }
 0x760   :  { %v5171_v35 = vrot.slane %v5163_v26, %v14724_v45  ;;  %v5178_v37 = vrot.slane %v5164_v13, %v14724_v45  ;;  %v5187_v20 = vrot.slane %v5179_v38, %v14724_v45  ;;  %v5194_v28 = vrot.slane %v5180_v49, %v14724_v45  ;;  %5733 = vrot.lane.b32.xlu0 %v5470_v25, %s14332_s16 }
 0x761   :  { %v5215_v11 = vcombine.low %v16247_v31, %v4855_v36  ;;  %v5216_v52 = vcombine.high %v16247_v31, %v4855_v36  ;;  %v5503_v40 = vcombine.low %v5478_v8, %v5486_v23  ;;  %v5519_v43 = vcombine.low %v5494_v41, %v5502_v9 }
 0x762   :  { %v5539_v21 = vcombine.low %v5171_v35, %v5178_v37  ;;  %v12649_v16 = vcombine.high %v5171_v35, %v5178_v37  ;;  %v5555_v48 = vcombine.low %v5187_v20, %v5194_v28  ;;  %v12650_v29 = vcombine.high %v5187_v20, %v5194_v28 }
 0x763   :  { %v5223_v5 = vrot.slane %v5215_v11, %v14709_v55  ;;  %v5230_v62 = vrot.slane %v5216_v52, %v14709_v55  ;;  %v16326_v57 = vrot.slane %v5503_v40, %v14724_v45  ;;  %v16329_v1 = vrot.slane %v5519_v43, %v14724_v45 }
 0x764   :  { %v5546_v25 = vrot.slane %v5539_v21, %v14709_v55  ;;  %v5554_v31 = vrot.slane %v12649_v16, %v14709_v55  ;;  %v5562_v47 = vrot.slane %v5555_v48, %v14709_v55  ;;  %v5570_v59 = vrot.slane %v12650_v29, %v14709_v55 }
 0x765   :  { %v5231_v51 = vcombine.low %v5207_v33, %v5223_v5  ;;  %v5232_v6 = vcombine.high %v5207_v33, %v5223_v5  ;;  %v5247_v44 = vcombine.low %v5214_v19, %v5230_v62  ;;  %v5248_v60 = vcombine.high %v5214_v19, %v5230_v62 }
 0x766   :  { %v5536_v46 = vcombine.high %v16326_v57, %v16329_v1  ;;  %v5504_v18 = vcombine.high %v5478_v8, %v5486_v23  ;;  %v5520_v30 = vcombine.high %v5494_v41, %v5502_v9  ;;  %v5571_v53 = vcombine.low %v5546_v25, %v5554_v31 }
 0x767   :  { %v5239_v12 = vrot.slane %v5231_v51, %v14724_v45  ;;  %v5246_v15 = vrot.slane %v5232_v6, %v14724_v45  ;;  %v5255_v39 = vrot.slane %v5247_v44, %v14724_v45  ;;  %v5262_v56 = vrot.slane %v5248_v60, %v14724_v45 }
 0x768   :  { %5687 = vrot.lane.b32.xlu1 %v5536_v46, %s14331_s15  ;;  %v5518_v33 = vrot.slane %v5504_v18, %v14724_v45  ;;  %v5534_v19 = vrot.slane %v5520_v30, %v14724_v45  ;;  %v16345_v50 = vrot.slane %v5571_v53, %v14724_v45  ;;  %v5587_v36 = vcombine.low %v5562_v47, %v5570_v59 }
 0x769   :  { %v5607_v10 = vcombine.low %v5239_v12, %v5246_v15  ;;  %v12651_v7 = vcombine.high %v5239_v12, %v5246_v15  ;;  %v5623_v24 = vcombine.low %v5255_v39, %v5262_v56  ;;  %v12652_v14 = vcombine.high %v5255_v39, %v5262_v56 }
 0x76a   :  { %v5537_v61 = vcombine.low %v5518_v33, %v5534_v19  ;;  %v16348_v26 = vrot.slane %v5587_v36, %v14724_v45  ;;  %v5538_v13 = vcombine.high %v5518_v33, %v5534_v19  ;;  %v5572_v38 = vcombine.high %v5546_v25, %v5554_v31 }
 0x76b   :  { %v5614_v49 = vrot.slane %v5607_v10, %v14709_v55  ;;  %v5622_v8 = vrot.slane %v12651_v7, %v14709_v55  ;;  %v5630_v23 = vrot.slane %v5623_v24, %v14709_v55  ;;  %v5638_v41 = vrot.slane %v12652_v14, %v14709_v55 }
 0x76c   :  { %5711 = vrot.lane.b32.xlu1 %v5537_v61, %s14330_s14  ;;  %v5604_v9 = vcombine.high %v16345_v50, %v16348_v26  ;;  %v5586_v35 = vrot.slane %v5572_v38, %v14724_v45  ;;  %v5588_v37 = vcombine.high %v5562_v47, %v5570_v59  ;;  %v5535_v20 = vcombine.low %v16326_v57, %v16329_v1 }
 0x76d   :  { %v5639_v28 = vcombine.low %v5614_v49, %v5622_v8  ;;  %v5655_v11 = vcombine.low %v5630_v23, %v5638_v41  ;;  %v5640_v52 = vcombine.high %v5614_v49, %v5622_v8  ;;  %v5656_v40 = vcombine.high %v5630_v23, %v5638_v41  ;;  %v18581_v23 = vld [vmem:[#allocation11_spill] sm:$0xff] }
 0x76e   :  { %5689 = vrot.lane.b32.xlu0 %v5604_v9, %s14331_s15  ;;  %v5602_v43 = vrot.slane %v5588_v37, %v14724_v45  ;;  %v5603_v21 = vcombine.low %v16345_v50, %v16348_v26  ;;  %v18517_v41 = vsub.s32 3, %v18581_v23  ;;  %v16411_v9 = vld [vmem:[%s18482_s7] sm:$0xff] }
 0x76f   :  { %v5647_v16 = vrot.slane %v5639_v28, %v14724_v45  ;;  %v5663_v48 = vrot.slane %v5655_v11, %v14724_v45  ;;  %v5654_v29 = vrot.slane %v5640_v52, %v14724_v45  ;;  %v5670_v5 = vrot.slane %v5656_v40, %v14724_v45  ;;  %v18582_v52 = vld [vmem:[#allocation6_spill] sm:$0xff] }
 0x770   :  { %5735 = vrot.lane.b32.xlu1 %v5538_v13, %s14332_s16  ;;  %v5605_v62 = vcombine.low %v5586_v35, %v5602_v43  ;;  %v5606_v57 = vcombine.high %v5586_v35, %v5602_v43  ;;  %v5773_v35 = vrot.slane %v16411_v9, %v18517_v41  ;;  %v18583_v43 = vld [vmem:[#allocation5_spill] sm:$0xff] }
 0x771   :  { %v5672_v1 = vcombine.high %v5647_v16, %v5663_v48  ;;  %v5673_v25 = vcombine.low %v5654_v29, %v5670_v5  ;;  %v5674_v31 = vcombine.high %v5654_v29, %v5670_v5  ;;  %v5671_v47 = vcombine.low %v5647_v16, %v5663_v48 }
 0x772   :  { %5713 = vrot.lane.b32.xlu0 %v5605_v62, %s14330_s14 }
 0x774   :  { %5691 = vrot.lane.b32.xlu1 %v5672_v1, %s14331_s15  ;;  %v18584_v1 = vld [vmem:[#allocation8_spill] sm:$0xff] }
 0x776   :  { %5737 = vrot.lane.b32.xlu0 %v5606_v57, %s14332_s16 }
 0x778   :  { %5715 = vrot.lane.b32.xlu1 %v5673_v25, %s14330_s14 }
 0x77c   :  { %5739 = vrot.lane.b32.xlu1 %v5674_v31, %s14332_s16  ;;  %v18585_v31 = vld [vmem:[#allocation7_spill] sm:$0xff] }
 0x799   :  { %v5682_v59 = vpop.permute.xlu0 %5681  ;;  %v5706_v51 = vpop.permute.xlu1 %5705 }
 0x79a   :  { %v5747_v6 = vsel %vm3049_vm3, %v5331_v63, %v5682_v59 }
 0x79b   :  { %v5754_v44 = vsel %vm5753_vm7, %v5747_v6, %v5706_v51 }
 0x79d   :  { %v5730_v60 = vpop.permute.xlu0 %5729 }
 0x79e   :  { %v5760_v46 = vsel %vm3882_vm6, %v5754_v44, %v5730_v60 }
 0x79f   :  { %13420 = vmatprep.mubr.msk.f32.mxu1 %vm176_vm1, %v5760_v46 }
 0x7c5   :  { %v5684_v18 = vpop.permute.xlu1 %5683 }
 0x7c6   :  { %v5748_v12 = vsel %vm3049_vm3, %v5399_v42, %v5684_v18  ;;  %v18586_v18 = vld [vmem:[#allocation9_spill] sm:$0xff] }
 0x7c9   :  { %v5708_v30 = vpop.permute.xlu1 %5707 }
 0x7ca   :  { %v5686_v53 = vpop.permute.xlu0 %5685  ;;  %v5755_v0 = vsel %vm5753_vm7, %v5748_v12, %v5708_v30 }
 0x7cb   :  { %v5749_v39 = vsel %vm3049_vm3, %v5467_v2, %v5686_v53  ;;  %v18587_v53 = vld [vmem:[#allocation10_spill] sm:$0xff] }
 0x7cd   :  { %v5732_v34 = vpop.permute.xlu1 %5731 }
 0x7ce   :  { %v5761_v63 = vsel %vm3882_vm6, %v5755_v0, %v5732_v34  ;;  %v5710_v15 = vpop.permute.xlu0 %5709 }
 0x7cf   :  { %13421 = vmatmul.mubr.msk.f32.vlgmr.msra.gmra.mrb[56].mxu1 %vm176_vm1, %v5761_v63  ;;  %v5756_v56 = vsel %vm5753_vm7, %v5749_v39, %v5710_v15 }
 0x7d2   :  { %v5734_v33 = vpop.permute.xlu0 %5733 }
 0x7d3   :  { %v5762_v27 = vsel %vm3882_vm6, %v5756_v56, %v5734_v33 }
 0x7d4   :  { %13423 = vmatprep.mubr.msk.f32.mxu1 %vm176_vm1, %v5762_v27 }
 0x7da   :  { %v5688_v32 = vpop.permute.xlu1 %5687 }
 0x7db   :  { %v5750_v50 = vsel %vm3049_vm3, %v5535_v20, %v5688_v32 }
 0x7de   :  { %v5712_v42 = vpop.permute.xlu1 %5711 }
 0x7df   :  { %v5757_v36 = vsel %vm5753_vm7, %v5750_v50, %v5712_v42 }
 0x7e0   :  { %v5690_v19 = vpop.permute.xlu0 %5689 }
 0x7e1   :  { %v5751_v2 = vsel %vm3049_vm3, %v5603_v21, %v5690_v19 }
 0x7e2   :  { %v5736_v10 = vpop.permute.xlu1 %5735 }
 0x7e3   :  { %v5763_v7 = vsel %vm3882_vm6, %v5757_v36, %v5736_v10 }
 0x7e4   :  { %v5714_v22 = vpop.permute.xlu0 %5713  ;;  %13424 = vmatmul.mubr.msk.f32.gmra.mrb[58].mxu1 %vm176_vm1, %v5763_v7 }
 0x7e5   :  { %v5758_v24 = vsel %vm5753_vm7, %v5751_v2, %v5714_v22 }
 0x7e6   :  { %v5692_v3 = vpop.permute.xlu1 %5691 }
 0x7e7   :  { %v5752_v13 = vsel %vm3049_vm3, %v5671_v47, %v5692_v3 }
 0x7e8   :  { %v5738_v14 = vpop.permute.xlu0 %5737 }
 0x7e9   :  { %v5764_v61 = vsel %vm3882_vm6, %v5758_v24, %v5738_v14 }
 0x7ea   :  { %13426 = vmatprep.mubr.msk.f32.mxu1 %vm176_vm1, %v5764_v61  ;;  %v5716_v26 = vpop.permute.xlu1 %5715 }
 0x7eb   :  { %v5759_v38 = vsel %vm5753_vm7, %v5752_v13, %v5716_v26 }
 0x7ee   :  { %v5740_v49 = vpop.permute.xlu1 %5739 }
 0x7ef   :  { %v5765_v8 = vsel %vm3882_vm6, %v5759_v38, %v5740_v49 }
 0x7f0   :  { %13427 = vmatmul.mubr.msk.f32.gmra.mrb[60].mxu1 %vm176_vm1, %v5765_v8 }
 0x8a2   :  { %v13422_v37 = vpop.f32.mrb[56].mxu1 }
 0x8a3   :  { %v5864_v20 = vadd.f32 %v13422_v37, %v5773_v35  ;;  %v5858_v28 = vpop.f32.mrb[57].mxu1 }
 0x8a4   :  { %v5859_v11 = vadd.f32 %v5858_v28, %v5773_v35 }
 0x8a5   :  { %v16417_v40 = vadd.f32 %v5864_v20, %v18582_v52  ;;  %v5992_v52 = vld [vmem:[%s18480_s5 + $0x8] sm:$0xff] }
 0x8a6   :  { %v16420_v21 = vadd.f32 %v5859_v11, %v18583_v43  ;;  %v5991_v11 = vld [vmem:[%s18480_s5] sm:$0xff]  ;;  %v5993_v43 = vld [vmem:[%s18480_s5 + $0x10] sm:$0xff] }
 0x8a7   :  { %v5896_v16 = vsel %vm176_vm1, %v16417_v40, 0.0 }
 0x8a8   :  { %5897 = vadd.xlane.f32.xlu1 %v5896_v16  ;;  %v5893_v48 = vsel %vm176_vm1, %v16420_v21, 0.0 }
 0x8a9   :  { %5894 = vadd.xlane.f32.xlu0 %v5893_v48  ;;  %v13882_v48 = vpack.c.bf16 %v5992_v52, %v5991_v11 }
 0x8ab   :  { %13883 = vmatprep.subr.bf16.mxu0 %v13882_v48 }
 0x8ac   :  { %13885 = vmatpush3.bf16.msra.mxu0 %v13882_v48 }
 0x8b7   :  { %v13425_v29 = vpop.f32.mrb[58].mxu1 }
 0x8b8   :  { %v5868_v5 = vpop.f32.mrb[59].mxu1  ;;  %v5874_v62 = vadd.f32 %v13425_v29, %v5773_v35  ;;  %v5994_v29 = vld [vmem:[%s18480_s5 + $0x18] sm:$0xff] }
 0x8b9   :  { %v5869_v57 = vadd.f32 %v5868_v5, %v5773_v35 }
 0x8ba   :  { %v16430_v47 = vadd.f32 %v5874_v62, %v18585_v31  ;;  %v13886_v62 = vpack.c.bf16 %v5994_v29, %v5993_v43 }
 0x8bb   :  { %v16427_v25 = vadd.f32 %v5869_v57, %v18584_v1 }
 0x8bc   :  { %v5902_v51 = vsel %vm176_vm1, %v16430_v47, 0.0  ;;  %13887 = vmatprep.subr.bf16.mxu0 %v13886_v62 }
 0x8bd   :  { %v5899_v59 = vsel %vm176_vm1, %v16427_v25, 0.0  ;;  %13889 = vmatpush3.bf16.msra.mxu0 %v13886_v62 }
 0x8be   :  { %5900 = vadd.xlane.f32.xlu0 %v5899_v59 }
 0x8c2   :  { %5903 = vadd.xlane.f32.xlu0 %v5902_v51 }
 0x8c3   :  { %v13428_v6 = vpop.f32.mrb[60].mxu1 }
 0x8c4   :  { %v5884_v44 = vadd.f32 %v13428_v6, %v5773_v35  ;;  %v5878_v60 = vpop.f32.mrb[61].mxu1 }
 0x8c5   :  { %v5879_v46 = vadd.f32 %v5878_v60, %v5773_v35  ;;  %v18515_v60 = vsub.s32 5, %v18581_v23 }
 0x8c6   :  { %v16437_v30 = vadd.f32 %v5884_v44, %v18586_v18  ;;  %v18516_v44 = vsub.s32 4, %v18581_v23 }
 0x8c7   :  { %v16440_v12 = vadd.f32 %v5879_v46, %v18587_v53 }
 0x8c8   :  { %v5908_v0 = vsel %vm176_vm1, %v16437_v30, 0.0  ;;  %v5974_v46 = vrot.slane %v16411_v9, %v18516_v44 }
 0x8c9   :  { %5909 = vadd.xlane.f32.xlu1 %v5908_v0  ;;  %v5905_v34 = vsel %vm176_vm1, %v16440_v12, 0.0 }
 0x8ca   :  { %5906 = vadd.xlane.f32.xlu0 %v5905_v34 }
 0x935   :  { %v5898_v63 = vpop.xlane.xlu1 %5897 }
 0x936   :  { %v5912_v15 = vmul.f32 0.03125, %v5898_v63  ;;  %v5895_v39 = vpop.xlane.xlu0 %5894  ;;  %v5984_v63 = vrot.slane %v16411_v9, %v18515_v60 }
 0x937   :  { %v5911_v56 = vmul.f32 0.03125, %v5895_v39 }
 0x938   :  { %v5918_v33 = vsub.f32 %v16417_v40, %v5912_v15 }
 0x939   :  { %v5917_v27 = vsub.f32 %v16420_v21, %v5911_v56 }
 0x93a   :  { %v5924_v32 = vmul.f32 %v5918_v33, %v5918_v33 }
 0x93b   :  { %v5923_v42 = vmul.f32 %v5917_v27, %v5917_v27 }
 0x93c   :  { %v5932_v19 = vsel %vm176_vm1, %v5924_v32, 0.0 }
 0x93d   :  { %5933 = vadd.xlane.f32.xlu1 %v5932_v19  ;;  %v5929_v50 = vsel %vm176_vm1, %v5923_v42, 0.0 }
 0x93e   :  { %5930 = vadd.xlane.f32.xlu0 %v5929_v50 }
 0x94b   :  { %v5901_v36 = vpop.xlane.xlu0 %5900 }
 0x94c   :  { %v5913_v10 = vmul.f32 0.03125, %v5901_v36 }
 0x94e   :  { %v16451_v7 = vsub.f32 %v16427_v25, %v5913_v10 }
 0x94f   :  { %v5904_v22 = vpop.xlane.xlu0 %5903 }
 0x950   :  { %v5914_v3 = vmul.f32 0.03125, %v5904_v22  ;;  %v5925_v2 = vmul.f32 %v16451_v7, %v16451_v7 }
 0x952   :  { %v16456_v24 = vsub.f32 %v16430_v47, %v5914_v3  ;;  %v5935_v14 = vsel %vm176_vm1, %v5925_v2, 0.0 }
 0x953   :  { %5936 = vadd.xlane.f32.xlu0 %v5935_v14 }
 0x954   :  { %v5926_v61 = vmul.f32 %v16456_v24, %v16456_v24 }
 0x956   :  { %v5910_v26 = vpop.xlane.xlu1 %5909  ;;  %v5938_v13 = vsel %vm176_vm1, %v5926_v61, 0.0 }
 0x957   :  { %v5916_v38 = vmul.f32 0.03125, %v5910_v26  ;;  %5939 = vadd.xlane.f32.xlu1 %v5938_v13  ;;  %v5907_v49 = vpop.xlane.xlu0 %5906 }
 0x958   :  { %v5915_v8 = vmul.f32 0.03125, %v5907_v49 }
 0x959   :  { %v16463_v35 = vsub.f32 %v16437_v30, %v5916_v38 }
 0x95a   :  { %v16466_v37 = vsub.f32 %v16440_v12, %v5915_v8 }
 0x95b   :  { %v5928_v20 = vmul.f32 %v16463_v35, %v16463_v35 }
 0x95c   :  { %v5927_v28 = vmul.f32 %v16466_v37, %v16466_v37 }
 0x95d   :  { %v5944_v16 = vsel %vm176_vm1, %v5928_v20, 0.0 }
 0x95e   :  { %5945 = vadd.xlane.f32.xlu1 %v5944_v16  ;;  %v5941_v5 = vsel %vm176_vm1, %v5927_v28, 0.0 }
 0x95f   :  { %5942 = vadd.xlane.f32.xlu0 %v5941_v5 }
 0x9ca   :  { %v5934_v57 = vpop.xlane.xlu1 %5933 }
 0x9cb   :  { %v5948_v1 = vmul.f32 0.03125, %v5934_v57  ;;  %v5931_v31 = vpop.xlane.xlu0 %5930  ;;  %v6143_v57 = vld [vmem:[%s18481_s6 + $0x8] sm:$0xff] }
 0x9cc   :  { %v5947_v59 = vmul.f32 0.03125, %v5931_v31 }
 0x9cd   :  { %v5954_v51 = vadd.f32 1e-12, %v5948_v1  ;;  %v6145_v1 = vld [vmem:[%s18481_s6 + $0x18] sm:$0xff] }
 0x9ce   :  { %v5953_v6 = vadd.f32 1e-12, %v5947_v59  ;;  %v6146_v59 = vld [vmem:[%s18481_s6 + $0x20] sm:$0xff] }
 0x9cf   :  { %14135 = vrsqrt.f32 %v5954_v51  ;;  %v6147_v51 = vld [vmem:[%s18481_s6 + $0x28] sm:$0xff] }
 0x9d0   :  { %14137 = vrsqrt.f32 %v5953_v6  ;;  %v13898_v6 = vpack.c.bf16 %v6147_v51, %v6146_v59 }
 0x9d9   :  { %v14136_v18 = vpop.eup %14135 }
 0x9da   :  { %v14138_v53 = vpop.eup %14137  ;;  %v5966_v0 = vmul.f32 %v14136_v18, %v5918_v33  ;;  %v6149_v18 = vld [vmem:[%s18481_s6 + $0x38] sm:$0xff] }
 0x9db   :  { %v5965_v34 = vmul.f32 %v14138_v53, %v5917_v27 }
 0x9dc   :  { %v5976_v15 = vmul.f32 %v5974_v46, %v5966_v0  ;;  %v18514_v0 = vsub.s32 6, %v18581_v23 }
 0x9dd   :  { %v5975_v39 = vmul.f32 %v5974_v46, %v5965_v34 }
 0x9de   :  { %v5986_v42 = vadd.f32 %v5984_v63, %v5976_v15  ;;  %v5998_v34 = vrot.slane %v16411_v9, %v18514_v0 }
 0x9df   :  { %v5985_v56 = vadd.f32 %v5984_v63, %v5975_v39 }
 0x9e0   :  { %v5937_v32 = vpop.xlane.xlu0 %5936 }
 0x9e1   :  { %v5949_v19 = vmul.f32 0.03125, %v5937_v32  ;;  %13437 = vmatprep.mubr.msk.f32.mxu0 %vm176_vm1, %v5985_v56 }
 0x9e2   :  { %13438 = vmatmul.mubr.msk.f32.vlgmr.msra.gmra.mrb[52].mxu0 %vm176_vm1, %v5986_v42 }
 0x9e3   :  { %v5955_v50 = vadd.f32 1e-12, %v5949_v19 }
 0x9e4   :  { %v5940_v36 = vpop.xlane.xlu1 %5939 }
 0x9e5   :  { %14139 = vrsqrt.f32 %v5955_v50  ;;  %v5950_v10 = vmul.f32 0.03125, %v5940_v36 }
 0x9e7   :  { %v5956_v33 = vadd.f32 1e-12, %v5950_v10 }
 0x9e9   :  { %14141 = vrsqrt.f32 %v5956_v33 }
 0x9eb   :  { %v5946_v27 = vpop.xlane.xlu1 %5945 }
 0x9ec   :  { %v5952_v22 = vmul.f32 0.03125, %v5946_v27  ;;  %v5943_v3 = vpop.xlane.xlu0 %5942 }
 0x9ed   :  { %v5951_v2 = vmul.f32 0.03125, %v5943_v3 }
 0x9ee   :  { %v5958_v14 = vadd.f32 1e-12, %v5952_v22 }
 0x9ef   :  { %v14140_v61 = vpop.eup %14139  ;;  %v5957_v26 = vadd.f32 1e-12, %v5951_v2 }
 0x9f0   :  { %14143 = vrsqrt.f32 %v5958_v14  ;;  %v5967_v13 = vmul.f32 %v14140_v61, %v16451_v7 }
 0x9f1   :  { %14145 = vrsqrt.f32 %v5957_v26 }
 0x9f2   :  { %v5977_v38 = vmul.f32 %v5974_v46, %v5967_v13 }
 0x9f3   :  { %v14142_v49 = vpop.eup %14141 }
 0x9f4   :  { %v5987_v8 = vadd.f32 %v5984_v63, %v5977_v38  ;;  %v5968_v20 = vmul.f32 %v14142_v49, %v16456_v24  ;;  %v6142_v24 = vld [vmem:[%s18481_s6] sm:$0xff] }
 0x9f6   :  { %13440 = vmatprep.mubr.msk.f32.mxu0 %vm176_vm1, %v5987_v8  ;;  %v5978_v28 = vmul.f32 %v5974_v46, %v5968_v20 }
 0x9f8   :  { %v5988_v11 = vadd.f32 %v5984_v63, %v5978_v28 }
 0x9fa   :  { %v14144_v52 = vpop.eup %14143  ;;  %13441 = vmatmul.mubr.msk.f32.gmra.mrb[54].mxu0 %vm176_vm1, %v5988_v11 }
 0x9fb   :  { %v14146_v43 = vpop.eup %14145  ;;  %v5970_v16 = vmul.f32 %v14144_v52, %v16463_v35  ;;  %v6144_v35 = vld [vmem:[%s18481_s6 + $0x10] sm:$0xff] }
 0x9fc   :  { %v5969_v48 = vmul.f32 %v14146_v43, %v16466_v37  ;;  %v13890_v37 = vpack.c.bf16 %v6143_v57, %v6142_v24  ;;  %v13894_v31 = vpack.c.bf16 %v6145_v1, %v6144_v35 }
 0x9fd   :  { %v5980_v29 = vmul.f32 %v5974_v46, %v5970_v16 }
 0x9fe   :  { %v5979_v7 = vmul.f32 %v5974_v46, %v5969_v48  ;;  %13891 = vmatprep.subr.bf16.mxu1 %v13890_v37  ;;  %v6148_v46 = vld [vmem:[%s18481_s6 + $0x30] sm:$0xff] }
 0x9ff   :  { %v5990_v62 = vadd.f32 %v5984_v63, %v5980_v29  ;;  %13893 = vmatpush3.bf16.msra.mxu1 %v13890_v37  ;;  %v13902_v53 = vpack.c.bf16 %v6149_v18, %v6148_v46  ;;  %v18513_v46 = vsub.s32 7, %v18581_v23 }
 0xa00   :  { %v5989_v5 = vadd.f32 %v5984_v63, %v5979_v7  ;;  %13895 = vmatprep.subr.bf16.mxu1 %v13894_v31 }
 0xa01   :  { %v6273_v18 = vrot.slane %v16411_v9, %v18513_v46 }
 0xa02   :  { %13443 = vmatprep.mubr.msk.f32.mxu0 %vm176_vm1, %v5989_v5 }
 0xa03   :  { %13444 = vmatmul.mubr.msk.f32.gmra.mrb[56].mxu0 %vm176_vm1, %v5990_v62  ;;  %13897 = vmatpush3.bf16.msra.mxu1 %v13894_v31 }
 0xa04   :  { %13899 = vmatprep.subr.bf16.mxu1 %v13898_v6 }
 0xa07   :  { %13901 = vmatpush3.bf16.msra.mxu1 %v13898_v6 }
 0xa08   :  { %13903 = vmatprep.subr.bf16.mxu1 %v13902_v53 }
 0xa0b   :  { %13905 = vmatpush3.bf16.msra.mxu1 %v13902_v53 }
 0xa0c   :  { %13918 = vmatprep.subr.bf16.mxu1 %v18549_v58 }
 0xab5   :  { %v13439_v63 = vpop.f32.mrb[52].mxu0 }
 0xab6   :  { %v6089_v15 = vadd.f32 %v13439_v63, %v5998_v34  ;;  %v6083_v39 = vpop.f32.mrb[53].mxu0 }
 0xab7   :  { %v6084_v56 = vadd.f32 %v6083_v39, %v5998_v34 }
 0xab8   :  { %v6119_v32 = vmul.f32 0.70710677, %v6089_v15  ;;  %v6113_v27 = vmul.f32 0.5, %v6089_v15 }
 0xab9   :  { %v6118_v42 = vmul.f32 0.70710677, %v6084_v56  ;;  %v6112_v10 = vmul.f32 0.5, %v6084_v56 }
 0xaba   :  { %14147 = verf.f32 %v6119_v32 }
 0xabb   :  { %14149 = verf.f32 %v6118_v42 }
 0xac4   :  { %v14148_v19 = vpop.eup %14147 }
 0xac5   :  { %v14150_v50 = vpop.eup %14149  ;;  %v6131_v36 = vadd.f32 1.0, %v14148_v19 }
 0xac6   :  { %v6130_v33 = vadd.f32 1.0, %v14150_v50 }
 0xac7   :  { %v6137_v3 = vmul.f32 %v6131_v36, %v6113_v27 }
 0xac8   :  { %v6136_v22 = vmul.f32 %v6130_v33, %v6112_v10 }
 0xaca   :  { %13462 = vmatprep.mubr.msk.f32.mxu1 %vm6150_vm8, %v6136_v22 }
 0xacb   :  { %13463 = vmatmul.mubr.msk.f32.vlgmr.msra.gmra.mrb[62].mxu1 %vm6150_vm8, %v6137_v3 }
 0xacd   :  { %v13442_v2 = vpop.f32.mrb[54].mxu0 }
 0xace   :  { %v6099_v14 = vadd.f32 %v13442_v2, %v5998_v34  ;;  %v6093_v61 = vpop.f32.mrb[55].mxu0 }
 0xacf   :  { %v6094_v26 = vadd.f32 %v6093_v61, %v5998_v34 }
 0xad0   :  { %v6121_v13 = vmul.f32 0.70710677, %v6099_v14  ;;  %v6115_v5 = vmul.f32 0.5, %v6099_v14 }
 0xad1   :  { %v6120_v38 = vmul.f32 0.70710677, %v6094_v26  ;;  %v6114_v29 = vmul.f32 0.5, %v6094_v26 }
 0xad2   :  { %14151 = verf.f32 %v6121_v13 }
 0xad3   :  { %14153 = verf.f32 %v6120_v38 }
 0xad6   :  { %v13445_v49 = vpop.f32.mrb[56].mxu0 }
 0xad7   :  { %v6109_v8 = vadd.f32 %v13445_v49, %v5998_v34  ;;  %v6103_v20 = vpop.f32.mrb[57].mxu0 }
 0xad8   :  { %v6104_v28 = vadd.f32 %v6103_v20, %v5998_v34 }
 0xad9   :  { %v6123_v11 = vmul.f32 0.70710677, %v6109_v8  ;;  %v6117_v59 = vmul.f32 0.5, %v6109_v8 }
 0xada   :  { %v6122_v52 = vmul.f32 0.70710677, %v6104_v28  ;;  %v6116_v1 = vmul.f32 0.5, %v6104_v28 }
 0xadb   :  { %14155 = verf.f32 %v6123_v11 }
 0xadc   :  { %v14152_v43 = vpop.eup %14151  ;;  %14157 = verf.f32 %v6122_v52 }
 0xadd   :  { %v14154_v16 = vpop.eup %14153  ;;  %v6133_v48 = vadd.f32 1.0, %v14152_v43 }
 0xade   :  { %v6132_v7 = vadd.f32 1.0, %v14154_v16 }
 0xadf   :  { %v6139_v24 = vmul.f32 %v6133_v48, %v6115_v5 }
 0xae0   :  { %v6138_v62 = vmul.f32 %v6132_v7, %v6114_v29 }
 0xae2   :  { %13465 = vmatprep.mubr.msk.f32.mxu1 %vm6150_vm8, %v6138_v62 }
 0xae3   :  { %13466 = vmatmul.mubr.msk.f32.gmra.mrb[64].mxu1 %vm6150_vm8, %v6139_v24 }
 0xae5   :  { %v14156_v57 = vpop.eup %14155 }
 0xae6   :  { %v14158_v35 = vpop.eup %14157  ;;  %v6135_v37 = vadd.f32 1.0, %v14156_v57 }
 0xae7   :  { %v6134_v31 = vadd.f32 1.0, %v14158_v35 }
 0xae8   :  { %v6141_v6 = vmul.f32 %v6135_v37, %v6117_v59 }
 0xae9   :  { %v6140_v51 = vmul.f32 %v6134_v31, %v6116_v1 }
 0xaeb   :  { %13468 = vmatprep.mubr.msk.f32.mxu1 %vm6150_vm8, %v6140_v51 }
 0xaec   :  { %13469 = vmatmul.mubr.msk.f32.gmra.mrb[66].mxu1 %vm6150_vm8, %v6141_v6 }
 0xaed   :  { %13509 = vmatprep.mubr.msk.f32.mxu1 %vm14324_vm2, %v18548_v54 }
 0xb9e   :  { %v13464_v53 = vpop.f32.mrb[62].mxu1 }
 0xb9f   :  { %v6265_v34 = vadd.f32 %v13464_v53, %v16417_v40  ;;  %v6235_v63 = vpop.f32.mrb[63].mxu1  ;;  %v12672_v53 = vld [vmem:[%s18478_s3 + $0x20] sm:$0xff] }
 0xba0   :  { %v6264_v15 = vadd.f32 %v6235_v63, %v16420_v21  ;;  %v12674_v63 = vld [vmem:[%s18478_s3 + $0x30] sm:$0xff] }
 0xba1   :  { %v16547_v39 = vadd.f32 %v6273_v18, %v6265_v34  ;;  %v12673_v34 = vld [vmem:[%s18478_s3 + $0x28] sm:$0xff] }
 0xba2   :  { %v16549_v56 = vadd.f32 %v6273_v18, %v6264_v15 }
 0xba3   :  { %18588 = vst [vmem:[#allocation17_spill] sm:$0xff] %v16547_v39  ;;  %v6285_v32 = vsel %vm176_vm1, %v16547_v39, 0.0 }
 0xba4   :  { %18589 = vst [vmem:[#allocation18_spill] sm:$0xff] %v16549_v56  ;;  %6286 = vadd.xlane.f32.xlu1 %v6285_v32  ;;  %v6282_v42 = vsel %vm176_vm1, %v16549_v56, 0.0  ;;  %v13906_v32 = vpack.c.bf16 %v12673_v34, %v12672_v53 }
 0xba5   :  { %6283 = vadd.xlane.f32.xlu0 %v6282_v42  ;;  %v12675_v42 = vld [vmem:[%s18478_s3 + $0x38] sm:$0xff] }
 0xba6   :  { %13907 = vmatprep.subr.bf16.mxu0 %v13906_v32 }
 0xba7   :  { %13909 = vmatpush3.bf16.msra.mxu0 %v13906_v32 }
 0xbb6   :  { %v13467_v19 = vpop.f32.mrb[64].mxu1 }
 0xbb7   :  { %v6267_v9 = vadd.f32 %v13467_v19, %v16430_v47  ;;  %v6245_v50 = vpop.f32.mrb[65].mxu1 }
 0xbb8   :  { %v6266_v40 = vadd.f32 %v6245_v50, %v16427_v25 }
 0xbb9   :  { %v16557_v36 = vadd.f32 %v6273_v18, %v6267_v9  ;;  %v13910_v9 = vpack.c.bf16 %v12675_v42, %v12674_v63 }
 0xbba   :  { %v16559_v21 = vadd.f32 %v6273_v18, %v6266_v40 }
 0xbbb   :  { %18590 = vst [vmem:[#allocation20_spill] sm:$0xff] %v16557_v36  ;;  %v6291_v10 = vsel %vm176_vm1, %v16557_v36, 0.0  ;;  %13911 = vmatprep.subr.bf16.mxu0 %v13910_v9 }
 0xbbc   :  { %18591 = vst [vmem:[#allocation19_spill] sm:$0xff] %v16559_v21  ;;  %6292 = vadd.xlane.f32.xlu1 %v6291_v10  ;;  %v6288_v33 = vsel %vm176_vm1, %v16559_v21, 0.0  ;;  %13913 = vmatpush3.bf16.msra.mxu0 %v13910_v9 }
 0xbbd   :  { %6289 = vadd.xlane.f32.xlu0 %v6288_v33  ;;  %13914 = vmatprep.subr.bf16.mxu0 %v18549_v58 }
 0xbbf   :  { %v13470_v27 = vpop.f32.mrb[66].mxu1 }
 0xbc0   :  { %v6269_v22 = vadd.f32 %v13470_v27, %v16437_v30  ;;  %v6255_v3 = vpop.f32.mrb[67].mxu1 }
 0xbc1   :  { %v6268_v47 = vadd.f32 %v6255_v3, %v16440_v12  ;;  %v12671_v3 = vld [vmem:[%s18482_s7 + $0x8] sm:$0xff] }
 0xbc2   :  { %v16567_v2 = vadd.f32 %v6273_v18, %v6269_v22 }
 0xbc3   :  { %v16569_v25 = vadd.f32 %v6273_v18, %v6268_v47  ;;  %v18594_v47 = vld [vmem:[#allocation12_spill] sm:$0xff] }
 0xbc4   :  { %18592 = vst [vmem:[#allocation22_spill] sm:$0xff] %v16567_v2  ;;  %v6297_v14 = vsel %vm176_vm1, %v16567_v2, 0.0 }
 0xbc5   :  { %18593 = vst [vmem:[#allocation21_spill] sm:$0xff] %v16569_v25  ;;  %6298 = vadd.xlane.f32.xlu1 %v6297_v14  ;;  %v6294_v61 = vsel %vm176_vm1, %v16569_v25, 0.0  ;;  %v6363_v14 = vrot.slane %v12671_v3, %v18594_v47 }
 0xbc6   :  { %6295 = vadd.xlane.f32.xlu0 %v6294_v61 }
 0xc31   :  { %v6287_v26 = vpop.xlane.xlu1 %6286 }
 0xc32   :  { %v6301_v13 = vmul.f32 0.03125, %v6287_v26  ;;  %v6284_v38 = vpop.xlane.xlu0 %6283 }
 0xc33   :  { %v6300_v49 = vmul.f32 0.03125, %v6284_v38 }
 0xc34   :  { %v6307_v30 = vsub.f32 %v16547_v39, %v6301_v13 }
 0xc35   :  { %v6306_v12 = vsub.f32 %v16549_v56, %v6300_v49  ;;  %v18595_v49 = vld [vmem:[#allocation13_spill] sm:$0xff] }
 0xc36   :  { %v6313_v8 = vmul.f32 %v6307_v30, %v6307_v30 }
 0xc37   :  { %v6312_v20 = vmul.f32 %v6306_v12, %v6306_v12 }
 0xc38   :  { %v6321_v28 = vsel %vm176_vm1, %v6313_v8, 0.0  ;;  %v6373_v8 = vrot.slane %v12671_v3, %v18595_v49 }
 0xc39   :  { %6322 = vadd.xlane.f32.xlu1 %v6321_v28  ;;  %v6318_v11 = vsel %vm176_vm1, %v6312_v20, 0.0 }
 0xc3a   :  { %6319 = vadd.xlane.f32.xlu0 %v6318_v11 }
 0xc49   :  { %v6293_v52 = vpop.xlane.xlu1 %6292 }
 0xc4a   :  { %v6303_v43 = vmul.f32 0.03125, %v6293_v52  ;;  %v6290_v16 = vpop.xlane.xlu0 %6289 }
 0xc4b   :  { %v6302_v48 = vmul.f32 0.03125, %v6290_v16 }
 0xc4c   :  { %v16580_v29 = vsub.f32 %v16557_v36, %v6303_v43 }
 0xc4d   :  { %v16583_v7 = vsub.f32 %v16559_v21, %v6302_v48 }
 0xc4e   :  { %v6315_v5 = vmul.f32 %v16580_v29, %v16580_v29 }
 0xc4f   :  { %v6314_v62 = vmul.f32 %v16583_v7, %v16583_v7 }
 0xc50   :  { %v6327_v24 = vsel %vm176_vm1, %v6315_v5, 0.0 }
 0xc51   :  { %6328 = vadd.xlane.f32.xlu1 %v6327_v24  ;;  %v6324_v57 = vsel %vm176_vm1, %v6314_v62, 0.0 }
 0xc52   :  { %v6299_v35 = vpop.xlane.xlu1 %6298  ;;  %6325 = vadd.xlane.f32.xlu0 %v6324_v57 }
 0xc53   :  { %v6305_v37 = vmul.f32 0.03125, %v6299_v35  ;;  %v6296_v1 = vpop.xlane.xlu0 %6295 }
 0xc54   :  { %v6304_v31 = vmul.f32 0.03125, %v6296_v1 }
 0xc55   :  { %v16592_v59 = vsub.f32 %v16567_v2, %v6305_v37 }
 0xc56   :  { %v16595_v51 = vsub.f32 %v16569_v25, %v6304_v31 }
 0xc57   :  { %v6317_v6 = vmul.f32 %v16592_v59, %v16592_v59 }
 0xc58   :  { %v6316_v18 = vmul.f32 %v16595_v51, %v16595_v51 }
 0xc59   :  { %v6333_v15 = vsel %vm176_vm1, %v6317_v6, 0.0 }
 0xc5a   :  { %6334 = vadd.xlane.f32.xlu1 %v6333_v15  ;;  %v6330_v19 = vsel %vm176_vm1, %v6316_v18, 0.0 }
 0xc5b   :  { %6331 = vadd.xlane.f32.xlu0 %v6330_v19 }
 0xcc6   :  { %v6323_v50 = vpop.xlane.xlu1 %6322 }
 0xcc7   :  { %v6337_v40 = vmul.f32 0.03125, %v6323_v50  ;;  %v6320_v10 = vpop.xlane.xlu0 %6319 }
 0xcc8   :  { %v6336_v33 = vmul.f32 0.03125, %v6320_v10 }
 0xcc9   :  { %v6343_v27 = vadd.f32 1e-12, %v6337_v40 }
 0xcca   :  { %v6342_v22 = vadd.f32 1e-12, %v6336_v33 }
 0xccb   :  { %14159 = vrsqrt.f32 %v6343_v27 }
 0xccc   :  { %14161 = vrsqrt.f32 %v6342_v22 }
 0xcd5   :  { %v14160_v61 = vpop.eup %14159 }
 0xcd6   :  { %v14162_v26 = vpop.eup %14161  ;;  %v6355_v13 = vmul.f32 %v14160_v61, %v6307_v30 }
 0xcd7   :  { %v6354_v38 = vmul.f32 %v14162_v26, %v6306_v12 }
 0xcd8   :  { %v6365_v20 = vmul.f32 %v6363_v14, %v6355_v13 }
 0xcd9   :  { %v6364_v28 = vmul.f32 %v6363_v14, %v6354_v38 }
 0xcda   :  { %v6375_v52 = vadd.f32 %v6373_v8, %v6365_v20 }
 0xcdb   :  { %v6374_v11 = vadd.f32 %v6373_v8, %v6364_v28 }
 0xcdd   :  { %13479 = vmatprep.mubr.msk.f32.mxu0 %vm176_vm1, %v6374_v11 }
 0xcde   :  { %v6329_v43 = vpop.xlane.xlu1 %6328  ;;  %13480 = vmatmul.mubr.msk.f32.vlgmr.msra.gmra.mrb[58].mxu0 %vm176_vm1, %v6375_v52 }
 0xcdf   :  { %v6339_v16 = vmul.f32 0.03125, %v6329_v43  ;;  %v6326_v48 = vpop.xlane.xlu0 %6325 }
 0xce0   :  { %v6338_v5 = vmul.f32 0.03125, %v6326_v48 }
 0xce1   :  { %v6345_v62 = vadd.f32 1e-12, %v6339_v16 }
 0xce2   :  { %v6344_v24 = vadd.f32 1e-12, %v6338_v5 }
 0xce3   :  { %14163 = vrsqrt.f32 %v6345_v62 }
 0xce4   :  { %14165 = vrsqrt.f32 %v6344_v24 }
 0xce7   :  { %v6335_v30 = vpop.xlane.xlu1 %6334 }
 0xce8   :  { %v6341_v12 = vmul.f32 0.03125, %v6335_v30  ;;  %v6332_v57 = vpop.xlane.xlu0 %6331 }
 0xce9   :  { %v6340_v35 = vmul.f32 0.03125, %v6332_v57 }
 0xcea   :  { %v6347_v37 = vadd.f32 1e-12, %v6341_v12 }
 0xceb   :  { %v6346_v1 = vadd.f32 1e-12, %v6340_v35 }
 0xcec   :  { %14167 = vrsqrt.f32 %v6347_v37 }
 0xced   :  { %v14164_v31 = vpop.eup %14163  ;;  %14169 = vrsqrt.f32 %v6346_v1 }
 0xcee   :  { %v14166_v6 = vpop.eup %14165  ;;  %v6357_v18 = vmul.f32 %v14164_v31, %v16580_v29 }
 0xcef   :  { %v6356_v53 = vmul.f32 %v14166_v6, %v16583_v7  ;;  %v18596_v7 = vld [vmem:[#allocation14_spill] sm:$0xff] }
 0xcf0   :  { %v6367_v34 = vmul.f32 %v6363_v14, %v6357_v18  ;;  %v6388_v27 = vrot.slane %v12671_v3, %v18596_v7 }
 0xcf1   :  { %v6366_v63 = vmul.f32 %v6363_v14, %v6356_v53 }
 0xcf2   :  { %v6377_v32 = vadd.f32 %v6373_v8, %v6367_v34 }
 0xcf3   :  { %v6376_v15 = vadd.f32 %v6373_v8, %v6366_v63 }
 0xcf5   :  { %13482 = vmatprep.mubr.msk.f32.mxu0 %vm176_vm1, %v6376_v15 }
 0xcf6   :  { %v14168_v42 = vpop.eup %14167  ;;  %13483 = vmatmul.mubr.msk.f32.gmra.mrb[60].mxu0 %vm176_vm1, %v6377_v32 }
 0xcf7   :  { %v14170_v19 = vpop.eup %14169  ;;  %v6359_v9 = vmul.f32 %v14168_v42, %v16592_v59 }
 0xcf8   :  { %v6358_v50 = vmul.f32 %v14170_v19, %v16595_v51 }
 0xcf9   :  { %v6369_v40 = vmul.f32 %v6363_v14, %v6359_v9 }
 0xcfa   :  { %v6368_v10 = vmul.f32 %v6363_v14, %v6358_v50 }
 0xcfb   :  { %v6379_v29 = vadd.f32 %v6373_v8, %v6369_v40 }
 0xcfc   :  { %v6378_v33 = vadd.f32 %v6373_v8, %v6368_v10 }
 0xcfe   :  { %13485 = vmatprep.mubr.msk.f32.mxu0 %vm176_vm1, %v6378_v33 }
 0xcff   :  { %13486 = vmatmul.mubr.msk.f32.gmra.mrb[62].mxu0 %vm176_vm1, %v6379_v29 }
 0xd00   :  { %13494 = vmatprep.mubr.msk.f32.mxu0 %vm14324_vm2, %v18548_v54 }
 0xdb1   :  { %v13481_v22 = vpop.f32.mrb[58].mxu0 }
 0xdb2   :  { %v16634_v61 = vadd.f32 %v13481_v22, %v6388_v27  ;;  %v6473_v26 = vpop.f32.mrb[59].mxu0 }
 0xdb3   :  { %v16636_v59 = vadd.f32 %v6473_v26, %v6388_v27 }
 0xdb4   :  { %6510 = vrot.lane.b32.xlu1 %v16634_v61, %s14319_s1 }
 0xdb5   :  { %6508 = vrot.lane.b32.xlu0 %v16636_v59, %s14319_s1 }
 0xdb8   :  { %6528 = vrot.lane.b32.xlu1 %v16634_v61, %s14320_s30 }
 0xdb9   :  { %6544 = vrot.lane.b32.xlu0 %v16636_v59, %s14321_s11 }
 0xdbc   :  { %6526 = vrot.lane.b32.xlu1 %v16636_v59, %s14320_s30 }
 0xdc0   :  { %6546 = vrot.lane.b32.xlu1 %v16634_v61, %s14321_s11 }
 0xdc9   :  { %v13484_v51 = vpop.f32.mrb[60].mxu0 }
 0xdca   :  { %v6483_v3 = vpop.f32.mrb[61].mxu0  ;;  %v16656_v13 = vadd.f32 %v13484_v51, %v6388_v27 }
 0xdcb   :  { %v16650_v14 = vadd.f32 %v6483_v3, %v6388_v27 }
 0xdcd   :  { %6530 = vrot.lane.b32.xlu1 %v16650_v14, %s14320_s30  ;;  %6512 = vrot.lane.b32.xlu0 %v16650_v14, %s14319_s1 }
 0xdd1   :  { %6514 = vrot.lane.b32.xlu1 %v16656_v13, %s14319_s1  ;;  %6548 = vrot.lane.b32.xlu0 %v16650_v14, %s14321_s11 }
 0xdd2   :  { %v13487_v38 = vpop.f32.mrb[62].mxu0 }
 0xdd3   :  { %v6493_v8 = vpop.f32.mrb[63].mxu0  ;;  %v16672_v28 = vadd.f32 %v13487_v38, %v6388_v27 }
 0xdd4   :  { %v16662_v20 = vadd.f32 %v6493_v8, %v6388_v27 }
 0xdd5   :  { %6532 = vrot.lane.b32.xlu1 %v16656_v13, %s14320_s30 }
 0xdd6   :  { %6516 = vrot.lane.b32.xlu0 %v16662_v20, %s14319_s1 }
 0xdd9   :  { %6550 = vrot.lane.b32.xlu1 %v16656_v13, %s14321_s11 }
 0xdda   :  { %6534 = vrot.lane.b32.xlu0 %v16662_v20, %s14320_s30 }
 0xddd   :  { %6518 = vrot.lane.b32.xlu1 %v16672_v28, %s14319_s1 }
 0xdde   :  { %6552 = vrot.lane.b32.xlu0 %v16662_v20, %s14321_s11 }
 0xde1   :  { %6554 = vrot.lane.b32.xlu1 %v16672_v28, %s14321_s11 }
 0xde2   :  { %6536 = vrot.lane.b32.xlu0 %v16672_v28, %s14320_s30 }
 0xde5   :  { %7380 = vrot.lane.b32.xlu1 %v16634_v61, %s14322_s12 }
 0xde6   :  { %7378 = vrot.lane.b32.xlu0 %v16636_v59, %s14322_s12 }
 0xe26   :  { %v16686_v11 = vpop.permute.xlu1 %6510 }
 0xe27   :  { %7392 = vrot.lane.b32.xlu1 %v16686_v11, %s14322_s12  ;;  %v6509_v52 = vpop.permute.xlu0 %6508 }
 0xe28   :  { %7390 = vrot.lane.b32.xlu0 %v6509_v52, %s14322_s12 }
 0xe2a   :  { %v16691_v43 = vpop.permute.xlu1 %6528 }
 0xe2b   :  { %7404 = vrot.lane.b32.xlu1 %v16691_v43, %s14322_s12  ;;  %v6545_v5 = vpop.permute.xlu0 %6544  ;;  %v6630_v26 = vcombine.low %v16634_v61, %v16691_v43 }
 0xe2c   :  { %v6578_v15 = vcombine.low %v6509_v52, %v6545_v5  ;;  %v6579_v32 = vcombine.high %v6509_v52, %v6545_v5 }
 0xe2e   :  { %v6527_v16 = vpop.permute.xlu1 %6526  ;;  %v6586_v9 = vrot.slane %v6578_v15, %v14709_v55  ;;  %v6593_v50 = vrot.slane %v6579_v32, %v14709_v55 }
 0xe2f   :  { %7402 = vrot.lane.b32.xlu0 %v6527_v16, %s14322_s12  ;;  %v6562_v34 = vcombine.low %v16636_v59, %v6527_v16  ;;  %v6563_v63 = vcombine.high %v16636_v59, %v6527_v16 }
 0xe31   :  { %v6570_v42 = vrot.slane %v6562_v34, %v14709_v55  ;;  %v6577_v19 = vrot.slane %v6563_v63, %v14709_v55 }
 0xe32   :  { %v16696_v48 = vpop.permute.xlu1 %6546 }
 0xe33   :  { %7416 = vrot.lane.b32.xlu1 %v16696_v48, %s14322_s12  ;;  %7414 = vrot.lane.b32.xlu0 %v6545_v5, %s14322_s12  ;;  %v6594_v40 = vcombine.low %v6570_v42, %v6586_v9  ;;  %v6595_v10 = vcombine.high %v6570_v42, %v6586_v9  ;;  %v6610_v33 = vcombine.low %v6577_v19, %v6593_v50 }
 0xe34   :  { %v6611_v29 = vcombine.high %v6577_v19, %v6593_v50  ;;  %v6646_v27 = vcombine.low %v16686_v11, %v16696_v48  ;;  %v6647_v22 = vcombine.high %v16686_v11, %v16696_v48 }
 0xe35   :  { %v6602_v51 = vrot.slane %v6594_v40, %v14724_v45  ;;  %v6609_v3 = vrot.slane %v6595_v10, %v14724_v45  ;;  %v6618_v38 = vrot.slane %v6610_v33, %v14724_v45 }
 0xe36   :  { %v6625_v8 = vrot.slane %v6611_v29, %v14724_v45 }
 0xe37   :  { %7382 = vrot.lane.b32.xlu0 %v16650_v14, %s14322_s12 }
 0xe38   :  { %v6986_v34 = vcombine.low %v6618_v38, %v6625_v8  ;;  %v12683_v63 = vcombine.high %v6618_v38, %v6625_v8 }
 0xe3a   :  { %v6993_v50 = vrot.slane %v6986_v34, %v14709_v55  ;;  %v7001_v40 = vrot.slane %v12683_v63, %v14709_v55 }
 0xe3c   :  { %v7019_v38 = vcombine.high %v6993_v50, %v7001_v40 }
 0xe3f   :  { %v16703_v62 = vpop.permute.xlu1 %6530  ;;  %v16705_v24 = vpop.permute.xlu0 %6512 }
 0xe40   :  { %7406 = vrot.lane.b32.xlu0 %v16703_v62, %s14322_s12  ;;  %7394 = vrot.lane.b32.xlu1 %v16705_v24, %s14322_s12  ;;  %v6698_v8 = vcombine.low %v16650_v14, %v16703_v62 }
 0xe42   :  { %v6706_v63 = vrot.slane %v6698_v8, %v14709_v55 }
 0xe43   :  { %v16711_v30 = vpop.permute.xlu1 %6514  ;;  %v16713_v12 = vpop.permute.xlu0 %6548 }
 0xe44   :  { %7384 = vrot.lane.b32.xlu0 %v16656_v13, %s14322_s12  ;;  %7418 = vrot.lane.b32.xlu1 %v16713_v12, %s14322_s12 }
 0xe47   :  { %v16723_v35 = vpop.permute.xlu1 %6532 }
 0xe48   :  { %7396 = vrot.lane.b32.xlu0 %v16711_v30, %s14322_s12  ;;  %v16721_v57 = vpop.permute.xlu0 %6516  ;;  %7386 = vrot.lane.b32.xlu1 %v16662_v20, %s14322_s12 }
 0xe4b   :  { %v16733_v1 = vpop.permute.xlu1 %6550 }
 0xe4c   :  { %7408 = vrot.lane.b32.xlu0 %v16723_v35, %s14322_s12  ;;  %v16729_v37 = vpop.permute.xlu0 %6534  ;;  %7398 = vrot.lane.b32.xlu1 %v16721_v57, %s14322_s12 }
 0xe4f   :  { %v16745_v6 = vpop.permute.xlu1 %6518 }
 0xe50   :  { %7420 = vrot.lane.b32.xlu0 %v16733_v1, %s14322_s12  ;;  %7410 = vrot.lane.b32.xlu1 %v16729_v37, %s14322_s12  ;;  %v16739_v31 = vpop.permute.xlu0 %6552 }
 0xe53   :  { %v16753_v53 = vpop.permute.xlu1 %6554 }
 0xe54   :  { %7388 = vrot.lane.b32.xlu0 %v16672_v28, %s14322_s12  ;;  %7422 = vrot.lane.b32.xlu1 %v16739_v31, %s14322_s12  ;;  %v16747_v18 = vpop.permute.xlu0 %6536 }
 0xe58   :  { %7412 = vrot.lane.b32.xlu0 %v16747_v18, %s14322_s12  ;;  %7400 = vrot.lane.b32.xlu1 %v16745_v6, %s14322_s12 }
 0xe5c   :  { %8266 = vrot.lane.b32.xlu0 %v16636_v59, %s14326_s13  ;;  %7424 = vrot.lane.b32.xlu1 %v16753_v53, %s14322_s12  ;;  %v6631_v59 = vcombine.high %v16634_v61, %v16691_v43 }
 0xe60   :  { %8290 = vrot.lane.b32.xlu0 %v6527_v16, %s14326_s13  ;;  %8268 = vrot.lane.b32.xlu1 %v16634_v61, %s14326_s13  ;;  %v6638_v61 = vrot.slane %v6630_v26, %v14709_v55  ;;  %v6970_v16 = vcombine.low %v6602_v51, %v6609_v3 }
 0xe62   :  { %v6977_v19 = vrot.slane %v6970_v16, %v14709_v55 }
 0xe64   :  { %8302 = vrot.lane.b32.xlu0 %v6545_v5, %s14326_s13  ;;  %8278 = vrot.lane.b32.xlu1 %v6509_v52, %s14326_s13  ;;  %v6654_v52 = vrot.slane %v6646_v27, %v14709_v55  ;;  %v12682_v5 = vcombine.high %v6602_v51, %v6609_v3  ;;  %v6715_v51 = vcombine.high %v16705_v24, %v16713_v12 }
 0xe66   :  { %v6662_v15 = vcombine.low %v6638_v61, %v6654_v52  ;;  %v6663_v32 = vcombine.high %v6638_v61, %v6654_v52  ;;  %v6985_v9 = vrot.slane %v12682_v5, %v14709_v55 }
 0xe68   :  { %8270 = vrot.lane.b32.xlu0 %v16650_v14, %s14326_s13  ;;  %8280 = vrot.lane.b32.xlu1 %v16686_v11, %s14326_s13  ;;  %v6661_v11 = vrot.slane %v6647_v22, %v14709_v55  ;;  %v6670_v10 = vrot.slane %v6662_v15, %v14724_v45  ;;  %v6677_v33 = vrot.slane %v6663_v32, %v14724_v45 }
 0xe69   :  { %v6714_v22 = vcombine.low %v16705_v24, %v16713_v12  ;;  %v7002_v26 = vcombine.low %v6977_v19, %v6985_v9  ;;  %v7003_v3 = vcombine.high %v6977_v19, %v6985_v9  ;;  %v16844_v15 = vrot.slane %v7019_v38, %v14724_v45 }
 0xe6a   :  { %v7038_v52 = vcombine.low %v6670_v10, %v6677_v33  ;;  %v12684_v61 = vcombine.high %v6670_v10, %v6677_v33  ;;  %v6783_v10 = vcombine.high %v16711_v30, %v16733_v1 }
 0xe6b   :  { %v16829_v5 = vrot.slane %v7002_v26, %v14724_v45  ;;  %v6766_v26 = vcombine.low %v16656_v13, %v16723_v35 }
 0xe6c   :  { %8294 = vrot.lane.b32.xlu0 %v16703_v62, %s14326_s13  ;;  %8292 = vrot.lane.b32.xlu1 %v16691_v43, %s14326_s13  ;;  %v6645_v43 = vrot.slane %v6631_v59, %v14709_v55  ;;  %v7018_v59 = vcombine.low %v6993_v50, %v7001_v40  ;;  %v6782_v40 = vcombine.low %v16711_v30, %v16733_v1 }
 0xe6e   :  { %v6678_v42 = vcombine.low %v6645_v43, %v6661_v11  ;;  %v16832_v34 = vrot.slane %v7018_v59, %v14724_v45  ;;  %v6767_v59 = vcombine.high %v16656_v13, %v16723_v35 }
 0xe70   :  { %8272 = vrot.lane.b32.xlu0 %v16656_v13, %s14326_s13  ;;  %8304 = vrot.lane.b32.xlu1 %v16696_v48, %s14326_s13  ;;  %v6679_v48 = vcombine.high %v6645_v43, %v6661_v11  ;;  %v6686_v29 = vrot.slane %v6678_v42, %v14724_v45  ;;  %v6699_v11 = vcombine.high %v16650_v14, %v16703_v62 }
 0xe71   :  { %v16838_v14 = vrot.slane %v7038_v52, %v14709_v55  ;;  %v16841_v62 = vrot.slane %v7003_v3, %v14724_v45  ;;  %v16848_v42 = vrot.slane %v12684_v61, %v14709_v55  ;;  %v6790_v52 = vrot.slane %v6782_v40, %v14709_v55 }
 0xe72   :  { %v6693_v27 = vrot.slane %v6679_v48, %v14724_v45  ;;  %v6713_v32 = vrot.slane %v6699_v11, %v14709_v55  ;;  %v6797_v11 = vrot.slane %v6783_v10, %v14709_v55  ;;  %v6919_v40 = vcombine.high %v16745_v6, %v16753_v53 }
 0xe73   :  { %v7071_v38 = vcombine.high %v16838_v14, %v16848_v42  ;;  %v6903_v10 = vcombine.high %v16672_v28, %v16747_v18 }
 0xe74   :  { %8296 = vrot.lane.b32.xlu0 %v16723_v35, %s14326_s13  ;;  %8282 = vrot.lane.b32.xlu1 %v16705_v24, %s14326_s13  ;;  %v7054_v43 = vcombine.low %v6686_v29, %v6693_v27  ;;  %v12685_v16 = vcombine.high %v6686_v29, %v6693_v27  ;;  %v6722_v24 = vrot.slane %v6714_v22, %v14709_v55 }
 0xe76   :  { %v16851_v48 = vrot.slane %v7054_v43, %v14709_v55  ;;  %v16854_v19 = vrot.slane %v12685_v16, %v14709_v55  ;;  %v6730_v9 = vcombine.low %v6706_v63, %v6722_v24  ;;  %v6731_v50 = vcombine.high %v6706_v63, %v6722_v24 }
 0xe77   :  { %v6850_v16 = vcombine.low %v16721_v57, %v16739_v31  ;;  %v6851_v24 = vcombine.high %v16721_v57, %v16739_v31  ;;  %v6781_v63 = vrot.slane %v6767_v59, %v14709_v55 }
 0xe78   :  { %8308 = vrot.lane.b32.xlu0 %v16733_v1, %s14326_s13  ;;  %8306 = vrot.lane.b32.xlu1 %v16713_v12, %s14326_s13  ;;  %v6729_v12 = vrot.slane %v6715_v51, %v14709_v55  ;;  %v7070_v51 = vcombine.low %v16838_v14, %v16848_v42  ;;  %v7086_v3 = vcombine.low %v16851_v48, %v16854_v19 }
 0xe79   :  { %v7087_v13 = vcombine.high %v16851_v48, %v16854_v19  ;;  %v6738_v35 = vrot.slane %v6730_v9, %v14724_v45  ;;  %v6745_v8 = vrot.slane %v6731_v50, %v14724_v45  ;;  %v6835_v9 = vcombine.high %v16662_v20, %v16729_v37 }
 0xe7a   :  { %v6746_v33 = vcombine.low %v6713_v32, %v6729_v12  ;;  %v6747_v29 = vcombine.high %v6713_v32, %v6729_v12  ;;  %v6774_v12 = vrot.slane %v6766_v26, %v14709_v55  ;;  %v6834_v32 = vcombine.low %v16662_v20, %v16729_v37 }
 0xe7b   :  { %v6918_v50 = vcombine.low %v16745_v6, %v16753_v53  ;;  %v6814_v26 = vcombine.low %v6781_v63, %v6797_v11  ;;  %v6815_v59 = vcombine.high %v6781_v63, %v6797_v11  ;;  %v7106_v46 = vcombine.low %v6738_v35, %v6745_v8 }
 0xe7c   :  { %8276 = vrot.lane.b32.xlu0 %v16672_v28, %s14326_s13  ;;  %8274 = vrot.lane.b32.xlu1 %v16662_v20, %s14326_s13  ;;  %v6754_v61 = vrot.slane %v6746_v33, %v14724_v45  ;;  %v6761_v43 = vrot.slane %v6747_v29, %v14724_v45  ;;  %v6798_v33 = vcombine.low %v6774_v12, %v6790_v52 }
 0xe7d   :  { %v6799_v29 = vcombine.high %v6774_v12, %v6790_v52  ;;  %v6858_v20 = vrot.slane %v6850_v16, %v14709_v55  ;;  %v12686_v0 = vcombine.high %v6738_v35, %v6745_v8  ;;  %v6842_v60 = vrot.slane %v6834_v32, %v14709_v55 }
 0xe7e   :  { %v6849_v44 = vrot.slane %v6835_v9, %v14709_v55  ;;  %v7122_v41 = vcombine.low %v6754_v61, %v6761_v43  ;;  %v12687_v1 = vcombine.high %v6754_v61, %v6761_v43  ;;  %v6933_v52 = vrot.slane %v6919_v40, %v14709_v55 }
 0xe7f   :  { %v6917_v16 = vrot.slane %v6903_v10, %v14709_v55  ;;  %v6813_v35 = vrot.slane %v6799_v29, %v14724_v45  ;;  %v6822_v8 = vrot.slane %v6814_v26, %v14724_v45  ;;  %v6829_v12 = vrot.slane %v6815_v59, %v14724_v45 }
 0xe80   :  { %8284 = vrot.lane.b32.xlu1 %v16711_v30, %s14326_s13  ;;  %v6866_v63 = vcombine.low %v6842_v60, %v6858_v20  ;;  %v7113_v43 = vrot.slane %v7106_v46, %v14709_v55  ;;  %v7121_v9 = vrot.slane %v12686_v0, %v14709_v55  ;;  %v7137_v40 = vrot.slane %v12687_v1, %v14709_v55 }
 0xe81   :  { %v6951_v29 = vcombine.high %v6917_v16, %v6933_v52  ;;  %v7190_v22 = vcombine.low %v6822_v8, %v6829_v12  ;;  %v12689_v59 = vcombine.high %v6822_v8, %v6829_v12  ;;  %v16934_v1 = vrot.slane %v7086_v3, %v14724_v45  ;;  %v16944_v3 = vpop.permute.xlu1 %7380 }
 0xe83   :  { %v7205_v8 = vrot.slane %v12689_v59, %v14709_v55 }
 0xe84   :  { %8286 = vrot.lane.b32.xlu1 %v16721_v57, %s14326_s13  ;;  %v6902_v57 = vcombine.low %v16672_v28, %v16747_v18  ;;  %v6926_v28 = vrot.slane %v6918_v50, %v14709_v55  ;;  %v7129_v50 = vrot.slane %v7122_v41, %v14709_v55  ;;  %v16931_v41 = vrot.slane %v7070_v51, %v14724_v45 }
 0xe85   :  { %v7197_v51 = vrot.slane %v7190_v22, %v14709_v55  ;;  %v16958_v22 = vrot.slane %v7087_v13, %v14724_v45 }
 0xe86   :  { %v6910_v11 = vrot.slane %v6902_v57, %v14709_v55 }
 0xe88   :  { %8298 = vrot.lane.b32.xlu1 %v16729_v37, %s14326_s13  ;;  %v6865_v37 = vrot.slane %v6851_v24, %v14709_v55  ;;  %v6806_v24 = vrot.slane %v6798_v33, %v14724_v45  ;;  %v6934_v57 = vcombine.low %v6910_v11, %v6926_v28  ;;  %v6935_v10 = vcombine.high %v6910_v11, %v6926_v28 }
 0xe89   :  { %v6950_v33 = vcombine.low %v6917_v16, %v6933_v52  ;;  %v6965_v16 = vrot.slane %v6951_v29, %v14724_v45 }
 0xe8a   :  { %v6882_v32 = vcombine.low %v6849_v44, %v6865_v37  ;;  %v6883_v61 = vcombine.high %v6849_v44, %v6865_v37  ;;  %v7174_v30 = vcombine.low %v6806_v24, %v6813_v35  ;;  %v12688_v26 = vcombine.high %v6806_v24, %v6813_v35 }
 0xe8b   :  { %v7154_v37 = vcombine.low %v7129_v50, %v7137_v40  ;;  %v6942_v28 = vrot.slane %v6934_v57, %v14724_v45  ;;  %v6949_v52 = vrot.slane %v6935_v10, %v14724_v45  ;;  %v6958_v11 = vrot.slane %v6950_v33, %v14724_v45 }
 0xe8c   :  { %8310 = vrot.lane.b32.xlu1 %v16739_v31, %s14326_s13  ;;  %v6867_v31 = vcombine.high %v6842_v60, %v6858_v20  ;;  %v6874_v60 = vrot.slane %v6866_v63, %v14724_v45  ;;  %v6890_v46 = vrot.slane %v6882_v32, %v14724_v45  ;;  %v6897_v0 = vrot.slane %v6883_v61, %v14724_v45  ;;  %v16946_v61 = vpop.permute.xlu0 %7378 }
 0xe8d   :  { %v7138_v20 = vcombine.low %v7113_v43, %v7121_v9  ;;  %v7181_v24 = vrot.slane %v7174_v30, %v14709_v55  ;;  %v7189_v35 = vrot.slane %v12688_v26, %v14709_v55  ;;  %v16952_v57 = vrot.slane %v7071_v38, %v14724_v45 }
 0xe8e   :  { %v6881_v44 = vrot.slane %v6867_v31, %v14724_v45  ;;  %v7258_v31 = vcombine.low %v6890_v46, %v6897_v0  ;;  %v12691_v32 = vcombine.high %v6890_v46, %v6897_v0  ;;  %v7139_v30 = vcombine.high %v7113_v43, %v7121_v9 }
 0xe8f   :  { %v7155_v10 = vcombine.high %v7129_v50, %v7137_v40  ;;  %v7310_v33 = vcombine.low %v6942_v28, %v6949_v52  ;;  %v12692_v29 = vcombine.high %v6942_v28, %v6949_v52  ;;  %v7326_v26 = vcombine.low %v6958_v11, %v6965_v16 }
 0xe90   :  { %v7242_v12 = vcombine.low %v6874_v60, %v6881_v44  ;;  %v12690_v63 = vcombine.high %v6874_v60, %v6881_v44  ;;  %v12693_v59 = vcombine.high %v6958_v11, %v6965_v16  ;;  %v7206_v60 = vcombine.low %v7181_v24, %v7189_v35 }
 0xe91   :  { %v7222_v44 = vcombine.low %v7197_v51, %v7205_v8  ;;  %v16961_v0 = vrot.slane %v7138_v20, %v14724_v45  ;;  %v16964_v14 = vrot.slane %v7154_v37, %v14724_v45  ;;  %v7265_v19 = vrot.slane %v7258_v31, %v14709_v55 }
 0xe92   :  { %v7249_v42 = vrot.slane %v7242_v12, %v14709_v55  ;;  %v7257_v48 = vrot.slane %v12690_v63, %v14709_v55  ;;  %v7273_v38 = vrot.slane %v12691_v32, %v14709_v55  ;;  %v7207_v13 = vcombine.high %v7181_v24, %v7189_v35 }
 0xe93   :  { %v7223_v43 = vcombine.high %v7197_v51, %v7205_v8  ;;  %v16971_v50 = vrot.slane %v7139_v30, %v14724_v45  ;;  %v16974_v40 = vrot.slane %v7155_v10, %v14724_v45  ;;  %v16977_v20 = vrot.slane %v7310_v33, %v14709_v55 }
 0xe94   :  { %v16980_v37 = vrot.slane %v12692_v29, %v14709_v55  ;;  %v16983_v28 = vrot.slane %v7326_v26, %v14709_v55  ;;  %v16986_v52 = vrot.slane %v12693_v59, %v14709_v55  ;;  %v16993_v24 = vrot.slane %v7206_v60, %v14724_v45 }
 0xe95   :  { %v16996_v35 = vrot.slane %v7222_v44, %v14724_v45  ;;  %v7274_v12 = vcombine.low %v7249_v42, %v7257_v48  ;;  %v7290_v63 = vcombine.low %v7265_v19, %v7273_v38  ;;  %v17007_v33 = vrot.slane %v7207_v13, %v14724_v45 }
 0xe96   :  { %v17010_v29 = vrot.slane %v7223_v43, %v14724_v45  ;;  %v7342_v60 = vcombine.low %v16977_v20, %v16980_v37  ;;  %v7358_v44 = vcombine.low %v16983_v28, %v16986_v52  ;;  %v7275_v43 = vcombine.high %v7249_v42, %v7257_v48 }
 0xe97   :  { %v7291_v51 = vcombine.high %v7265_v19, %v7273_v38  ;;  %v17027_v59 = vrot.slane %v7274_v12, %v14724_v45  ;;  %v17030_v30 = vrot.slane %v7290_v63, %v14724_v45 }
 0xe98   :  { %v17039_v38 = vrot.slane %v7342_v60, %v14724_v45  ;;  %v17042_v12 = vrot.slane %v7358_v44, %v14724_v45 }
 0xe99   :  { %v7393_v46 = vpop.permute.xlu1 %7392 }
 0xe9a   :  { %v7391_v9 = vpop.permute.xlu0 %7390 }
 0xe9d   :  { %v7405_v31 = vpop.permute.xlu1 %7404 }
 0xe9e   :  { %v7518_v10 = vcombine.low %v16944_v3, %v7405_v31  ;;  %v7519_v26 = vcombine.high %v16944_v3, %v7405_v31 }
 0xea0   :  { %v7526_v13 = vrot.slane %v7518_v10, %v14709_v55  ;;  %v7533_v42 = vrot.slane %v7519_v26, %v14709_v55 }
 0xea1   :  { %v7403_v32 = vpop.permute.xlu0 %7402 }
 0xea2   :  { %v7450_v16 = vcombine.low %v16946_v61, %v7403_v32  ;;  %v7451_v11 = vcombine.high %v16946_v61, %v7403_v32  ;;  %v17045_v61 = vrot.slane %v7275_v43, %v14724_v45  ;;  %v17048_v32 = vrot.slane %v7291_v51, %v14724_v45 }
 0xea4   :  { %v7458_v60 = vrot.slane %v7450_v16, %v14709_v55  ;;  %v7465_v44 = vrot.slane %v7451_v11, %v14709_v55 }
 0xea5   :  { %v7417_v8 = vpop.permute.xlu1 %7416  ;;  %v7415_v3 = vpop.permute.xlu0 %7414 }
 0xea6   :  { %v7534_v48 = vcombine.low %v7393_v46, %v7417_v8  ;;  %v7535_v19 = vcombine.high %v7393_v46, %v7417_v8  ;;  %v7466_v63 = vcombine.low %v7391_v9, %v7415_v3  ;;  %v7467_v31 = vcombine.high %v7391_v9, %v7415_v3 }
 0xea8   :  { %v7542_v46 = vrot.slane %v7534_v48, %v14709_v55  ;;  %v7549_v8 = vrot.slane %v7535_v19, %v14709_v55  ;;  %v7474_v9 = vrot.slane %v7466_v63, %v14709_v55  ;;  %v7481_v43 = vrot.slane %v7467_v31, %v14709_v55 }
 0xeaa   :  { %v7550_v3 = vcombine.low %v7526_v13, %v7542_v46  ;;  %v7551_v27 = vcombine.high %v7526_v13, %v7542_v46  ;;  %v7566_v51 = vcombine.low %v7533_v42, %v7549_v8  ;;  %v7567_v7 = vcombine.high %v7533_v42, %v7549_v8 }
 0xeab   :  { %v7482_v49 = vcombine.low %v7458_v60, %v7474_v9  ;;  %v7483_v10 = vcombine.high %v7458_v60, %v7474_v9  ;;  %v7498_v47 = vcombine.low %v7465_v44, %v7481_v43  ;;  %v7499_v26 = vcombine.high %v7465_v44, %v7481_v43  ;;  %v7383_v9 = vpop.permute.xlu0 %7382 }
 0xeac   :  { %v7558_v48 = vrot.slane %v7550_v3, %v14724_v45  ;;  %v7565_v19 = vrot.slane %v7551_v27, %v14724_v45  ;;  %v7574_v16 = vrot.slane %v7566_v51, %v14724_v45  ;;  %v7581_v11 = vrot.slane %v7567_v7, %v14724_v45 }
 0xead   :  { %v7490_v63 = vrot.slane %v7482_v49, %v14724_v45  ;;  %v7497_v31 = vrot.slane %v7483_v10, %v14724_v45  ;;  %v7506_v13 = vrot.slane %v7498_v47, %v14724_v45  ;;  %v7513_v42 = vrot.slane %v7499_v26, %v14724_v45 }
 0xeae   :  { %v7926_v46 = vcombine.low %v7558_v48, %v7565_v19  ;;  %v12696_v8 = vcombine.high %v7558_v48, %v7565_v19  ;;  %v7942_v60 = vcombine.low %v7574_v16, %v7581_v11  ;;  %v12697_v44 = vcombine.high %v7574_v16, %v7581_v11 }
 0xeaf   :  { %v7858_v43 = vcombine.low %v7490_v63, %v7497_v31  ;;  %v12694_v3 = vcombine.high %v7490_v63, %v7497_v31  ;;  %v7874_v27 = vcombine.low %v7506_v13, %v7513_v42  ;;  %v12695_v25 = vcombine.high %v7506_v13, %v7513_v42 }
 0xeb0   :  { %v7933_v51 = vrot.slane %v7926_v46, %v14709_v55  ;;  %v7941_v7 = vrot.slane %v12696_v8, %v14709_v55  ;;  %v7949_v49 = vrot.slane %v7942_v60, %v14709_v55  ;;  %v7957_v10 = vrot.slane %v12697_v44, %v14709_v55 }
 0xeb1   :  { %v7865_v47 = vrot.slane %v7858_v43, %v14709_v55  ;;  %v7873_v26 = vrot.slane %v12694_v3, %v14709_v55  ;;  %v7881_v48 = vrot.slane %v7874_v27, %v14709_v55  ;;  %v7889_v19 = vrot.slane %v12695_v25, %v14709_v55 }
 0xeb2   :  { %v7958_v16 = vcombine.low %v7933_v51, %v7941_v7  ;;  %v7974_v11 = vcombine.low %v7949_v49, %v7957_v10  ;;  %v7395_v63 = vpop.permute.xlu1 %7394  ;;  %v7407_v31 = vpop.permute.xlu0 %7406  ;;  %v7343_v60 = vcombine.high %v16977_v20, %v16980_v37  ;;  %v7359_v44 = vcombine.high %v16983_v28, %v16986_v52 }
 0xeb3   :  { %v7890_v46 = vcombine.low %v7865_v47, %v7873_v26  ;;  %v7906_v8 = vcombine.low %v7881_v48, %v7889_v19  ;;  %v7586_v43 = vcombine.low %v7383_v9, %v7407_v31  ;;  %v7587_v25 = vcombine.high %v7383_v9, %v7407_v31 }
 0xeb4   :  { %v7966_v3 = vrot.slane %v7958_v16, %v14724_v45  ;;  %v7982_v27 = vrot.slane %v7974_v11, %v14724_v45  ;;  %v7959_v2 = vcombine.high %v7933_v51, %v7941_v7  ;;  %v7975_v36 = vcombine.high %v7949_v49, %v7957_v10 }
 0xeb5   :  { %v7898_v13 = vrot.slane %v7890_v46, %v14724_v45  ;;  %v7914_v42 = vrot.slane %v7906_v8, %v14724_v45  ;;  %v7891_v21 = vcombine.high %v7865_v47, %v7873_v26  ;;  %v7907_v56 = vcombine.high %v7881_v48, %v7889_v19 }
 0xeb6   :  { %v7419_v39 = vpop.permute.xlu1 %7418  ;;  %v17086_v23 = vpop.permute.xlu0 %7384  ;;  %v7990_v20 = vcombine.low %v7966_v3, %v7982_v27  ;;  %v7991_v37 = vcombine.high %v7966_v3, %v7982_v27  ;;  %v7594_v16 = vrot.slane %v7586_v43, %v14709_v55  ;;  %v7601_v51 = vrot.slane %v7587_v25, %v14709_v55 }
 0xeb7   :  { %v7602_v28 = vcombine.low %v7395_v63, %v7419_v39  ;;  %v7603_v52 = vcombine.high %v7395_v63, %v7419_v39  ;;  %v7922_v9 = vcombine.low %v7898_v13, %v7914_v42  ;;  %v7923_v31 = vcombine.high %v7898_v13, %v7914_v42 }
 0xeb8   :  { %v7905_v39 = vrot.slane %v7891_v21, %v14724_v45  ;;  %v7921_v11 = vrot.slane %v7907_v56, %v14724_v45  ;;  %v7973_v63 = vrot.slane %v7959_v2, %v14724_v45  ;;  %v7989_v13 = vrot.slane %v7975_v36, %v14724_v45 }
 0xeb9   :  { %v7610_v10 = vrot.slane %v7602_v28, %v14709_v55  ;;  %v7617_v47 = vrot.slane %v7603_v52, %v14709_v55  ;;  %v13915_v26 = vpack.c.bf16 %v7990_v20, %v7922_v9  ;;  %v13919_v48 = vpack.c.bf16 %v7991_v37, %v7923_v31 }
 0xeba   :  { %v7397_v19 = vpop.permute.xlu0 %7396  ;;  %v7387_v25 = vpop.permute.xlu1 %7386  ;;  %v17108_v21 = vrot.slane %v7343_v60, %v14724_v45  ;;  %v17111_v36 = vrot.slane %v7359_v44, %v14724_v45  ;;  %v7924_v28 = vcombine.low %v7905_v39, %v7921_v11  ;;  %v7992_v52 = vcombine.low %v7973_v63, %v7989_v13 }
 0xebb   :  { %v7618_v42 = vcombine.low %v7594_v16, %v7610_v10  ;;  %v7619_v46 = vcombine.high %v7594_v16, %v7610_v10  ;;  %v7634_v8 = vcombine.low %v7601_v51, %v7617_v47  ;;  %v7635_v43 = vcombine.high %v7601_v51, %v7617_v47  ;;  %13917 = vmatpush3.bf16.xpose.msk.msra.mxu0 %vm15074_vm4, %v13915_v26 }
 0xebc   :  { %13921 = vmatpush3.bf16.xpose.msk.msra.mxu1 %vm15074_vm4, %v13919_v48  ;;  %13492 = vmatprep.subr.mxu0 %v18548_v54  ;;  %v7925_v9 = vcombine.high %v7905_v39, %v7921_v11  ;;  %v7993_v31 = vcombine.high %v7973_v63, %v7989_v13 }
 0xebd   :  { %v7626_v2 = vrot.slane %v7618_v42, %v14724_v45  ;;  %v7633_v3 = vrot.slane %v7619_v46, %v14724_v45  ;;  %v7642_v27 = vrot.slane %v7634_v8, %v14724_v45  ;;  %v7649_v20 = vrot.slane %v7635_v43, %v14724_v45  ;;  %13507 = vmatprep.subr.mxu1 %v18548_v54 }
 0xebe   :  { %v7409_v37 = vpop.permute.xlu0 %7408  ;;  %v7399_v10 = vpop.permute.xlu1 %7398 }
 0xebf   :  { %v7994_v60 = vcombine.low %v7626_v2, %v7633_v3  ;;  %v12698_v16 = vcombine.high %v7626_v2, %v7633_v3  ;;  %v8010_v51 = vcombine.low %v7642_v27, %v7649_v20  ;;  %v12699_v44 = vcombine.high %v7642_v27, %v7649_v20 }
 0xec0   :  { %v7654_v47 = vcombine.low %v17086_v23, %v7409_v37  ;;  %v7655_v13 = vcombine.high %v17086_v23, %v7409_v37  ;;  %v13923_v2 = vpack.c.bf16 %v7992_v52, %v7924_v28  ;;  %v17131_v3 = vpack.c.bf16 %v7993_v31, %v7925_v9 }
 0xec1   :  { %v8001_v46 = vrot.slane %v7994_v60, %v14709_v55  ;;  %v8009_v39 = vrot.slane %v12698_v16, %v14709_v55  ;;  %v8017_v11 = vrot.slane %v8010_v51, %v14709_v55  ;;  %v8025_v63 = vrot.slane %v12699_v44, %v14709_v55 }
 0xec2   :  { %v7662_v8 = vrot.slane %v7654_v47, %v14709_v55  ;;  %v7421_v43 = vpop.permute.xlu0 %7420  ;;  %v7411_v26 = vpop.permute.xlu1 %7410  ;;  %v7669_v28 = vrot.slane %v7655_v13, %v14709_v55 }
 0xec3   :  { %v8026_v27 = vcombine.low %v8001_v46, %v8009_v39  ;;  %v8027_v20 = vcombine.high %v8001_v46, %v8009_v39  ;;  %v8042_v48 = vcombine.low %v8017_v11, %v8025_v63  ;;  %v8043_v42 = vcombine.high %v8017_v11, %v8025_v63 }
 0xec4   :  { %v7722_v60 = vcombine.low %v7387_v25, %v7411_v26  ;;  %v7723_v56 = vcombine.high %v7387_v25, %v7411_v26  ;;  %v7670_v16 = vcombine.low %v7397_v19, %v7421_v43  ;;  %v7671_v49 = vcombine.high %v7397_v19, %v7421_v43 }
 0xec5   :  { %v8034_v51 = vrot.slane %v8026_v27, %v14724_v45  ;;  %v8050_v44 = vrot.slane %v8042_v48, %v14724_v45  ;;  %v17136_v23 = vrot.slane %v8027_v20, %v14724_v45  ;;  %v17139_v37 = vrot.slane %v8043_v42, %v14724_v45 }
 0xec6   :  { %v7730_v52 = vrot.slane %v7722_v60, %v14709_v55  ;;  %v7678_v9 = vrot.slane %v7670_v16, %v14709_v55  ;;  %v7685_v25 = vrot.slane %v7671_v49, %v14709_v55  ;;  %v7389_v31 = vpop.permute.xlu0 %7388  ;;  %v7737_v19 = vrot.slane %v7723_v56, %v14709_v55  ;;  %v7423_v47 = vpop.permute.xlu1 %7422 }
 0xec7   :  { %v8058_v26 = vcombine.low %v8034_v51, %v8050_v44  ;;  %v8059_v48 = vcombine.high %v8034_v51, %v8050_v44  ;;  %v8060_v46 = vcombine.low %v17136_v23, %v17139_v37  ;;  %v7738_v13 = vcombine.low %v7399_v10, %v7423_v47 }
 0xec8   :  { %v7686_v39 = vcombine.low %v7662_v8, %v7678_v9  ;;  %v7687_v42 = vcombine.high %v7662_v8, %v7678_v9  ;;  %v7702_v11 = vcombine.low %v7669_v28, %v7685_v25  ;;  %v7703_v63 = vcombine.high %v7669_v28, %v7685_v25 }
 0xec9   :  { %v7739_v43 = vcombine.high %v7399_v10, %v7423_v47  ;;  %13493 = vmatpush3.xpose.msk.msra.mxu0 %vm3049_vm3, %v8058_v26  ;;  %13508 = vmatpush3.xpose.msk.msra.mxu1 %vm3049_vm3, %v8059_v48  ;;  %v8061_v49 = vcombine.high %v17136_v23, %v17139_v37  ;;  %v7746_v10 = vrot.slane %v7738_v13, %v14709_v55 }
 0xeca   :  { %v7694_v56 = vrot.slane %v7686_v39, %v14724_v45  ;;  %v7701_v27 = vrot.slane %v7687_v42, %v14724_v45  ;;  %v7710_v20 = vrot.slane %v7702_v11, %v14724_v45  ;;  %v7717_v60 = vrot.slane %v7703_v63, %v14724_v45  ;;  %v7413_v8 = vpop.permute.xlu0 %7412  ;;  %13922 = vmatprep.subr.bf16.mxu0 %v18549_v58  ;;  %v7401_v51 = vpop.permute.xlu1 %7400 }
 0xecb   :  { %v7753_v16 = vrot.slane %v7739_v43, %v14709_v55  ;;  %v7790_v44 = vcombine.low %v7389_v31, %v7413_v8  ;;  %v7791_v28 = vcombine.high %v7389_v31, %v7413_v8  ;;  %13926 = vmatprep.subr.bf16.mxu1 %v18549_v58  ;;  %v18597_v48 = vcombine.low %v16829_v5, %v16832_v34 }
 0xecc   :  { %v8062_v9 = vcombine.low %v7694_v56, %v7701_v27  ;;  %v12700_v25 = vcombine.high %v7694_v56, %v7701_v27  ;;  %v8078_v47 = vcombine.low %v7710_v20, %v7717_v60  ;;  %v12701_v26 = vcombine.high %v7710_v20, %v7717_v60 }
 0xecd   :  { %13495 = vmatmul.mubr.msk.f32.vlgmr.msra.gmra.mrb[64].mxu0 %vm3049_vm3, %v18597_v48  ;;  %v7754_v39 = vcombine.low %v7730_v52, %v7746_v10  ;;  %v7755_v42 = vcombine.high %v7730_v52, %v7746_v10  ;;  %v7770_v11 = vcombine.low %v7737_v19, %v7753_v16  ;;  %v7771_v63 = vcombine.high %v7737_v19, %v7753_v16 }
 0xece   :  { %v18598_v13 = vcombine.high %v16829_v5, %v16832_v34  ;;  %v17169_v31 = vrot.slane %v8062_v9, %v14709_v55  ;;  %v17172_v43 = vrot.slane %v12700_v25, %v14709_v55  ;;  %v17175_v56 = vrot.slane %v8078_v47, %v14709_v55  ;;  %13925 = vmatpush3.bf16.xpose.msk.msra.mxu0 %vm15074_vm4, %v13923_v2  ;;  %v8267_v52 = vpop.permute.xlu0 %8266  ;;  %v7425_v60 = vpop.permute.xlu1 %7424 }
 0xecf   :  { %v17178_v27 = vrot.slane %v12701_v26, %v14709_v55  ;;  %v7762_v5 = vrot.slane %v7754_v39, %v14724_v45  ;;  %v7769_v34 = vrot.slane %v7755_v42, %v14724_v45  ;;  %v7778_v19 = vrot.slane %v7770_v11, %v14724_v45  ;;  %13497 = vmatprep.mubr.msk.f32.mxu0 %vm14324_vm2, %v18548_v54 }
 0xed0   :  { %13510 = vmatmul.mubr.msk.f32.vlgmr.msra.gmra.mrb[68].mxu1 %vm3049_vm3, %v18598_v13  ;;  %v7785_v20 = vrot.slane %v7771_v63, %v14724_v45  ;;  %v8094_v8 = vcombine.low %v17169_v31, %v17172_v43  ;;  %v8095_v2 = vcombine.high %v17169_v31, %v17172_v43  ;;  %v7798_v26 = vrot.slane %v7790_v44, %v14709_v55 }
 0xed1   :  { %13929 = vmatpush3.bf16.xpose.msk.msra.mxu1 %vm15074_vm4, %v17131_v3  ;;  %v8110_v10 = vcombine.low %v17175_v56, %v17178_v27  ;;  %v8111_v16 = vcombine.high %v17175_v56, %v17178_v27  ;;  %v8130_v9 = vcombine.low %v7762_v5, %v7769_v34  ;;  %v12702_v25 = vcombine.high %v7762_v5, %v7769_v34 }
 0xed2   :  { %v8146_v47 = vcombine.low %v7778_v19, %v7785_v20  ;;  %v12703_v3 = vcombine.high %v7778_v19, %v7785_v20  ;;  %13512 = vmatprep.mubr.msk.f32.mxu1 %vm14324_vm2, %v18548_v54  ;;  %v7805_v48 = vrot.slane %v7791_v28, %v14709_v55  ;;  %v7806_v39 = vcombine.low %v7401_v51, %v7425_v60  ;;  %v8291_v63 = vpop.permute.xlu0 %8290 }
 0xed3   :  { %v7807_v42 = vcombine.high %v7401_v51, %v7425_v60  ;;  %v18599_v11 = vcombine.low %v16931_v41, %v16934_v1  ;;  %v8137_v13 = vrot.slane %v8130_v9, %v14709_v55  ;;  %v8145_v5 = vrot.slane %v12702_v25, %v14709_v55  ;;  %v17215_v51 = vpop.permute.xlu1 %8268  ;;  %13522 = vmatprep.subr.mxu0 %v18548_v54 }
 0xed4   :  { %v8153_v34 = vrot.slane %v8146_v47, %v14709_v55  ;;  %v8161_v19 = vrot.slane %v12703_v3, %v14709_v55  ;;  %v18600_v44 = vcombine.high %v16931_v41, %v16934_v1  ;;  %v7814_v28 = vrot.slane %v7806_v39, %v14709_v55  ;;  %13537 = vmatprep.subr.mxu1 %v18548_v54 }
 0xed5   :  { %13498 = vmatmul.mubr.msk.f32.gmra.mrb[66].mxu0 %vm3049_vm3, %v18599_v11  ;;  %v7821_v20 = vrot.slane %v7807_v42, %v14709_v55  ;;  %v8338_v60 = vcombine.low %v8267_v52, %v8291_v63  ;;  %v8339_v11 = vcombine.high %v8267_v52, %v8291_v63  ;;  %v8162_v9 = vcombine.low %v8137_v13, %v8145_v5 }
 0xed6   :  { %13513 = vmatmul.mubr.msk.f32.gmra.mrb[70].mxu1 %vm3049_vm3, %v18600_v44  ;;  %13500 = vmatprep.mubr.msk.f32.mxu0 %vm14324_vm2, %v18548_v54  ;;  %v8163_v25 = vcombine.high %v8137_v13, %v8145_v5  ;;  %v8178_v47 = vcombine.low %v8153_v34, %v8161_v19  ;;  %v8179_v3 = vcombine.high %v8153_v34, %v8161_v19  ;;  %v8303_v52 = vpop.permute.xlu0 %8302 }
 0xed7   :  { %13515 = vmatprep.mubr.msk.f32.mxu1 %vm14324_vm2, %v18548_v54  ;;  %v7822_v41 = vcombine.low %v7798_v26, %v7814_v28  ;;  %v7823_v1 = vcombine.high %v7798_v26, %v7814_v28  ;;  %v7838_v44 = vcombine.low %v7805_v48, %v7821_v20  ;;  %v7839_v7 = vcombine.high %v7805_v48, %v7821_v20  ;;  %v8279_v48 = vpop.permute.xlu1 %8278 }
 0xed8   :  { %v18601_v39 = vcombine.low %v16961_v0, %v16964_v14  ;;  %v17228_v42 = vrot.slane %v8162_v9, %v14724_v45  ;;  %v17231_v63 = vrot.slane %v8163_v25, %v14724_v45  ;;  %v17234_v13 = vrot.slane %v8178_v47, %v14724_v45  ;;  %13523 = vmatpush3.xpose.msk.msra.mxu0 %vm3049_vm3, %v8060_v46 }
 0xed9   :  { %v17237_v5 = vrot.slane %v8179_v3, %v14724_v45  ;;  %v18602_v26 = vcombine.high %v16961_v0, %v16964_v14  ;;  %v7830_v34 = vrot.slane %v7822_v41, %v14724_v45  ;;  %v7837_v19 = vrot.slane %v7823_v1, %v14724_v45  ;;  %13538 = vmatpush3.xpose.msk.msra.mxu1 %vm3049_vm3, %v8061_v49 }
 0xeda   :  { %13501 = vmatmul.mubr.msk.f32.gmra.mrb[68].mxu0 %vm3049_vm3, %v18601_v39  ;;  %v7846_v28 = vrot.slane %v7838_v44, %v14724_v45  ;;  %v7853_v20 = vrot.slane %v7839_v7, %v14724_v45  ;;  %v8346_v9 = vrot.slane %v8338_v60, %v14709_v55  ;;  %v8353_v25 = vrot.slane %v8339_v11, %v14709_v55  ;;  %v17259_v7 = vpop.permute.xlu0 %8270 }
 0xedb   :  { %13516 = vmatmul.mubr.msk.f32.gmra.mrb[72].mxu1 %vm3049_vm3, %v18602_v26  ;;  %v8354_v0 = vcombine.low %v8279_v48, %v8303_v52  ;;  %v8198_v14 = vcombine.low %v7830_v34, %v7837_v19  ;;  %v12704_v47 = vcombine.high %v7830_v34, %v7837_v19  ;;  %v8355_v60 = vcombine.high %v8279_v48, %v8303_v52  ;;  %v17266_v46 = vpop.permute.xlu1 %8280 }
 0xedc   :  { %v8214_v3 = vcombine.low %v7846_v28, %v7853_v20  ;;  %v12705_v41 = vcombine.high %v7846_v28, %v7853_v20  ;;  %13524 = vmatprep.mubr.msk.f32.mxu0 %vm14324_vm2, %v18548_v54  ;;  %13539 = vmatprep.mubr.msk.f32.mxu1 %vm14324_vm2, %v18548_v54  ;;  %v8102_v23 = vrot.slane %v8094_v8, %v14724_v45 }
 0xedd   :  { %v8362_v11 = vrot.slane %v8354_v0, %v14709_v55  ;;  %v17273_v37 = vrot.slane %v8198_v14, %v14709_v55  ;;  %v17276_v49 = vrot.slane %v12704_v47, %v14709_v55  ;;  %v18603_v39 = vcombine.low %v16841_v62, %v16844_v15  ;;  %13930 = vmatprep.subr.bf16.mxu0 %v18549_v58 }
 0xede   :  { %v17279_v1 = vrot.slane %v8214_v3, %v14709_v55  ;;  %v17282_v44 = vrot.slane %v12705_v41, %v14709_v55  ;;  %v8369_v52 = vrot.slane %v8355_v60, %v14709_v55  ;;  %v18604_v48 = vcombine.high %v16841_v62, %v16844_v15  ;;  %13934 = vmatprep.subr.bf16.mxu1 %v18549_v58 }
 0xedf   :  { %13525 = vmatmul.mubr.msk.f32.vlgmr.msra.gmra.mrb[70].mxu0 %vm3049_vm3, %v18603_v39  ;;  %v8370_v8 = vcombine.low %v8346_v9, %v8362_v11  ;;  %v8371_v26 = vcombine.high %v8346_v9, %v8362_v11  ;;  %v8230_v34 = vcombine.low %v17273_v37, %v17276_v49  ;;  %v8231_v19 = vcombine.high %v17273_v37, %v17276_v49  ;;  %v8295_v9 = vpop.permute.xlu0 %8294  ;;  %v8293_v47 = vpop.permute.xlu1 %8292 }
 0xee0   :  { %13540 = vmatmul.mubr.msk.f32.vlgmr.msra.gmra.mrb[74].mxu1 %vm3049_vm3, %v18604_v48  ;;  %v8246_v28 = vcombine.low %v17279_v1, %v17282_v44  ;;  %v8247_v20 = vcombine.high %v17279_v1, %v17282_v44  ;;  %v8386_v0 = vcombine.low %v8353_v25, %v8369_v52  ;;  %v8387_v14 = vcombine.high %v8353_v25, %v8369_v52 }
 0xee1   :  { %v8378_v62 = vrot.slane %v8370_v8, %v14724_v45  ;;  %v8385_v15 = vrot.slane %v8371_v26, %v14724_v45  ;;  %13527 = vmatprep.mubr.msk.f32.mxu0 %vm14324_vm2, %v18548_v54  ;;  %13542 = vmatprep.mubr.msk.f32.mxu1 %vm14324_vm2, %v18548_v54  ;;  %v8118_v3 = vrot.slane %v8110_v10, %v14724_v45 }
 0xee2   :  { %v8194_v41 = vcombine.low %v17228_v42, %v17234_v13  ;;  %v8195_v60 = vcombine.high %v17228_v42, %v17234_v13  ;;  %v18605_v25 = vcombine.low %v16952_v57, %v16958_v22  ;;  %v8394_v11 = vrot.slane %v8386_v0, %v14724_v45 }
 0xee3   :  { %v8401_v39 = vrot.slane %v8387_v14, %v14724_v45  ;;  %v8746_v52 = vcombine.low %v8378_v62, %v8385_v15  ;;  %v12706_v8 = vcombine.high %v8378_v62, %v8385_v15  ;;  %v18606_v10 = vcombine.high %v16952_v57, %v16958_v22  ;;  %v8305_v22 = vpop.permute.xlu1 %8304 }
 0xee4   :  { %13528 = vmatmul.mubr.msk.f32.gmra.mrb[72].mxu0 %vm3049_vm3, %v18605_v25  ;;  %v8126_v26 = vcombine.low %v8102_v23, %v8118_v3  ;;  %v8127_v48 = vcombine.high %v8102_v23, %v8118_v3  ;;  %v8406_v42 = vcombine.low %v17215_v51, %v8293_v47  ;;  %v8407_v13 = vcombine.high %v17215_v51, %v8293_v47  ;;  %v8273_v25 = vpop.permute.xlu0 %8272 }
 0xee5   :  { %13543 = vmatmul.mubr.msk.f32.gmra.mrb[76].mxu1 %vm3049_vm3, %v18606_v10  ;;  %13530 = vmatprep.mubr.msk.f32.mxu0 %vm14324_vm2, %v18548_v54  ;;  %v17332_v0 = vrot.slane %v8746_v52, %v14709_v55  ;;  %v17335_v62 = vrot.slane %v12706_v8, %v14709_v55  ;;  %v8762_v15 = vcombine.low %v8394_v11, %v8401_v39 }
 0xee6   :  { %v12707_v57 = vcombine.high %v8394_v11, %v8401_v39  ;;  %13545 = vmatprep.mubr.msk.f32.mxu1 %vm14324_vm2, %v18548_v54  ;;  %v13931_v23 = vpack.c.bf16 %v8194_v41, %v8126_v26  ;;  %v13935_v14 = vpack.c.bf16 %v8195_v60, %v8127_v48  ;;  %v8414_v51 = vrot.slane %v8406_v42, %v14709_v55 }
 0xee7   :  { %v8421_v47 = vrot.slane %v8407_v13, %v14709_v55  ;;  %v18607_v3 = vcombine.low %v16971_v50, %v16974_v40  ;;  %v17346_v52 = vrot.slane %v8762_v15, %v14709_v55  ;;  %v8474_v39 = vcombine.low %v17259_v7, %v8295_v9 }
 0xee8   :  { %v17349_v11 = vrot.slane %v12707_v57, %v14709_v55  ;;  %v8475_v41 = vcombine.high %v17259_v7, %v8295_v9  ;;  %v18608_v60 = vcombine.high %v16971_v50, %v16974_v40  ;;  %13933 = vmatpush3.bf16.xpose.msk.msra.mxu0 %vm15074_vm4, %v13931_v23  ;;  %13937 = vmatpush3.bf16.xpose.msk.msra.mxu1 %vm15074_vm4, %v13935_v14  ;;  %v8297_v48 = vpop.permute.xlu0 %8296  ;;  %v8283_v9 = vpop.permute.xlu1 %8282 }
 0xee9   :  { %13531 = vmatmul.mubr.msk.f32.gmra.mrb[74].mxu0 %vm3049_vm3, %v18607_v3  ;;  %v8422_v8 = vcombine.low %v17266_v46, %v8305_v22  ;;  %v8423_v10 = vcombine.high %v17266_v46, %v8305_v22  ;;  %v8238_v26 = vrot.slane %v8230_v34, %v14724_v45  ;;  %v17365_v7 = vrot.slane %v8474_v39, %v14709_v55 }
 0xeea   :  { %13546 = vmatmul.mubr.msk.f32.gmra.mrb[78].mxu1 %vm3049_vm3, %v18608_v60  ;;  %v17368_v50 = vrot.slane %v8475_v41, %v14709_v55  ;;  %13552 = vmatprep.subr.mxu0 %v18548_v54  ;;  %v8254_v40 = vrot.slane %v8246_v28, %v14724_v45  ;;  %v8542_v34 = vcombine.low %v8273_v25, %v8297_v48 }
 0xeeb   :  { %13567 = vmatprep.subr.mxu1 %v18548_v54  ;;  %v8430_v42 = vrot.slane %v8422_v8, %v14709_v55  ;;  %v8437_v46 = vrot.slane %v8423_v10, %v14709_v55  ;;  %13554 = vmatprep.mubr.msk.f32.mxu0 %vm14324_vm2, %v18548_v54  ;;  %v8543_v57 = vcombine.high %v8273_v25, %v8297_v48 }
 0xeec   :  { %13569 = vmatprep.mubr.msk.f32.mxu1 %vm14324_vm2, %v18548_v54  ;;  %v8262_v13 = vcombine.low %v8238_v26, %v8254_v40  ;;  %v8263_v15 = vcombine.high %v8238_v26, %v8254_v40  ;;  %v8109_v28 = vrot.slane %v8095_v2, %v14724_v45  ;;  %v17384_v39 = vrot.slane %v8542_v34, %v14709_v55  ;;  %v8307_v31 = vpop.permute.xlu1 %8306 }
 0xeed   :  { %v8438_v22 = vcombine.low %v8414_v51, %v8430_v42  ;;  %v8439_v23 = vcombine.high %v8414_v51, %v8430_v42  ;;  %v8454_v14 = vcombine.low %v8421_v47, %v8437_v46  ;;  %v8455_v3 = vcombine.high %v8421_v47, %v8437_v46 }
 0xeee   :  { %v17387_v41 = vrot.slane %v8543_v57, %v14709_v55  ;;  %v8125_v25 = vrot.slane %v8111_v16, %v14724_v45  ;;  %v8196_v60 = vcombine.low %v17231_v63, %v17237_v5  ;;  %v8197_v26 = vcombine.high %v17231_v63, %v17237_v5 }
 0xeef   :  { %v8446_v43 = vrot.slane %v8438_v22, %v14724_v45  ;;  %v8453_v2 = vrot.slane %v8439_v23, %v14724_v45  ;;  %v8462_v51 = vrot.slane %v8454_v14, %v14724_v45  ;;  %v8469_v47 = vrot.slane %v8455_v3, %v14724_v45 }
 0xef0   :  { %v8128_v8 = vcombine.low %v8109_v28, %v8125_v25  ;;  %v8129_v10 = vcombine.high %v8109_v28, %v8125_v25  ;;  %v8490_v48 = vcombine.low %v8283_v9, %v8307_v31  ;;  %13553 = vmatpush3.xpose.msk.msra.mxu0 %vm3049_vm3, %v8262_v13  ;;  %13568 = vmatpush3.xpose.msk.msra.mxu1 %vm3049_vm3, %v8263_v15  ;;  %v17404_v57 = vpop.permute.xlu1 %8274 }
 0xef1   :  { %v8814_v56 = vcombine.low %v8446_v43, %v8453_v2  ;;  %v12708_v27 = vcombine.high %v8446_v43, %v8453_v2  ;;  %v8830_v16 = vcombine.low %v8462_v51, %v8469_v47  ;;  %v12709_v40 = vcombine.high %v8462_v51, %v8469_v47  ;;  %13938 = vmatprep.subr.bf16.mxu0 %v18549_v58  ;;  %v8309_v2 = vpop.permute.xlu0 %8308 }
 0xef2   :  { %v13939_v42 = vpack.c.bf16 %v8196_v60, %v8128_v8  ;;  %v13943_v46 = vpack.c.bf16 %v8197_v26, %v8129_v10  ;;  %v8491_v34 = vcombine.high %v8283_v9, %v8307_v31  ;;  %13942 = vmatprep.subr.bf16.mxu1 %v18549_v58  ;;  %v18609_v15 = vcombine.low %v16993_v24, %v16996_v35 }
 0xef3   :  { %v17407_v28 = vrot.slane %v8814_v56, %v14709_v55  ;;  %v17410_v63 = vrot.slane %v12708_v27, %v14709_v55  ;;  %v17413_v5 = vrot.slane %v8830_v16, %v14709_v55  ;;  %v17416_v13 = vrot.slane %v12709_v40, %v14709_v55 }
 0xef4   :  { %13555 = vmatmul.mubr.msk.f32.vlgmr.msra.gmra.mrb[76].mxu0 %vm3049_vm3, %v18609_v15  ;;  %v8498_v9 = vrot.slane %v8490_v48, %v14709_v55  ;;  %v8505_v22 = vrot.slane %v8491_v34, %v14709_v55  ;;  %v8245_v23 = vrot.slane %v8231_v19, %v14724_v45  ;;  %v8261_v14 = vrot.slane %v8247_v20, %v14724_v45  ;;  %v8285_v44 = vpop.permute.xlu1 %8284 }
 0xef5   :  { %v18610_v3 = vcombine.high %v16993_v24, %v16996_v35  ;;  %13941 = vmatpush3.bf16.xpose.msk.msra.mxu0 %vm15074_vm4, %v13939_v42  ;;  %v8778_v25 = vcombine.low %v17332_v0, %v17335_v62  ;;  %v8794_v37 = vcombine.low %v17346_v52, %v17349_v11  ;;  %v8846_v49 = vcombine.low %v17407_v28, %v17410_v63 }
 0xef6   :  { %13557 = vmatprep.mubr.msk.f32.mxu0 %vm14324_vm2, %v18548_v54  ;;  %v8506_v24 = vcombine.low %v17365_v7, %v8498_v9  ;;  %v8507_v35 = vcombine.high %v17365_v7, %v8498_v9  ;;  %v8522_v1 = vcombine.low %v17368_v50, %v8505_v22  ;;  %v8523_v19 = vcombine.high %v17368_v50, %v8505_v22 }
 0xef7   :  { %13570 = vmatmul.mubr.msk.f32.vlgmr.msra.gmra.mrb[80].mxu1 %vm3049_vm3, %v18610_v3  ;;  %13582 = vmatprep.subr.mxu0 %v18548_v54  ;;  %v8264_v20 = vcombine.low %v8245_v23, %v8261_v14  ;;  %v8265_v17 = vcombine.high %v8245_v23, %v8261_v14  ;;  %v18611_v7 = vcombine.low %v17027_v59, %v17030_v30 }
 0xef8   :  { %13945 = vmatpush3.bf16.xpose.msk.msra.mxu1 %vm15074_vm4, %v13943_v46  ;;  %13572 = vmatprep.mubr.msk.f32.mxu1 %vm14324_vm2, %v18548_v54  ;;  %v8514_v60 = vrot.slane %v8506_v24, %v14724_v45  ;;  %v8521_v31 = vrot.slane %v8507_v35, %v14724_v45  ;;  %v8530_v43 = vrot.slane %v8522_v1, %v14724_v45  ;;  %v17473_v48 = vpop.permute.xlu1 %8286 }
 0xef9   :  { %13558 = vmatmul.mubr.msk.f32.gmra.mrb[78].mxu0 %vm3049_vm3, %v18611_v7  ;;  %13597 = vmatprep.subr.mxu1 %v18548_v54  ;;  %v8537_v50 = vrot.slane %v8523_v19, %v14724_v45  ;;  %v18612_v51 = vcombine.high %v17027_v59, %v17030_v30  ;;  %v8558_v47 = vcombine.low %v8285_v44, %v8309_v2 }
 0xefa   :  { %13560 = vmatprep.mubr.msk.f32.mxu0 %vm14324_vm2, %v18548_v54  ;;  %v8559_v8 = vcombine.high %v8285_v44, %v8309_v2  ;;  %v8882_v10 = vcombine.low %v8514_v60, %v8521_v31  ;;  %v12710_v26 = vcombine.high %v8514_v60, %v8521_v31  ;;  %v8786_v56 = vrot.slane %v8778_v25, %v14724_v45 }
 0xefb   :  { %13573 = vmatmul.mubr.msk.f32.gmra.mrb[82].mxu1 %vm3049_vm3, %v18612_v51  ;;  %v8802_v27 = vrot.slane %v8794_v37, %v14724_v45  ;;  %v8898_v16 = vcombine.low %v8530_v43, %v8537_v50  ;;  %v12711_v30 = vcombine.high %v8530_v43, %v8537_v50  ;;  %v8566_v59 = vrot.slane %v8558_v47, %v14709_v55 }
 0xefc   :  { %13575 = vmatprep.mubr.msk.f32.mxu1 %vm14324_vm2, %v18548_v54  ;;  %v8573_v40 = vrot.slane %v8559_v8, %v14709_v55  ;;  %v17480_v42 = vrot.slane %v8882_v10, %v14709_v55  ;;  %v17483_v46 = vrot.slane %v12710_v26, %v14709_v55  ;;  %v18613_v34 = vcombine.low %v17039_v38, %v17042_v12  ;;  %v8299_v24 = vpop.permute.xlu1 %8298 }
 0xefd   :  { %v8810_v15 = vcombine.low %v8786_v56, %v8802_v27  ;;  %v8854_v9 = vrot.slane %v8846_v49, %v14724_v45  ;;  %v17491_v22 = vrot.slane %v8898_v16, %v14709_v55  ;;  %v17494_v23 = vrot.slane %v12711_v30, %v14709_v55  ;;  %13583 = vmatpush3.xpose.msk.msra.mxu0 %vm3049_vm3, %v8264_v20 }
 0xefe   :  { %13561 = vmatmul.mubr.msk.f32.gmra.mrb[80].mxu0 %vm3049_vm3, %v18613_v34  ;;  %v18614_v14 = vcombine.high %v17039_v38, %v17042_v12  ;;  %v8574_v3 = vcombine.low %v17384_v39, %v8566_v59  ;;  %v8575_v25 = vcombine.high %v17384_v39, %v8566_v59  ;;  %v8590_v37 = vcombine.low %v17387_v41, %v8573_v40 }
 0xeff   :  { %13584 = vmatprep.mubr.msk.f32.mxu0 %vm14324_vm2, %v18548_v54  ;;  %v8591_v49 = vcombine.high %v17387_v41, %v8573_v40  ;;  %13946 = vmatprep.subr.bf16.mxu0 %v18549_v58  ;;  %v8862_v12 = vcombine.low %v17413_v5, %v17416_v13  ;;  %v8811_v35 = vcombine.high %v8786_v56, %v8802_v27 }
 0xf00   :  { %13576 = vmatmul.mubr.msk.f32.gmra.mrb[84].mxu1 %vm3049_vm3, %v18614_v14  ;;  %v8582_v38 = vrot.slane %v8574_v3, %v14724_v45  ;;  %v8589_v1 = vrot.slane %v8575_v25, %v14724_v45  ;;  %v8598_v39 = vrot.slane %v8590_v37, %v14724_v45  ;;  %v18615_v41 = vcombine.low %v17007_v33, %v17010_v29  ;;  %v8311_v47 = vpop.permute.xlu1 %8310 }
 0xf01   :  { %13598 = vmatpush3.xpose.msk.msra.mxu1 %vm3049_vm3, %v8265_v17  ;;  %13599 = vmatprep.mubr.msk.f32.mxu1 %vm14324_vm2, %v18548_v54  ;;  %v8605_v44 = vrot.slane %v8591_v49, %v14724_v45  ;;  %v18616_v19 = vcombine.high %v17007_v33, %v17010_v29  ;;  %v8870_v20 = vrot.slane %v8862_v12, %v14724_v45 }
 0xf02   :  { %13585 = vmatmul.mubr.msk.f32.vlgmr.msra.gmra.mrb[82].mxu0 %vm3049_vm3, %v18615_v41  ;;  %13949 = vmatprep.subr.bf16.mxu1 %v18549_v58  ;;  %v8610_v17 = vcombine.low %v17404_v57, %v8299_v24  ;;  %v8611_v60 = vcombine.high %v17404_v57, %v8299_v24  ;;  %v8950_v31 = vcombine.low %v8582_v38, %v8589_v1 }
 0xf03   :  { %13587 = vmatprep.mubr.msk.f32.mxu0 %vm14324_vm2, %v18548_v54  ;;  %v12712_v43 = vcombine.high %v8582_v38, %v8589_v1  ;;  %v8966_v7 = vcombine.low %v8598_v39, %v8605_v44  ;;  %v12713_v2 = vcombine.high %v8598_v39, %v8605_v44  ;;  %v8878_v50 = vcombine.low %v8854_v9, %v8870_v20 }
 0xf04   :  { %13600 = vmatmul.mubr.msk.f32.vlgmr.msra.gmra.mrb[86].mxu1 %vm3049_vm3, %v18616_v19  ;;  %v8879_v33 = vcombine.high %v8854_v9, %v8870_v20  ;;  %v8618_v29 = vrot.slane %v8610_v17, %v14709_v55  ;;  %v8625_v51 = vrot.slane %v8611_v60, %v14709_v55  ;;  %v17536_v8 = vrot.slane %v8950_v31, %v14709_v55 }
 0xf05   :  { %13602 = vmatprep.mubr.msk.f32.mxu1 %vm14324_vm2, %v18548_v54  ;;  %v17539_v10 = vrot.slane %v12712_v43, %v14709_v55  ;;  %v17542_v57 = vrot.slane %v8966_v7, %v14709_v55  ;;  %v17545_v26 = vrot.slane %v12713_v2, %v14709_v55  ;;  %v18617_v56 = vcombine.low %v17045_v61, %v17048_v32 }
 0xf06   :  { %v18618_v27 = vcombine.high %v17045_v61, %v17048_v32  ;;  %v13947_v16 = vpack.c.bf16 %v8878_v50, %v8810_v15  ;;  %v13950_v30 = vpack.c.bf16 %v8879_v33, %v8811_v35  ;;  %v8914_v59 = vcombine.low %v17480_v42, %v17483_v46 }
 0xf07   :  { %13588 = vmatmul.mubr.msk.f32.gmra.mrb[84].mxu0 %vm3049_vm3, %v18617_v56  ;;  %v8930_v40 = vcombine.low %v17491_v22, %v17494_v23  ;;  %v8626_v34 = vcombine.low %v17473_v48, %v8311_v47  ;;  %v8627_v61 = vcombine.high %v17473_v48, %v8311_v47  ;;  %v8779_v32 = vcombine.high %v17332_v0, %v17335_v62 }
 0xf08   :  { %13603 = vmatmul.mubr.msk.f32.gmra.mrb[88].mxu1 %vm3049_vm3, %v18618_v27  ;;  %13590 = vmatprep.mubr.msk.f32.mxu0 %vm14324_vm2, %v18548_v54  ;;  %v8922_v15 = vrot.slane %v8914_v59, %v14724_v45  ;;  %v8795_v9 = vcombine.high %v17346_v52, %v17349_v11  ;;  %v8847_v14 = vcombine.high %v17407_v28, %v17410_v63 }
 0xf09   :  { %13605 = vmatprep.mubr.msk.f32.mxu1 %vm14324_vm2, %v18548_v54  ;;  %13948 = vmatpush3.bf16.msra.mxu0 %v13947_v16  ;;  %v18619_v3 = vcombine.low %v17108_v21, %v17111_v36  ;;  %v8938_v48 = vrot.slane %v8930_v40, %v14724_v45  ;;  %v8634_v0 = vrot.slane %v8626_v34, %v14709_v55 }
 0xf0a   :  { %13951 = vmatpush3.bf16.msra.mxu1 %v13950_v30  ;;  %13612 = vmatprep.subr.mxu0 %v18548_v54  ;;  %v8641_v62 = vrot.slane %v8627_v61, %v14709_v55  ;;  %v18620_v25 = vcombine.high %v17108_v21, %v17111_v36  ;;  %v8793_v52 = vrot.slane %v8779_v32, %v14724_v45 }
 0xf0b   :  { %13591 = vmatmul.mubr.msk.f32.gmra.mrb[86].mxu0 %vm3049_vm3, %v18619_v3  ;;  %13627 = vmatprep.subr.mxu1 %v18548_v54  ;;  %v8809_v11 = vrot.slane %v8795_v9, %v14724_v45  ;;  %v8861_v28 = vrot.slane %v8847_v14, %v14724_v45  ;;  %v8946_v63 = vcombine.low %v8922_v15, %v8938_v48 }
 0xf0c   :  { %13606 = vmatmul.mubr.msk.f32.gmra.mrb[90].mxu1 %vm3049_vm3, %v18620_v25  ;;  %v8947_v37 = vcombine.high %v8922_v15, %v8938_v48  ;;  %v8642_v49 = vcombine.low %v8618_v29, %v8634_v0  ;;  %v8643_v24 = vcombine.high %v8618_v29, %v8634_v0  ;;  %13614 = vmatprep.mubr.msk.f32.mxu0 %vm14324_vm2, %v18548_v54 }
 0xf0d   :  { %v8658_v38 = vcombine.low %v8625_v51, %v8641_v62  ;;  %v8659_v12 = vcombine.high %v8625_v51, %v8641_v62  ;;  %13629 = vmatprep.mubr.msk.f32.mxu1 %vm14324_vm2, %v18548_v54  ;;  %v8812_v21 = vcombine.low %v8793_v52, %v8809_v11  ;;  %v8863_v36 = vcombine.high %v17413_v5, %v17416_v13 }
 0xf0e   :  { %13613 = vmatpush3.msra.mxu0 %v8946_v63  ;;  %13628 = vmatpush3.msra.mxu1 %v8947_v37  ;;  %v8650_v35 = vrot.slane %v8642_v49, %v14724_v45  ;;  %v8657_v1 = vrot.slane %v8643_v24, %v14724_v45  ;;  %v8813_v39 = vcombine.high %v8793_v52, %v8809_v11 }
 0xf0f   :  { %v8666_v44 = vrot.slane %v8658_v38, %v14724_v45  ;;  %v8673_v41 = vrot.slane %v8659_v12, %v14724_v45  ;;  %13952 = vmatprep.subr.bf16.mxu0 %v18549_v58  ;;  %13955 = vmatprep.subr.bf16.mxu1 %v18549_v58  ;;  %v8877_v19 = vrot.slane %v8863_v36, %v14724_v45 }
 0xf10   :  { %v9018_v20 = vcombine.low %v8650_v35, %v8657_v1  ;;  %v12714_v17 = vcombine.high %v8650_v35, %v8657_v1  ;;  %v8915_v5 = vcombine.high %v17480_v42, %v17483_v46  ;;  %v8931_v13 = vcombine.high %v17491_v22, %v17494_v23 }
 0xf11   :  { %v9034_v60 = vcombine.low %v8666_v44, %v8673_v41  ;;  %v12715_v31 = vcombine.high %v8666_v44, %v8673_v41  ;;  %v8880_v43 = vcombine.low %v8861_v28, %v8877_v19  ;;  %v8881_v7 = vcombine.high %v8861_v28, %v8877_v19 }
 0xf12   :  { %v9025_v2 = vrot.slane %v9018_v20, %v14709_v55  ;;  %v9033_v50 = vrot.slane %v12714_v17, %v14709_v55  ;;  %v17608_v33 = vrot.slane %v8915_v5, %v14724_v45  ;;  %v17611_v29 = vrot.slane %v8931_v13, %v14724_v45 }
 0xf13   :  { %v9041_v51 = vrot.slane %v9034_v60, %v14709_v55  ;;  %v9049_v42 = vrot.slane %v12715_v31, %v14709_v55  ;;  %v17615_v46 = vpack.c.bf16 %v8880_v43, %v8812_v21  ;;  %v17617_v22 = vpack.c.bf16 %v8881_v7, %v8813_v39 }
 0xf14   :  { %v8948_v23 = vcombine.low %v17608_v33, %v17611_v29  ;;  %v8949_v47 = vcombine.high %v17608_v33, %v17611_v29  ;;  %v8982_v56 = vcombine.low %v17536_v8, %v17539_v10  ;;  %v8998_v27 = vcombine.low %v17542_v57, %v17545_v26 }
 0xf15   :  { %v9050_v16 = vcombine.low %v9025_v2, %v9033_v50  ;;  %v9066_v30 = vcombine.low %v9041_v51, %v9049_v42  ;;  %v8983_v59 = vcombine.high %v17536_v8, %v17539_v10  ;;  %v8999_v40 = vcombine.high %v17542_v57, %v17545_v26 }
 0xf16   :  { %v8990_v34 = vrot.slane %v8982_v56, %v14724_v45  ;;  %v9006_v61 = vrot.slane %v8998_v27, %v14724_v45  ;;  %v9051_v32 = vcombine.high %v9025_v2, %v9033_v50  ;;  %v9067_v15 = vcombine.high %v9041_v51, %v9049_v42 }
 0xf17   :  { %v9058_v9 = vrot.slane %v9050_v16, %v14724_v45  ;;  %v9074_v14 = vrot.slane %v9066_v30, %v14724_v45  ;;  %v8997_v3 = vrot.slane %v8983_v59, %v14724_v45  ;;  %v9013_v48 = vrot.slane %v8999_v40, %v14724_v45 }
 0xf18   :  { %v9065_v0 = vrot.slane %v9051_v32, %v14724_v45  ;;  %v9081_v8 = vrot.slane %v9067_v15, %v14724_v45  ;;  %v9014_v10 = vcombine.low %v8990_v34, %v9006_v61  ;;  %v9015_v26 = vcombine.high %v8990_v34, %v9006_v61 }
 0xf19   :  { %v9082_v57 = vcombine.low %v9058_v9, %v9074_v14  ;;  %v9083_v62 = vcombine.high %v9058_v9, %v9074_v14  ;;  %v9016_v25 = vcombine.low %v8997_v3, %v9013_v48  ;;  %v9017_v11 = vcombine.high %v8997_v3, %v9013_v48 }
 0xf1a   :  { %v9084_v52 = vcombine.low %v9065_v0, %v9081_v8  ;;  %v9085_v28 = vcombine.high %v9065_v0, %v9081_v8 }
 0xf1b   :  { %v17639_v63 = vpack.c.bf16 %v9082_v57, %v9014_v10  ;;  %v17641_v37 = vpack.c.bf16 %v9083_v62, %v9015_v26 }
 0xf1c   :  { %v17643_v49 = vpack.c.bf16 %v9084_v52, %v9016_v25  ;;  %v17645_v24 = vpack.c.bf16 %v9085_v28, %v9017_v11 }
 0xfa0   :  { %v9238_v38 = vpop.f32.mrb[64].mxu0 }
 0xfa1   :  { %v9938_v12 = vmul.f32 0.35355338, %v9238_v38  ;;  %v13496_v36 = vpop.f32.mrb[65].mxu0 }
 0xfa3   :  { %v9336_v21 = vpop.f32.mrb[68].mxu1  ;;  %v17648_v39 = vadd.f32 %v9938_v12, %v15592_v4 }
 0xfa4   :  { %v9941_v35 = vmul.f32 0.35355338, %v9336_v21  ;;  %v13511_v1 = vpop.f32.mrb[69].mxu1 }
 0xfa5   :  { %v9986_v41 = vsel %vm3882_vm6, %v17648_v39, -inf }
 0xfa6   :  { %v17651_v44 = vadd.f32 %v9941_v35, %v15592_v4  ;;  %9987 = vmax.xlane.f32.xlu0 %v9986_v41 }
 0xfa8   :  { %v9243_v19 = vpop.f32.mrb[66].mxu0  ;;  %v9995_v20 = vsel %vm3882_vm6, %v17651_v44, -inf }
 0xfa9   :  { %v9939_v17 = vmul.f32 0.35355338, %v9243_v19  ;;  %v9341_v5 = vpop.f32.mrb[70].mxu1  ;;  %v13499_v13 = vpop.f32.mrb[67].mxu0  ;;  %9996 = vmax.xlane.f32.xlu1 %v9995_v20 }
 0xfaa   :  { %v9942_v60 = vmul.f32 0.35355338, %v9341_v5  ;;  %v13514_v31 = vpop.f32.mrb[71].mxu1 }
 0xfab   :  { %v17658_v43 = vadd.f32 %v9939_v17, %v15592_v4 }
 0xfac   :  { %v17661_v2 = vadd.f32 %v9942_v60, %v15592_v4 }
 0xfad   :  { %v9248_v7 = vpop.f32.mrb[68].mxu0  ;;  %v9989_v56 = vsel %vm3882_vm6, %v17658_v43, -inf }
 0xfae   :  { %v9940_v50 = vmul.f32 0.35355338, %v9248_v7  ;;  %v9346_v51 = vpop.f32.mrb[72].mxu1  ;;  %v13502_v42 = vpop.f32.mrb[69].mxu0  ;;  %9990 = vmax.xlane.f32.xlu0 %v9989_v56  ;;  %v9998_v40 = vsel %vm3882_vm6, %v17661_v2, -inf }
 0xfaf   :  { %v9943_v27 = vmul.f32 0.35355338, %v9346_v51  ;;  %v13517_v16 = vpop.f32.mrb[73].mxu1 }
 0xfb0   :  { %v17669_v59 = vadd.f32 %v9940_v50, %v15592_v4 }
 0xfb1   :  { %v17666_v30 = vadd.f32 %v9943_v27, %v15592_v4 }
 0xfb2   :  { %v9434_v34 = vpop.f32.mrb[70].mxu0  ;;  %9999 = vmax.xlane.f32.xlu0 %v9998_v40  ;;  %v9992_v0 = vsel %vm3882_vm6, %v17669_v59, -inf }
 0xfb3   :  { %v10001_v61 = vsel %vm3882_vm6, %v17666_v30, -inf  ;;  %v9944_v32 = vmul.f32 0.35355338, %v9434_v34  ;;  %v9532_v15 = vpop.f32.mrb[74].mxu1  ;;  %v13526_v9 = vpop.f32.mrb[71].mxu0 }
 0xfb4   :  { %10002 = vmax.xlane.f32.xlu1 %v10001_v61  ;;  %v9947_v14 = vmul.f32 0.35355338, %v9532_v15  ;;  %v13541_v3 = vpop.f32.mrb[75].mxu1 }
 0xfb5   :  { %v17676_v48 = vadd.f32 %v9944_v32, %v15592_v4 }
 0xfb6   :  { %v17681_v8 = vadd.f32 %v9947_v14, %v15592_v4  ;;  %9993 = vmax.xlane.f32.xlu0 %v9992_v0 }
 0xfb7   :  { %v9439_v10 = vpop.f32.mrb[72].mxu0  ;;  %v10004_v38 = vsel %vm3882_vm6, %v17676_v48, -inf }
 0xfb8   :  { %v9945_v57 = vmul.f32 0.35355338, %v9439_v10  ;;  %v9537_v26 = vpop.f32.mrb[76].mxu1  ;;  %v13529_v62 = vpop.f32.mrb[73].mxu0  ;;  %v10013_v11 = vsel %vm3882_vm6, %v17681_v8, -inf }
 0xfb9   :  { %v9948_v25 = vmul.f32 0.35355338, %v9537_v26  ;;  %v13544_v52 = vpop.f32.mrb[77].mxu1  ;;  %10014 = vmax.xlane.f32.xlu1 %v10013_v11 }
 0xfba   :  { %v17686_v28 = vadd.f32 %v9945_v57, %v15592_v4  ;;  %10005 = vmax.xlane.f32.xlu0 %v10004_v38 }
 0xfbb   :  { %v17691_v12 = vadd.f32 %v9948_v25, %v15592_v4 }
 0xfbc   :  { %v9444_v21 = vpop.f32.mrb[74].mxu0  ;;  %v10007_v5 = vsel %vm3882_vm6, %v17686_v28, -inf }
 0xfbd   :  { %v9946_v36 = vmul.f32 0.35355338, %v9444_v21  ;;  %v9542_v35 = vpop.f32.mrb[78].mxu1  ;;  %v13532_v1 = vpop.f32.mrb[75].mxu0  ;;  %v10016_v20 = vsel %vm3882_vm6, %v17691_v12, -inf }
 0xfbe   :  { %v9949_v41 = vmul.f32 0.35355338, %v9542_v35  ;;  %v13547_v19 = vpop.f32.mrb[79].mxu1  ;;  %10017 = vmax.xlane.f32.xlu1 %v10016_v20  ;;  %10008 = vmax.xlane.f32.xlu0 %v10007_v5 }
 0xfbf   :  { %v17696_v17 = vadd.f32 %v9946_v36, %v15592_v4 }
 0xfc0   :  { %v17701_v13 = vadd.f32 %v9949_v41, %v15592_v4 }
 0xfc1   :  { %v10010_v31 = vsel %vm3882_vm6, %v17696_v17, -inf }
 0xfc2   :  { %v10019_v60 = vsel %vm3882_vm6, %v17701_v13, -inf  ;;  %10011 = vmax.xlane.f32.xlu0 %v10010_v31 }
 0xfc3   :  { %10020 = vmax.xlane.f32.xlu1 %v10019_v60 }
 0xfc7   :  { %v9630_v7 = vpop.f32.mrb[76].mxu0 }
 0xfc8   :  { %v9950_v50 = vmul.f32 0.35355338, %v9630_v7  ;;  %v13556_v42 = vpop.f32.mrb[77].mxu0 }
 0xfca   :  { %v9728_v51 = vpop.f32.mrb[80].mxu1  ;;  %v17708_v16 = vadd.f32 %v9950_v50, %v15592_v4 }
 0xfcb   :  { %v9953_v56 = vmul.f32 0.35355338, %v9728_v51  ;;  %v13571_v27 = vpop.f32.mrb[81].mxu1 }
 0xfcc   :  { %v9635_v34 = vpop.f32.mrb[78].mxu0  ;;  %v10022_v9 = vsel %vm3882_vm6, %v17708_v16, -inf }
 0xfcd   :  { %v17711_v40 = vadd.f32 %v9953_v56, %v15592_v4  ;;  %v9951_v61 = vmul.f32 0.35355338, %v9635_v34  ;;  %v13559_v15 = vpop.f32.mrb[79].mxu0  ;;  %10023 = vmax.xlane.f32.xlu0 %v10022_v9 }
 0xfce   :  { %v9733_v32 = vpop.f32.mrb[82].mxu1 }
 0xfcf   :  { %v9954_v14 = vmul.f32 0.35355338, %v9733_v32  ;;  %v13574_v3 = vpop.f32.mrb[83].mxu1  ;;  %v10031_v0 = vsel %vm3882_vm6, %v17711_v40, -inf  ;;  %v17718_v10 = vadd.f32 %v9951_v61, %v15592_v4 }
 0xfd0   :  { %10032 = vmax.xlane.f32.xlu1 %v10031_v0 }
 0xfd1   :  { %v17721_v57 = vadd.f32 %v9954_v14, %v15592_v4  ;;  %v9640_v26 = vpop.f32.mrb[80].mxu0  ;;  %v10025_v11 = vsel %vm3882_vm6, %v17718_v10, -inf }
 0xfd2   :  { %v9952_v25 = vmul.f32 0.35355338, %v9640_v26  ;;  %v13562_v52 = vpop.f32.mrb[81].mxu0  ;;  %10026 = vmax.xlane.f32.xlu0 %v10025_v11  ;;  %v17759_v26 = vpop.permute.xlu0 %8276 }
 0xfd3   :  { %v9738_v62 = vpop.f32.mrb[84].mxu1  ;;  %v10034_v36 = vsel %vm3882_vm6, %v17721_v57, -inf }
 0xfd4   :  { %v9955_v38 = vmul.f32 0.35355338, %v9738_v62  ;;  %v13577_v21 = vpop.f32.mrb[85].mxu1  ;;  %v17728_v35 = vadd.f32 %v9952_v25, %v15592_v4  ;;  %10035 = vmax.xlane.f32.xlu1 %v10034_v36 }
 0xfd5   :  { %v9826_v41 = vpop.f32.mrb[82].mxu0 }
 0xfd6   :  { %v17731_v1 = vadd.f32 %v9955_v38, %v15592_v4  ;;  %v9956_v20 = vmul.f32 0.35355338, %v9826_v41  ;;  %v13586_v5 = vpop.f32.mrb[83].mxu0  ;;  %v10028_v60 = vsel %vm3882_vm6, %v17728_v35, -inf }
 0xfd7   :  { %v9924_v19 = vpop.f32.mrb[86].mxu1  ;;  %10029 = vmax.xlane.f32.xlu0 %v10028_v60 }
 0xfd8   :  { %v9959_v31 = vmul.f32 0.35355338, %v9924_v19  ;;  %v13601_v7 = vpop.f32.mrb[87].mxu1  ;;  %v10037_v50 = vsel %vm3882_vm6, %v17731_v1, -inf  ;;  %v17738_v51 = vadd.f32 %v9956_v20, %v15592_v4 }
 0xfd9   :  { %10038 = vmax.xlane.f32.xlu1 %v10037_v50 }
 0xfda   :  { %v17741_v42 = vadd.f32 %v9959_v31, %v15592_v4  ;;  %v17743_v56 = vpop.f32.mrb[84].mxu0  ;;  %v10040_v61 = vsel %vm3882_vm6, %v17738_v51, -inf }
 0xfdb   :  { %v17745_v27 = vpop.f32.mrb[88].mxu1  ;;  %v13589_v34 = vpop.f32.mrb[85].mxu0  ;;  %10041 = vmax.xlane.f32.xlu0 %v10040_v61 }
 0xfdc   :  { %v13604_v32 = vpop.f32.mrb[89].mxu1  ;;  %v10049_v15 = vsel %vm3882_vm6, %v17741_v42, -inf }
 0xfdd   :  { %10050 = vmax.xlane.f32.xlu1 %v10049_v15 }
 0xfde   :  { %v17751_v9 = vpop.f32.mrb[86].mxu0 }
 0xfdf   :  { %v17753_v14 = vpop.f32.mrb[90].mxu1  ;;  %v13592_v3 = vpop.f32.mrb[87].mxu0 }
 0xfe0   :  { %v13607_v0 = vpop.f32.mrb[91].mxu1 }
 0xfee   :  { %8288 = vrot.lane.b32.xlu1 %v16745_v6, %s14326_s13 }
 0xff1   :  { %8300 = vrot.lane.b32.xlu0 %v16747_v18, %s14326_s13 }
0x1033   :  { %v9988_v62 = vpop.xlane.xlu0 %9987 }
0x1034   :  { %v10058_v52 = vsub.f32 %v17648_v39, %v9988_v62 }
0x1036   :  { %v9997_v25 = vpop.xlane.xlu1 %9996  ;;  %v10082_v38 = vmul.f32 1.442695, %v10058_v52 }
0x1037   :  { %v10061_v11 = vsub.f32 %v17651_v44, %v9997_v25 }
0x1038   :  { %14171 = vpow2.f32 %v10082_v38 }
0x1039   :  { %v10088_v21 = vmul.f32 1.442695, %v10061_v11 }
0x103b   :  { %14173 = vpow2.f32 %v10088_v21  ;;  %v9991_v36 = vpop.xlane.xlu0 %9990 }
0x103c   :  { %v10059_v41 = vsub.f32 %v17658_v43, %v9991_v36 }
0x103e   :  { %v10084_v19 = vmul.f32 1.442695, %v10059_v41 }
0x103f   :  { %v10000_v6 = vpop.xlane.xlu0 %9999 }
0x1040   :  { %14175 = vpow2.f32 %v10084_v19  ;;  %v10062_v18 = vsub.f32 %v17661_v2, %v10000_v6 }
0x1041   :  { %v10003_v20 = vpop.xlane.xlu1 %10002 }
0x1042   :  { %v10063_v5 = vsub.f32 %v17666_v30, %v10003_v20  ;;  %v10090_v60 = vmul.f32 1.442695, %v10062_v18  ;;  %v17766_v7 = vpop.eup %14171 }
0x1043   :  { %v9994_v39 = vpop.xlane.xlu0 %9993  ;;  %v10130_v43 = vsel %vm3882_vm6, %v17766_v7, 0.0 }
0x1044   :  { %v10092_v31 = vmul.f32 1.442695, %v10063_v5  ;;  %14177 = vpow2.f32 %v10090_v60  ;;  %v10060_v44 = vsub.f32 %v17669_v59, %v9994_v39  ;;  %10131 = vadd.xlane.f32.xlu0 %v10130_v43 }
0x1045   :  { %v17769_v50 = vpop.eup %14173 }
0x1046   :  { %14179 = vpow2.f32 %v10092_v31  ;;  %v10015_v34 = vpop.xlane.xlu1 %10014  ;;  %v10086_v61 = vmul.f32 1.442695, %v10060_v44  ;;  %v10139_v2 = vsel %vm3882_vm6, %v17769_v50, 0.0 }
0x1047   :  { %v10067_v30 = vsub.f32 %v17681_v8, %v10015_v34  ;;  %v10006_v32 = vpop.xlane.xlu0 %10005  ;;  %10140 = vadd.xlane.f32.xlu1 %v10139_v2 }
0x1048   :  { %14181 = vpow2.f32 %v10086_v61  ;;  %v10064_v15 = vsub.f32 %v17676_v48, %v10006_v32 }
0x1049   :  { %v10100_v3 = vmul.f32 1.442695, %v10067_v30 }
0x104a   :  { %v17777_v59 = vpop.eup %14175  ;;  %v10094_v0 = vmul.f32 1.442695, %v10064_v15 }
0x104b   :  { %v10009_v62 = vpop.xlane.xlu0 %10008  ;;  %v10133_v25 = vsel %vm3882_vm6, %v17777_v59, 0.0  ;;  %v10018_v41 = vpop.xlane.xlu1 %10017 }
0x104c   :  { %14183 = vpow2.f32 %v10094_v0  ;;  %v10065_v52 = vsub.f32 %v17686_v28, %v10009_v62  ;;  %10134 = vadd.xlane.f32.xlu0 %v10133_v25 }
0x104d   :  { %14185 = vpow2.f32 %v10100_v3 }
0x104e   :  { %v17782_v11 = vpop.eup %14177  ;;  %v10096_v8 = vmul.f32 1.442695, %v10065_v52 }
0x104f   :  { %v10012_v38 = vpop.xlane.xlu0 %10011  ;;  %v10142_v48 = vsel %vm3882_vm6, %v17782_v11, 0.0 }
0x1050   :  { %v17786_v21 = vpop.eup %14179  ;;  %v10066_v36 = vsub.f32 %v17696_v17, %v10012_v38  ;;  %10143 = vadd.xlane.f32.xlu1 %v10142_v48  ;;  %14187 = vpow2.f32 %v10096_v8  ;;  %v10021_v5 = vpop.xlane.xlu1 %10020 }
0x1051   :  { %v10145_v28 = vsel %vm3882_vm6, %v17786_v21, 0.0 }
0x1052   :  { %v17789_v19 = vpop.eup %14181  ;;  %v10098_v6 = vmul.f32 1.442695, %v10066_v36 }
0x1053   :  { %v10136_v20 = vsel %vm3882_vm6, %v17789_v19, 0.0 }
0x1054   :  { %10146 = vadd.xlane.f32.xlu1 %v10145_v28  ;;  %10137 = vadd.xlane.f32.xlu0 %v10136_v20  ;;  %14189 = vpow2.f32 %v10098_v6 }
0x1056   :  { %v17795_v18 = vpop.eup %14183 }
0x1057   :  { %v10148_v17 = vsel %vm3882_vm6, %v17795_v18, 0.0  ;;  %v17799_v60 = vpop.eup %14185 }
0x1058   :  { %10149 = vadd.xlane.f32.xlu0 %v10148_v17  ;;  %v10157_v43 = vsel %vm3882_vm6, %v17799_v60, 0.0 }
0x105a   :  { %v10024_v31 = vpop.xlane.xlu0 %10023  ;;  %v17804_v34 = vpop.eup %14187 }
0x105b   :  { %v10070_v44 = vsub.f32 %v17708_v16, %v10024_v31  ;;  %v10151_v15 = vsel %vm3882_vm6, %v17804_v34, 0.0 }
0x105c   :  { %10158 = vadd.xlane.f32.xlu0 %v10157_v43  ;;  %v9957_v43 = vmul.f32 0.35355338, %v17743_v56 }
0x105d   :  { %v10033_v39 = vpop.xlane.xlu1 %10032  ;;  %v10106_v61 = vmul.f32 1.442695, %v10070_v44 }
0x105e   :  { %v17809_v3 = vpop.eup %14189 }
0x105f   :  { %v10027_v2 = vpop.xlane.xlu0 %10026  ;;  %14191 = vpow2.f32 %v10106_v61  ;;  %v10154_v52 = vsel %vm3882_vm6, %v17809_v3, 0.0 }
0x1060   :  { %v10071_v32 = vsub.f32 %v17718_v10, %v10027_v2  ;;  %10152 = vadd.xlane.f32.xlu0 %v10151_v15  ;;  %v10069_v15 = vsub.f32 %v17701_v13, %v10021_v5 }
0x1061   :  { %v10036_v30 = vpop.xlane.xlu1 %10035 }
0x1062   :  { %v10108_v0 = vmul.f32 1.442695, %v10071_v32 }
0x1064   :  { %v10030_v16 = vpop.xlane.xlu0 %10029  ;;  %14193 = vpow2.f32 %v10108_v0  ;;  %10155 = vadd.xlane.f32.xlu0 %v10154_v52  ;;  %v17840_v0 = vadd.f32 %v9957_v43, %v15592_v4  ;;  %v10074_v52 = vsub.f32 %v17721_v57, %v10036_v30 }
0x1065   :  { %v10072_v25 = vsub.f32 %v17728_v35, %v10030_v16  ;;  %8312 = vrot.lane.b32.xlu1 %v16753_v53, %s14326_s13  ;;  %v10073_v16 = vsub.f32 %v17711_v40, %v10033_v39 }
0x1066   :  { %v10039_v62 = vpop.xlane.xlu1 %10038  ;;  %v10043_v56 = vsel %vm3882_vm6, %v17840_v0, -inf  ;;  %v10114_v13 = vmul.f32 1.442695, %v10074_v52 }
0x1067   :  { %v10110_v8 = vmul.f32 1.442695, %v10072_v25  ;;  %v10112_v25 = vmul.f32 1.442695, %v10073_v16  ;;  %v10075_v5 = vsub.f32 %v17731_v1, %v10039_v62  ;;  %v9958_v62 = vmul.f32 0.35355338, %v17751_v9 }
0x1068   :  { %v10042_v10 = vpop.xlane.xlu0 %10041 }
0x1069   :  { %14195 = vpow2.f32 %v10110_v8  ;;  %v10076_v48 = vsub.f32 %v17738_v51, %v10042_v10  ;;  %v17818_v6 = vpop.eup %14191  ;;  %v10116_v10 = vmul.f32 1.442695, %v10075_v5 }
0x106a   :  { %v10051_v38 = vpop.xlane.xlu1 %10050  ;;  %v10166_v35 = vsel %vm3882_vm6, %v17818_v6, 0.0 }
0x106b   :  { %v10079_v36 = vsub.f32 %v17741_v42, %v10051_v38  ;;  %v10118_v28 = vmul.f32 1.442695, %v10076_v48  ;;  %10167 = vadd.xlane.f32.xlu0 %v10166_v35  ;;  %v10068_v42 = vsub.f32 %v17691_v12, %v10018_v41  ;;  %v10104_v41 = vmul.f32 1.442695, %v10069_v15 }
0x106d   :  { %v10124_v20 = vmul.f32 1.442695, %v10079_v36  ;;  %14197 = vpow2.f32 %v10118_v28  ;;  %v10102_v32 = vmul.f32 1.442695, %v10068_v42  ;;  %v17869_v28 = vadd.f32 %v9958_v62, %v15592_v4 }
0x106e   :  { %v17822_v17 = vpop.eup %14193 }
0x106f   :  { %14199 = vpow2.f32 %v10124_v20  ;;  %v10169_v53 = vsel %vm3882_vm6, %v17822_v17, 0.0  ;;  %v10046_v35 = vsel %vm3882_vm6, %v17869_v28, -inf }
0x1070   :  { %10170 = vadd.xlane.f32.xlu0 %v10169_v53  ;;  %14201 = vpow2.f32 %v10102_v32  ;;  %v8301_v53 = vpop.permute.xlu0 %8300 }
0x1071   :  { %14203 = vpow2.f32 %v10104_v41 }
0x1072   :  { %14205 = vpow2.f32 %v10112_v25  ;;  %v8678_v25 = vcombine.low %v17759_v26, %v8301_v53 }
0x1073   :  { %v17826_v31 = vpop.eup %14195  ;;  %14207 = vpow2.f32 %v10114_v13 }
0x1074   :  { %v10172_v51 = vsel %vm3882_vm6, %v17826_v31, 0.0  ;;  %14209 = vpow2.f32 %v10116_v10 }
0x1075   :  { %10173 = vadd.xlane.f32.xlu0 %v10172_v51  ;;  %v8289_v51 = vpop.permute.xlu1 %8288 }
0x1077   :  { %v17831_v44 = vpop.eup %14197 }
0x1078   :  { %v10184_v61 = vsel %vm3882_vm6, %v17831_v44, 0.0 }
0x1079   :  { %v17836_v2 = vpop.eup %14199  ;;  %10185 = vadd.xlane.f32.xlu0 %v10184_v61 }
0x107a   :  { %v10193_v12 = vsel %vm3882_vm6, %v17836_v2, 0.0  ;;  %v17849_v8 = vpop.eup %14201 }
0x107b   :  { %v10160_v40 = vsel %vm3882_vm6, %v17849_v8, 0.0  ;;  %v17853_v39 = vpop.eup %14203 }
0x107c   :  { %v10163_v38 = vsel %vm3882_vm6, %v17853_v39, 0.0  ;;  %v17857_v57 = vpop.eup %14205 }
0x107d   :  { %10194 = vadd.xlane.f32.xlu0 %v10193_v12  ;;  %v10175_v1 = vsel %vm3882_vm6, %v17857_v57, 0.0  ;;  %v17861_v30 = vpop.eup %14207 }
0x107e   :  { %v10178_v48 = vsel %vm3882_vm6, %v17861_v30, 0.0  ;;  %v17866_v36 = vpop.eup %14209 }
0x107f   :  { %v10181_v20 = vsel %vm3882_vm6, %v17866_v36, 0.0 }
0x1081   :  { %10044 = vmax.xlane.f32.xlu0 %v10043_v56 }
0x1089   :  { %10161 = vadd.xlane.f32.xlu1 %v10160_v40 }
0x108d   :  { %10164 = vadd.xlane.f32.xlu1 %v10163_v38 }
0x1091   :  { %10176 = vadd.xlane.f32.xlu1 %v10175_v1 }
0x1095   :  { %10179 = vadd.xlane.f32.xlu1 %v10178_v48 }
0x1099   :  { %10182 = vadd.xlane.f32.xlu1 %v10181_v20 }
0x109d   :  { %10047 = vmax.xlane.f32.xlu1 %v10046_v35 }
0x10d1   :  { %v10132_v9 = vpop.xlane.xlu0 %10131 }
0x10d2   :  { %14211 = vrcp.f32 %v10132_v9 }
0x10d4   :  { %v10141_v42 = vpop.xlane.xlu1 %10140 }
0x10d5   :  { %14213 = vrcp.f32 %v10141_v42 }
0x10d9   :  { %v10135_v43 = vpop.xlane.xlu0 %10134 }
0x10da   :  { %14215 = vrcp.f32 %v10135_v43 }
0x10dc   :  { %v14212_v32 = vpop.eup %14211 }
0x10dd   :  { %v10144_v61 = vpop.xlane.xlu1 %10143  ;;  %v10203_v12 = vmul.f32 %v14212_v32, %v17766_v7 }
0x10de   :  { %14217 = vrcp.f32 %v10144_v61 }
0x10df   :  { %v14214_v15 = vpop.eup %14213  ;;  %13615 = vmatmul.mubr.msk.f32.vlgmr.msra.gmra.mrb[88].mxu0 %vm3882_vm6, %v10203_v12 }
0x10e0   :  { %v10209_v41 = vmul.f32 %v14214_v15, %v17769_v50  ;;  %13954 = vmatpush3.bf16.msra.mxu0 %v17615_v46  ;;  %13617 = vmatprep.mubr.msk.f32.mxu0 %vm14324_vm2, %v18548_v54  ;;  %v8679_v50 = vcombine.high %v17759_v26, %v8301_v53 }
0x10e1   :  { %v10147_v16 = vpop.xlane.xlu1 %10146  ;;  %v10138_v56 = vpop.xlane.xlu0 %10137  ;;  %13642 = vmatprep.subr.mxu0 %v18548_v54 }
0x10e2   :  { %14219 = vrcp.f32 %v10147_v16  ;;  %13630 = vmatmul.mubr.msk.f32.vlgmr.msra.gmra.mrb[92].mxu1 %vm3882_vm6, %v10209_v41 }
0x10e3   :  { %14221 = vrcp.f32 %v10138_v56  ;;  %13957 = vmatpush3.bf16.msra.mxu1 %v17617_v22  ;;  %13632 = vmatprep.mubr.msk.f32.mxu1 %vm14324_vm2, %v18548_v54  ;;  %v8686_v22 = vrot.slane %v8678_v25, %v14709_v55 }
0x10e4   :  { %v14216_v7 = vpop.eup %14215  ;;  %13657 = vmatprep.subr.mxu1 %v18548_v54  ;;  %13643 = vmatpush3.msra.mxu0 %v8948_v23 }
0x10e5   :  { %v8313_v52 = vpop.permute.xlu1 %8312  ;;  %v10150_v13 = vpop.xlane.xlu0 %10149  ;;  %v10205_v5 = vmul.f32 %v14216_v7, %v17777_v59  ;;  %v8693_v59 = vrot.slane %v8679_v50, %v14709_v55  ;;  %13958 = vmatprep.subr.bf16.mxu0 %v18549_v58 }
0x10e6   :  { %v8694_v46 = vcombine.low %v8289_v51, %v8313_v52  ;;  %v8695_v10 = vcombine.high %v8289_v51, %v8313_v52  ;;  %14223 = vrcp.f32 %v10150_v13 }
0x10e7   :  { %13618 = vmatmul.mubr.msk.f32.gmra.mrb[90].mxu0 %vm3882_vm6, %v10205_v5  ;;  %13658 = vmatpush3.msra.mxu1 %v8949_v47 }
0x10e8   :  { %v14218_v26 = vpop.eup %14217  ;;  %v8702_v40 = vrot.slane %v8694_v46, %v14709_v55  ;;  %v8709_v38 = vrot.slane %v8695_v10, %v14709_v55  ;;  %13620 = vmatprep.mubr.msk.f32.mxu0 %vm14324_vm2, %v18548_v54  ;;  %13961 = vmatprep.subr.bf16.mxu1 %v18549_v58 }
0x10e9   :  { %v10159_v23 = vpop.xlane.xlu0 %10158  ;;  %v10211_v1 = vmul.f32 %v14218_v26, %v17782_v11 }
0x10ea   :  { %v8710_v62 = vcombine.low %v8686_v22, %v8702_v40  ;;  %v8711_v33 = vcombine.high %v8686_v22, %v8702_v40  ;;  %v8726_v29 = vcombine.low %v8693_v59, %v8709_v38  ;;  %v8727_v47 = vcombine.high %v8693_v59, %v8709_v38 }
0x10eb   :  { %14225 = vrcp.f32 %v10159_v23  ;;  %13633 = vmatmul.mubr.msk.f32.gmra.mrb[94].mxu1 %vm3882_vm6, %v10211_v1 }
0x10ec   :  { %v14220_v48 = vpop.eup %14219  ;;  %v8718_v20 = vrot.slane %v8710_v62, %v14724_v45  ;;  %v8725_v35 = vrot.slane %v8711_v33, %v14724_v45  ;;  %v8734_v53 = vrot.slane %v8726_v29, %v14724_v45  ;;  %v8741_v51 = vrot.slane %v8727_v47, %v14724_v45  ;;  %13635 = vmatprep.mubr.msk.f32.mxu1 %vm14324_vm2, %v18548_v54 }
0x10ed   :  { %v14222_v11 = vpop.eup %14221  ;;  %v10153_v9 = vpop.xlane.xlu0 %10152  ;;  %v10213_v42 = vmul.f32 %v14220_v48, %v17786_v21 }
0x10ee   :  { %v9086_v43 = vcombine.low %v8718_v20, %v8725_v35  ;;  %v12716_v61 = vcombine.high %v8718_v20, %v8725_v35  ;;  %v9102_v32 = vcombine.low %v8734_v53, %v8741_v51  ;;  %v12717_v15 = vcombine.high %v8734_v53, %v8741_v51 }
0x10ef   :  { %14227 = vrcp.f32 %v10153_v9  ;;  %v10207_v12 = vmul.f32 %v14222_v11, %v17789_v19  ;;  %13636 = vmatmul.mubr.msk.f32.gmra.mrb[96].mxu1 %vm3882_vm6, %v10213_v42 }
0x10f0   :  { %v14224_v41 = vpop.eup %14223  ;;  %v9093_v16 = vrot.slane %v9086_v43, %v14709_v55  ;;  %v9101_v56 = vrot.slane %v12716_v61, %v14709_v55  ;;  %v9109_v25 = vrot.slane %v9102_v32, %v14709_v55  ;;  %v9117_v7 = vrot.slane %v12717_v15, %v14709_v55  ;;  %13659 = vmatprep.mubr.msk.f32.mxu1 %vm14324_vm2, %v18548_v54 }
0x10f1   :  { %v10215_v21 = vmul.f32 %v14224_v41, %v17795_v18  ;;  %13621 = vmatmul.mubr.msk.f32.gmra.mrb[92].mxu0 %vm3882_vm6, %v10207_v12  ;;  %v10156_v50 = vpop.xlane.xlu0 %10155 }
0x10f2   :  { %14229 = vrcp.f32 %v10156_v50  ;;  %13644 = vmatprep.mubr.msk.f32.mxu0 %vm14324_vm2, %v18548_v54  ;;  %v9118_v19 = vcombine.low %v9093_v16, %v9101_v56  ;;  %v9134_v52 = vcombine.low %v9109_v25, %v9117_v7  ;;  %v9135_v23 = vcombine.high %v9109_v25, %v9117_v7 }
0x10f4   :  { %v9126_v13 = vrot.slane %v9118_v19, %v14724_v45  ;;  %v9142_v5 = vrot.slane %v9134_v52, %v14724_v45 }
0x10f5   :  { %v14226_v46 = vpop.eup %14225  ;;  %13645 = vmatmul.mubr.msk.f32.vlgmr.msra.gmra.mrb[94].mxu0 %vm3882_vm6, %v10215_v21 }
0x10f6   :  { %v10221_v10 = vmul.f32 %v14226_v46, %v17799_v60  ;;  %13960 = vmatpush3.bf16.msra.mxu0 %v17639_v63  ;;  %v9150_v18 = vcombine.low %v9126_v13, %v9142_v5  ;;  %13647 = vmatprep.mubr.msk.f32.mxu0 %vm14324_vm2, %v18548_v54  ;;  %v9151_v60 = vcombine.high %v9126_v13, %v9142_v5 }
0x10f7   :  { %13672 = vmatprep.subr.mxu0 %v18548_v54 }
0x10f8   :  { %v10168_v22 = vpop.xlane.xlu0 %10167  ;;  %13660 = vmatmul.mubr.msk.f32.vlgmr.msra.gmra.mrb[98].mxu1 %vm3882_vm6, %v10221_v10 }
0x10f9   :  { %v14228_v26 = vpop.eup %14227  ;;  %14231 = vrcp.f32 %v10168_v22  ;;  %13963 = vmatpush3.bf16.msra.mxu1 %v17641_v37  ;;  %13662 = vmatprep.mubr.msk.f32.mxu1 %vm14324_vm2, %v18548_v54 }
0x10fa   :  { %13673 = vmatpush3.msra.mxu0 %v9150_v18  ;;  %13687 = vmatprep.subr.mxu1 %v18548_v54  ;;  %v10217_v63 = vmul.f32 %v14228_v26, %v17804_v34  ;;  %v9119_v34 = vcombine.high %v9093_v16, %v9101_v56 }
0x10fb   :  { %13964 = vmatprep.subr.bf16.mxu0 %v18549_v58 }
0x10fc   :  { %v14230_v59 = vpop.eup %14229  ;;  %13648 = vmatmul.mubr.msk.f32.gmra.mrb[96].mxu0 %vm3882_vm6, %v10217_v63  ;;  %v9133_v29 = vrot.slane %v9119_v34, %v14724_v45 }
0x10fd   :  { %v10171_v40 = vpop.xlane.xlu0 %10170  ;;  %13688 = vmatpush3.msra.mxu1 %v9151_v60  ;;  %13650 = vmatprep.mubr.msk.f32.mxu0 %vm14324_vm2, %v18548_v54  ;;  %v10219_v37 = vmul.f32 %v14230_v59, %v17809_v3  ;;  %v9149_v3 = vrot.slane %v9135_v23, %v14724_v45 }
0x10fe   :  { %14233 = vrcp.f32 %v10171_v40  ;;  %13967 = vmatprep.subr.bf16.mxu1 %v18549_v58 }
0x10ff   :  { %v9153_v19 = vcombine.high %v9133_v29, %v9149_v3 }
0x1100   :  { %13651 = vmatmul.mubr.msk.f32.gmra.mrb[98].mxu0 %vm3882_vm6, %v10219_v37 }
0x1101   :  { %13674 = vmatprep.mubr.msk.f32.mxu0 %vm14324_vm2, %v18548_v54 }
0x1102   :  { %v10174_v38 = vpop.xlane.xlu0 %10173 }
0x1103   :  { %14235 = vrcp.f32 %v10174_v38  ;;  %v14232_v1 = vpop.eup %14231 }
0x1104   :  { %v10227_v62 = vmul.f32 %v14232_v1, %v17818_v6  ;;  %v9152_v6 = vcombine.low %v9133_v29, %v9149_v3 }
0x1106   :  { %v10186_v33 = vpop.xlane.xlu0 %10185  ;;  %13675 = vmatmul.mubr.msk.f32.vlgmr.msra.gmra.mrb[100].mxu0 %vm3882_vm6, %v10227_v62 }
0x1107   :  { %14237 = vrcp.f32 %v10186_v33  ;;  %13966 = vmatpush3.bf16.msra.mxu0 %v17643_v49  ;;  %13677 = vmatprep.mubr.msk.f32.mxu0 %vm14324_vm2, %v18548_v54 }
0x1108   :  { %v14234_v47 = vpop.eup %14233  ;;  %13702 = vmatprep.subr.mxu0 %v18548_v54 }
0x1109   :  { %v10229_v20 = vmul.f32 %v14234_v47, %v17822_v17 }
0x110a   :  { %v10195_v48 = vpop.xlane.xlu0 %10194 }
0x110b   :  { %13678 = vmatmul.mubr.msk.f32.gmra.mrb[102].mxu0 %vm3882_vm6, %v10229_v20 }
0x110c   :  { %13703 = vmatpush3.msra.mxu0 %v9152_v6  ;;  %13680 = vmatprep.mubr.msk.f32.mxu0 %vm14324_vm2, %v18548_v54 }
0x110d   :  { %v14236_v35 = vpop.eup %14235 }
0x110e   :  { %v10045_v53 = vpop.xlane.xlu0 %10044  ;;  %v10231_v51 = vmul.f32 %v14236_v35, %v17826_v31 }
0x110f   :  { %v10077_v49 = vsub.f32 %v17840_v0, %v10045_v53 }
0x1110   :  { %13681 = vmatmul.mubr.msk.f32.gmra.mrb[104].mxu0 %vm3882_vm6, %v10231_v51 }
0x1111   :  { %v14238_v11 = vpop.eup %14237  ;;  %v10120_v9 = vmul.f32 1.442695, %v10077_v49  ;;  %13704 = vmatprep.mubr.msk.f32.mxu0 %vm14324_vm2, %v18548_v54 }
0x1112   :  { %v10239_v17 = vmul.f32 %v14238_v11, %v17831_v44 }
0x1113   :  { %14239 = vpow2.f32 %v10120_v9 }
0x1114   :  { %13705 = vmatmul.mubr.msk.f32.vlgmr.msra.gmra.mrb[106].mxu0 %vm3882_vm6, %v10239_v17 }
0x1115   :  { %13707 = vmatprep.mubr.msk.f32.mxu0 %vm14324_vm2, %v18548_v54 }
0x1116   :  { %v10162_v42 = vpop.xlane.xlu1 %10161 }
0x1117   :  { %14241 = vrcp.f32 %v10162_v42 }
0x111a   :  { %v10165_v31 = vpop.xlane.xlu1 %10164 }
0x111b   :  { %14243 = vrcp.f32 %v10165_v31 }
0x111d   :  { %v14240_v43 = vpop.eup %14239 }
0x111e   :  { %v10187_v0 = vsel %vm3882_vm6, %v14240_v43, 0.0  ;;  %v10177_v61 = vpop.xlane.xlu1 %10176 }
0x111f   :  { %10188 = vadd.xlane.f32.xlu0 %v10187_v0  ;;  %14245 = vrcp.f32 %v10177_v61 }
0x1121   :  { %v14242_v32 = vpop.eup %14241 }
0x1122   :  { %v10180_v15 = vpop.xlane.xlu1 %10179  ;;  %v10223_v44 = vmul.f32 %v14242_v32, %v17849_v8 }
0x1123   :  { %14247 = vrcp.f32 %v10180_v15 }
0x1124   :  { %13663 = vmatmul.mubr.msk.f32.gmra.mrb[100].mxu1 %vm3882_vm6, %v10223_v44 }
0x1125   :  { %v14244_v12 = vpop.eup %14243  ;;  %13665 = vmatprep.mubr.msk.f32.mxu1 %vm14324_vm2, %v18548_v54 }
0x1126   :  { %v10183_v41 = vpop.xlane.xlu1 %10182  ;;  %v10225_v16 = vmul.f32 %v14244_v12, %v17853_v39 }
0x1127   :  { %14249 = vrcp.f32 %v10183_v41 }
0x1128   :  { %13666 = vmatmul.mubr.msk.f32.gmra.mrb[102].mxu1 %vm3882_vm6, %v10225_v16  ;;  %14251 = vrcp.f32 %v10195_v48 }
0x1129   :  { %v14246_v56 = vpop.eup %14245  ;;  %13689 = vmatprep.mubr.msk.f32.mxu1 %vm14324_vm2, %v18548_v54 }
0x112a   :  { %v10233_v8 = vmul.f32 %v14246_v56, %v17857_v57  ;;  %v10048_v25 = vpop.xlane.xlu1 %10047 }
0x112b   :  { %v10078_v7 = vsub.f32 %v17869_v28, %v10048_v25 }
0x112c   :  { %13690 = vmatmul.mubr.msk.f32.vlgmr.msra.gmra.mrb[104].mxu1 %vm3882_vm6, %v10233_v8 }
0x112d   :  { %v14248_v21 = vpop.eup %14247  ;;  %v10122_v50 = vmul.f32 1.442695, %v10078_v7  ;;  %13969 = vmatpush3.bf16.msra.mxu1 %v17645_v24  ;;  %13692 = vmatprep.mubr.msk.f32.mxu1 %vm14324_vm2, %v18548_v54 }
0x112e   :  { %13717 = vmatprep.subr.mxu1 %v18548_v54  ;;  %v10235_v39 = vmul.f32 %v14248_v21, %v17861_v30 }
0x112f   :  { %14253 = vpow2.f32 %v10122_v50 }
0x1130   :  { %13693 = vmatmul.mubr.msk.f32.gmra.mrb[106].mxu1 %vm3882_vm6, %v10235_v39 }
0x1131   :  { %v14250_v57 = vpop.eup %14249  ;;  %13718 = vmatpush3.msra.mxu1 %v9153_v19  ;;  %13695 = vmatprep.mubr.msk.f32.mxu1 %vm14324_vm2, %v18548_v54 }
0x1132   :  { %v10237_v28 = vmul.f32 %v14250_v57, %v17866_v36  ;;  %v14252_v52 = vpop.eup %14251 }
0x1133   :  { %v10245_v24 = vmul.f32 %v14252_v52, %v17836_v2 }
0x1134   :  { %13696 = vmatmul.mubr.msk.f32.gmra.mrb[108].mxu1 %vm3882_vm6, %v10237_v28 }
0x1135   :  { %13719 = vmatprep.mubr.msk.f32.mxu1 %vm14324_vm2, %v18548_v54 }
0x1138   :  { %13720 = vmatmul.mubr.msk.f32.vlgmr.msra.gmra.mrb[110].mxu1 %vm3882_vm6, %v10245_v24  ;;  %v12802_v24 = vld [vmem:[%s18479_s4 + $0x20] sm:$0xff] }
0x1139   :  { %v14254_v30 = vpop.eup %14253  ;;  %13722 = vmatprep.mubr.msk.f32.mxu1 %vm14324_vm2, %v18548_v54 }
0x113a   :  { %v10190_v13 = vsel %vm3882_vm6, %v14254_v30, 0.0 }
0x113b   :  { %10191 = vadd.xlane.f32.xlu1 %v10190_v13  ;;  %v12803_v13 = vld [vmem:[%s18479_s4 + $0x28] sm:$0xff] }
0x11ac   :  { %v10189_v5 = vpop.xlane.xlu0 %10188 }
0x11ad   :  { %14255 = vrcp.f32 %v10189_v5  ;;  %v13970_v5 = vpack.c.bf16 %v12803_v13, %v12802_v24 }
0x11af   :  { %13971 = vmatprep.subr.bf16.mxu0 %v13970_v5 }
0x11b0   :  { %13973 = vmatpush3.bf16.msra.mxu0 %v13970_v5 }
0x11b2   :  { %v10325_v36 = vpop.f32.mrb[88].mxu0 }
0x11b3   :  { %v13616_v18 = vpop.f32.mrb[89].mxu0 }
0x11b5   :  { %v10414_v10 = vpop.f32.mrb[92].mxu1 }
0x11b6   :  { %v13631_v26 = vpop.f32.mrb[93].mxu1 }
0x11b7   :  { %v14256_v46 = vpop.eup %14255 }
0x11b8   :  { %v10241_v22 = vmul.f32 %v14256_v46, %v14240_v43 }
0x11ba   :  { %13708 = vmatmul.mubr.msk.f32.gmra.mrb[108].mxu0 %vm3882_vm6, %v10241_v22  ;;  %v18002_v2 = vpop.f32.mrb[90].mxu0 }
0x11bb   :  { %13710 = vmatprep.mubr.msk.f32.mxu0 %vm14324_vm2, %v18548_v54  ;;  %v13619_v63 = vpop.f32.mrb[91].mxu0 }
0x11be   :  { %v18004_v60 = vpop.f32.mrb[94].mxu1 }
0x11bf   :  { %v13634_v59 = vpop.f32.mrb[95].mxu1 }
0x11c2   :  { %v18006_v40 = vpop.f32.mrb[96].mxu1 }
0x11c3   :  { %v13637_v37 = vpop.f32.mrb[97].mxu1 }
0x11c4   :  { %v18008_v38 = vpop.f32.mrb[92].mxu0 }
0x11c5   :  { %v13622_v34 = vpop.f32.mrb[93].mxu0 }
0x11c8   :  { %v10503_v23 = vpop.f32.mrb[94].mxu0  ;;  %v10192_v1 = vpop.xlane.xlu1 %10191 }
0x11c9   :  { %v10962_v62 = vcombine.low %v10325_v36, %v10503_v23  ;;  %v10963_v33 = vcombine.high %v10325_v36, %v10503_v23  ;;  %v13646_v29 = vpop.f32.mrb[95].mxu0  ;;  %14257 = vrcp.f32 %v10192_v1 }
0x11cb   :  { %v10592_v3 = vpop.f32.mrb[98].mxu1  ;;  %v10970_v6 = vrot.slane %v10962_v62, %v14709_v55  ;;  %v10977_v35 = vrot.slane %v10963_v33, %v14709_v55 }
0x11cc   :  { %v10978_v47 = vcombine.low %v10414_v10, %v10592_v3  ;;  %v10979_v48 = vcombine.high %v10414_v10, %v10592_v3  ;;  %v13661_v20 = vpop.f32.mrb[99].mxu1 }
0x11ce   :  { %v10986_v53 = vrot.slane %v10978_v47, %v14709_v55  ;;  %v10993_v51 = vrot.slane %v10979_v48, %v14709_v55 }
0x11cf   :  { %v18014_v49 = vpop.f32.mrb[96].mxu0 }
0x11d0   :  { %v10994_v11 = vcombine.low %v10970_v6, %v10986_v53  ;;  %v10995_v9 = vcombine.high %v10970_v6, %v10986_v53  ;;  %v11010_v17 = vcombine.low %v10977_v35, %v10993_v51  ;;  %v11011_v42 = vcombine.high %v10977_v35, %v10993_v51  ;;  %v13649_v31 = vpop.f32.mrb[97].mxu0 }
0x11d1   :  { %v11030_v43 = vcombine.low %v18002_v2, %v18014_v49  ;;  %v11031_v0 = vcombine.high %v18002_v2, %v18014_v49 }
0x11d2   :  { %v11002_v61 = vrot.slane %v10994_v11, %v14724_v45  ;;  %v11009_v32 = vrot.slane %v10995_v9, %v14724_v45  ;;  %v11018_v15 = vrot.slane %v11010_v17, %v14724_v45  ;;  %v11025_v44 = vrot.slane %v11011_v42, %v14724_v45 }
0x11d3   :  { %v14258_v12 = vpop.eup %14257  ;;  %v18024_v41 = vpop.f32.mrb[98].mxu0  ;;  %v11038_v49 = vrot.slane %v11030_v43, %v14709_v55  ;;  %v11045_v11 = vrot.slane %v11031_v0, %v14709_v55  ;;  %v12804_v43 = vld [vmem:[%s18479_s4 + $0x30] sm:$0xff]  ;;  %v12805_v0 = vld [vmem:[%s18479_s4 + $0x38] sm:$0xff] }
0x11d4   :  { %v11370_v16 = vcombine.low %v11002_v61, %v11009_v32  ;;  %v12790_v56 = vcombine.high %v11002_v61, %v11009_v32  ;;  %v11386_v8 = vcombine.low %v11018_v15, %v11025_v44  ;;  %v12791_v25 = vcombine.high %v11018_v15, %v11025_v44  ;;  %v13652_v7 = vpop.f32.mrb[99].mxu0 }
0x11d5   :  { %v11098_v21 = vcombine.low %v18008_v38, %v18024_v41  ;;  %v11099_v50 = vcombine.high %v18008_v38, %v18024_v41  ;;  %v10243_v39 = vmul.f32 %v14258_v12, %v14254_v30 }
0x11d6   :  { %v11377_v19 = vrot.slane %v11370_v16, %v14709_v55  ;;  %v11385_v57 = vrot.slane %v12790_v56, %v14709_v55  ;;  %v11393_v28 = vrot.slane %v11386_v8, %v14709_v55  ;;  %v11401_v52 = vrot.slane %v12791_v25, %v14709_v55 }
0x11d7   :  { %13711 = vmatmul.mubr.msk.f32.gmra.mrb[110].mxu0 %vm3882_vm6, %v10243_v39  ;;  %v11106_v12 = vrot.slane %v11098_v21, %v14709_v55  ;;  %v11113_v7 = vrot.slane %v11099_v50, %v14709_v55 }
0x11d8   :  { %v11403_v30 = vcombine.high %v11377_v19, %v11385_v57  ;;  %v11419_v36 = vcombine.high %v11393_v28, %v11401_v52  ;;  %v11402_v46 = vcombine.low %v11377_v19, %v11385_v57  ;;  %v11418_v10 = vcombine.low %v11393_v28, %v11401_v52 }
0x11d9   :  { %v18041_v18 = vpop.f32.mrb[100].mxu0  ;;  %v13974_v19 = vpack.c.bf16 %v12805_v0, %v12804_v43 }
0x11da   :  { %v13676_v22 = vpop.f32.mrb[101].mxu0  ;;  %v11417_v26 = vrot.slane %v11403_v30, %v14724_v45  ;;  %v11433_v2 = vrot.slane %v11419_v36, %v14724_v45  ;;  %v18046_v63 = vrot.slane %v11402_v46, %v14724_v45  ;;  %v18049_v59 = vrot.slane %v11418_v10, %v14724_v45 }
0x11db   :  { %13975 = vmatprep.subr.bf16.mxu0 %v13974_v19 }
0x11dc   :  { %v11436_v37 = vcombine.low %v11417_v26, %v11433_v2  ;;  %v11435_v38 = vcombine.high %v18046_v63, %v18049_v59  ;;  %v11437_v34 = vcombine.high %v11417_v26, %v11433_v2  ;;  %v11434_v23 = vcombine.low %v18046_v63, %v18049_v59  ;;  %13977 = vmatpush3.bf16.msra.mxu0 %v13974_v19 }
0x11de   :  { %v18055_v1 = vpop.f32.mrb[102].mxu0  ;;  %11808 = vrot.lane.b32.xlu1 %v11436_v37, %s14330_s14  ;;  %11784 = vrot.lane.b32.xlu0 %v11435_v38, %s14331_s15 }
0x11df   :  { %v13679_v62 = vpop.f32.mrb[103].mxu0 }
0x11e2   :  { %11832 = vrot.lane.b32.xlu0 %v11437_v34, %s14332_s16 }
0x11e3   :  { %v18059_v33 = vpop.f32.mrb[104].mxu0 }
0x11e4   :  { %v13682_v29 = vpop.f32.mrb[105].mxu0 }
0x11e7   :  { %v18062_v3 = vpop.f32.mrb[106].mxu0 }
0x11e8   :  { %v11166_v47 = vcombine.low %v18041_v18, %v18062_v3  ;;  %v11167_v48 = vcombine.high %v18041_v18, %v18062_v3  ;;  %v13706_v20 = vpop.f32.mrb[107].mxu0 }
0x11f7   :  { %v10597_v6 = vpop.f32.mrb[100].mxu1 }
0x11f8   :  { %v11046_v35 = vcombine.low %v18004_v60, %v10597_v6  ;;  %v11047_v53 = vcombine.high %v18004_v60, %v10597_v6  ;;  %v13664_v51 = vpop.f32.mrb[101].mxu1 }
0x11fa   :  { %v11054_v9 = vrot.slane %v11046_v35, %v14709_v55  ;;  %v11061_v17 = vrot.slane %v11047_v53, %v14709_v55 }
0x11fb   :  { %v10602_v42 = vpop.f32.mrb[102].mxu1 }
0x11fc   :  { %v11062_v31 = vcombine.low %v11038_v49, %v11054_v9  ;;  %v11063_v61 = vcombine.high %v11038_v49, %v11054_v9  ;;  %v11078_v32 = vcombine.low %v11045_v11, %v11061_v17  ;;  %v11079_v15 = vcombine.high %v11045_v11, %v11061_v17  ;;  %v13667_v44 = vpop.f32.mrb[103].mxu1 }
0x11fd   :  { %v11114_v41 = vcombine.low %v18006_v40, %v10602_v42  ;;  %v11115_v60 = vcombine.high %v18006_v40, %v10602_v42 }
0x11fe   :  { %v11070_v16 = vrot.slane %v11062_v31, %v14724_v45  ;;  %v11077_v56 = vrot.slane %v11063_v61, %v14724_v45  ;;  %v11086_v8 = vrot.slane %v11078_v32, %v14724_v45  ;;  %v11093_v25 = vrot.slane %v11079_v15, %v14724_v45 }
0x11ff   :  { %v11122_v40 = vrot.slane %v11114_v41, %v14709_v55  ;;  %v11129_v21 = vrot.slane %v11115_v60, %v14709_v55  ;;  %v18090_v39 = vpop.f32.mrb[104].mxu1 }
0x1200   :  { %v11438_v57 = vcombine.low %v11070_v16, %v11077_v56  ;;  %v12792_v28 = vcombine.high %v11070_v16, %v11077_v56  ;;  %v11454_v52 = vcombine.low %v11086_v8, %v11093_v25  ;;  %v12793_v24 = vcombine.high %v11086_v8, %v11093_v25  ;;  %v13691_v13 = vpop.f32.mrb[105].mxu1 }
0x1201   :  { %v11130_v5 = vcombine.low %v11106_v12, %v11122_v40  ;;  %v11131_v30 = vcombine.high %v11106_v12, %v11122_v40  ;;  %v11146_v36 = vcombine.low %v11113_v7, %v11129_v21  ;;  %v11147_v46 = vcombine.high %v11113_v7, %v11129_v21 }
0x1202   :  { %v11445_v10 = vrot.slane %v11438_v57, %v14709_v55  ;;  %v11453_v50 = vrot.slane %v12792_v28, %v14709_v55  ;;  %v11461_v22 = vrot.slane %v11454_v52, %v14709_v55  ;;  %v11469_v26 = vrot.slane %v12793_v24, %v14709_v55 }
0x1203   :  { %v11138_v2 = vrot.slane %v11130_v5, %v14724_v45  ;;  %v11145_v37 = vrot.slane %v11131_v30, %v14724_v45  ;;  %v11154_v38 = vrot.slane %v11146_v36, %v14724_v45  ;;  %v11161_v34 = vrot.slane %v11147_v46, %v14724_v45  ;;  %v18100_v62 = vpop.f32.mrb[106].mxu1 }
0x1204   :  { %v13694_v29 = vpop.f32.mrb[107].mxu1  ;;  %v11470_v20 = vcombine.low %v11445_v10, %v11453_v50  ;;  %v11486_v6 = vcombine.low %v11461_v22, %v11469_v26  ;;  %v11471_v35 = vcombine.high %v11445_v10, %v11453_v50  ;;  %v11487_v53 = vcombine.high %v11461_v22, %v11469_v26 }
0x1205   :  { %v11506_v51 = vcombine.low %v11138_v2, %v11145_v37  ;;  %v12794_v49 = vcombine.high %v11138_v2, %v11145_v37  ;;  %v11522_v11 = vcombine.low %v11154_v38, %v11161_v34  ;;  %v12795_v9 = vcombine.high %v11154_v38, %v11161_v34 }
0x1206   :  { %v18103_v17 = vrot.slane %v11470_v20, %v14724_v45  ;;  %v18106_v42 = vrot.slane %v11486_v6, %v14724_v45  ;;  %v11485_v31 = vrot.slane %v11471_v35, %v14724_v45  ;;  %v11501_v61 = vrot.slane %v11487_v53, %v14724_v45 }
0x1207   :  { %v11513_v32 = vrot.slane %v11506_v51, %v14709_v55  ;;  %v11521_v15 = vrot.slane %v12794_v49, %v14709_v55  ;;  %v11529_v44 = vrot.slane %v11522_v11, %v14709_v55  ;;  %v11537_v12 = vrot.slane %v12795_v9, %v14709_v55  ;;  %v18114_v41 = vpop.f32.mrb[108].mxu1 }
0x1208   :  { %v13697_v60 = vpop.f32.mrb[109].mxu1  ;;  %v11503_v43 = vcombine.high %v18103_v17, %v18106_v42  ;;  %v11505_v0 = vcombine.high %v11485_v31, %v11501_v61  ;;  %v11504_v16 = vcombine.low %v11485_v31, %v11501_v61  ;;  %v11502_v56 = vcombine.low %v18103_v17, %v18106_v42 }
0x1209   :  { %v11538_v8 = vcombine.low %v11513_v32, %v11521_v15  ;;  %v11554_v25 = vcombine.low %v11529_v44, %v11537_v12  ;;  %v11539_v7 = vcombine.high %v11513_v32, %v11521_v15  ;;  %v11555_v40 = vcombine.high %v11529_v44, %v11537_v12 }
0x120a   :  { %11786 = vrot.lane.b32.xlu1 %v11503_v43, %s14331_s15  ;;  %11834 = vrot.lane.b32.xlu0 %v11505_v0, %s14332_s16  ;;  %v11174_v50 = vrot.slane %v11166_v47, %v14709_v55  ;;  %v11181_v22 = vrot.slane %v11167_v48, %v14709_v55 }
0x120b   :  { %v10948_v21 = vpop.f32.mrb[110].mxu1  ;;  %v18123_v19 = vrot.slane %v11538_v8, %v14724_v45  ;;  %v18126_v57 = vrot.slane %v11554_v25, %v14724_v45  ;;  %v11553_v28 = vrot.slane %v11539_v7, %v14724_v45  ;;  %v11569_v52 = vrot.slane %v11555_v40, %v14724_v45 }
0x120c   :  { %v11182_v24 = vcombine.low %v18090_v39, %v10948_v21  ;;  %v11183_v13 = vcombine.high %v18090_v39, %v10948_v21  ;;  %v13721_v5 = vpop.f32.mrb[111].mxu1  ;;  %v9960_v25 = vmul.f32 0.35355338, %v17745_v27  ;;  %v9961_v21 = vmul.f32 0.35355338, %v17753_v14 }
0x120d   :  { %v11571_v30 = vcombine.high %v18123_v19, %v18126_v57  ;;  %v11572_v36 = vcombine.low %v11553_v28, %v11569_v52  ;;  %v11573_v46 = vcombine.high %v11553_v28, %v11569_v52  ;;  %v11570_v10 = vcombine.low %v18123_v19, %v18126_v57 }
0x120e   :  { %v11190_v39 = vrot.slane %v11182_v24, %v14709_v55  ;;  %v11197_v26 = vrot.slane %v11183_v13, %v14709_v55  ;;  %11810 = vrot.lane.b32.xlu1 %v11504_v16, %s14330_s14  ;;  %v9984_v7 = vadd.f32 %v9960_v25, %v15592_v4  ;;  %v9985_v28 = vadd.f32 %v9961_v21, %v15592_v4  ;;  %v18623_v25 = vld [vmem:[#allocation17_spill] sm:$0xff] }
0x120f   :  { %11788 = vrot.lane.b32.xlu0 %v11571_v30, %s14331_s15 }
0x1210   :  { %v11198_v2 = vcombine.low %v11174_v50, %v11190_v39  ;;  %v11199_v37 = vcombine.high %v11174_v50, %v11190_v39  ;;  %v11214_v38 = vcombine.low %v11181_v22, %v11197_v26  ;;  %v11215_v34 = vcombine.high %v11181_v22, %v11197_v26 }
0x1211   :  { %v10052_v40 = vsel %vm3882_vm6, %v9984_v7, -inf  ;;  %v10055_v52 = vsel %vm3882_vm6, %v9985_v28, -inf }
0x1212   :  { %v11206_v29 = vrot.slane %v11198_v2, %v14724_v45  ;;  %v11213_v47 = vrot.slane %v11199_v37, %v14724_v45  ;;  %v11222_v20 = vrot.slane %v11214_v38, %v14724_v45  ;;  %v11229_v18 = vrot.slane %v11215_v34, %v14724_v45 }
0x1213   :  { %11812 = vrot.lane.b32.xlu0 %v11572_v36, %s14330_s14 }
0x1214   :  { %v11574_v3 = vcombine.low %v11206_v29, %v11213_v47  ;;  %v12796_v48 = vcombine.high %v11206_v29, %v11213_v47  ;;  %v11590_v6 = vcombine.low %v11222_v20, %v11229_v18  ;;  %v12797_v35 = vcombine.high %v11222_v20, %v11229_v18 }
0x1216   :  { %v11581_v53 = vrot.slane %v11574_v3, %v14709_v55  ;;  %v11589_v51 = vrot.slane %v12796_v48, %v14709_v55  ;;  %v11597_v49 = vrot.slane %v11590_v6, %v14709_v55  ;;  %v11605_v11 = vrot.slane %v12797_v35, %v14709_v55 }
0x1217   :  { %11836 = vrot.lane.b32.xlu0 %v11573_v46, %s14332_s16 }
0x1218   :  { %v11606_v9 = vcombine.low %v11581_v53, %v11589_v51  ;;  %v11622_v31 = vcombine.low %v11597_v49, %v11605_v11  ;;  %v11607_v61 = vcombine.high %v11581_v53, %v11589_v51  ;;  %v11623_v32 = vcombine.high %v11597_v49, %v11605_v11 }
0x121a   :  { %v11614_v15 = vrot.slane %v11606_v9, %v14724_v45  ;;  %v11630_v44 = vrot.slane %v11622_v31, %v14724_v45  ;;  %v11621_v12 = vrot.slane %v11607_v61, %v14724_v45  ;;  %v11637_v60 = vrot.slane %v11623_v32, %v14724_v45 }
0x121c   :  { %v11639_v43 = vcombine.high %v11614_v15, %v11630_v44  ;;  %v11640_v0 = vcombine.low %v11621_v12, %v11637_v60  ;;  %v11641_v16 = vcombine.high %v11621_v12, %v11637_v60  ;;  %v11638_v8 = vcombine.low %v11614_v15, %v11630_v44  ;;  %v18213_v15 = vld [vmem:[%s18482_s7 + $0x8] sm:$0xff]  ;;  %v18621_v44 = vld [vmem:[#allocation11_spill] sm:$0xff] }
0x121d   :  { %v18622_v12 = vsub.s32 3, %v18621_v44 }
0x121e   :  { %11790 = vrot.lane.b32.xlu0 %v11639_v43, %s14331_s15 }
0x121f   :  { %v18218_v60 = vrot.slane %v18213_v15, %v18622_v12 }
0x1222   :  { %11814 = vrot.lane.b32.xlu0 %v11640_v0, %s14330_s14 }
0x1232   :  { %10053 = vmax.xlane.f32.xlu1 %v10052_v40  ;;  %v18624_v40 = vld [vmem:[#allocation18_spill] sm:$0xff] }
0x1241   :  { %10056 = vmax.xlane.f32.xlu0 %v10055_v52 }
0x1243   :  { %11838 = vrot.lane.b32.xlu1 %v11641_v16, %s14332_s16 }
0x1250   :  { %v11785_v24 = vpop.permute.xlu0 %11784  ;;  %v11809_v13 = vpop.permute.xlu1 %11808 }
0x1251   :  { %v11850_v27 = vsel %vm3049_vm3, %v11434_v23, %v11785_v24 }
0x1252   :  { %v11856_v5 = vsel %vm5753_vm7, %v11850_v27, %v11809_v13 }
0x1254   :  { %v11833_v30 = vpop.permute.xlu0 %11832 }
0x1255   :  { %v11862_v36 = vsel %vm3882_vm6, %v11856_v5, %v11833_v30 }
0x1256   :  { %13736 = vmatprep.mubr.msk.f32.mxu0 %vm176_vm1, %v11862_v36 }
0x127c   :  { %v11787_v4 = vpop.permute.xlu1 %11786  ;;  %v11835_v14 = vpop.permute.xlu0 %11834 }
0x127d   :  { %v11851_v46 = vsel %vm3049_vm3, %v11502_v56, %v11787_v4 }
0x1280   :  { %v11811_v50 = vpop.permute.xlu1 %11810 }
0x1281   :  { %v11857_v22 = vsel %vm5753_vm7, %v11851_v46, %v11811_v50  ;;  %v11789_v63 = vpop.permute.xlu0 %11788 }
0x1282   :  { %v11863_v59 = vsel %vm3882_vm6, %v11857_v22, %v11835_v14  ;;  %v11852_v39 = vsel %vm3049_vm3, %v11570_v10, %v11789_v63  ;;  %v18625_v22 = vld [vmem:[#allocation19_spill] sm:$0xff] }
0x1283   :  { %13737 = vmatmul.mubr.msk.f32.vlgmr.msra.gmra.mrb[112].mxu0 %vm176_vm1, %v11863_v59  ;;  %v18626_v59 = vld [vmem:[#allocation20_spill] sm:$0xff] }
0x1285   :  { %v11813_v23 = vpop.permute.xlu0 %11812 }
0x1286   :  { %v11858_v26 = vsel %vm5753_vm7, %v11852_v39, %v11813_v23 }
0x1289   :  { %v11837_v2 = vpop.permute.xlu0 %11836 }
0x128a   :  { %v11864_v17 = vsel %vm3882_vm6, %v11858_v26, %v11837_v2 }
0x128b   :  { %13739 = vmatprep.mubr.msk.f32.mxu0 %vm176_vm1, %v11864_v17 }
0x128d   :  { %v18191_v42 = vpop.f32.mrb[108].mxu0 }
0x128e   :  { %v11234_v56 = vcombine.low %v18055_v1, %v18191_v42  ;;  %v11235_v37 = vcombine.high %v18055_v1, %v18191_v42  ;;  %v13709_v38 = vpop.f32.mrb[109].mxu0 }
0x1290   :  { %v11791_v29 = vpop.permute.xlu0 %11790 }
0x1291   :  { %v11853_v3 = vsel %vm3049_vm3, %v11638_v8, %v11791_v29 }
0x1294   :  { %v11815_v20 = vpop.permute.xlu0 %11814 }
0x1295   :  { %v11859_v6 = vsel %vm5753_vm7, %v11853_v3, %v11815_v20 }
0x12aa   :  { %v18198_v34 = vpop.f32.mrb[110].mxu0 }
0x12ab   :  { %v11302_v19 = vcombine.low %v18059_v33, %v18198_v34  ;;  %v11303_v57 = vcombine.high %v18059_v33, %v18198_v34  ;;  %v13712_v10 = vpop.f32.mrb[111].mxu0 }
0x12bf   :  { %v10054_v47 = vpop.xlane.xlu1 %10053 }
0x12c0   :  { %v10080_v18 = vsub.f32 %v9984_v7, %v10054_v47 }
0x12c2   :  { %v10126_v48 = vmul.f32 1.442695, %v10080_v18 }
0x12c3   :  { %v11839_v35 = vpop.permute.xlu1 %11838 }
0x12c4   :  { %14259 = vpow2.f32 %v10126_v48  ;;  %v11865_v53 = vsel %vm3882_vm6, %v11859_v6, %v11839_v35  ;;  %v12812_v6 = vld [vmem:[%s18480_s5 + $0x20] sm:$0xff]  ;;  %v12813_v35 = vld [vmem:[%s18480_s5 + $0x28] sm:$0xff] }
0x12c5   :  { %13740 = vmatmul.mubr.msk.f32.gmra.mrb[114].mxu0 %vm176_vm1, %v11865_v53  ;;  %v12814_v53 = vld [vmem:[%s18480_s5 + $0x30] sm:$0xff] }
0x12ce   :  { %v14260_v51 = vpop.eup %14259  ;;  %v10057_v49 = vpop.xlane.xlu0 %10056 }
0x12cf   :  { %v10081_v11 = vsub.f32 %v9985_v28, %v10057_v49  ;;  %v10196_v9 = vsel %vm3882_vm6, %v14260_v51, 0.0  ;;  %v12815_v49 = vld [vmem:[%s18480_s5 + $0x38] sm:$0xff] }
0x12d0   :  { %10197 = vadd.xlane.f32.xlu1 %v10196_v9 }
0x12d1   :  { %v10128_v31 = vmul.f32 1.442695, %v10081_v11  ;;  %v13982_v11 = vpack.c.bf16 %v12815_v49, %v12814_v53 }
0x12d3   :  { %14261 = vpow2.f32 %v10128_v31 }
0x12dd   :  { %v14262_v61 = vpop.eup %14261 }
0x12de   :  { %v10199_v32 = vsel %vm3882_vm6, %v14262_v61, 0.0 }
0x12df   :  { %10200 = vadd.xlane.f32.xlu0 %v10199_v32 }
0x1356   :  { %v13738_v43 = vpop.f32.mrb[112].mxu0 }
0x1357   :  { %v11967_v0 = vadd.f32 %v13738_v43, %v18218_v60  ;;  %v11961_v16 = vpop.f32.mrb[113].mxu0 }
0x1358   :  { %v11962_v8 = vadd.f32 %v11961_v16, %v18218_v60 }
0x1359   :  { %v11991_v7 = vadd.f32 %v11967_v0, %v18623_v25 }
0x135a   :  { %v18224_v21 = vadd.f32 %v11962_v8, %v18624_v40 }
0x135b   :  { %v11999_v28 = vsel %vm176_vm1, %v11991_v7, 0.0 }
0x135c   :  { %12000 = vadd.xlane.f32.xlu0 %v11999_v28  ;;  %v11996_v24 = vsel %vm176_vm1, %v18224_v21, 0.0 }
0x135d   :  { %v10198_v52 = vpop.xlane.xlu1 %10197 }
0x135e   :  { %14263 = vrcp.f32 %v10198_v52 }
0x1360   :  { %11997 = vadd.xlane.f32.xlu0 %v11996_v24  ;;  %v11242_v24 = vrot.slane %v11234_v56, %v14709_v55 }
0x1368   :  { %v14264_v13 = vpop.eup %14263 }
0x1369   :  { %v10247_v27 = vmul.f32 %v14264_v13, %v14260_v51  ;;  %v13978_v51 = vpack.c.bf16 %v12813_v35, %v12812_v6  ;;  %v11249_v13 = vrot.slane %v11235_v37, %v14709_v55 }
0x136b   :  { %13723 = vmatmul.mubr.msk.f32.gmra.mrb[112].mxu1 %vm3882_vm6, %v10247_v27  ;;  %13979 = vmatprep.subr.bf16.mxu1 %v13978_v51 }
0x136c   :  { %v10201_v5 = vpop.xlane.xlu0 %10200  ;;  %13725 = vmatprep.mubr.msk.f32.mxu1 %vm14324_vm2, %v18548_v54  ;;  %13981 = vmatpush3.bf16.msra.mxu1 %v13978_v51 }
0x136d   :  { %14265 = vrcp.f32 %v10201_v5  ;;  %13983 = vmatprep.subr.bf16.mxu1 %v13982_v11 }
0x1370   :  { %13985 = vmatpush3.bf16.msra.mxu1 %v13982_v11 }
0x1371   :  { %14002 = vmatprep.subr.bf16.mxu1 %v18549_v58 }
0x1377   :  { %v14266_v30 = vpop.eup %14265 }
0x1378   :  { %v10249_v36 = vmul.f32 %v14266_v30, %v14262_v61 }
0x137a   :  { %13726 = vmatmul.mubr.msk.f32.gmra.mrb[114].mxu1 %vm3882_vm6, %v10249_v36 }
0x1398   :  { %v13741_v4 = vpop.f32.mrb[114].mxu0 }
0x1399   :  { %v11971_v14 = vpop.f32.mrb[115].mxu0  ;;  %v11977_v46 = vadd.f32 %v13741_v4, %v18218_v60 }
0x139a   :  { %v11972_v50 = vadd.f32 %v11971_v14, %v18218_v60 }
0x139b   :  { %v18237_v23 = vadd.f32 %v11977_v46, %v18626_v59 }
0x139c   :  { %v11992_v63 = vadd.f32 %v11972_v50, %v18625_v22 }
0x139d   :  { %v12005_v26 = vsel %vm176_vm1, %v18237_v23, 0.0 }
0x139e   :  { %v12002_v39 = vsel %vm176_vm1, %v11992_v63, 0.0 }
0x139f   :  { %12003 = vadd.xlane.f32.xlu0 %v12002_v39 }
0x13a3   :  { %12006 = vadd.xlane.f32.xlu0 %v12005_v26 }
0x13e9   :  { %v12001_v2 = vpop.xlane.xlu0 %12000 }
0x13ea   :  { %v12015_v17 = vmul.f32 0.03125, %v12001_v2 }
0x13ec   :  { %v18242_v38 = vsub.f32 %v11991_v7, %v12015_v17 }
0x13ed   :  { %v11998_v10 = vpop.xlane.xlu0 %11997 }
0x13ee   :  { %v12014_v29 = vmul.f32 0.03125, %v11998_v10  ;;  %v12027_v47 = vmul.f32 %v18242_v38, %v18242_v38 }
0x13f0   :  { %v18247_v20 = vsub.f32 %v18224_v21, %v12014_v29  ;;  %v12035_v18 = vsel %vm176_vm1, %v12027_v47, 0.0 }
0x13f1   :  { %12036 = vadd.xlane.f32.xlu0 %v12035_v18 }
0x13f2   :  { %v12026_v3 = vmul.f32 %v18247_v20, %v18247_v20 }
0x13f4   :  { %v12032_v48 = vsel %vm176_vm1, %v12026_v3, 0.0 }
0x13f5   :  { %12033 = vadd.xlane.f32.xlu0 %v12032_v48 }
0x142c   :  { %v12004_v9 = vpop.xlane.xlu0 %12003 }
0x142d   :  { %v12016_v31 = vmul.f32 0.03125, %v12004_v9 }
0x142f   :  { %v18266_v61 = vsub.f32 %v11992_v63, %v12016_v31 }
0x1430   :  { %v12007_v32 = vpop.xlane.xlu0 %12006 }
0x1431   :  { %v12017_v12 = vmul.f32 0.03125, %v12007_v32  ;;  %v12028_v43 = vmul.f32 %v18266_v61, %v18266_v61  ;;  %v11310_v32 = vrot.slane %v11302_v19, %v14709_v55 }
0x1433   :  { %v18271_v0 = vsub.f32 %v18237_v23, %v12017_v12  ;;  %v12038_v16 = vsel %vm176_vm1, %v12028_v43, 0.0  ;;  %v11317_v12 = vrot.slane %v11303_v57, %v14709_v55 }
0x1434   :  { %12039 = vadd.xlane.f32.xlu0 %v12038_v16 }
0x1435   :  { %v12029_v8 = vmul.f32 %v18271_v0, %v18271_v0 }
0x1437   :  { %v12041_v25 = vsel %vm176_vm1, %v12029_v8, 0.0 }
0x1438   :  { %12042 = vadd.xlane.f32.xlu0 %v12041_v25 }
0x143e   :  { %v10953_v7 = vpop.f32.mrb[112].mxu1 }
0x143f   :  { %v11250_v40 = vcombine.low %v18100_v62, %v10953_v7  ;;  %v11251_v28 = vcombine.high %v18100_v62, %v10953_v7  ;;  %v13724_v52 = vpop.f32.mrb[113].mxu1 }
0x1441   :  { %v11258_v27 = vrot.slane %v11250_v40, %v14709_v55  ;;  %v11265_v5 = vrot.slane %v11251_v28, %v14709_v55 }
0x1443   :  { %v11266_v30 = vcombine.low %v11242_v24, %v11258_v27  ;;  %v11267_v36 = vcombine.high %v11242_v24, %v11258_v27  ;;  %v11282_v4 = vcombine.low %v11249_v13, %v11265_v5  ;;  %v11283_v14 = vcombine.high %v11249_v13, %v11265_v5 }
0x1445   :  { %v11274_v62 = vrot.slane %v11266_v30, %v14724_v45  ;;  %v11281_v46 = vrot.slane %v11267_v36, %v14724_v45  ;;  %v11290_v50 = vrot.slane %v11282_v4, %v14724_v45  ;;  %v11297_v56 = vrot.slane %v11283_v14, %v14724_v45 }
0x1447   :  { %v11642_v22 = vcombine.low %v11274_v62, %v11281_v46  ;;  %v12798_v63 = vcombine.high %v11274_v62, %v11281_v46  ;;  %v11658_v1 = vcombine.low %v11290_v50, %v11297_v56  ;;  %v12799_v42 = vcombine.high %v11290_v50, %v11297_v56 }
0x1449   :  { %v11649_v37 = vrot.slane %v11642_v22, %v14709_v55  ;;  %v11657_v59 = vrot.slane %v12798_v63, %v14709_v55  ;;  %v11665_v39 = vrot.slane %v11658_v1, %v14709_v55  ;;  %v11673_v26 = vrot.slane %v12799_v42, %v14709_v55 }
0x144b   :  { %v11674_v2 = vcombine.low %v11649_v37, %v11657_v59  ;;  %v11690_v17 = vcombine.low %v11665_v39, %v11673_v26  ;;  %v11675_v10 = vcombine.high %v11649_v37, %v11657_v59  ;;  %v11691_v29 = vcombine.high %v11665_v39, %v11673_v26 }
0x144d   :  { %v10958_v47 = vpop.f32.mrb[114].mxu1  ;;  %v18298_v18 = vrot.slane %v11674_v2, %v14724_v45  ;;  %v18301_v3 = vrot.slane %v11690_v17, %v14724_v45  ;;  %v11689_v48 = vrot.slane %v11675_v10, %v14724_v45  ;;  %v11705_v6 = vrot.slane %v11691_v29, %v14724_v45 }
0x144e   :  { %v11318_v35 = vcombine.low %v18114_v41, %v10958_v47  ;;  %v11319_v53 = vcombine.high %v18114_v41, %v10958_v47  ;;  %v13727_v51 = vpop.f32.mrb[115].mxu1  ;;  %v18627_v10 = vsub.s32 4, %v18621_v44 }
0x144f   :  { %v11707_v49 = vcombine.high %v18298_v18, %v18301_v3  ;;  %v11708_v11 = vcombine.low %v11689_v48, %v11705_v6  ;;  %v11709_v9 = vcombine.high %v11689_v48, %v11705_v6  ;;  %v11706_v31 = vcombine.low %v18298_v18, %v18301_v3  ;;  %v12822_v3 = vld [vmem:[%s18481_s6 + $0x40] sm:$0xff] }
0x1450   :  { %v11326_v41 = vrot.slane %v11318_v35, %v14709_v55  ;;  %v11333_v43 = vrot.slane %v11319_v53, %v14709_v55  ;;  %v18342_v29 = vrot.slane %v18213_v15, %v18627_v10  ;;  %v18628_v35 = vsub.s32 5, %v18621_v44 }
0x1451   :  { %11792 = vrot.lane.b32.xlu1 %v11707_v49, %s14331_s15 }
0x1452   :  { %v11334_v16 = vcombine.low %v11310_v32, %v11326_v41  ;;  %v11335_v8 = vcombine.high %v11310_v32, %v11326_v41  ;;  %v11350_v25 = vcombine.low %v11317_v12, %v11333_v43  ;;  %v11351_v7 = vcombine.high %v11317_v12, %v11333_v43 }
0x1453   :  { %v18349_v53 = vrot.slane %v18213_v15, %v18628_v35 }
0x1454   :  { %v11342_v40 = vrot.slane %v11334_v16, %v14724_v45  ;;  %v11349_v28 = vrot.slane %v11335_v8, %v14724_v45  ;;  %v11358_v19 = vrot.slane %v11350_v25, %v14724_v45  ;;  %v11365_v52 = vrot.slane %v11351_v7, %v14724_v45 }
0x1455   :  { %11816 = vrot.lane.b32.xlu1 %v11708_v11, %s14330_s14 }
0x1456   :  { %v11710_v33 = vcombine.low %v11342_v40, %v11349_v28  ;;  %v12800_v34 = vcombine.high %v11342_v40, %v11349_v28  ;;  %v11726_v57 = vcombine.low %v11358_v19, %v11365_v52  ;;  %v12801_v24 = vcombine.high %v11358_v19, %v11365_v52 }
0x1458   :  { %v11717_v13 = vrot.slane %v11710_v33, %v14709_v55  ;;  %v11725_v27 = vrot.slane %v12800_v34, %v14709_v55  ;;  %v11733_v5 = vrot.slane %v11726_v57, %v14709_v55  ;;  %v11741_v30 = vrot.slane %v12801_v24, %v14709_v55 }
0x145a   :  { %v11743_v36 = vcombine.high %v11717_v13, %v11725_v27  ;;  %v11759_v4 = vcombine.high %v11733_v5, %v11741_v30  ;;  %v11742_v14 = vcombine.low %v11717_v13, %v11725_v27  ;;  %v11758_v62 = vcombine.low %v11733_v5, %v11741_v30 }
0x145c   :  { %v11757_v46 = vrot.slane %v11743_v36, %v14724_v45  ;;  %v11773_v50 = vrot.slane %v11759_v4, %v14724_v45  ;;  %v11750_v56 = vrot.slane %v11742_v14, %v14724_v45  ;;  %v11766_v22 = vrot.slane %v11758_v62, %v14724_v45  ;;  %v12824_v4 = vld [vmem:[%s18481_s6 + $0x50] sm:$0xff]  ;;  %v12825_v62 = vld [vmem:[%s18481_s6 + $0x58] sm:$0xff] }
0x145e   :  { %v11776_v63 = vcombine.low %v11757_v46, %v11773_v50  ;;  %v11775_v1 = vcombine.high %v11750_v56, %v11766_v22  ;;  %v11777_v42 = vcombine.high %v11757_v46, %v11773_v50  ;;  %v11774_v37 = vcombine.low %v11750_v56, %v11766_v22  ;;  %v12826_v50 = vld [vmem:[%s18481_s6 + $0x60] sm:$0xff]  ;;  %v12827_v56 = vld [vmem:[%s18481_s6 + $0x68] sm:$0xff] }
0x145f   :  { %v13990_v46 = vpack.c.bf16 %v12825_v62, %v12824_v4  ;;  %v13994_v22 = vpack.c.bf16 %v12827_v56, %v12826_v50 }
0x1460   :  { %11818 = vrot.lane.b32.xlu1 %v11776_v63, %s14330_s14  ;;  %11794 = vrot.lane.b32.xlu0 %v11775_v1, %s14331_s15  ;;  %v12828_v63 = vld [vmem:[%s18481_s6 + $0x70] sm:$0xff]  ;;  %v12829_v1 = vld [vmem:[%s18481_s6 + $0x78] sm:$0xff] }
0x1464   :  { %11842 = vrot.lane.b32.xlu1 %v11777_v42, %s14332_s16  ;;  %11840 = vrot.lane.b32.xlu0 %v11709_v9, %s14332_s16  ;;  %v13998_v42 = vpack.c.bf16 %v12829_v1, %v12828_v63  ;;  %v18632_v1 = vsub.s32 7, %v18621_v44 }
0x147e   :  { %v12037_v55 = vpop.xlane.xlu0 %12036 }
0x147f   :  { %v12051_v59 = vmul.f32 0.03125, %v12037_v55 }
0x1481   :  { %v12057_v39 = vadd.f32 1e-12, %v12051_v59 }
0x1482   :  { %v12034_v26 = vpop.xlane.xlu0 %12033 }
0x1483   :  { %14267 = vrsqrt.f32 %v12057_v39  ;;  %v12050_v2 = vmul.f32 0.03125, %v12034_v26 }
0x1485   :  { %v12056_v17 = vadd.f32 1e-12, %v12050_v2 }
0x1487   :  { %14269 = vrsqrt.f32 %v12056_v17 }
0x148d   :  { %v14268_v45 = vpop.eup %14267 }
0x148e   :  { %v12069_v47 = vmul.f32 %v14268_v45, %v18242_v38 }
0x1490   :  { %v12079_v51 = vmul.f32 %v18342_v29, %v12069_v47 }
0x1491   :  { %v14270_v48 = vpop.eup %14269 }
0x1492   :  { %v12068_v6 = vmul.f32 %v14270_v48, %v18247_v20  ;;  %v12089_v9 = vadd.f32 %v18349_v53, %v12079_v51 }
0x1494   :  { %v12078_v49 = vmul.f32 %v18342_v29, %v12068_v6 }
0x1496   :  { %v12088_v11 = vadd.f32 %v18349_v53, %v12078_v49 }
0x1498   :  { %13753 = vmatprep.mubr.msk.f32.mxu1 %vm176_vm1, %v12088_v11 }
0x1499   :  { %13754 = vmatmul.mubr.msk.f32.vlgmr.msra.gmra.mrb[116].mxu1 %vm176_vm1, %v12089_v9 }
0x14c1   :  { %v12040_v38 = vpop.xlane.xlu0 %12039 }
0x14c2   :  { %v12052_v32 = vmul.f32 0.03125, %v12040_v38 }
0x14c3   :  { %v11793_v43 = vpop.permute.xlu1 %11792 }
0x14c4   :  { %v12058_v20 = vadd.f32 1e-12, %v12052_v32  ;;  %v11854_v34 = vsel %vm3049_vm3, %v11706_v31, %v11793_v43  ;;  %v12823_v31 = vld [vmem:[%s18481_s6 + $0x48] sm:$0xff] }
0x14c5   :  { %v12043_v12 = vpop.xlane.xlu0 %12042  ;;  %v13986_v14 = vpack.c.bf16 %v12823_v31, %v12822_v3 }
0x14c6   :  { %14271 = vrsqrt.f32 %v12058_v20  ;;  %v12053_v41 = vmul.f32 0.03125, %v12043_v12 }
0x14c7   :  { %v11817_v8 = vpop.permute.xlu1 %11816  ;;  %13987 = vmatprep.subr.bf16.mxu0 %v13986_v14 }
0x14c8   :  { %v12059_v16 = vadd.f32 1e-12, %v12053_v41  ;;  %v11860_v13 = vsel %vm5753_vm7, %v11854_v34, %v11817_v8  ;;  %13989 = vmatpush3.bf16.msra.mxu0 %v13986_v14  ;;  %v18630_v41 = vld [vmem:[#allocation22_spill] sm:$0xff] }
0x14c9   :  { %13991 = vmatprep.subr.bf16.mxu0 %v13990_v46 }
0x14ca   :  { %14273 = vrsqrt.f32 %v12059_v16 }
0x14cc   :  { %13993 = vmatpush3.bf16.msra.mxu0 %v13990_v46 }
0x14cd   :  { %13995 = vmatprep.subr.bf16.mxu0 %v13994_v22 }
0x14d0   :  { %v14272_v25 = vpop.eup %14271  ;;  %13997 = vmatpush3.bf16.msra.mxu0 %v13994_v22 }
0x14d1   :  { %v12070_v7 = vmul.f32 %v14272_v25, %v18266_v61  ;;  %13999 = vmatprep.subr.bf16.mxu0 %v13998_v42  ;;  %v18631_v25 = vld [vmem:[#allocation21_spill] sm:$0xff] }
0x14d2   :  { %v11819_v40 = vpop.permute.xlu1 %11818  ;;  %v11795_v28 = vpop.permute.xlu0 %11794 }
0x14d3   :  { %v11855_v19 = vsel %vm3049_vm3, %v11774_v37, %v11795_v28  ;;  %v12080_v52 = vmul.f32 %v18342_v29, %v12070_v7  ;;  %v18629_v37 = vsub.s32 6, %v18621_v44 }
0x14d4   :  { %v14274_v33 = vpop.eup %14273  ;;  %v11861_v61 = vsel %vm5753_vm7, %v11855_v19, %v11819_v40  ;;  %14001 = vmatpush3.bf16.msra.mxu0 %v13998_v42  ;;  %v12369_v42 = vrot.slane %v18213_v15, %v18632_v1 }
0x14d5   :  { %v12090_v57 = vadd.f32 %v18349_v53, %v12080_v52  ;;  %v12071_v24 = vmul.f32 %v14274_v33, %v18271_v0  ;;  %v18403_v55 = vrot.slane %v18213_v15, %v18629_v37 }
0x14d6   :  { %v11843_v27 = vpop.permute.xlu1 %11842  ;;  %v11841_v5 = vpop.permute.xlu0 %11840 }
0x14d7   :  { %v11867_v30 = vsel %vm3882_vm6, %v11861_v61, %v11843_v27  ;;  %v11866_v36 = vsel %vm3882_vm6, %v11860_v13, %v11841_v5  ;;  %13756 = vmatprep.mubr.msk.f32.mxu1 %vm176_vm1, %v12090_v57  ;;  %v12081_v18 = vmul.f32 %v18342_v29, %v12071_v24 }
0x14d8   :  { %13742 = vmatprep.mubr.msk.f32.mxu0 %vm176_vm1, %v11866_v36 }
0x14d9   :  { %13743 = vmatmul.mubr.msk.f32.gmra.mrb[116].mxu0 %vm176_vm1, %v11867_v30  ;;  %v12091_v0 = vadd.f32 %v18349_v53, %v12081_v18 }
0x14db   :  { %13757 = vmatmul.mubr.msk.f32.gmra.mrb[118].mxu1 %vm176_vm1, %v12091_v0 }
0x156c   :  { %v13755_v59 = vpop.f32.mrb[116].mxu1 }
0x156d   :  { %v12193_v39 = vadd.f32 %v13755_v59, %v18403_v55  ;;  %v12187_v26 = vpop.f32.mrb[117].mxu1 }
0x156e   :  { %v12188_v2 = vadd.f32 %v12187_v26, %v18403_v55 }
0x156f   :  { %v12223_v17 = vmul.f32 0.70710677, %v12193_v39  ;;  %v12217_v51 = vmul.f32 0.5, %v12193_v39 }
0x1570   :  { %v12222_v45 = vmul.f32 0.70710677, %v12188_v2  ;;  %v12216_v6 = vmul.f32 0.5, %v12188_v2 }
0x1571   :  { %14275 = verf.f32 %v12223_v17 }
0x1572   :  { %14277 = verf.f32 %v12222_v45 }
0x157b   :  { %v14276_v10 = vpop.eup %14275 }
0x157c   :  { %v14278_v47 = vpop.eup %14277  ;;  %v12235_v48 = vadd.f32 1.0, %v14276_v10 }
0x157d   :  { %v12234_v35 = vadd.f32 1.0, %v14278_v47 }
0x157e   :  { %v12241_v11 = vmul.f32 %v12235_v48, %v12217_v51 }
0x157f   :  { %v12240_v49 = vmul.f32 %v12234_v35, %v12216_v6 }
0x1581   :  { %13778 = vmatprep.mubr.msk.f32.mxu0 %vm6150_vm8, %v12240_v49 }
0x1582   :  { %13779 = vmatmul.mubr.msk.f32.vlgmr.msra.gmra.mrb[118].mxu0 %vm6150_vm8, %v12241_v11 }
0x15ac   :  { %v13744_v9 = vpop.f32.mrb[116].mxu0 }
0x15ad   :  { %v11987_v38 = vadd.f32 %v13744_v9, %v18218_v60  ;;  %v11981_v32 = vpop.f32.mrb[117].mxu0 }
0x15ae   :  { %v11982_v20 = vadd.f32 %v11981_v32, %v18218_v60  ;;  %v13758_v12 = vpop.f32.mrb[118].mxu1 }
0x15af   :  { %v11995_v43 = vadd.f32 %v11987_v38, %v18630_v41  ;;  %v12203_v16 = vadd.f32 %v13758_v12, %v18403_v55  ;;  %v12197_v8 = vpop.f32.mrb[119].mxu1 }
0x15b0   :  { %v11994_v7 = vadd.f32 %v11982_v20, %v18631_v25  ;;  %v12198_v40 = vadd.f32 %v12197_v8, %v18403_v55 }
0x15b1   :  { %v12225_v28 = vmul.f32 0.70710677, %v12203_v16  ;;  %v12011_v19 = vsel %vm176_vm1, %v11995_v43, 0.0  ;;  %v12219_v27 = vmul.f32 0.5, %v12203_v16 }
0x15b2   :  { %v12224_v52 = vmul.f32 0.70710677, %v12198_v40  ;;  %12012 = vadd.xlane.f32.xlu1 %v12011_v19  ;;  %v12008_v33 = vsel %vm176_vm1, %v11994_v7, 0.0  ;;  %v12218_v24 = vmul.f32 0.5, %v12198_v40  ;;  %v12424_v19 = vld [vmem:[%s18484_s9 + $0x18] sm:$0xff] }
0x15b3   :  { %14279 = verf.f32 %v12225_v28  ;;  %12009 = vadd.xlane.f32.xlu0 %v12008_v33 }
0x15b4   :  { %14281 = verf.f32 %v12224_v52 }
0x15bd   :  { %v14280_v60 = vpop.eup %14279 }
0x15be   :  { %v14282_v34 = vpop.eup %14281  ;;  %v12237_v57 = vadd.f32 1.0, %v14280_v60 }
0x15bf   :  { %v12236_v13 = vadd.f32 1.0, %v14282_v34 }
0x15c0   :  { %v12243_v5 = vmul.f32 %v12237_v57, %v12219_v27 }
0x15c1   :  { %v12242_v61 = vmul.f32 %v12236_v13, %v12218_v24 }
0x15c3   :  { %13781 = vmatprep.mubr.msk.f32.mxu0 %vm6150_vm8, %v12242_v61 }
0x15c4   :  { %13782 = vmatmul.mubr.msk.f32.gmra.mrb[120].mxu0 %vm6150_vm8, %v12243_v5 }
0x163f   :  { %v12013_v30 = vpop.xlane.xlu1 %12012 }
0x1640   :  { %v12019_v36 = vmul.f32 0.03125, %v12013_v30  ;;  %v12010_v18 = vpop.xlane.xlu0 %12009 }
0x1641   :  { %v12018_v0 = vmul.f32 0.03125, %v12010_v18 }
0x1642   :  { %v12025_v3 = vsub.f32 %v11995_v43, %v12019_v36 }
0x1643   :  { %v12024_v31 = vsub.f32 %v11994_v7, %v12018_v0 }
0x1644   :  { %v12031_v62 = vmul.f32 %v12025_v3, %v12025_v3 }
0x1645   :  { %v12030_v4 = vmul.f32 %v12024_v31, %v12024_v31 }
0x1646   :  { %v12047_v46 = vsel %vm176_vm1, %v12031_v62, 0.0  ;;  %v18633_v62 = vld [vmem:[#allocation12_spill] sm:$0xff] }
0x1647   :  { %v12044_v14 = vsel %vm176_vm1, %v12030_v4, 0.0 }
0x1648   :  { %12045 = vadd.xlane.f32.xlu0 %v12044_v14 }
0x164c   :  { %12048 = vadd.xlane.f32.xlu0 %v12047_v46 }
0x1655   :  { %v13780_v50 = vpop.f32.mrb[118].mxu0 }
0x1656   :  { %v12339_v56 = vpop.f32.mrb[119].mxu0 }
0x1657   :  { %v12364_v63 = vadd.f32 %v12339_v56, %v18224_v21 }
0x1659   :  { %v12370_v26 = vadd.f32 %v12369_v42, %v12364_v63 }
0x1697   :  { %v13783_v22 = vpop.f32.mrb[120].mxu0 }
0x1698   :  { %v12365_v37 = vadd.f32 %v13783_v22, %v18237_v23  ;;  %v12348_v59 = vpop.f32.mrb[121].mxu0 }
0x169a   :  { %v12371_v39 = vadd.f32 %v12369_v42, %v12365_v37  ;;  %v18634_v42 = vld [vmem:[#allocation13_spill] sm:$0xff] }
0x169c   :  { %v12375_v2 = vrot.slane %v12371_v39, 7 }
0x169e   :  { %v12377_v17 = vsel %vm12376_vm9, %v12375_v2, %v12370_v26 }
0x169f   :  { %v12380_v45 = vsel %vm12379_vm10, %v12377_v17, 0.0 }
0x16a0   :  { %12381 = vadd.xlane.f32.xlu1 %v12380_v45 }
0x16d5   :  { %v12046_v10 = vpop.xlane.xlu0 %12045 }
0x16d6   :  { %v12054_v47 = vmul.f32 0.03125, %v12046_v10  ;;  %v18635_v10 = vld [vmem:[#allocation14_spill] sm:$0xff] }
0x16d8   :  { %v12060_v21 = vadd.f32 1e-12, %v12054_v47 }
0x16d9   :  { %v12049_v48 = vpop.xlane.xlu0 %12048 }
0x16da   :  { %14283 = vrsqrt.f32 %v12060_v21  ;;  %v12055_v44 = vmul.f32 0.03125, %v12049_v48 }
0x16dc   :  { %v12061_v15 = vadd.f32 1e-12, %v12055_v44 }
0x16de   :  { %14285 = vrsqrt.f32 %v12061_v15 }
0x16e4   :  { %v14284_v23 = vpop.eup %14283 }
0x16e5   :  { %v12072_v6 = vmul.f32 %v14284_v23, %v12024_v31  ;;  %v12372_v31 = vld [vmem:[%s18483_s8] sm:$0x7]  ;;  %s14333_s8 = smov [#allocation2]  }
0x16e6   :  { %v12412_v46 = vrot.slane %v12372_v31, %v18633_v62  ;;  %v12418_v37 = vrot.slane %v12372_v31, %v18634_v42  ;;  %v12428_v47 = vrot.slane %v12372_v31, %v18635_v10  ;;  %s12513_s2 = sshll.u32 %s14333_s8, 4  ;;  %s12514_s2 = int_to_ptr.vmem [resolvable:$true] %s12513_s2 }
0x16e7   :  { %v12082_v35 = vmul.f32 %v18342_v29, %v12072_v6  ;;  %s14295_s22 = scalar_lea.vmem %s12514_s2, 32  ;;  %p14300_p1 = scmp.lt.s32.totalorder %s12514_s2, %s12514_s2 }
0x16e8   :  { %v14286_v51 = vpop.eup %14285  ;;  %p14296_p0 = scmp.ne.s32.totalorder %s12514_s2, %s14295_s22  ;;  %p14301_p2 = scmp.lt.s32.totalorder %s14295_s22, %s14295_s22 }
0x16e9   :  { %v12092_v49 = vadd.f32 %v18349_v53, %v12082_v35  ;;  %v12073_v11 = vmul.f32 %v14286_v51, %v12025_v3 }
0x16ea   :  { %p14302_p3 = por %p14301_p2, %p14300_p1 }
0x16eb   :  { %13759 = vmatprep.mubr.msk.f32.mxu1 %vm176_vm1, %v12092_v49  ;;  %v12083_v9 = vmul.f32 %v18342_v29, %v12073_v11  ;;  %v12421_v29 = vld [vmem:[%s18484_s9] sm:$0xff] }
0x16ec   :  { %p14303_p4 = pnand %p14302_p3, %p14296_p0 }
0x16ed   :  { %v12093_v38 = vadd.f32 %v18349_v53, %v12083_v9  ;;  %v12423_v53 = vld [vmem:[%s18484_s9 + $0x10] sm:$0xff] }
0x16ee   :  { %v14006_v52 = vpack.c.bf16 %v12424_v19, %v12423_v53 }
0x16ef   :  { %13760 = vmatmul.mubr.msk.f32.gmra.mrb[120].mxu1 %vm176_vm1, %v12093_v38 }
0x16f0   :  { %13795 = vmatprep.mubr.msk.f32.mxu1 %vm14324_vm2, %v18548_v54  ;;  %v12422_v54 = vld [vmem:[%s18484_s9 + $0x8] sm:$0xff] }
0x16f1   :  { %v14003_v28 = vpack.c.bf16 %v12422_v54, %v12421_v29 }
0x16f3   :  { %14004 = vmatpush3.bf16.msra.mxu1 %v14003_v28 }
0x16f4   :  { %14005 = vmatprep.subr.bf16.mxu1 %v18549_v58 }
0x16f7   :  { %14007 = vmatpush3.bf16.msra.mxu1 %v14006_v52 }
0x172d   :  { %v12382_v32 = vpop.xlane.xlu1 %12381 }
0x172e   :  { %v12383_v20 = vmul.f32 0.03125, %v12382_v32 }
0x1730   :  { %v12385_v12 = vrot.slane %v12383_v20, 1  ;;  %v12388_v41 = vsub.f32 %v12370_v26, %v12383_v20 }
0x1732   :  { %v12389_v43 = vsub.f32 %v12371_v39, %v12385_v12  ;;  %v12390_v8 = vmul.f32 %v12388_v41, %v12388_v41 }
0x1734   :  { %v12391_v16 = vmul.f32 %v12389_v43, %v12389_v43 }
0x1736   :  { %v12394_v25 = vrot.slane %v12391_v16, 7 }
0x1738   :  { %v12395_v7 = vsel %vm12376_vm9, %v12394_v25, %v12390_v8 }
0x1739   :  { %v12397_v40 = vsel %vm12379_vm10, %v12395_v7, 0.0 }
0x173a   :  { %12398 = vadd.xlane.f32.xlu0 %v12397_v40 }
0x17c2   :  { %v13761_v33 = vpop.f32.mrb[120].mxu1 }
0x17c3   :  { %v12213_v60 = vadd.f32 %v13761_v33, %v18403_v55  ;;  %v12207_v34 = vpop.f32.mrb[121].mxu1 }
0x17c4   :  { %v12208_v57 = vadd.f32 %v12207_v34, %v18403_v55 }
0x17c5   :  { %v12227_v24 = vmul.f32 0.70710677, %v12213_v60  ;;  %v12221_v3 = vmul.f32 0.5, %v12213_v60 }
0x17c6   :  { %v12226_v13 = vmul.f32 0.70710677, %v12208_v57  ;;  %v12220_v0 = vmul.f32 0.5, %v12208_v57 }
0x17c7   :  { %14287 = verf.f32 %v12227_v24  ;;  %v12399_v27 = vpop.xlane.xlu0 %12398 }
0x17c8   :  { %14289 = verf.f32 %v12226_v13  ;;  %v12400_v61 = vmul.f32 0.03125, %v12399_v27 }
0x17ca   :  { %v12401_v5 = vadd.f32 1e-12, %v12400_v61 }
0x17cc   :  { %14291 = vrsqrt.f32 %v12401_v5 }
0x17d1   :  { %v14288_v30 = vpop.eup %14287 }
0x17d2   :  { %v14290_v36 = vpop.eup %14289  ;;  %v12239_v18 = vadd.f32 1.0, %v14288_v30 }
0x17d3   :  { %v12238_v58 = vadd.f32 1.0, %v14290_v36 }
0x17d4   :  { %v12245_v14 = vmul.f32 %v12239_v18, %v12221_v3 }
0x17d5   :  { %v12244_v4 = vmul.f32 %v12238_v58, %v12220_v0 }
0x17d6   :  { %v14292_v55 = vpop.eup %14291 }
0x17d7   :  { %v12404_v50 = vrot.slane %v14292_v55, 1  ;;  %v12407_v56 = vmul.f32 %v14292_v55, %v12388_v41  ;;  %13784 = vmatprep.mubr.msk.f32.mxu0 %vm6150_vm8, %v12244_v4 }
0x17d8   :  { %13785 = vmatmul.mubr.msk.f32.gmra.mrb[122].mxu0 %vm6150_vm8, %v12245_v14 }
0x17d9   :  { %v12408_v22 = vmul.f32 %v12404_v50, %v12389_v43  ;;  %v12413_v63 = vmul.f32 %v12412_v46, %v12407_v56 }
0x17db   :  { %v12414_v1 = vmul.f32 %v12412_v46, %v12408_v22  ;;  %v12419_v39 = vadd.f32 %v12418_v37, %v12413_v63 }
0x17dd   :  { %v12420_v59 = vadd.f32 %v12418_v37, %v12414_v1 }
0x17df   :  { %v12431_v26 = vrot.slane %v12420_v59, 7 }
0x17e1   :  { %v12432_v2 = vsel %vm12376_vm9, %v12431_v26, %v12419_v39 }
0x17e2   :  { %13796 = vmatmul.mubr.msk.f32.vlgmr.msra.gmra.mrb[122].mxu1 %vm176_vm1, %v12432_v2 }
0x18ab   :  { %v13786_v17 = vpop.f32.mrb[122].mxu0 }
0x18ac   :  { %v12357_v45 = vpop.f32.mrb[123].mxu0 }
0x18b5   :  { %v12501_v21 = vpop.f32.mrb[122].mxu1 }
0x18b6   :  { %v12502_v48 = vadd.f32 %v12501_v21, %v12428_v47  ;;  %v13797_v44 = vpop.f32.mrb[123].mxu1 }
0x18b8   :  { %12506 = vst.msk [vmem:[#allocation2] sm:$0x3] %vm12505_vm11, %v12502_v48 }
0x18b9   :  { %14306 = shalt.err (!%p14303_p4)
}
0x18ba   :  { %s14307_s14 = scalar_lea.hbm %s18485_s10, 32 }
0x18bb   :  { %p14308_p5 = scmp.ne.s32.totalorder %s18485_s10, %s14307_s14  ;;  %p14311_p6 = scmp.lt.u32.totalorder %s14307_s14, %s18485_s10 }
0x18bd   :  { %p14313_p7 = pnand %p14311_p6, %p14308_p5 }
0x18bf   :  { %14316 = shalt.err (!%p14313_p7)
}
0x18c0   :  { %12516 = dma.vmem_to_hbm [thread:$0]  %s12514_s2, 32, %s18485_s10, [#allocation3]  }
0x18c1   :  { %14317 = dma.done.wait [#allocation3], 32  }
0x18c2   :  { %14318 = vsyncadd [#allocation3], 4294967264 }
0x18c3   :  { %12520 = vsyncpa [#allocation3], 1 }

</bundles_post_ra>
